<compile_context>
chip_gen: v7x
topology: tpu7x:2x2x1
jax: 0.10.0
libtpu: 0.0.40
codegen_flags: <defaults>
</compile_context>

<pallas_src>
import functools

import jax
import jax.numpy as jnp
from jax import lax
from jax.experimental import pallas as pl
from jax.experimental.pallas import tpu as pltpu

LANE = 128                      # TPU lane width: pad channel dims to this
MATMUL_DTYPE = jnp.bfloat16     # MXU input / activation storage dtype
BLOCK_M = 512                   # row tile for the conv matmuls


def _round_up(x, m):
    return (x + m - 1) // m * m


# ----------------------------------------------------------------------------
# Pallas kernel 1: out = relu(x @ w + shift)     (BN scale already inside w)
# ----------------------------------------------------------------------------
def _matmul_bias_kernel(x_ref, w_ref, shift_ref, o_ref, *, relu):
    acc = jnp.dot(x_ref[...], w_ref[...], preferred_element_type=jnp.float32)
    y = acc + shift_ref[...]              # f32 epilogue (v5e has no bf16 VPU)
    if relu:
        y = jnp.maximum(y, 0.0)
    o_ref[...] = y.astype(o_ref.dtype)    # lane-dense (N % 128 == 0) store


def matmul_bias(x, w, shift, *, relu, out_dtype, block_m=BLOCK_M):
    """Row-tiled fused matmul + bias (+ReLU).  Requires K % 128 == N % 128 == 0."""
    M, K = x.shape
    K2, N = w.shape
    assert K == K2 and K % LANE == 0 and N % LANE == 0
    tm = block_m if M >= block_m else _round_up(M, 8)
    Mp = _round_up(M, tm)
    if Mp != M:                           # pad rows so every grid block is full
        x = jnp.pad(x, ((0, Mp - M), (0, 0)))
    kernel = functools.partial(_matmul_bias_kernel, relu=relu)
    out = pl.pallas_call(
        kernel,
        out_shape=jax.ShapeDtypeStruct((Mp, N), out_dtype),
        grid=(Mp // tm,),
        in_specs=[
            pl.BlockSpec((tm, K), lambda i: (i, 0)),
            pl.BlockSpec((K, N), lambda i: (0, 0)),
            pl.BlockSpec((1, N), lambda i: (0, 0)),
        ],
        out_specs=pl.BlockSpec((tm, N), lambda i: (i, 0)),
        compiler_params=pltpu.CompilerParams(
            dimension_semantics=("parallel",)),
    )(x.astype(MATMUL_DTYPE), w.astype(MATMUL_DTYPE),
      shift.reshape(1, N).astype(jnp.float32))
    return out[:M] if Mp != M else out


# ----------------------------------------------------------------------------
# Pallas kernel 2: fused conv3 (as matmul) + BN/ReLU + Linear head.
# One grid step per batch element.  The head weight is pre-permuted to
# [n, s=ho*Wo+wo, c] so PyTorch's NCHW flatten needs no runtime transpose.
# ----------------------------------------------------------------------------
def _conv3_head_kernel(p_ref, w_ref, shift_ref, wh_ref, bh_ref, o_ref):
    y = jnp.dot(p_ref[0], w_ref[...], preferred_element_type=jnp.float32)
    y = jnp.maximum(y + shift_ref[...], 0.0)                # (S, 128), f32
    lane = lax.broadcasted_iota(jnp.int32, (1, o_ref.shape[-1]), 1)
    row = bh_ref[...]                                       # (1, 128)
    for n in range(wh_ref.shape[0]):                        # n_actions (=2), unrolled
        contrib = jnp.sum(y * wh_ref[n])                    # VPU mul + XLU reduce
        row = row + jnp.where(lane == n, contrib, 0.0)
    o_ref[0] = row.astype(o_ref.dtype)


def conv3_head(patches3, w3, shift3, wh_p, bh_p):
    B, S, K = patches3.shape
    N = w3.shape[1]
    out = pl.pallas_call(
        _conv3_head_kernel,
        out_shape=jax.ShapeDtypeStruct((B, 1, N), jnp.float32),
        grid=(B,),
        in_specs=[
            pl.BlockSpec((1, S, K), lambda b: (b, 0, 0)),
            pl.BlockSpec((K, N), lambda b: (0, 0)),
            pl.BlockSpec((1, N), lambda b: (0, 0)),
            pl.BlockSpec((wh_p.shape[0], S, N), lambda b: (0, 0, 0)),
            pl.BlockSpec((1, N), lambda b: (0, 0)),
        ],
        out_specs=pl.BlockSpec((1, 1, N), lambda b: (b, 0, 0)),
        compiler_params=pltpu.CompilerParams(
            dimension_semantics=("parallel",)),
    )(patches3.astype(MATMUL_DTYPE), w3.astype(MATMUL_DTYPE),
      shift3.reshape(1, N).astype(jnp.float32),
      wh_p.astype(jnp.float32), bh_p.reshape(1, N).astype(jnp.float32))
    return out[:, 0, :wh_p.shape[0]]                        # (B, n_actions)


# ----------------------------------------------------------------------------
# Glue: im2col patch extraction (strided slicing / stack / reshape only)
# ----------------------------------------------------------------------------
def im2col(x_nhwc, k, s):
    B, H, W, C = x_nhwc.shape
    Ho = (H - k) // s + 1
    Wo = (W - k) // s + 1
    cols = []
    for kh in range(k):
        for kw in range(k):
            cols.append(x_nhwc[:, kh:kh + s * Ho:s, kw:kw + s * Wo:s, :])
    p = jnp.stack(cols, axis=3)                    # (B, Ho, Wo, k*k, C)
    return p.reshape(B * Ho * Wo, k * k * C), (B, Ho, Wo)


# ----------------------------------------------------------------------------
# Parameters (deterministic, in-script) + one-time kernel-ready preparation
# ----------------------------------------------------------------------------
def init_params(key):
    ks = jax.random.split(key, 8)

    def nrm(k, shape):
        return jax.random.normal(k, shape, jnp.float32) * 0.05

    def bn(c):
        return dict(gamma=jnp.ones((c,), jnp.float32),
                    beta=jnp.zeros((c,), jnp.float32),
                    mean=jnp.zeros((c,), jnp.float32),
                    var=jnp.ones((c,), jnp.float32))

    return dict(
        w1=nrm(ks[0], (5, 5, 3, 16)),  b1=nrm(ks[1], (16,)), bn1=bn(16),
        w2=nrm(ks[2], (5, 5, 16, 32)), b2=nrm(ks[3], (32,)), bn2=bn(32),
        w3=nrm(ks[4], (5, 5, 32, 32)), b3=nrm(ks[5], (32,)), bn3=bn(32),
        wh=nrm(ks[6], (448, 2)),       bh=nrm(ks[7], (2,)),
    )


def prepare_params(p, eps=1e-5):
    """Fold BN scale into conv weights, zero-pad channels to 128, and fold the
    NCHW flatten into the head weight.  Done once, outside the hot path."""

    def fold(w, b, bn, cin_pad, cout_pad):
        k, _, cin, cout = w.shape
        inv_std = 1.0 / jnp.sqrt(bn["var"] + eps)
        scale = bn["gamma"] * inv_std
        shift = (b - bn["mean"]) * scale + bn["beta"]
        wf = w * scale                                      # BN scale -> weight
        wf = jnp.pad(wf, ((0, 0), (0, 0),
                          (0, cin_pad - cin), (0, cout_pad - cout)))
        return (wf.reshape(k * k * cin_pad, cout_pad),
                jnp.pad(shift, (0, cout_pad - cout)))

    # conv1: keep cin = 3 and pad the flattened K (75) up to 128 instead.
    w1, s1 = fold(p["w1"], p["b1"], p["bn1"], cin_pad=3, cout_pad=LANE)
    w1 = jnp.pad(w1, ((0, _round_up(w1.shape[0], LANE) - w1.shape[0]), (0, 0)))
    # conv2/conv3 consume the 128-padded channels of the previous layer.
    w2, s2 = fold(p["w2"], p["b2"], p["bn2"], cin_pad=LANE, cout_pad=LANE)
    w3, s3 = fold(p["w3"], p["b3"], p["bn3"], cin_pad=LANE, cout_pad=LANE)

    # Head: PyTorch flattens NCHW, row index = c*14 + (ho*7 + wo).  Permute to
    # [n, s, c] and pad c -> 128 so the activations never need a transpose.
    n_act = p["wh"].shape[1]
    wh = p["wh"].reshape(32, 14, n_act)          # [c, s, n]
    wh = jnp.transpose(wh, (2, 1, 0))            # [n, s, c]
    wh = jnp.pad(wh, ((0, 0), (0, 0), (0, LANE - 32)))
    bh = jnp.pad(p["bh"], (0, LANE - n_act)).reshape(1, LANE)

    return dict(w1=w1, s1=s1, w2=w2, s2=s2, w3=w3, s3=s3, wh=wh, bh=bh)


# ----------------------------------------------------------------------------
# Forward pass (mirrors DQN.forward)
# ----------------------------------------------------------------------------
def dqn_forward(x_nchw, q):
    x = jnp.transpose(x_nchw, (0, 2, 3, 1)).astype(jnp.float32)  # NCHW -> NHWC

    # conv1 + bn1 + relu  (K padded 75 -> 128, out channels padded 16 -> 128)
    p1, (B, H1, W1) = im2col(x, 5, 2)
    p1 = jnp.pad(p1, ((0, 0), (0, q["w1"].shape[0] - p1.shape[1])))
    x1 = matmul_bias(p1, q["w1"], q["s1"], relu=True,
                     out_dtype=MATMUL_DTYPE).reshape(B, H1, W1, LANE)

    # conv2 + bn2 + relu  (128-padded channels carried straight through)
    p2, (B, H2, W2) = im2col(x1, 5, 2)
    x2 = matmul_bias(p2, q["w2"], q["s2"], relu=True,
                     out_dtype=MATMUL_DTYPE).reshape(B, H2, W2, LANE)

    # conv3 + bn3 + relu + Linear head, fused in a single kernel.
    p3, (B, H3, W3) = im2col(x2, 5, 2)
    p3 = p3.reshape(B, H3 * W3, p3.shape[-1])
    return conv3_head(p3, q["w3"], q["s3"], q["wh"], q["bh"])


if __name__ == "__main__":
    key = jax.random.PRNGKey(0)
    k_x, k_p = jax.random.split(key)
    # Input consistent with the module: Linear(448, 2) implies 3x40x80 images.
    x = jax.random.normal(k_x, (2, 3, 40, 80), jnp.float32)   # NCHW
    params = init_params(k_p)
    prepared = prepare_params(params)                          # one-time fold

    fwd = jax.jit(dqn_forward)
    out = jax.block_until_ready(fwd(x, prepared))
    assert out.shape == (2, 2), out.shape
    print("KERNEL_OK")
</pallas_src>

<mosaic_0001>
module attributes {stable_mosaic.version = 11 : i64} {
  func.func @_matmul_bias_kernel(%arg0: i32, %arg1: memref<512x128xbf16, #tpu.memory_space<vmem>>, %arg2: memref<128x128xbf16, #tpu.memory_space<vmem>>, %arg3: memref<1x128xf32, #tpu.memory_space<vmem>>, %arg4: memref<512x128xbf16, #tpu.memory_space<vmem>>) attributes {dimension_semantics = [#tpu.dimension_semantics<parallel>], iteration_bounds = array<i64: 3>, scalar_prefetch = 0 : i64, scratch_operands = 0 : i64, tpu.core_type = #tpu.core_type<tc>, window_params = [{transform_indices = @transform_0, window_bounds = array<i64: 512, 128>}, {pipeline_mode = #tpu.pipeline_mode<synchronous>, transform_indices = @transform_1, window_bounds = array<i64: 128, 128>}, {pipeline_mode = #tpu.pipeline_mode<synchronous>, transform_indices = @transform_2, window_bounds = array<i64: 1, 128>}, {transform_indices = @transform_3, window_bounds = array<i64: 512, 128>}]} {
    %c0 = arith.constant 0 : index
    %c0_0 = arith.constant 0 : index
    %0 = vector.load %arg1[%c0, %c0_0] : memref<512x128xbf16, #tpu.memory_space<vmem>>, vector<512x128xbf16>
    %c0_1 = arith.constant 0 : index
    %c0_2 = arith.constant 0 : index
    %1 = vector.load %arg2[%c0_1, %c0_2] : memref<128x128xbf16, #tpu.memory_space<vmem>>, vector<128x128xbf16>
    %cst = arith.constant dense<0.000000e+00> : vector<512x128xf32>
    %2 = tpu.matmul %0, %1, %cst {dimension_numbers = #tpu.dot_dimension_numbers<[1], [0], [0], [1], [0, 0, 1, 1], [], []>} : vector<512x128xbf16>, vector<128x128xbf16>, vector<512x128xf32> -> vector<512x128xf32>
    %c0_3 = arith.constant 0 : index
    %c0_4 = arith.constant 0 : index
    %3 = vector.load %arg3[%c0_3, %c0_4] : memref<1x128xf32, #tpu.memory_space<vmem>>, vector<1x128xf32>
    %4 = vector.broadcast %3 : vector<1x128xf32> to vector<512x128xf32>
    %5 = arith.addf %2, %4 : vector<512x128xf32>
    %cst_5 = arith.constant 0.000000e+00 : f32
    %6 = vector.broadcast %cst_5 : f32 to vector<512x128xf32>
    %7 = arith.maximumf %5, %6 : vector<512x128xf32>
    %8 = arith.truncf %7 : vector<512x128xf32> to vector<512x128xbf16>
    %c0_6 = arith.constant 0 : index
    %c0_7 = arith.constant 0 : index
    %9 = vector.load %arg4[%c0_6, %c0_7] : memref<512x128xbf16, #tpu.memory_space<vmem>>, vector<512x128xbf16>
    tpu.vector_store %arg4[%c0_6, %c0_7], %8 {strides = array<i32>} : memref<512x128xbf16, #tpu.memory_space<vmem>>, vector<512x128xbf16>,
    return
  }
  func.func @transform_0(%arg0: i32) -> (i32, i32) {
    %c0_i32 = arith.constant 0 : i32
    %c0_i32_0 = arith.constant 0 : i32
    return %arg0, %c0_i32 : i32, i32
  }
  func.func @transform_1(%arg0: i32) -> (i32, i32) {
    %c0_i32 = arith.constant 0 : i32
    %c0_i32_0 = arith.constant 0 : i32
    %c0_i32_1 = arith.constant 0 : i32
    return %c0_i32, %c0_i32_0 : i32, i32
  }
  func.func @transform_2(%arg0: i32) -> (i32, i32) {
    %c0_i32 = arith.constant 0 : i32
    %c0_i32_0 = arith.constant 0 : i32
    %c0_i32_1 = arith.constant 0 : i32
    return %c0_i32, %c0_i32_0 : i32, i32
  }
  func.func @transform_3(%arg0: i32) -> (i32, i32) {
    %c0_i32 = arith.constant 0 : i32
    %c0_i32_0 = arith.constant 0 : i32
    return %arg0, %c0_i32 : i32, i32
  }
}

module attributes {stable_mosaic.version = 11 : i64} {
  func.func @_matmul_bias_kernel(%arg0: i32, %arg1: memref<240x3200xbf16, #tpu.memory_space<vmem>>, %arg2: memref<3200x128xbf16, #tpu.memory_space<vmem>>, %arg3: memref<1x128xf32, #tpu.memory_space<vmem>>, %arg4: memref<240x128xbf16, #tpu.memory_space<vmem>>) attributes {dimension_semantics = [#tpu.dimension_semantics<parallel>], iteration_bounds = array<i64: 1>, scalar_prefetch = 0 : i64, scratch_operands = 0 : i64, tpu.core_type = #tpu.core_type<tc>, window_params = [{transform_indices = @transform_0, window_bounds = array<i64: 240, 3200>}, {pipeline_mode = #tpu.pipeline_mode<synchronous>, transform_indices = @transform_1, window_bounds = array<i64: 3200, 128>}, {pipeline_mode = #tpu.pipeline_mode<synchronous>, transform_indices = @transform_2, window_bounds = array<i64: 1, 128>}, {transform_indices = @transform_3, window_bounds = array<i64: 240, 128>}]} {
    %c0 = arith.constant 0 : index
    %c0_0 = arith.constant 0 : index
    %0 = vector.load %arg1[%c0, %c0_0] : memref<240x3200xbf16, #tpu.memory_space<vmem>>, vector<240x3200xbf16>
    %c0_1 = arith.constant 0 : index
    %c0_2 = arith.constant 0 : index
    %1 = vector.load %arg2[%c0_1, %c0_2] : memref<3200x128xbf16, #tpu.memory_space<vmem>>, vector<3200x128xbf16>
    %cst = arith.constant dense<0.000000e+00> : vector<240x128xf32>
    %2 = tpu.matmul %0, %1, %cst {dimension_numbers = #tpu.dot_dimension_numbers<[1], [0], [0], [1], [0, 0, 1, 1], [], []>} : vector<240x3200xbf16>, vector<3200x128xbf16>, vector<240x128xf32> -> vector<240x128xf32>
    %c0_3 = arith.constant 0 : index
    %c0_4 = arith.constant 0 : index
    %3 = vector.load %arg3[%c0_3, %c0_4] : memref<1x128xf32, #tpu.memory_space<vmem>>, vector<1x128xf32>
    %4 = vector.broadcast %3 : vector<1x128xf32> to vector<240x128xf32>
    %5 = arith.addf %2, %4 : vector<240x128xf32>
    %cst_5 = arith.constant 0.000000e+00 : f32
    %6 = vector.broadcast %cst_5 : f32 to vector<240x128xf32>
    %7 = arith.maximumf %5, %6 : vector<240x128xf32>
    %8 = arith.truncf %7 : vector<240x128xf32> to vector<240x128xbf16>
    %c0_6 = arith.constant 0 : index
    %c0_7 = arith.constant 0 : index
    %9 = vector.load %arg4[%c0_6, %c0_7] : memref<240x128xbf16, #tpu.memory_space<vmem>>, vector<240x128xbf16>
    tpu.vector_store %arg4[%c0_6, %c0_7], %8 {strides = array<i32>} : memref<240x128xbf16, #tpu.memory_space<vmem>>, vector<240x128xbf16>,
    return
  }
  func.func @transform_0(%arg0: i32) -> (i32, i32) {
    %c0_i32 = arith.constant 0 : i32
    %c0_i32_0 = arith.constant 0 : i32
    return %arg0, %c0_i32 : i32, i32
  }
  func.func @transform_1(%arg0: i32) -> (i32, i32) {
    %c0_i32 = arith.constant 0 : i32
    %c0_i32_0 = arith.constant 0 : i32
    %c0_i32_1 = arith.constant 0 : i32
    return %c0_i32, %c0_i32_0 : i32, i32
  }
  func.func @transform_2(%arg0: i32) -> (i32, i32) {
    %c0_i32 = arith.constant 0 : i32
    %c0_i32_0 = arith.constant 0 : i32
    %c0_i32_1 = arith.constant 0 : i32
    return %c0_i32, %c0_i32_0 : i32, i32
  }
  func.func @transform_3(%arg0: i32) -> (i32, i32) {
    %c0_i32 = arith.constant 0 : i32
    %c0_i32_0 = arith.constant 0 : i32
    return %arg0, %c0_i32 : i32, i32
  }
}

module attributes {stable_mosaic.version = 11 : i64} {
  func.func @_conv3_head_kernel(%arg0: i32, %arg1: memref<1x14x3200xbf16, #tpu.memory_space<vmem>>, %arg2: memref<3200x128xbf16, #tpu.memory_space<vmem>>, %arg3: memref<1x128xf32, #tpu.memory_space<vmem>>, %arg4: memref<2x14x128xf32, #tpu.memory_space<vmem>>, %arg5: memref<1x128xf32, #tpu.memory_space<vmem>>, %arg6: memref<1x1x128xf32, #tpu.memory_space<vmem>>) attributes {dimension_semantics = [#tpu.dimension_semantics<parallel>], iteration_bounds = array<i64: 2>, scalar_prefetch = 0 : i64, scratch_operands = 0 : i64, tpu.core_type = #tpu.core_type<tc>, window_params = [{transform_indices = @transform_0, window_bounds = array<i64: 1, 14, 3200>}, {pipeline_mode = #tpu.pipeline_mode<synchronous>, transform_indices = @transform_1, window_bounds = array<i64: 3200, 128>}, {pipeline_mode = #tpu.pipeline_mode<synchronous>, transform_indices = @transform_2, window_bounds = array<i64: 1, 128>}, {pipeline_mode = #tpu.pipeline_mode<synchronous>, transform_indices = @transform_3, window_bounds = array<i64: 2, 14, 128>}, {pipeline_mode = #tpu.pipeline_mode<synchronous>, transform_indices = @transform_4, window_bounds = array<i64: 1, 128>}, {transform_indices = @transform_5, window_bounds = array<i64: 1, 1, 128>}]} {
    %c0 = arith.constant 0 : index
    %c0_0 = arith.constant 0 : index
    %c0_1 = arith.constant 0 : index
    %0 = vector.load %arg1[%c0, %c0_0, %c0_1] : memref<1x14x3200xbf16, #tpu.memory_space<vmem>>, vector<1x14x3200xbf16>
    %1 = vector.shape_cast %0 : vector<1x14x3200xbf16> to vector<14x3200xbf16>
    %c0_2 = arith.constant 0 : index
    %c0_3 = arith.constant 0 : index
    %2 = vector.load %arg2[%c0_2, %c0_3] : memref<3200x128xbf16, #tpu.memory_space<vmem>>, vector<3200x128xbf16>
    %cst = arith.constant dense<0.000000e+00> : vector<14x128xf32>
    %3 = tpu.matmul %1, %2, %cst {dimension_numbers = #tpu.dot_dimension_numbers<[1], [0], [0], [1], [0, 0, 1, 1], [], []>} : vector<14x3200xbf16>, vector<3200x128xbf16>, vector<14x128xf32> -> vector<14x128xf32>
    %c0_4 = arith.constant 0 : index
    %c0_5 = arith.constant 0 : index
    %4 = vector.load %arg3[%c0_4, %c0_5] : memref<1x128xf32, #tpu.memory_space<vmem>>, vector<1x128xf32>
    %5 = vector.broadcast %4 : vector<1x128xf32> to vector<14x128xf32>
    %6 = arith.addf %3, %5 : vector<14x128xf32>
    %cst_6 = arith.constant 0.000000e+00 : f32
    %7 = vector.broadcast %cst_6 : f32 to vector<14x128xf32>
    %8 = arith.maximumf %6, %7 : vector<14x128xf32>
    %9 = tpu.iota {dimensions = array<i32: 1>} : vector<1x128xi32>
    %c0_7 = arith.constant 0 : index
    %c0_8 = arith.constant 0 : index
    %10 = vector.load %arg5[%c0_7, %c0_8] : memref<1x128xf32, #tpu.memory_space<vmem>>, vector<1x128xf32>
    %c0_9 = arith.constant 0 : index
    %c0_10 = arith.constant 0 : index
    %c0_11 = arith.constant 0 : index
    %11 = vector.load %arg4[%c0_9, %c0_10, %c0_11] : memref<2x14x128xf32, #tpu.memory_space<vmem>>, vector<1x14x128xf32>
    %12 = vector.shape_cast %11 : vector<1x14x128xf32> to vector<14x128xf32>
    %13 = arith.mulf %8, %12 : vector<14x128xf32>
    %14 = vector.shape_cast %13 : vector<14x128xf32> to vector<1x14x128xf32>
    %cst_12 = arith.constant dense<0.000000e+00> : vector<1xf32>
    %15 = vector.multi_reduction <add>, %14, %cst_12 [1, 2] : vector<1x14x128xf32> to vector<1xf32>
    %16 = vector.shape_cast %15 : vector<1xf32> to vector<1x1x1xf32>
    %17 = vector.extract %16[0, 0, 0] : f32 from vector<1x1x1xf32>
    %c0_i32 = arith.constant 0 : i32
    %18 = vector.broadcast %c0_i32 : i32 to vector<1x128xi32>
    %19 = arith.cmpi eq, %9, %18 : vector<1x128xi32>
    %cst_13 = arith.constant 0.000000e+00 : f32
    %20 = vector.broadcast %17 : f32 to vector<1x128xf32>
    %21 = vector.broadcast %cst_13 : f32 to vector<1x128xf32>
    %22 = arith.select %19, %20, %21 : vector<1x128xi1>, vector<1x128xf32>
    %23 = arith.addf %10, %22 : vector<1x128xf32>
    %c1 = arith.constant 1 : index
    %c0_14 = arith.constant 0 : index
    %c0_15 = arith.constant 0 : index
    %24 = vector.load %arg4[%c1, %c0_14, %c0_15] : memref<2x14x128xf32, #tpu.memory_space<vmem>>, vector<1x14x128xf32>
    %25 = vector.shape_cast %24 : vector<1x14x128xf32> to vector<14x128xf32>
    %26 = arith.mulf %8, %25 : vector<14x128xf32>
    %27 = vector.shape_cast %26 : vector<14x128xf32> to vector<1x14x128xf32>
    %cst_16 = arith.constant dense<0.000000e+00> : vector<1xf32>
    %28 = vector.multi_reduction <add>, %27, %cst_16 [1, 2] : vector<1x14x128xf32> to vector<1xf32>
    %29 = vector.shape_cast %28 : vector<1xf32> to vector<1x1x1xf32>
    %30 = vector.extract %29[0, 0, 0] : f32 from vector<1x1x1xf32>
    %c1_i32 = arith.constant 1 : i32
    %31 = vector.broadcast %c1_i32 : i32 to vector<1x128xi32>
    %32 = arith.cmpi eq, %9, %31 : vector<1x128xi32>
    %cst_17 = arith.constant 0.000000e+00 : f32
    %33 = vector.broadcast %30 : f32 to vector<1x128xf32>
    %34 = vector.broadcast %cst_17 : f32 to vector<1x128xf32>
    %35 = arith.select %32, %33, %34 : vector<1x128xi1>, vector<1x128xf32>
    %36 = arith.addf %23, %35 : vector<1x128xf32>
    %c0_18 = arith.constant 0 : index
    %c0_19 = arith.constant 0 : index
    %c0_20 = arith.constant 0 : index
    %37 = vector.load %arg6[%c0_18, %c0_19, %c0_20] : memref<1x1x128xf32, #tpu.memory_space<vmem>>, vector<1x1x128xf32>
    %38 = vector.shape_cast %37 : vector<1x1x128xf32> to vector<1x128xf32>
    %39 = vector.shape_cast %36 : vector<1x128xf32> to vector<1x1x128xf32>
    tpu.vector_store %arg6[%c0_18, %c0_19, %c0_20], %39 {strides = array<i32>} : memref<1x1x128xf32, #tpu.memory_space<vmem>>, vector<1x1x128xf32>,
    return
  }
  func.func @transform_0(%arg0: i32) -> (i32, i32, i32) {
    %c0_i32 = arith.constant 0 : i32
    %c0_i32_0 = arith.constant 0 : i32
    %c0_i32_1 = arith.constant 0 : i32
    return %arg0, %c0_i32, %c0_i32_0 : i32, i32, i32
  }
  func.func @transform_1(%arg0: i32) -> (i32, i32) {
    %c0_i32 = arith.constant 0 : i32
    %c0_i32_0 = arith.constant 0 : i32
    %c0_i32_1 = arith.constant 0 : i32
    return %c0_i32, %c0_i32_0 : i32, i32
  }
  func.func @transform_2(%arg0: i32) -> (i32, i32) {
    %c0_i32 = arith.constant 0 : i32
    %c0_i32_0 = arith.constant 0 : i32
    %c0_i32_1 = arith.constant 0 : i32
    return %c0_i32, %c0_i32_0 : i32, i32
  }
  func.func @transform_3(%arg0: i32) -> (i32, i32, i32) {
    %c0_i32 = arith.constant 0 : i32
    %c0_i32_0 = arith.constant 0 : i32
    %c0_i32_1 = arith.constant 0 : i32
    %c0_i32_2 = arith.constant 0 : i32
    return %c0_i32, %c0_i32_0, %c0_i32_1 : i32, i32, i32
  }
  func.func @transform_4(%arg0: i32) -> (i32, i32) {
    %c0_i32 = arith.constant 0 : i32
    %c0_i32_0 = arith.constant 0 : i32
    %c0_i32_1 = arith.constant 0 : i32
    return %c0_i32, %c0_i32_0 : i32, i32
  }
  func.func @transform_5(%arg0: i32) -> (i32, i32, i32) {
    %c0_i32 = arith.constant 0 : i32
    %c0_i32_0 = arith.constant 0 : i32
    %c0_i32_1 = arith.constant 0 : i32
    return %arg0, %c0_i32, %c0_i32_0 : i32, i32, i32
  }
}

</mosaic_0001>

<bundles_post_ra>
// kernel: dqn_forward.3
= control target key start
LH: loop header
LB: loop body
LE: loop exit
PB: predicated region body
PF: predicated region fallthrough
CT: control target
= control target key end

     0   :  { %s1814_s12 = smov 0   ;;  %s1999_s0 = inlined_call_operand.vmem [shape: bf16[1536,128], index: 0, kind: input, shape index: {}]   ;;  %s2000_s1 = inlined_call_operand.vmem [shape: bf16[128,128], index: 1, kind: input, shape index: {}]   ;;  %s2001_s2 = inlined_call_operand.vmem [shape: f32[1,128], index: 2, kind: input, shape index: {}]   ;;  %s2002_s3 = inlined_call_operand.vmem [shape: bf16[1536,128], index: 3, kind: output, shape index: {}]  }
   0x1 LB: > { %s1231_s13 = sadd.s32 4294967295, %s1792_s12   ;;  %p1235_p0 = scmp.ge.s32.totalorder %s1792_s12, 1  ;;  %s1792_s12 = sphi %s1814_s12, %s13_s12  }
   0x2   : > { %p138_p1 = scmp.lt.s32.totalorder %s1792_s12, 4 }
   0x4   : > { %p139_p2 = pnand %p1235_p0, %p138_p1 }
   0x5   : > { %v1746_v0 = vld [vmem:[%s2000_s1] sm:$0xff] (!%p139_p2)   ;;  %s1236_s16 = sshll.u32 (!%p139_p2), %s1231_s13, 6  ;;  %v1747_v1 = vld [vmem:[%s2000_s1 + $0x8] sm:$0xff] (!%p139_p2)   ;;  %v1748_v2 = vld [vmem:[%s2000_s1 + $0x10] sm:$0xff] (!%p139_p2)  }
   0x6   : > { %142 = sbr.rel (%p139_p2) target bundleno = 316 (0x13c), region = 32  ;;  %p163_p3 = scmp.lt.s32.totalorder (!%p139_p2), %s1236_s16, 191  ;;  %1642 = vmatprep.subr.bf16.mxu0 (!%p139_p2), %v1746_v0  ;;  %1722 = vmatprep.subr.bf16.mxu1 (!%p139_p2), %v1746_v0  ;;  %v1749_v3 = vld [vmem:[%s2000_s1 + $0x18] sm:$0xff] (!%p139_p2)   ;;  %v1750_v6 = vld [vmem:[%s2000_s1 + $0x20] sm:$0xff] (!%p139_p2)   ;;  %v1751_v7 = vld [vmem:[%s2000_s1 + $0x28] sm:$0xff] (!%p139_p2)  }
   0x7   : > { %1643 = vmatpush3.bf16.msra.mxu0 (!%p139_p2), %v1746_v0  ;;  %1730 = vmatpush3.bf16.msra.mxu1 (!%p139_p2), %v1746_v0  ;;  %v1752_v8 = vld [vmem:[%s2000_s1 + $0x30] sm:$0xff] (!%p139_p2)   ;;  %v1753_v9 = vld [vmem:[%s2000_s1 + $0x38] sm:$0xff] (!%p139_p2)   ;;  %v1891_v40 = vld [vmem:[%s2001_s2] ss:$0 sm:$0xff] (!%p139_p2) }
   0x8   : > { %1644 = vmatprep.subr.bf16.mxu0 (!%p139_p2), %v1747_v1  ;;  %1723 = vmatprep.subr.bf16.mxu1 (!%p139_p2), %v1747_v1 }
   0xb   : > { %1645 = vmatpush3.bf16.msra.mxu0 (!%p139_p2), %v1747_v1  ;;  %1731 = vmatpush3.bf16.msra.mxu1 (!%p139_p2), %v1747_v1 }
   0xc   : > { %1646 = vmatprep.subr.bf16.mxu0 (!%p139_p2), %v1748_v2  ;;  %1724 = vmatprep.subr.bf16.mxu1 (!%p139_p2), %v1748_v2 }
   0xd   : > { %s2004_s16 = smov (!%p163_p3, %s1236_s16), 191 }
   0xe   : > { %s1237_s21 = sshll.u32 %s2004_s16, 2 }
   0xf   : > { %s1839_s24 = scalar_lea.vmem %s1999_s0, %s1237_s21  ;;  %1647 = vmatpush3.bf16.msra.mxu0 %v1748_v2  ;;  %1732 = vmatpush3.bf16.msra.mxu1 %v1748_v2  ;;  %s1906_s13 = scalar_lea.vmem %s2002_s3, %s1237_s21 }
  0x10   : > { %v1754_v4 = vld [vmem:[%s1839_s24] sm:$0xff]   ;;  %1648 = vmatprep.subr.bf16.mxu0 %v1749_v3  ;;  %1725 = vmatprep.subr.bf16.mxu1 %v1749_v3  ;;  %v1756_v10 = vld [vmem:[%s1839_s24 + $0x8] sm:$0xff]   ;;  %v1758_v12 = vld [vmem:[%s1839_s24 + $0x10] sm:$0xff]  }
  0x11   : > { %v1755_v5 = vld [vmem:[%s1839_s24 + $0x80] sm:$0xff]   ;;  %1658 = vmatprep.mubr.bf16.mxu0 %v1754_v4  ;;  %v1757_v11 = vld [vmem:[%s1839_s24 + $0x88] sm:$0xff]   ;;  %v1759_v13 = vld [vmem:[%s1839_s24 + $0x90] sm:$0xff]  }
  0x12   : > { %1690 = vmatprep.mubr.bf16.mxu1 %v1755_v5  ;;  %v1760_v14 = vld [vmem:[%s1839_s24 + $0x18] sm:$0xff]   ;;  %v1762_v16 = vld [vmem:[%s1839_s24 + $0x20] sm:$0xff]   ;;  %v1764_v18 = vld [vmem:[%s1839_s24 + $0x28] sm:$0xff]  }
  0x13   : > { %1649 = vmatpush3.bf16.msra.mxu0 %v1749_v3  ;;  %1733 = vmatpush3.bf16.msra.mxu1 %v1749_v3  ;;  %v1761_v15 = vld [vmem:[%s1839_s24 + $0x98] sm:$0xff]   ;;  %v1763_v17 = vld [vmem:[%s1839_s24 + $0xa0] sm:$0xff]   ;;  %v1765_v19 = vld [vmem:[%s1839_s24 + $0xa8] sm:$0xff]  }
  0x14   : > { %1650 = vmatprep.subr.bf16.mxu0 %v1750_v6  ;;  %1726 = vmatprep.subr.bf16.mxu1 %v1750_v6  ;;  %v1766_v20 = vld [vmem:[%s1839_s24 + $0x30] sm:$0xff]   ;;  %v1768_v22 = vld [vmem:[%s1839_s24 + $0x38] sm:$0xff]   ;;  %v1770_v24 = vld [vmem:[%s1839_s24 + $0x40] sm:$0xff]  }
  0x15   : > { %v1767_v21 = vld [vmem:[%s1839_s24 + $0xb0] sm:$0xff]   ;;  %v1769_v23 = vld [vmem:[%s1839_s24 + $0xb8] sm:$0xff]   ;;  %v1771_v25 = vld [vmem:[%s1839_s24 + $0xc0] sm:$0xff]  }
  0x16   : > { %v1772_v26 = vld [vmem:[%s1839_s24 + $0x48] sm:$0xff]   ;;  %v1774_v28 = vld [vmem:[%s1839_s24 + $0x50] sm:$0xff]   ;;  %v1776_v30 = vld [vmem:[%s1839_s24 + $0x58] sm:$0xff]  }
  0x17   : > { %1651 = vmatpush3.bf16.msra.mxu0 %v1750_v6  ;;  %1734 = vmatpush3.bf16.msra.mxu1 %v1750_v6  ;;  %v1773_v27 = vld [vmem:[%s1839_s24 + $0xc8] sm:$0xff]   ;;  %v1775_v29 = vld [vmem:[%s1839_s24 + $0xd0] sm:$0xff]   ;;  %v1777_v31 = vld [vmem:[%s1839_s24 + $0xd8] sm:$0xff]  }
  0x18   : > { %1652 = vmatprep.subr.bf16.mxu0 %v1751_v7  ;;  %1727 = vmatprep.subr.bf16.mxu1 %v1751_v7  ;;  %v1778_v32 = vld [vmem:[%s1839_s24 + $0x60] sm:$0xff]   ;;  %v1780_v34 = vld [vmem:[%s1839_s24 + $0x68] sm:$0xff]   ;;  %v1782_v36 = vld [vmem:[%s1839_s24 + $0x70] sm:$0xff]  }
  0x19   : > { %v1779_v33 = vld [vmem:[%s1839_s24 + $0xe0] sm:$0xff]   ;;  %v1781_v35 = vld [vmem:[%s1839_s24 + $0xe8] sm:$0xff]   ;;  %v1783_v37 = vld [vmem:[%s1839_s24 + $0xf0] sm:$0xff]  }
  0x1a   : > { %v1784_v38 = vld [vmem:[%s1839_s24 + $0x78] sm:$0xff]  }
  0x1b   : > { %1653 = vmatpush3.bf16.msra.mxu0 %v1751_v7  ;;  %1735 = vmatpush3.bf16.msra.mxu1 %v1751_v7  ;;  %v1785_v39 = vld [vmem:[%s1839_s24 + $0xf8] sm:$0xff]  }
  0x1c   : > { %1654 = vmatprep.subr.bf16.mxu0 %v1752_v8  ;;  %1728 = vmatprep.subr.bf16.mxu1 %v1752_v8 }
  0x1f   : > { %1655 = vmatpush3.bf16.msra.mxu0 %v1752_v8  ;;  %1736 = vmatpush3.bf16.msra.mxu1 %v1752_v8 }
  0x20   : > { %1656 = vmatprep.subr.bf16.mxu0 %v1753_v9  ;;  %1729 = vmatprep.subr.bf16.mxu1 %v1753_v9 }
  0x23   : > { %1657 = vmatpush3.bf16.msra.mxu0 %v1753_v9  ;;  %1737 = vmatpush3.bf16.msra.mxu1 %v1753_v9 }
  0x26   : > { %1659 = vmatmul.mubr.bf16.vlgmr.msra.gmra.mrb[0].mxu0 %v1756_v10  ;;  %1691 = vmatmul.mubr.bf16.vlgmr.msra.gmra.mrb[0].mxu1 %v1757_v11 }
  0x27   : > { %1662 = vmatprep.mubr.bf16.mxu0 %v1758_v12  ;;  %1694 = vmatprep.mubr.bf16.mxu1 %v1759_v13 }
  0x2e   : > { %1663 = vmatmul.mubr.bf16.gmra.mrb[4].mxu0 %v1760_v14  ;;  %1695 = vmatmul.mubr.bf16.gmra.mrb[4].mxu1 %v1761_v15 }
  0x2f   : > { %1666 = vmatprep.mubr.bf16.mxu0 %v1762_v16  ;;  %1698 = vmatprep.mubr.bf16.mxu1 %v1763_v17 }
  0x36   : > { %1667 = vmatmul.mubr.bf16.gmra.mrb[8].mxu0 %v1764_v18  ;;  %1699 = vmatmul.mubr.bf16.gmra.mrb[8].mxu1 %v1765_v19 }
  0x37   : > { %1670 = vmatprep.mubr.bf16.mxu0 %v1766_v20  ;;  %1702 = vmatprep.mubr.bf16.mxu1 %v1767_v21 }
  0x3e   : > { %1671 = vmatmul.mubr.bf16.gmra.mrb[12].mxu0 %v1768_v22  ;;  %1703 = vmatmul.mubr.bf16.gmra.mrb[12].mxu1 %v1769_v23 }
  0x3f   : > { %1674 = vmatprep.mubr.bf16.mxu0 %v1770_v24  ;;  %1706 = vmatprep.mubr.bf16.mxu1 %v1771_v25 }
  0x46   : > { %1675 = vmatmul.mubr.bf16.gmra.mrb[16].mxu0 %v1772_v26  ;;  %1707 = vmatmul.mubr.bf16.gmra.mrb[16].mxu1 %v1773_v27 }
  0x47   : > { %1678 = vmatprep.mubr.bf16.mxu0 %v1774_v28  ;;  %1710 = vmatprep.mubr.bf16.mxu1 %v1775_v29 }
  0x4e   : > { %1679 = vmatmul.mubr.bf16.gmra.mrb[20].mxu0 %v1776_v30  ;;  %1711 = vmatmul.mubr.bf16.gmra.mrb[20].mxu1 %v1777_v31 }
  0x4f   : > { %1682 = vmatprep.mubr.bf16.mxu0 %v1778_v32  ;;  %1714 = vmatprep.mubr.bf16.mxu1 %v1779_v33 }
  0x56   : > { %1683 = vmatmul.mubr.bf16.gmra.mrb[24].mxu0 %v1780_v34  ;;  %1715 = vmatmul.mubr.bf16.gmra.mrb[24].mxu1 %v1781_v35 }
  0x57   : > { %1686 = vmatprep.mubr.bf16.mxu0 %v1782_v36  ;;  %1718 = vmatprep.mubr.bf16.mxu1 %v1783_v37 }
  0x5e   : > { %1687 = vmatmul.mubr.bf16.gmra.mrb[28].mxu0 %v1784_v38  ;;  %1719 = vmatmul.mubr.bf16.gmra.mrb[28].mxu1 %v1785_v39 }
  0xf9   : > { %v1660_v41 = vpop.f32.mrb[0].mxu0  ;;  %v1692_v42 = vpop.f32.mrb[0].mxu1 }
  0xfa   : > { %v545_v43 = vadd.f32 %v1660_v41, %v1891_v40  ;;  %v673_v44 = vadd.f32 %v1692_v42, %v1891_v40  ;;  %v536_v45 = vpop.f32.mrb[1].mxu0  ;;  %v664_v46 = vpop.f32.mrb[1].mxu1 }
  0xfb   : > { %v537_v47 = vadd.f32 %v1891_v40, %v536_v45  ;;  %v665_v48 = vadd.f32 %v1891_v40, %v664_v46  ;;  %v1661_v49 = vpop.f32.mrb[2].mxu0  ;;  %v1693_v50 = vpop.f32.mrb[2].mxu1 }
  0xfc   : > { %v548_v51 = vadd.f32 %v1661_v49, %v1891_v40  ;;  %v676_v52 = vadd.f32 %v1693_v50, %v1891_v40  ;;  %v539_v53 = vpop.f32.mrb[3].mxu0  ;;  %v667_v54 = vpop.f32.mrb[3].mxu1  ;;  %v793_v57 = vmax.f32 %v545_v43, 0.0  ;;  %v825_v58 = vmax.f32 %v673_v44, 0.0 }
  0xfd   : > { %v540_v55 = vadd.f32 %v1891_v40, %v539_v53  ;;  %v668_v56 = vadd.f32 %v1891_v40, %v667_v54  ;;  %v791_v61 = vmax.f32 %v537_v47, 0.0  ;;  %v823_v62 = vmax.f32 %v665_v48, 0.0 }
  0xfe   : > { %v794_v59 = vmax.f32 %v548_v51, 0.0  ;;  %v826_v60 = vmax.f32 %v676_v52, 0.0 }
  0xff   : > { %v792_v63 = vmax.f32 %v540_v55, 0.0  ;;  %v824_v0 = vmax.f32 %v668_v56, 0.0 }
 0x100   : > { %v1419_v1 = vpack.c.bf16 %v794_v59, %v793_v57  ;;  %v1499_v2 = vpack.c.bf16 %v826_v60, %v825_v58 }
 0x101   : > { %v1414_v3 = vpack.c.bf16 %v792_v63, %v791_v61  ;;  %v1494_v4 = vpack.c.bf16 %v824_v0, %v823_v62  ;;  %v1664_v5 = vpop.f32.mrb[4].mxu0  ;;  %v1696_v6 = vpop.f32.mrb[4].mxu1 }
 0x102   : > { %1571 = vst [vmem:[%s1906_s13 + $0x8] sm:$0xff] %v1419_v1   ;;  %1587 = vst [vmem:[%s1906_s13 + $0x88] sm:$0xff] %v1499_v2   ;;  %v561_v7 = vadd.f32 %v1664_v5, %v1891_v40  ;;  %v689_v8 = vadd.f32 %v1696_v6, %v1891_v40  ;;  %v552_v9 = vpop.f32.mrb[5].mxu0  ;;  %v680_v10 = vpop.f32.mrb[5].mxu1 }
 0x103   : > { %1415 = vst [vmem:[%s1906_s13] sm:$0xff] %v1414_v3   ;;  %1586 = vst [vmem:[%s1906_s13 + $0x80] sm:$0xff] %v1494_v4   ;;  %v553_v11 = vadd.f32 %v1891_v40, %v552_v9  ;;  %v681_v12 = vadd.f32 %v1891_v40, %v680_v10  ;;  %v1665_v13 = vpop.f32.mrb[6].mxu0  ;;  %v1697_v14 = vpop.f32.mrb[6].mxu1 }
 0x104   : > { %v564_v15 = vadd.f32 %v1665_v13, %v1891_v40  ;;  %v692_v16 = vadd.f32 %v1697_v14, %v1891_v40  ;;  %v555_v17 = vpop.f32.mrb[7].mxu0  ;;  %v683_v18 = vpop.f32.mrb[7].mxu1  ;;  %v797_v21 = vmax.f32 %v561_v7, 0.0  ;;  %v829_v22 = vmax.f32 %v689_v8, 0.0 }
 0x105   : > { %v556_v19 = vadd.f32 %v1891_v40, %v555_v17  ;;  %v684_v20 = vadd.f32 %v1891_v40, %v683_v18  ;;  %v795_v25 = vmax.f32 %v553_v11, 0.0  ;;  %v827_v26 = vmax.f32 %v681_v12, 0.0 }
 0x106   : > { %v798_v23 = vmax.f32 %v564_v15, 0.0  ;;  %v830_v24 = vmax.f32 %v692_v16, 0.0 }
 0x107   : > { %v796_v27 = vmax.f32 %v556_v19, 0.0  ;;  %v828_v28 = vmax.f32 %v684_v20, 0.0 }
 0x108   : > { %v1429_v29 = vpack.c.bf16 %v798_v23, %v797_v21  ;;  %v1509_v30 = vpack.c.bf16 %v830_v24, %v829_v22 }
 0x109   : > { %v1424_v31 = vpack.c.bf16 %v796_v27, %v795_v25  ;;  %v1504_v32 = vpack.c.bf16 %v828_v28, %v827_v26  ;;  %v1668_v33 = vpop.f32.mrb[8].mxu0  ;;  %v1700_v34 = vpop.f32.mrb[8].mxu1 }
 0x10a   : > { %1573 = vst [vmem:[%s1906_s13 + $0x18] sm:$0xff] %v1429_v29   ;;  %1589 = vst [vmem:[%s1906_s13 + $0x98] sm:$0xff] %v1509_v30   ;;  %v577_v35 = vadd.f32 %v1668_v33, %v1891_v40  ;;  %v705_v36 = vadd.f32 %v1700_v34, %v1891_v40  ;;  %v568_v37 = vpop.f32.mrb[9].mxu0  ;;  %v696_v38 = vpop.f32.mrb[9].mxu1 }
 0x10b   : > { %1572 = vst [vmem:[%s1906_s13 + $0x10] sm:$0xff] %v1424_v31   ;;  %1588 = vst [vmem:[%s1906_s13 + $0x90] sm:$0xff] %v1504_v32   ;;  %v569_v39 = vadd.f32 %v1891_v40, %v568_v37  ;;  %v697_v41 = vadd.f32 %v1891_v40, %v696_v38  ;;  %v1669_v42 = vpop.f32.mrb[10].mxu0  ;;  %v1701_v43 = vpop.f32.mrb[10].mxu1 }
 0x10c   : > { %v580_v44 = vadd.f32 %v1669_v42, %v1891_v40  ;;  %v708_v45 = vadd.f32 %v1701_v43, %v1891_v40  ;;  %v571_v46 = vpop.f32.mrb[11].mxu0  ;;  %v699_v47 = vpop.f32.mrb[11].mxu1  ;;  %v801_v50 = vmax.f32 %v577_v35, 0.0  ;;  %v833_v51 = vmax.f32 %v705_v36, 0.0 }
 0x10d   : > { %v572_v48 = vadd.f32 %v1891_v40, %v571_v46  ;;  %v700_v49 = vadd.f32 %v1891_v40, %v699_v47  ;;  %v799_v54 = vmax.f32 %v569_v39, 0.0  ;;  %v831_v55 = vmax.f32 %v697_v41, 0.0 }
 0x10e   : > { %v802_v52 = vmax.f32 %v580_v44, 0.0  ;;  %v834_v53 = vmax.f32 %v708_v45, 0.0 }
 0x10f   : > { %v800_v56 = vmax.f32 %v572_v48, 0.0  ;;  %v832_v57 = vmax.f32 %v700_v49, 0.0 }
 0x110   : > { %v1439_v58 = vpack.c.bf16 %v802_v52, %v801_v50  ;;  %v1519_v59 = vpack.c.bf16 %v834_v53, %v833_v51 }
 0x111   : > { %v1434_v60 = vpack.c.bf16 %v800_v56, %v799_v54  ;;  %v1514_v61 = vpack.c.bf16 %v832_v57, %v831_v55  ;;  %v1672_v62 = vpop.f32.mrb[12].mxu0  ;;  %v1704_v63 = vpop.f32.mrb[12].mxu1 }
 0x112   : > { %1575 = vst [vmem:[%s1906_s13 + $0x28] sm:$0xff] %v1439_v58   ;;  %1591 = vst [vmem:[%s1906_s13 + $0xa8] sm:$0xff] %v1519_v59   ;;  %v593_v0 = vadd.f32 %v1672_v62, %v1891_v40  ;;  %v721_v1 = vadd.f32 %v1704_v63, %v1891_v40  ;;  %v584_v2 = vpop.f32.mrb[13].mxu0  ;;  %v712_v3 = vpop.f32.mrb[13].mxu1 }
 0x113   : > { %1574 = vst [vmem:[%s1906_s13 + $0x20] sm:$0xff] %v1434_v60   ;;  %1590 = vst [vmem:[%s1906_s13 + $0xa0] sm:$0xff] %v1514_v61   ;;  %v585_v4 = vadd.f32 %v1891_v40, %v584_v2  ;;  %v713_v5 = vadd.f32 %v1891_v40, %v712_v3  ;;  %v1673_v6 = vpop.f32.mrb[14].mxu0  ;;  %v1705_v7 = vpop.f32.mrb[14].mxu1 }
 0x114   : > { %v596_v8 = vadd.f32 %v1673_v6, %v1891_v40  ;;  %v724_v9 = vadd.f32 %v1705_v7, %v1891_v40  ;;  %v587_v10 = vpop.f32.mrb[15].mxu0  ;;  %v715_v11 = vpop.f32.mrb[15].mxu1  ;;  %v805_v14 = vmax.f32 %v593_v0, 0.0  ;;  %v837_v15 = vmax.f32 %v721_v1, 0.0 }
 0x115   : > { %v588_v12 = vadd.f32 %v1891_v40, %v587_v10  ;;  %v716_v13 = vadd.f32 %v1891_v40, %v715_v11  ;;  %v803_v18 = vmax.f32 %v585_v4, 0.0  ;;  %v835_v19 = vmax.f32 %v713_v5, 0.0 }
 0x116   : > { %v806_v16 = vmax.f32 %v596_v8, 0.0  ;;  %v838_v17 = vmax.f32 %v724_v9, 0.0 }
 0x117   : > { %v804_v20 = vmax.f32 %v588_v12, 0.0  ;;  %v836_v21 = vmax.f32 %v716_v13, 0.0 }
 0x118   : > { %v1449_v22 = vpack.c.bf16 %v806_v16, %v805_v14  ;;  %v1529_v23 = vpack.c.bf16 %v838_v17, %v837_v15 }
 0x119   : > { %v1444_v24 = vpack.c.bf16 %v804_v20, %v803_v18  ;;  %v1524_v25 = vpack.c.bf16 %v836_v21, %v835_v19  ;;  %v1676_v26 = vpop.f32.mrb[16].mxu0  ;;  %v1708_v27 = vpop.f32.mrb[16].mxu1 }
 0x11a   : > { %1577 = vst [vmem:[%s1906_s13 + $0x38] sm:$0xff] %v1449_v22   ;;  %1593 = vst [vmem:[%s1906_s13 + $0xb8] sm:$0xff] %v1529_v23   ;;  %v609_v28 = vadd.f32 %v1676_v26, %v1891_v40  ;;  %v737_v29 = vadd.f32 %v1708_v27, %v1891_v40  ;;  %v600_v30 = vpop.f32.mrb[17].mxu0  ;;  %v728_v31 = vpop.f32.mrb[17].mxu1 }
 0x11b   : > { %1576 = vst [vmem:[%s1906_s13 + $0x30] sm:$0xff] %v1444_v24   ;;  %1592 = vst [vmem:[%s1906_s13 + $0xb0] sm:$0xff] %v1524_v25   ;;  %v601_v32 = vadd.f32 %v1891_v40, %v600_v30  ;;  %v729_v33 = vadd.f32 %v1891_v40, %v728_v31  ;;  %v1677_v34 = vpop.f32.mrb[18].mxu0  ;;  %v1709_v35 = vpop.f32.mrb[18].mxu1 }
 0x11c   : > { %v612_v36 = vadd.f32 %v1677_v34, %v1891_v40  ;;  %v740_v37 = vadd.f32 %v1709_v35, %v1891_v40  ;;  %v603_v38 = vpop.f32.mrb[19].mxu0  ;;  %v731_v39 = vpop.f32.mrb[19].mxu1  ;;  %v809_v43 = vmax.f32 %v609_v28, 0.0  ;;  %v841_v44 = vmax.f32 %v737_v29, 0.0 }
 0x11d   : > { %v604_v41 = vadd.f32 %v1891_v40, %v603_v38  ;;  %v732_v42 = vadd.f32 %v1891_v40, %v731_v39  ;;  %v807_v47 = vmax.f32 %v601_v32, 0.0  ;;  %v839_v48 = vmax.f32 %v729_v33, 0.0 }
 0x11e   : > { %v810_v45 = vmax.f32 %v612_v36, 0.0  ;;  %v842_v46 = vmax.f32 %v740_v37, 0.0 }
 0x11f   : > { %v808_v49 = vmax.f32 %v604_v41, 0.0  ;;  %v840_v50 = vmax.f32 %v732_v42, 0.0 }
 0x120   : > { %v1459_v51 = vpack.c.bf16 %v810_v45, %v809_v43  ;;  %v1539_v52 = vpack.c.bf16 %v842_v46, %v841_v44 }
 0x121   : > { %v1454_v53 = vpack.c.bf16 %v808_v49, %v807_v47  ;;  %v1534_v54 = vpack.c.bf16 %v840_v50, %v839_v48  ;;  %v1680_v55 = vpop.f32.mrb[20].mxu0  ;;  %v1712_v56 = vpop.f32.mrb[20].mxu1 }
 0x122   : > { %1579 = vst [vmem:[%s1906_s13 + $0x48] sm:$0xff] %v1459_v51   ;;  %1595 = vst [vmem:[%s1906_s13 + $0xc8] sm:$0xff] %v1539_v52   ;;  %v625_v57 = vadd.f32 %v1680_v55, %v1891_v40  ;;  %v753_v58 = vadd.f32 %v1712_v56, %v1891_v40  ;;  %v616_v59 = vpop.f32.mrb[21].mxu0  ;;  %v744_v60 = vpop.f32.mrb[21].mxu1 }
 0x123   : > { %1578 = vst [vmem:[%s1906_s13 + $0x40] sm:$0xff] %v1454_v53   ;;  %1594 = vst [vmem:[%s1906_s13 + $0xc0] sm:$0xff] %v1534_v54   ;;  %v617_v61 = vadd.f32 %v1891_v40, %v616_v59  ;;  %v745_v62 = vadd.f32 %v1891_v40, %v744_v60  ;;  %v1681_v63 = vpop.f32.mrb[22].mxu0  ;;  %v1713_v0 = vpop.f32.mrb[22].mxu1 }
 0x124   : > { %v628_v1 = vadd.f32 %v1681_v63, %v1891_v40  ;;  %v756_v2 = vadd.f32 %v1713_v0, %v1891_v40  ;;  %v619_v3 = vpop.f32.mrb[23].mxu0  ;;  %v747_v4 = vpop.f32.mrb[23].mxu1  ;;  %v813_v7 = vmax.f32 %v625_v57, 0.0  ;;  %v845_v8 = vmax.f32 %v753_v58, 0.0 }
 0x125   : > { %v620_v5 = vadd.f32 %v1891_v40, %v619_v3  ;;  %v748_v6 = vadd.f32 %v1891_v40, %v747_v4  ;;  %v811_v11 = vmax.f32 %v617_v61, 0.0  ;;  %v843_v12 = vmax.f32 %v745_v62, 0.0 }
 0x126   : > { %v814_v9 = vmax.f32 %v628_v1, 0.0  ;;  %v846_v10 = vmax.f32 %v756_v2, 0.0 }
 0x127   : > { %v812_v13 = vmax.f32 %v620_v5, 0.0  ;;  %v844_v14 = vmax.f32 %v748_v6, 0.0 }
 0x128   : > { %v1469_v15 = vpack.c.bf16 %v814_v9, %v813_v7  ;;  %v1549_v16 = vpack.c.bf16 %v846_v10, %v845_v8 }
 0x129   : > { %v1464_v17 = vpack.c.bf16 %v812_v13, %v811_v11  ;;  %v1544_v18 = vpack.c.bf16 %v844_v14, %v843_v12  ;;  %v1684_v19 = vpop.f32.mrb[24].mxu0  ;;  %v1716_v20 = vpop.f32.mrb[24].mxu1 }
 0x12a   : > { %1581 = vst [vmem:[%s1906_s13 + $0x58] sm:$0xff] %v1469_v15   ;;  %1597 = vst [vmem:[%s1906_s13 + $0xd8] sm:$0xff] %v1549_v16   ;;  %v641_v21 = vadd.f32 %v1684_v19, %v1891_v40  ;;  %v769_v22 = vadd.f32 %v1716_v20, %v1891_v40  ;;  %v632_v23 = vpop.f32.mrb[25].mxu0  ;;  %v760_v24 = vpop.f32.mrb[25].mxu1 }
 0x12b   : > { %1580 = vst [vmem:[%s1906_s13 + $0x50] sm:$0xff] %v1464_v17   ;;  %1596 = vst [vmem:[%s1906_s13 + $0xd0] sm:$0xff] %v1544_v18   ;;  %v633_v25 = vadd.f32 %v1891_v40, %v632_v23  ;;  %v761_v26 = vadd.f32 %v1891_v40, %v760_v24  ;;  %v1685_v27 = vpop.f32.mrb[26].mxu0  ;;  %v1717_v28 = vpop.f32.mrb[26].mxu1 }
 0x12c   : > { %v644_v29 = vadd.f32 %v1685_v27, %v1891_v40  ;;  %v772_v30 = vadd.f32 %v1717_v28, %v1891_v40  ;;  %v635_v31 = vpop.f32.mrb[27].mxu0  ;;  %v763_v32 = vpop.f32.mrb[27].mxu1  ;;  %v817_v35 = vmax.f32 %v641_v21, 0.0  ;;  %v849_v36 = vmax.f32 %v769_v22, 0.0 }
 0x12d   : > { %v636_v33 = vadd.f32 %v1891_v40, %v635_v31  ;;  %v764_v34 = vadd.f32 %v1891_v40, %v763_v32  ;;  %v815_v39 = vmax.f32 %v633_v25, 0.0  ;;  %v847_v41 = vmax.f32 %v761_v26, 0.0 }
 0x12e   : > { %v818_v37 = vmax.f32 %v644_v29, 0.0  ;;  %v850_v38 = vmax.f32 %v772_v30, 0.0 }
 0x12f   : > { %v816_v42 = vmax.f32 %v636_v33, 0.0  ;;  %v848_v43 = vmax.f32 %v764_v34, 0.0 }
 0x130   : > { %v1479_v44 = vpack.c.bf16 %v818_v37, %v817_v35  ;;  %v1559_v45 = vpack.c.bf16 %v850_v38, %v849_v36 }
 0x131   : > { %v1474_v46 = vpack.c.bf16 %v816_v42, %v815_v39  ;;  %v1554_v47 = vpack.c.bf16 %v848_v43, %v847_v41  ;;  %v1688_v48 = vpop.f32.mrb[28].mxu0  ;;  %v1720_v49 = vpop.f32.mrb[28].mxu1 }
 0x132   : > { %1583 = vst [vmem:[%s1906_s13 + $0x68] sm:$0xff] %v1479_v44   ;;  %1599 = vst [vmem:[%s1906_s13 + $0xe8] sm:$0xff] %v1559_v45   ;;  %v657_v50 = vadd.f32 %v1688_v48, %v1891_v40  ;;  %v785_v51 = vadd.f32 %v1720_v49, %v1891_v40  ;;  %v648_v52 = vpop.f32.mrb[29].mxu0  ;;  %v776_v53 = vpop.f32.mrb[29].mxu1 }
 0x133   : > { %1582 = vst [vmem:[%s1906_s13 + $0x60] sm:$0xff] %v1474_v46   ;;  %1598 = vst [vmem:[%s1906_s13 + $0xe0] sm:$0xff] %v1554_v47   ;;  %v649_v54 = vadd.f32 %v1891_v40, %v648_v52  ;;  %v777_v55 = vadd.f32 %v1891_v40, %v776_v53  ;;  %v1689_v56 = vpop.f32.mrb[30].mxu0  ;;  %v1721_v57 = vpop.f32.mrb[30].mxu1 }
 0x134   : > { %v660_v58 = vadd.f32 %v1689_v56, %v1891_v40  ;;  %v788_v59 = vadd.f32 %v1721_v57, %v1891_v40  ;;  %v651_v60 = vpop.f32.mrb[31].mxu0  ;;  %v779_v61 = vpop.f32.mrb[31].mxu1  ;;  %v821_v0 = vmax.f32 %v657_v50, 0.0  ;;  %v853_v1 = vmax.f32 %v785_v51, 0.0 }
 0x135   : > { %v652_v62 = vadd.f32 %v1891_v40, %v651_v60  ;;  %v780_v63 = vadd.f32 %v1891_v40, %v779_v61  ;;  %v819_v4 = vmax.f32 %v649_v54, 0.0  ;;  %v851_v5 = vmax.f32 %v777_v55, 0.0 }
 0x136   : > { %v822_v2 = vmax.f32 %v660_v58, 0.0  ;;  %v854_v3 = vmax.f32 %v788_v59, 0.0 }
 0x137   : > { %v820_v6 = vmax.f32 %v652_v62, 0.0  ;;  %v852_v7 = vmax.f32 %v780_v63, 0.0 }
 0x138   : > { %v1489_v8 = vpack.c.bf16 %v822_v2, %v821_v0  ;;  %v1569_v9 = vpack.c.bf16 %v854_v3, %v853_v1 }
 0x139   : > { %v1484_v10 = vpack.c.bf16 %v820_v6, %v819_v4  ;;  %v1564_v11 = vpack.c.bf16 %v852_v7, %v851_v5 }
 0x13a   : > { %1585 = vst [vmem:[%s1906_s13 + $0x78] sm:$0xff] %v1489_v8   ;;  %1601 = vst [vmem:[%s1906_s13 + $0xf8] sm:$0xff] %v1569_v9  }
 0x13b   : > { %1584 = vst [vmem:[%s1906_s13 + $0x70] sm:$0xff] %v1484_v10   ;;  %1600 = vst [vmem:[%s1906_s13 + $0xf0] sm:$0xff] %v1564_v11  }
 0x13c PF: > { %s13_s12 = sadd.s32 1, %s1792_s12  }
 0x13d   : > { %p10_p4 = scmp.ge.s32.totalorder %s13_s12, 5  }
 0x13f   :  { %12 = sbr.rel (!%p10_p4) target bundleno = 1 (0x1), region = 62 }

// kernel: dqn_forward.4
= control target key start
LH: loop header
LB: loop body
LE: loop exit
PB: predicated region body
PF: predicated region fallthrough
CT: control target
= control target key end

     0   :  { %vm8946_vm0 = vmmov 0   ;;  %s11349_s1 = inlined_call_operand.vmem [shape: bf16[3200,128], index: 1, kind: input, shape index: {}]   ;;  %s11350_s0 = inlined_call_operand.vmem [shape: bf16[240,3200], index: 0, kind: input, shape index: {}]   ;;  %s11351_s2 = inlined_call_operand.vmem [shape: f32[1,128], index: 2, kind: input, shape index: {}]   ;;  %s11352_s3 = inlined_call_operand.vmem [shape: bf16[240,128], index: 3, kind: output, shape index: {}]  }
   0x1   :  { %v8189_v0 = vld [vmem:[%s11349_s1 + $0x40] sm:$0xff]   ;;  %v8191_v2 = vld [vmem:[%s11349_s1 + $0x48] sm:$0xff]   ;;  %v8193_v4 = vld [vmem:[%s11349_s1 + $0x50] sm:$0xff]  }
   0x2   :  { %v8190_v1 = vld [vmem:[%s11349_s1] sm:$0xff]   ;;  %6800 = vmatprep.subr.bf16.mxu0 %v8189_v0  ;;  %8171 = vmatprep.subr.bf16.mxu1 %v8189_v0  ;;  %v8192_v3 = vld [vmem:[%s11349_s1 + $0x8] sm:$0xff]   ;;  %v8194_v5 = vld [vmem:[%s11349_s1 + $0x10] sm:$0xff]  }
   0x3   :  { %6801 = vmatpush3.bf16.msra.mxu0 %v8190_v1  ;;  %8179 = vmatpush3.bf16.msra.mxu1 %v8190_v1  ;;  %v8195_v6 = vld [vmem:[%s11349_s1 + $0x58] sm:$0xff]   ;;  %v8197_v8 = vld [vmem:[%s11349_s1 + $0x60] sm:$0xff]   ;;  %v8199_v10 = vld [vmem:[%s11349_s1 + $0x68] sm:$0xff]  }
   0x4   :  { %6802 = vmatprep.subr.bf16.mxu0 %v8191_v2  ;;  %8172 = vmatprep.subr.bf16.mxu1 %v8191_v2  ;;  %v8196_v7 = vld [vmem:[%s11349_s1 + $0x18] sm:$0xff]   ;;  %v8198_v9 = vld [vmem:[%s11349_s1 + $0x20] sm:$0xff]   ;;  %v8200_v13 = vld [vmem:[%s11349_s1 + $0x28] sm:$0xff]  }
   0x5   :  { %v8207_v11 = vld [vmem:[%s11350_s0 + $0x4] ss:$100 sps:$4 sm:$0xff]   ;;  %v8201_v14 = vld [vmem:[%s11349_s1 + $0x70] sm:$0xff]   ;;  %v8203_v16 = vld [vmem:[%s11349_s1 + $0x78] sm:$0xff]  }
   0x6   :  { %v8210_v12 = vld [vmem:[%s11350_s0 + $0x644] ss:$100 sps:$4 sm:$0xff]   ;;  %3934 = vmatprep.mubr.bf16.mxu0 %v8207_v11  ;;  %v8202_v15 = vld [vmem:[%s11349_s1 + $0x30] sm:$0xff]   ;;  %v8204_v17 = vld [vmem:[%s11349_s1 + $0x38] sm:$0xff]  }
   0x7   :  { %6803 = vmatpush3.bf16.msra.mxu0 %v8192_v3  ;;  %8180 = vmatpush3.bf16.msra.mxu1 %v8192_v3  ;;  %v8211_v18 = vld [vmem:[%s11349_s1 + $0x140] sm:$0xff]   ;;  %v8215_v24 = vld [vmem:[%s11350_s0 + $0xcc] ss:$100 sps:$4 sm:$0xff]   ;;  %v8225_v34 = vld [vmem:[%s11350_s0 + $0x194] ss:$100 sps:$4 sm:$0xff]  }
   0x8   :  { %6804 = vmatprep.subr.bf16.mxu0 %v8193_v4  ;;  %8173 = vmatprep.subr.bf16.mxu1 %v8193_v4  ;;  %v8205_v19 = vld [vmem:[%s11350_s0] ss:$100 sps:$4 sm:$0xff]   ;;  %v8217_v25 = vld [vmem:[%s11350_s0 + $0x70c] ss:$100 sps:$4 sm:$0xff]   ;;  %v8227_v35 = vld [vmem:[%s11350_s0 + $0x7d4] ss:$100 sps:$4 sm:$0xff]  }
   0x9   :  { %3998 = vmatprep.mubr.bf16.mxu1 %v8210_v12  ;;  %v8213_v20 = vld [vmem:[%s11349_s1 + $0xc0] sm:$0xff]   ;;  %v8221_v26 = vld [vmem:[%s11349_s1 + $0x148] sm:$0xff]   ;;  %v8231_v30 = vld [vmem:[%s11349_s1 + $0x150] sm:$0xff]  }
   0xa   :  { %v8208_v21 = vld [vmem:[%s11350_s0 + $0x640] ss:$100 sps:$4 sm:$0xff]   ;;  %v8222_v27 = vld [vmem:[%s11349_s1 + $0x108] sm:$0xff]   ;;  %v8232_v33 = vld [vmem:[%s11349_s1 + $0xd0] sm:$0xff]  }
   0xb   :  { %6805 = vmatpush3.bf16.msra.mxu0 %v8194_v5  ;;  %8181 = vmatpush3.bf16.msra.mxu1 %v8194_v5  ;;  %v8212_v22 = vld [vmem:[%s11349_s1 + $0x100] sm:$0xff]   ;;  %v8223_v28 = vld [vmem:[%s11349_s1 + $0xc8] sm:$0xff]   ;;  %v8233_v36 = vld [vmem:[%s11349_s1 + $0x110] sm:$0xff]  }
   0xc   :  { %6806 = vmatprep.subr.bf16.mxu0 %v8195_v6  ;;  %8174 = vmatprep.subr.bf16.mxu1 %v8195_v6  ;;  %v8214_v23 = vld [vmem:[%s11349_s1 + $0x80] sm:$0xff]   ;;  %v8224_v29 = vld [vmem:[%s11349_s1 + $0x88] sm:$0xff]   ;;  %v8234_v37 = vld [vmem:[%s11349_s1 + $0x90] sm:$0xff]  }
   0xd   :  { %v8219_v31 = vld [vmem:[%s11350_s0 + $0xc8] ss:$100 sps:$4 sm:$0xff]   ;;  %v8241_v38 = vld [vmem:[%s11349_s1 + $0xd8] sm:$0xff]   ;;  %v8229_v41 = vld [vmem:[%s11350_s0 + $0x190] ss:$100 sps:$4 sm:$0xff]  }
   0xe   :  { %v8220_v32 = vld [vmem:[%s11350_s0 + $0x708] ss:$100 sps:$4 sm:$0xff]   ;;  %v8242_v39 = vld [vmem:[%s11349_s1 + $0x158] sm:$0xff]   ;;  %v8230_v42 = vld [vmem:[%s11350_s0 + $0x7d0] ss:$100 sps:$4 sm:$0xff]  }
   0xf   :  { %6807 = vmatpush3.bf16.msra.mxu0 %v8196_v7  ;;  %8182 = vmatpush3.bf16.msra.mxu1 %v8196_v7  ;;  %v8243_v40 = vld [vmem:[%s11349_s1 + $0x98] sm:$0xff]   ;;  %v8249_v45 = vld [vmem:[%s11349_s1 + $0xe0] sm:$0xff]   ;;  %v8255_v50 = vld [vmem:[%s11349_s1 + $0xe8] sm:$0xff]  }
  0x10   :  { %6808 = vmatprep.subr.bf16.mxu0 %v8197_v8  ;;  %8175 = vmatprep.subr.bf16.mxu1 %v8197_v8  ;;  %v8244_v43 = vld [vmem:[%s11349_s1 + $0x118] sm:$0xff]   ;;  %v8252_v47 = vld [vmem:[%s11349_s1 + $0xa0] sm:$0xff]   ;;  %v8260_v55 = vld [vmem:[%s11349_s1 + $0xa8] sm:$0xff]  }
  0x11   :  { %v8235_v44 = vld [vmem:[%s11350_s0 + $0x25c] ss:$100 sps:$4 sm:$0xff]   ;;  %v8245_v53 = vld [vmem:[%s11350_s0 + $0x324] ss:$100 sps:$4 sm:$0xff]   ;;  %v8265_v58 = vld [vmem:[%s11349_s1 + $0xf0] sm:$0xff]  }
  0x12   :  { %v8237_v46 = vld [vmem:[%s11350_s0 + $0x89c] ss:$100 sps:$4 sm:$0xff]   ;;  %v8247_v54 = vld [vmem:[%s11350_s0 + $0x964] ss:$100 sps:$4 sm:$0xff]   ;;  %v8266_v59 = vld [vmem:[%s11349_s1 + $0xb0] sm:$0xff]  }
  0x13   :  { %6809 = vmatpush3.bf16.msra.mxu0 %v8198_v9  ;;  %8183 = vmatpush3.bf16.msra.mxu1 %v8198_v9  ;;  %v8253_v48 = vld [vmem:[%s11349_s1 + $0x160] sm:$0xff]   ;;  %v8239_v51 = vld [vmem:[%s11350_s0 + $0x258] ss:$100 sps:$4 sm:$0xff]   ;;  %v8263_v56 = vld [vmem:[%s11349_s1 + $0x168] sm:$0xff]  }
  0x14   :  { %6810 = vmatprep.subr.bf16.mxu0 %v8199_v10  ;;  %8176 = vmatprep.subr.bf16.mxu1 %v8199_v10  ;;  %v8254_v49 = vld [vmem:[%s11349_s1 + $0x120] sm:$0xff]   ;;  %v8240_v52 = vld [vmem:[%s11350_s0 + $0x898] ss:$100 sps:$4 sm:$0xff]   ;;  %v8264_v57 = vld [vmem:[%s11349_s1 + $0x128] sm:$0xff]  }
  0x15   :  { %v8250_v60 = vld [vmem:[%s11350_s0 + $0x320] ss:$100 sps:$4 sm:$0xff]   ;;  %v8256_v62 = vld [vmem:[%s11350_s0 + $0x3ec] ss:$100 sps:$4 sm:$0xff]   ;;  %v8275_v2 = vld [vmem:[%s11349_s1 + $0xf8] sm:$0xff]  }
  0x16   :  { %v8251_v61 = vld [vmem:[%s11350_s0 + $0x960] ss:$100 sps:$4 sm:$0xff]   ;;  %v8258_v63 = vld [vmem:[%s11350_s0 + $0xa2c] ss:$100 sps:$4 sm:$0xff]   ;;  %v8276_v3 = vld [vmem:[%s11349_s1 + $0xb8] sm:$0xff]  }
  0x17   :  { %6811 = vmatpush3.bf16.msra.mxu0 %v8200_v13  ;;  %8184 = vmatpush3.bf16.msra.mxu1 %v8200_v13  ;;  %v8273_v0 = vld [vmem:[%s11349_s1 + $0x170] sm:$0xff]   ;;  %v8261_v4 = vld [vmem:[%s11350_s0 + $0x3e8] ss:$100 sps:$4 sm:$0xff]   ;;  %v8283_v6 = vld [vmem:[%s11349_s1 + $0x178] sm:$0xff]  }
  0x18   :  { %6812 = vmatprep.subr.bf16.mxu0 %v8201_v14  ;;  %8177 = vmatprep.subr.bf16.mxu1 %v8201_v14  ;;  %v8274_v1 = vld [vmem:[%s11349_s1 + $0x130] sm:$0xff]   ;;  %v8262_v5 = vld [vmem:[%s11350_s0 + $0xa28] ss:$100 sps:$4 sm:$0xff]   ;;  %v8284_v8 = vld [vmem:[%s11349_s1 + $0x138] sm:$0xff]  }
  0x19   :  { %v8267_v7 = vld [vmem:[%s11350_s0 + $0x4b4] ss:$100 sps:$4 sm:$0xff]   ;;  %v8285_v9 = vld [vmem:[%s11349_s1 + $0x1c0] sm:$0xff]  }
  0x1a   :  { %v8269_v10 = vld [vmem:[%s11350_s0 + $0xaf4] ss:$100 sps:$4 sm:$0xff]   ;;  %v8293_v11 = vld [vmem:[%s11349_s1 + $0x240] sm:$0xff]  }
  0x1b   :  { %6813 = vmatpush3.bf16.msra.mxu0 %v8202_v15  ;;  %8185 = vmatpush3.bf16.msra.mxu1 %v8202_v15  ;;  %v8271_v12 = vld [vmem:[%s11350_s0 + $0x4b0] ss:$100 sps:$4 sm:$0xff]   ;;  %v8277_v14 = vld [vmem:[%s11350_s0 + $0x57c] ss:$100 sps:$4 sm:$0xff]  }
  0x1c   :  { %6814 = vmatprep.subr.bf16.mxu0 %v8203_v16  ;;  %8178 = vmatprep.subr.bf16.mxu1 %v8203_v16  ;;  %v8272_v13 = vld [vmem:[%s11350_s0 + $0xaf0] ss:$100 sps:$4 sm:$0xff]   ;;  %v8279_v16 = vld [vmem:[%s11350_s0 + $0x8] ss:$100 sps:$4 sm:$0xff]  }
  0x1d   :  { %v8281_v15 = vld [vmem:[%s11350_s0 + $0xc] ss:$100 sps:$4 sm:$0xff]  }
  0x1f   :  { %6815 = vmatpush3.bf16.msra.mxu0 %v8204_v17  ;;  %8186 = vmatpush3.bf16.msra.mxu1 %v8204_v17  ;;  %v8282_v17 = vld [vmem:[%s11350_s0 + $0x578] ss:$100 sps:$4 sm:$0xff]  }
  0x20   :  { %7012 = vmatprep.subr.bf16.mxu0 %v8211_v18  ;;  %6906 = vmatprep.subr.bf16.mxu1 %v8213_v20  ;;  %v8286_v18 = vld [vmem:[%s11349_s1 + $0x180] sm:$0xff]   ;;  %v8291_v20 = vld [vmem:[%s11350_s0 + $0x14] ss:$100 sps:$4 sm:$0xff]  }
  0x22   :  { %3935 = vmatmul.mubr.bf16.vlgmr.msra.gmra.mrb[0].mxu0 %v8205_v19  ;;  %3999 = vmatmul.mubr.bf16.vlgmr.msra.gmra.mrb[0].mxu1 %v8208_v21  ;;  %v8287_v19 = vld [vmem:[%s11350_s0 + $0xd4] ss:$100 sps:$4 sm:$0xff]   ;;  %v8301_v21 = vld [vmem:[%s11349_s1 + $0x1c8] sm:$0xff]  }
  0x23   :  { %7013 = vmatpush3.bf16.msra.mxu0 %v8212_v22  ;;  %6907 = vmatpush3.bf16.msra.mxu1 %v8214_v23  ;;  %v8302_v22 = vld [vmem:[%s11349_s1 + $0x188] sm:$0xff]   ;;  %v8317_v23 = vld [vmem:[%s11349_s1 + $0x1d0] sm:$0xff]  }
  0x24   :  { %3942 = vmatprep.mubr.bf16.mxu0 %v8215_v24  ;;  %4006 = vmatprep.mubr.bf16.mxu1 %v8217_v25  ;;  %v8289_v24 = vld [vmem:[%s11350_s0 + $0x10] ss:$100 sps:$4 sm:$0xff]  }
  0x25   :  { %7014 = vmatprep.subr.bf16.mxu0 %v8221_v26  ;;  %6908 = vmatprep.subr.bf16.mxu1 %v8223_v28  ;;  %v8292_v25 = vld [vmem:[%s11350_s0 + $0xd0] ss:$100 sps:$4 sm:$0xff]   ;;  %v8294_v26 = vld [vmem:[%s11349_s1 + $0x200] sm:$0xff]  }
  0x26   :  { %v8297_v28 = vld [vmem:[%s11350_s0 + $0xdc] ss:$100 sps:$4 sm:$0xff]  }
  0x27   :  { %7015 = vmatpush3.bf16.msra.mxu0 %v8222_v27  ;;  %6909 = vmatpush3.bf16.msra.mxu1 %v8224_v29  ;;  %v8295_v27 = vld [vmem:[%s11350_s0 + $0x19c] ss:$100 sps:$4 sm:$0xff]   ;;  %v8307_v29 = vld [vmem:[%s11349_s1 + $0x248] sm:$0xff]  }
  0x28   :  { %7016 = vmatprep.subr.bf16.mxu0 %v8231_v30  ;;  %6910 = vmatprep.subr.bf16.mxu1 %v8232_v33  ;;  %v8318_v30 = vld [vmem:[%s11349_s1 + $0x190] sm:$0xff]   ;;  %v8299_v33 = vld [vmem:[%s11350_s0 + $0x198] ss:$100 sps:$4 sm:$0xff]  }
  0x2a   :  { %3943 = vmatmul.mubr.bf16.gmra.mrb[4].mxu0 %v8219_v31  ;;  %4007 = vmatmul.mubr.bf16.gmra.mrb[4].mxu1 %v8220_v32  ;;  %v8333_v31 = vld [vmem:[%s11349_s1 + $0x1d8] sm:$0xff]   ;;  %v8310_v32 = vld [vmem:[%s11349_s1 + $0x208] sm:$0xff]  }
  0x2b   :  { %3950 = vmatprep.mubr.bf16.mxu0 %v8225_v34  ;;  %4014 = vmatprep.mubr.bf16.mxu1 %v8227_v35  ;;  %v8319_v34 = vld [vmem:[%s11349_s1 + $0x250] sm:$0xff]   ;;  %v8334_v35 = vld [vmem:[%s11349_s1 + $0x198] sm:$0xff]  }
  0x2c   :  { %7017 = vmatpush3.bf16.msra.mxu0 %v8233_v36  ;;  %6911 = vmatpush3.bf16.msra.mxu1 %v8234_v37  ;;  %v8300_v36 = vld [vmem:[%s11350_s0 + $0xd8] ss:$100 sps:$4 sm:$0xff]   ;;  %v8303_v37 = vld [vmem:[%s11350_s0 + $0x264] ss:$100 sps:$4 sm:$0xff]  }
  0x2d   :  { %6912 = vmatprep.subr.bf16.mxu1 %v8241_v38  ;;  %7018 = vmatprep.subr.bf16.mxu0 %v8242_v39  ;;  %v8305_v38 = vld [vmem:[%s11350_s0 + $0x1a4] ss:$100 sps:$4 sm:$0xff]   ;;  %v8324_v39 = vld [vmem:[%s11349_s1 + $0x210] sm:$0xff]  }
  0x30   :  { %6913 = vmatpush3.bf16.msra.mxu1 %v8243_v40  ;;  %7019 = vmatpush3.bf16.msra.mxu0 %v8244_v43  ;;  %v8335_v40 = vld [vmem:[%s11349_s1 + $0x258] sm:$0xff]   ;;  %v8308_v43 = vld [vmem:[%s11350_s0 + $0x260] ss:$100 sps:$4 sm:$0xff]  }
  0x31   :  { %6914 = vmatprep.subr.bf16.mxu1 %v8249_v45  ;;  %7020 = vmatprep.subr.bf16.mxu0 %v8253_v48  ;;  %v8350_v45 = vld [vmem:[%s11349_s1 + $0x1a0] sm:$0xff]   ;;  %v8313_v48 = vld [vmem:[%s11350_s0 + $0x26c] ss:$100 sps:$4 sm:$0xff]  }
  0x32   :  { %3951 = vmatmul.mubr.bf16.gmra.mrb[8].mxu0 %v8229_v41  ;;  %4015 = vmatmul.mubr.bf16.gmra.mrb[8].mxu1 %v8230_v42  ;;  %v8347_v41 = vld [vmem:[%s11349_s1 + $0x1e0] sm:$0xff]   ;;  %v8336_v42 = vld [vmem:[%s11349_s1 + $0x218] sm:$0xff]  }
  0x33   :  { %3958 = vmatprep.mubr.bf16.mxu0 %v8235_v44  ;;  %4022 = vmatprep.mubr.bf16.mxu1 %v8237_v46  ;;  %v8309_v44 = vld [vmem:[%s11350_s0 + $0x1a0] ss:$100 sps:$4 sm:$0xff]  }
  0x34   :  { %6915 = vmatpush3.bf16.msra.mxu1 %v8252_v47  ;;  %7021 = vmatpush3.bf16.msra.mxu0 %v8254_v49  ;;  %v8351_v46 = vld [vmem:[%s11349_s1 + $0x260] sm:$0xff]   ;;  %v8311_v47 = vld [vmem:[%s11350_s0 + $0x32c] ss:$100 sps:$4 sm:$0xff]  }
  0x35   :  { %6916 = vmatprep.subr.bf16.mxu1 %v8255_v50  ;;  %7022 = vmatprep.subr.bf16.mxu0 %v8263_v56  ;;  %v8352_v49 = vld [vmem:[%s11349_s1 + $0x220] sm:$0xff]   ;;  %v8359_v50 = vld [vmem:[%s11349_s1 + $0x1e8] sm:$0xff]  }
  0x36   :  { %v8367_v56 = vld [vmem:[%s11349_s1 + $0x268] sm:$0xff]  }
  0x38   :  { %6917 = vmatpush3.bf16.msra.mxu1 %v8260_v55  ;;  %7023 = vmatpush3.bf16.msra.mxu0 %v8264_v57  ;;  %v8364_v55 = vld [vmem:[%s11349_s1 + $0x1a8] sm:$0xff]  }
  0x39   :  { %6918 = vmatprep.subr.bf16.mxu1 %v8265_v58  ;;  %7024 = vmatprep.subr.bf16.mxu0 %v8273_v0  ;;  %v8368_v57 = vld [vmem:[%s11349_s1 + $0x228] sm:$0xff]   ;;  %v8375_v58 = vld [vmem:[%s11349_s1 + $0x1f0] sm:$0xff]  }
  0x3a   :  { %3959 = vmatmul.mubr.bf16.gmra.mrb[12].mxu0 %v8239_v51  ;;  %4023 = vmatmul.mubr.bf16.gmra.mrb[12].mxu1 %v8240_v52  ;;  %v8315_v51 = vld [vmem:[%s11350_s0 + $0x328] ss:$100 sps:$4 sm:$0xff]   ;;  %v8383_v0 = vld [vmem:[%s11349_s1 + $0x270] sm:$0xff]  }
  0x3b   :  { %3966 = vmatprep.mubr.bf16.mxu0 %v8245_v53  ;;  %4030 = vmatprep.mubr.bf16.mxu1 %v8247_v54  ;;  %v8316_v52 = vld [vmem:[%s11350_s0 + $0x268] ss:$100 sps:$4 sm:$0xff]   ;;  %v8320_v53 = vld [vmem:[%s11350_s0 + $0x3f4] ss:$100 sps:$4 sm:$0xff]  }
  0x3c   :  { %6919 = vmatpush3.bf16.msra.mxu1 %v8266_v59  ;;  %7025 = vmatpush3.bf16.msra.mxu0 %v8274_v1  ;;  %v8322_v54 = vld [vmem:[%s11350_s0 + $0x334] ss:$100 sps:$4 sm:$0xff]  }
  0x3d   :  { %6920 = vmatprep.subr.bf16.mxu1 %v8275_v2  ;;  %7026 = vmatprep.subr.bf16.mxu0 %v8283_v6  ;;  %v8376_v59 = vld [vmem:[%s11349_s1 + $0x1b0] sm:$0xff]   ;;  %v8331_v2 = vld [vmem:[%s11350_s0 + $0x4b8] ss:$100 sps:$4 sm:$0xff]   ;;  %v8337_v6 = vld [vmem:[%s11350_s0 + $0x584] ss:$100 sps:$4 sm:$0xff]  }
  0x3e   :  { %v8384_v1 = vld [vmem:[%s11349_s1 + $0x230] sm:$0xff]  }
  0x40   :  { %6921 = vmatpush3.bf16.msra.mxu1 %v8276_v3  ;;  %7027 = vmatpush3.bf16.msra.mxu0 %v8284_v8  ;;  %v8332_v3 = vld [vmem:[%s11350_s0 + $0x3f8] ss:$100 sps:$4 sm:$0xff]  }
  0x41   :  { %7118 = vmatprep.subr.bf16.mxu1 %v8285_v9  ;;  %7224 = vmatprep.subr.bf16.mxu0 %v8293_v11  ;;  %v8399_v8 = vld [vmem:[%s11349_s1 + $0x278] sm:$0xff]   ;;  %v8342_v11 = vld [vmem:[%s11350_s0 + $0x4c0] ss:$100 sps:$4 sm:$0xff]  }
  0x42   :  { %3967 = vmatmul.mubr.bf16.gmra.mrb[16].mxu0 %v8250_v60  ;;  %4031 = vmatmul.mubr.bf16.gmra.mrb[16].mxu1 %v8251_v61  ;;  %v8325_v60 = vld [vmem:[%s11350_s0 + $0x3f0] ss:$100 sps:$4 sm:$0xff]   ;;  %v8400_v9 = vld [vmem:[%s11349_s1 + $0x238] sm:$0xff]  }
  0x43   :  { %3974 = vmatprep.mubr.bf16.mxu0 %v8256_v62  ;;  %4038 = vmatprep.mubr.bf16.mxu1 %v8258_v63  ;;  %v8326_v61 = vld [vmem:[%s11350_s0 + $0x330] ss:$100 sps:$4 sm:$0xff]   ;;  %v8327_v62 = vld [vmem:[%s11350_s0 + $0x4bc] ss:$100 sps:$4 sm:$0xff]  }
  0x44   :  { %v8329_v63 = vld [vmem:[%s11350_s0 + $0x3fc] ss:$100 sps:$4 sm:$0xff]  }
  0x4a   :  { %3975 = vmatmul.mubr.bf16.gmra.mrb[20].mxu0 %v8261_v4  ;;  %4039 = vmatmul.mubr.bf16.gmra.mrb[20].mxu1 %v8262_v5  ;;  %v8391_v4 = vld [vmem:[%s11349_s1 + $0x1f8] sm:$0xff]  }
  0x4b   :  { %3982 = vmatprep.mubr.bf16.mxu0 %v8267_v7  ;;  %4046 = vmatprep.mubr.bf16.mxu1 %v8269_v10  ;;  %v8392_v5 = vld [vmem:[%s11349_s1 + $0x1b8] sm:$0xff]   ;;  %v8339_v7 = vld [vmem:[%s11350_s0 + $0x4c4] ss:$100 sps:$4 sm:$0xff]  }
  0x4c   :  { %v8341_v10 = vld [vmem:[%s11350_s0 + $0x580] ss:$100 sps:$4 sm:$0xff]  }
  0x52   :  { %3983 = vmatmul.mubr.bf16.gmra.mrb[24].mxu0 %v8271_v12  ;;  %4047 = vmatmul.mubr.bf16.gmra.mrb[24].mxu1 %v8272_v13  ;;  %v8343_v12 = vld [vmem:[%s11350_s0 + $0x64c] ss:$100 sps:$4 sm:$0xff]   ;;  %v8407_v13 = vld [vmem:[%s11349_s1 + $0x2c0] sm:$0xff]  }
  0x53   :  { %3990 = vmatprep.mubr.bf16.mxu0 %v8277_v14  ;;  %4087 = vmatprep.mubr.bf16.mxu1 %v8281_v15  ;;  %v8345_v14 = vld [vmem:[%s11350_s0 + $0x58c] ss:$100 sps:$4 sm:$0xff]   ;;  %v8415_v15 = vld [vmem:[%s11349_s1 + $0x340] sm:$0xff]  }
  0x5a   :  { %3991 = vmatmul.mubr.bf16.gmra.mrb[28].mxu0 %v8282_v17  ;;  %4088 = vmatmul.mubr.bf16.vlgmr.msra.gmra.mrb[28].mxu1 %v8279_v16  ;;  %v8348_v16 = vld [vmem:[%s11350_s0 + $0x648] ss:$100 sps:$4 sm:$0xff]  }
  0x5b   :  { %7119 = vmatpush3.bf16.msra.mxu1 %v8286_v18  ;;  %4095 = vmatprep.mubr.bf16.mxu1 %v8287_v19  ;;  %v8349_v17 = vld [vmem:[%s11350_s0 + $0x588] ss:$100 sps:$4 sm:$0xff]   ;;  %v8353_v18 = vld [vmem:[%s11350_s0 + $0x714] ss:$100 sps:$4 sm:$0xff]  }
  0x5c   :  { %4240 = vmatprep.mubr.bf16.mxu0 %v8291_v20  ;;  %7120 = vmatprep.subr.bf16.mxu1 %v8301_v21  ;;  %v8355_v19 = vld [vmem:[%s11350_s0 + $0x654] ss:$100 sps:$4 sm:$0xff]  }
  0x5d   :  { %v8357_v20 = vld [vmem:[%s11350_s0 + $0x710] ss:$100 sps:$4 sm:$0xff]  }
  0x5e   :  { %v8358_v21 = vld [vmem:[%s11350_s0 + $0x650] ss:$100 sps:$4 sm:$0xff]  }
  0x5f   :  { %7121 = vmatpush3.bf16.msra.mxu1 %v8302_v22  ;;  %v8360_v22 = vld [vmem:[%s11350_s0 + $0x7dc] ss:$100 sps:$4 sm:$0xff]  }
  0x60   :  { %7122 = vmatprep.subr.bf16.mxu1 %v8317_v23  ;;  %v8362_v23 = vld [vmem:[%s11350_s0 + $0x71c] ss:$100 sps:$4 sm:$0xff]  }
  0x62   :  { %4096 = vmatmul.mubr.bf16.gmra.mrb[32].mxu1 %v8292_v25  ;;  %4241 = vmatmul.mubr.bf16.vlgmr.msra.gmra.mrb[32].mxu0 %v8289_v24  ;;  %v8365_v24 = vld [vmem:[%s11350_s0 + $0x7d8] ss:$100 sps:$4 sm:$0xff]  }
  0x63   :  { %7225 = vmatpush3.bf16.msra.mxu0 %v8294_v26  ;;  %4103 = vmatprep.mubr.bf16.mxu1 %v8295_v27  ;;  %v8366_v25 = vld [vmem:[%s11350_s0 + $0x718] ss:$100 sps:$4 sm:$0xff]   ;;  %v8369_v26 = vld [vmem:[%s11350_s0 + $0x8a4] ss:$100 sps:$4 sm:$0xff]  }
  0x64   :  { %4248 = vmatprep.mubr.bf16.mxu0 %v8297_v28  ;;  %7226 = vmatprep.subr.bf16.mxu0 %v8307_v29  ;;  %v8371_v27 = vld [vmem:[%s11350_s0 + $0x7e4] ss:$100 sps:$4 sm:$0xff]  }
  0x65   :  { %7123 = vmatpush3.bf16.msra.mxu1 %v8318_v30  ;;  %v8373_v28 = vld [vmem:[%s11350_s0 + $0x8a0] ss:$100 sps:$4 sm:$0xff]   ;;  %v8377_v30 = vld [vmem:[%s11350_s0 + $0x96c] ss:$100 sps:$4 sm:$0xff]  }
  0x66   :  { %7124 = vmatprep.subr.bf16.mxu1 %v8333_v31  ;;  %v8374_v29 = vld [vmem:[%s11350_s0 + $0x7e0] ss:$100 sps:$4 sm:$0xff]   ;;  %v8379_v31 = vld [vmem:[%s11350_s0 + $0x8ac] ss:$100 sps:$4 sm:$0xff]  }
  0x67   :  { %7227 = vmatpush3.bf16.msra.mxu0 %v8310_v32  ;;  %v8381_v32 = vld [vmem:[%s11350_s0 + $0x968] ss:$100 sps:$4 sm:$0xff]  }
  0x68   :  { %7228 = vmatprep.subr.bf16.mxu0 %v8319_v34  ;;  %v8385_v34 = vld [vmem:[%s11350_s0 + $0xa34] ss:$100 sps:$4 sm:$0xff]  }
  0x69   :  { %7125 = vmatpush3.bf16.msra.mxu1 %v8334_v35  ;;  %v8387_v35 = vld [vmem:[%s11350_s0 + $0x974] ss:$100 sps:$4 sm:$0xff]  }
  0x6a   :  { %4104 = vmatmul.mubr.bf16.gmra.mrb[36].mxu1 %v8299_v33  ;;  %4249 = vmatmul.mubr.bf16.gmra.mrb[36].mxu0 %v8300_v36  ;;  %v8382_v33 = vld [vmem:[%s11350_s0 + $0x8a8] ss:$100 sps:$4 sm:$0xff]   ;;  %v8389_v36 = vld [vmem:[%s11350_s0 + $0xa30] ss:$100 sps:$4 sm:$0xff]  }
  0x6b   :  { %4111 = vmatprep.mubr.bf16.mxu1 %v8303_v37  ;;  %4256 = vmatprep.mubr.bf16.mxu0 %v8305_v38  ;;  %v8390_v37 = vld [vmem:[%s11350_s0 + $0x970] ss:$100 sps:$4 sm:$0xff]   ;;  %v8393_v38 = vld [vmem:[%s11350_s0 + $0xafc] ss:$100 sps:$4 sm:$0xff]  }
  0x6c   :  { %7229 = vmatpush3.bf16.msra.mxu0 %v8324_v39  ;;  %7126 = vmatprep.subr.bf16.mxu1 %v8347_v41  ;;  %v8395_v39 = vld [vmem:[%s11350_s0 + $0xa3c] ss:$100 sps:$4 sm:$0xff]  }
  0x6d   :  { %7230 = vmatprep.subr.bf16.mxu0 %v8335_v40  ;;  %7127 = vmatpush3.bf16.msra.mxu1 %v8350_v45  ;;  %v8397_v40 = vld [vmem:[%s11350_s0 + $0xaf8] ss:$100 sps:$4 sm:$0xff]   ;;  %v8406_v45 = vld [vmem:[%s11350_s0 + $0xb00] ss:$100 sps:$4 sm:$0xff]  }
  0x6e   :  { %7128 = vmatprep.subr.bf16.mxu1 %v8359_v50  ;;  %v8398_v41 = vld [vmem:[%s11350_s0 + $0xa38] ss:$100 sps:$4 sm:$0xff]   ;;  %v8424_v50 = vld [vmem:[%s11349_s1 + $0x288] sm:$0xff]  }
  0x70   :  { %7231 = vmatpush3.bf16.msra.mxu0 %v8336_v42  ;;  %v8401_v42 = vld [vmem:[%s11350_s0 + $0xb04] ss:$100 sps:$4 sm:$0xff]  }
  0x71   :  { %7232 = vmatprep.subr.bf16.mxu0 %v8351_v46  ;;  %7129 = vmatpush3.bf16.msra.mxu1 %v8364_v55  ;;  %v8408_v46 = vld [vmem:[%s11349_s1 + $0x280] sm:$0xff]   ;;  %v8417_v55 = vld [vmem:[%s11350_s0 + $0x1ac] ss:$100 sps:$4 sm:$0xff]  }
  0x72   :  { %4112 = vmatmul.mubr.bf16.gmra.mrb[40].mxu1 %v8308_v43  ;;  %4257 = vmatmul.mubr.bf16.gmra.mrb[40].mxu0 %v8309_v44  ;;  %v8405_v43 = vld [vmem:[%s11350_s0 + $0x1c] ss:$100 sps:$4 sm:$0xff]  }
  0x73   :  { %4119 = vmatprep.mubr.bf16.mxu1 %v8311_v47  ;;  %4264 = vmatprep.mubr.bf16.mxu0 %v8313_v48  ;;  %v8403_v44 = vld [vmem:[%s11350_s0 + $0x18] ss:$100 sps:$4 sm:$0xff]   ;;  %v8409_v47 = vld [vmem:[%s11350_s0 + $0xe4] ss:$100 sps:$4 sm:$0xff]  }
  0x74   :  { %7233 = vmatpush3.bf16.msra.mxu0 %v8352_v49  ;;  %7130 = vmatprep.subr.bf16.mxu1 %v8375_v58  ;;  %v8413_v48 = vld [vmem:[%s11350_s0 + $0x24] ss:$100 sps:$4 sm:$0xff]   ;;  %v8440_v58 = vld [vmem:[%s11349_s1 + $0x290] sm:$0xff]  }
  0x75   :  { %7234 = vmatprep.subr.bf16.mxu0 %v8367_v56  ;;  %7131 = vmatpush3.bf16.msra.mxu1 %v8376_v59  ;;  %v8423_v49 = vld [vmem:[%s11349_s1 + $0x2c8] sm:$0xff]   ;;  %v8455_v59 = vld [vmem:[%s11349_s1 + $0x2d8] sm:$0xff]  }
  0x76   :  { %7132 = vmatprep.subr.bf16.mxu1 %v8391_v4  ;;  %v8419_v56 = vld [vmem:[%s11350_s0 + $0xec] ss:$100 sps:$4 sm:$0xff]   ;;  %v8457_v4 = vld [vmem:[%s11349_s1 + $0x358] sm:$0xff]  }
  0x78   :  { %7235 = vmatpush3.bf16.msra.mxu0 %v8368_v57  ;;  %v8429_v57 = vld [vmem:[%s11349_s1 + $0x348] sm:$0xff]  }
  0x79   :  { %7236 = vmatprep.subr.bf16.mxu0 %v8383_v0  ;;  %7133 = vmatpush3.bf16.msra.mxu1 %v8392_v5  ;;  %v8456_v0 = vld [vmem:[%s11349_s1 + $0x298] sm:$0xff]   ;;  %v8469_v5 = vld [vmem:[%s11349_s1 + $0x2e0] sm:$0xff]  }
  0x7a   :  { %4120 = vmatmul.mubr.bf16.gmra.mrb[44].mxu1 %v8315_v51  ;;  %4265 = vmatmul.mubr.bf16.gmra.mrb[44].mxu0 %v8316_v52  ;;  %v8411_v51 = vld [vmem:[%s11350_s0 + $0x20] ss:$100 sps:$4 sm:$0xff]   ;;  %v8439_v52 = vld [vmem:[%s11349_s1 + $0x2d0] sm:$0xff]  }
  0x7b   :  { %4127 = vmatprep.mubr.bf16.mxu1 %v8320_v53  ;;  %4272 = vmatprep.mubr.bf16.mxu0 %v8322_v54  ;;  %v8414_v53 = vld [vmem:[%s11350_s0 + $0xe0] ss:$100 sps:$4 sm:$0xff]  }
  0x7c   :  { %7237 = vmatpush3.bf16.msra.mxu0 %v8384_v1  ;;  %7330 = vmatprep.subr.bf16.mxu1 %v8407_v13  ;;  %v8416_v54 = vld [vmem:[%s11349_s1 + $0x300] sm:$0xff]   ;;  %v8425_v1 = vld [vmem:[%s11350_s0 + $0x274] ss:$100 sps:$4 sm:$0xff]  }
  0x7d   :  { %7238 = vmatprep.subr.bf16.mxu0 %v8399_v8  ;;  %v8430_v8 = vld [vmem:[%s11350_s0 + $0x270] ss:$100 sps:$4 sm:$0xff]   ;;  %v8435_v13 = vld [vmem:[%s11350_s0 + $0x27c] ss:$100 sps:$4 sm:$0xff]  }
  0x80   :  { %7239 = vmatpush3.bf16.msra.mxu0 %v8400_v9  ;;  %v8431_v9 = vld [vmem:[%s11350_s0 + $0x1b0] ss:$100 sps:$4 sm:$0xff]  }
  0x81   :  { %7436 = vmatprep.subr.bf16.mxu0 %v8415_v15  ;;  %v8474_v15 = vld [vmem:[%s11349_s1 + $0x320] sm:$0xff]  }
  0x82   :  { %4128 = vmatmul.mubr.bf16.gmra.mrb[48].mxu1 %v8325_v60  ;;  %4273 = vmatmul.mubr.bf16.gmra.mrb[48].mxu0 %v8326_v61  ;;  %v8432_v60 = vld [vmem:[%s11349_s1 + $0x308] sm:$0xff]  }
  0x83   :  { %4135 = vmatprep.mubr.bf16.mxu1 %v8327_v62  ;;  %4280 = vmatprep.mubr.bf16.mxu0 %v8329_v63  ;;  %v8421_v61 = vld [vmem:[%s11350_s0 + $0x1a8] ss:$100 sps:$4 sm:$0xff]   ;;  %v8441_v63 = vld [vmem:[%s11349_s1 + $0x350] sm:$0xff]  }
  0x84   :  { %v8422_v62 = vld [vmem:[%s11350_s0 + $0xe8] ss:$100 sps:$4 sm:$0xff]  }
  0x8a   :  { %4136 = vmatmul.mubr.bf16.gmra.mrb[52].mxu1 %v8331_v2  ;;  %4281 = vmatmul.mubr.bf16.gmra.mrb[52].mxu0 %v8332_v3  ;;  %v8427_v2 = vld [vmem:[%s11350_s0 + $0x1b4] ss:$100 sps:$4 sm:$0xff]  }
  0x8b   :  { %4143 = vmatprep.mubr.bf16.mxu1 %v8337_v6  ;;  %4288 = vmatprep.mubr.bf16.mxu0 %v8339_v7  ;;  %v8446_v3 = vld [vmem:[%s11349_s1 + $0x310] sm:$0xff]   ;;  %v8472_v6 = vld [vmem:[%s11349_s1 + $0x2a0] sm:$0xff]   ;;  %v8481_v7 = vld [vmem:[%s11349_s1 + $0x2e8] sm:$0xff]  }
  0x92   :  { %4144 = vmatmul.mubr.bf16.gmra.mrb[56].mxu1 %v8341_v10  ;;  %4289 = vmatmul.mubr.bf16.gmra.mrb[56].mxu0 %v8342_v11  ;;  %v8458_v10 = vld [vmem:[%s11349_s1 + $0x318] sm:$0xff]   ;;  %v8473_v11 = vld [vmem:[%s11349_s1 + $0x360] sm:$0xff]  }
  0x93   :  { %4151 = vmatprep.mubr.bf16.mxu1 %v8343_v12  ;;  %4296 = vmatprep.mubr.bf16.mxu0 %v8345_v14  ;;  %v8433_v12 = vld [vmem:[%s11350_s0 + $0x33c] ss:$100 sps:$4 sm:$0xff]   ;;  %v8486_v14 = vld [vmem:[%s11349_s1 + $0x2a8] sm:$0xff]  }
  0x9a   :  { %4152 = vmatmul.mubr.bf16.gmra.mrb[60].mxu1 %v8348_v16  ;;  %4297 = vmatmul.mubr.bf16.gmra.mrb[60].mxu0 %v8349_v17  ;;  %v8489_v16 = vld [vmem:[%s11349_s1 + $0x368] sm:$0xff]   ;;  %v8497_v17 = vld [vmem:[%s11349_s1 + $0x2f0] sm:$0xff]  }
  0x9b   :  { %4159 = vmatprep.mubr.bf16.mxu1 %v8353_v18  ;;  %4304 = vmatprep.mubr.bf16.mxu0 %v8355_v19  ;;  %v8498_v18 = vld [vmem:[%s11349_s1 + $0x2b0] sm:$0xff]   ;;  %v8513_v19 = vld [vmem:[%s11349_s1 + $0x2f8] sm:$0xff]  }
  0xa2   :  { %4160 = vmatmul.mubr.bf16.gmra.mrb[64].mxu1 %v8357_v20  ;;  %4305 = vmatmul.mubr.bf16.gmra.mrb[64].mxu0 %v8358_v21  ;;  %v8490_v20 = vld [vmem:[%s11349_s1 + $0x328] sm:$0xff]   ;;  %v8505_v21 = vld [vmem:[%s11349_s1 + $0x370] sm:$0xff]  }
  0xa3   :  { %4167 = vmatprep.mubr.bf16.mxu1 %v8360_v22  ;;  %4312 = vmatprep.mubr.bf16.mxu0 %v8362_v23  ;;  %v8514_v22 = vld [vmem:[%s11349_s1 + $0x2b8] sm:$0xff]  }
  0xa4   :  { %v8437_v23 = vld [vmem:[%s11350_s0 + $0x338] ss:$100 sps:$4 sm:$0xff]  }
  0xaa   :  { %4168 = vmatmul.mubr.bf16.gmra.mrb[68].mxu1 %v8365_v24  ;;  %4313 = vmatmul.mubr.bf16.gmra.mrb[68].mxu0 %v8366_v25  ;;  %v8438_v24 = vld [vmem:[%s11350_s0 + $0x278] ss:$100 sps:$4 sm:$0xff]   ;;  %v8442_v25 = vld [vmem:[%s11350_s0 + $0x404] ss:$100 sps:$4 sm:$0xff]  }
  0xab   :  { %4175 = vmatprep.mubr.bf16.mxu1 %v8369_v26  ;;  %4320 = vmatprep.mubr.bf16.mxu0 %v8371_v27  ;;  %v8444_v26 = vld [vmem:[%s11350_s0 + $0x344] ss:$100 sps:$4 sm:$0xff]   ;;  %v8506_v27 = vld [vmem:[%s11349_s1 + $0x330] sm:$0xff]  }
  0xb2   :  { %4176 = vmatmul.mubr.bf16.gmra.mrb[72].mxu1 %v8373_v28  ;;  %4321 = vmatmul.mubr.bf16.gmra.mrb[72].mxu0 %v8374_v29  ;;  %v8521_v28 = vld [vmem:[%s11349_s1 + $0x378] sm:$0xff]   ;;  %v8529_v29 = vld [vmem:[%s11349_s1 + $0x3c0] sm:$0xff]  }
  0xb3   :  { %4183 = vmatprep.mubr.bf16.mxu1 %v8377_v30  ;;  %4328 = vmatprep.mubr.bf16.mxu0 %v8379_v31  ;;  %v8522_v30 = vld [vmem:[%s11349_s1 + $0x338] sm:$0xff]   ;;  %v8537_v31 = vld [vmem:[%s11349_s1 + $0x440] sm:$0xff]  }
  0xba   :  { %4184 = vmatmul.mubr.bf16.gmra.mrb[76].mxu1 %v8381_v32  ;;  %4329 = vmatmul.mubr.bf16.gmra.mrb[76].mxu0 %v8382_v33  ;;  %v8447_v32 = vld [vmem:[%s11350_s0 + $0x400] ss:$100 sps:$4 sm:$0xff]  }
  0xbb   :  { %4191 = vmatprep.mubr.bf16.mxu1 %v8385_v34  ;;  %4336 = vmatprep.mubr.bf16.mxu0 %v8387_v35  ;;  %v8448_v33 = vld [vmem:[%s11350_s0 + $0x340] ss:$100 sps:$4 sm:$0xff]  }
  0xc2   :  { %4192 = vmatmul.mubr.bf16.gmra.mrb[80].mxu1 %v8389_v36  ;;  %4337 = vmatmul.mubr.bf16.gmra.mrb[80].mxu0 %v8390_v37 }
  0xc3   :  { %4199 = vmatprep.mubr.bf16.mxu1 %v8393_v38  ;;  %4344 = vmatprep.mubr.bf16.mxu0 %v8395_v39 }
  0xca   :  { %4200 = vmatmul.mubr.bf16.gmra.mrb[84].mxu1 %v8397_v40  ;;  %4345 = vmatmul.mubr.bf16.gmra.mrb[84].mxu0 %v8398_v41 }
  0xcb   :  { %4352 = vmatprep.mubr.bf16.mxu0 %v8401_v42  ;;  %4393 = vmatprep.mubr.bf16.mxu1 %v8405_v43  ;;  %v8449_v42 = vld [vmem:[%s11350_s0 + $0x4cc] ss:$100 sps:$4 sm:$0xff]  }
  0xcc   :  { %v8451_v43 = vld [vmem:[%s11350_s0 + $0x40c] ss:$100 sps:$4 sm:$0xff]  }
  0xd2   :  { %4353 = vmatmul.mubr.bf16.gmra.mrb[88].mxu0 %v8406_v45  ;;  %4394 = vmatmul.mubr.bf16.vlgmr.msra.gmra.mrb[88].mxu1 %v8403_v44  ;;  %v9656_v44 = vld [vmem:[%s11351_s2] ss:$0 sm:$0xff] }
  0xd3   :  { %7331 = vmatpush3.bf16.msra.mxu1 %v8408_v46  ;;  %4401 = vmatprep.mubr.bf16.mxu1 %v8409_v47 }
  0xd4   :  { %4546 = vmatprep.mubr.bf16.mxu0 %v8413_v48  ;;  %7332 = vmatprep.subr.bf16.mxu1 %v8423_v49 }
  0xd7   :  { %7333 = vmatpush3.bf16.msra.mxu1 %v8424_v50 }
  0xd8   :  { %7334 = vmatprep.subr.bf16.mxu1 %v8439_v52  ;;  %v8454_v52 = vld [vmem:[%s11350_s0 + $0x408] ss:$100 sps:$4 sm:$0xff]  }
  0xda   :  { %4402 = vmatmul.mubr.bf16.gmra.mrb[92].mxu1 %v8414_v53  ;;  %4547 = vmatmul.mubr.bf16.vlgmr.msra.gmra.mrb[92].mxu0 %v8411_v51  ;;  %v8453_v51 = vld [vmem:[%s11350_s0 + $0x4c8] ss:$100 sps:$4 sm:$0xff]  }
  0xdb   :  { %7437 = vmatpush3.bf16.msra.mxu0 %v8416_v54  ;;  %4409 = vmatprep.mubr.bf16.mxu1 %v8417_v55 }
  0xdc   :  { %4554 = vmatprep.mubr.bf16.mxu0 %v8419_v56  ;;  %7438 = vmatprep.subr.bf16.mxu0 %v8429_v57 }
  0xdd   :  { %7335 = vmatpush3.bf16.msra.mxu1 %v8440_v58 }
  0xde   :  { %7336 = vmatprep.subr.bf16.mxu1 %v8455_v59 }
  0xdf   :  { %7439 = vmatpush3.bf16.msra.mxu0 %v8432_v60 }
  0xe0   :  { %7440 = vmatprep.subr.bf16.mxu0 %v8441_v63 }
  0xe1   :  { %7337 = vmatpush3.bf16.msra.mxu1 %v8456_v0 }
  0xe2   :  { %4410 = vmatmul.mubr.bf16.gmra.mrb[96].mxu1 %v8421_v61  ;;  %4555 = vmatmul.mubr.bf16.gmra.mrb[96].mxu0 %v8422_v62  ;;  %v8459_v61 = vld [vmem:[%s11350_s0 + $0x594] ss:$100 sps:$4 sm:$0xff]  }
  0xe3   :  { %4417 = vmatprep.mubr.bf16.mxu1 %v8425_v1  ;;  %4562 = vmatprep.mubr.bf16.mxu0 %v8427_v2  ;;  %v8461_v62 = vld [vmem:[%s11350_s0 + $0x4d4] ss:$100 sps:$4 sm:$0xff]  }
  0xe4   :  { %7441 = vmatpush3.bf16.msra.mxu0 %v8446_v3  ;;  %7338 = vmatprep.subr.bf16.mxu1 %v8469_v5  ;;  %v8463_v5 = vld [vmem:[%s11350_s0 + $0x590] ss:$100 sps:$4 sm:$0xff]  }
  0xe5   :  { %7442 = vmatprep.subr.bf16.mxu0 %v8457_v4  ;;  %7339 = vmatpush3.bf16.msra.mxu1 %v8472_v6  ;;  %v8464_v6 = vld [vmem:[%s11350_s0 + $0x4d0] ss:$100 sps:$4 sm:$0xff]  }
  0xe6   :  { %7340 = vmatprep.subr.bf16.mxu1 %v8481_v7 }
  0xe8   :  { %7443 = vmatpush3.bf16.msra.mxu0 %v8458_v10 }
  0xe9   :  { %7444 = vmatprep.subr.bf16.mxu0 %v8473_v11  ;;  %7341 = vmatpush3.bf16.msra.mxu1 %v8486_v14 }
  0xea   :  { %4418 = vmatmul.mubr.bf16.gmra.mrb[100].mxu1 %v8430_v8  ;;  %4563 = vmatmul.mubr.bf16.gmra.mrb[100].mxu0 %v8431_v9 }
  0xeb   :  { %4425 = vmatprep.mubr.bf16.mxu1 %v8433_v12  ;;  %4570 = vmatprep.mubr.bf16.mxu0 %v8435_v13 }
  0xec   :  { %7445 = vmatpush3.bf16.msra.mxu0 %v8474_v15  ;;  %7342 = vmatprep.subr.bf16.mxu1 %v8497_v17  ;;  %v8465_v15 = vld [vmem:[%s11350_s0 + $0x65c] ss:$100 sps:$4 sm:$0xff]  }
  0xed   :  { %7446 = vmatprep.subr.bf16.mxu0 %v8489_v16  ;;  %7343 = vmatpush3.bf16.msra.mxu1 %v8498_v18  ;;  %v8467_v16 = vld [vmem:[%s11350_s0 + $0x59c] ss:$100 sps:$4 sm:$0xff]  }
  0xee   :  { %7344 = vmatprep.subr.bf16.mxu1 %v8513_v19 }
  0xf0   :  { %7447 = vmatpush3.bf16.msra.mxu0 %v8490_v20 }
  0xf1   :  { %7448 = vmatprep.subr.bf16.mxu0 %v8505_v21  ;;  %7345 = vmatpush3.bf16.msra.mxu1 %v8514_v22 }
  0xf2   :  { %4426 = vmatmul.mubr.bf16.gmra.mrb[104].mxu1 %v8437_v23  ;;  %4571 = vmatmul.mubr.bf16.gmra.mrb[104].mxu0 %v8438_v24  ;;  %v8470_v23 = vld [vmem:[%s11350_s0 + $0x658] ss:$100 sps:$4 sm:$0xff]  }
  0xf3   :  { %4433 = vmatprep.mubr.bf16.mxu1 %v8442_v25  ;;  %4578 = vmatprep.mubr.bf16.mxu0 %v8444_v26  ;;  %v8471_v24 = vld [vmem:[%s11350_s0 + $0x598] ss:$100 sps:$4 sm:$0xff]  }
  0xf4   :  { %7449 = vmatpush3.bf16.msra.mxu0 %v8506_v27  ;;  %7542 = vmatprep.subr.bf16.mxu1 %v8529_v29 }
  0xf5   :  { %v6816_v34 = vpop.f32.mrb[0].mxu0  ;;  %v6864_v35 = vpop.f32.mrb[0].mxu1  ;;  %7450 = vmatprep.subr.bf16.mxu0 %v8521_v28 }
  0xf6   :  { %v6817_v36 = vpop.f32.mrb[1].mxu0  ;;  %v6865_v37 = vpop.f32.mrb[1].mxu1 }
  0xf7   :  { %v9645_v38 = vadd.f32 %v6817_v36, %v6816_v34  ;;  %v6819_v39 = vpop.f32.mrb[2].mxu0  ;;  %v6866_v40 = vadd.f32 %v6865_v37, %v6864_v35  ;;  %v6867_v41 = vpop.f32.mrb[2].mxu1  ;;  %v8477_v34 = vld [vmem:[%s11350_s0 + $0x664] ss:$100 sps:$4 sm:$0xff]  }
  0xf8   :  { %v6820_v45 = vpop.f32.mrb[3].mxu0  ;;  %v6868_v46 = vpop.f32.mrb[3].mxu1  ;;  %7451 = vmatpush3.bf16.msra.mxu0 %v8522_v30 }
  0xf9   :  { %v9659_v47 = vadd.f32 %v6866_v40, %v9656_v44  ;;  %v9661_v48 = vadd.f32 %v6820_v45, %v6819_v39  ;;  %v6869_v49 = vadd.f32 %v6868_v46, %v6867_v41  ;;  %7648 = vmatprep.subr.bf16.mxu0 %v8537_v31 }
  0xfa   :  { %4434 = vmatmul.mubr.bf16.gmra.mrb[108].mxu1 %v8447_v32  ;;  %4579 = vmatmul.mubr.bf16.gmra.mrb[108].mxu0 %v8448_v33  ;;  %v8475_v33 = vld [vmem:[%s11350_s0 + $0x724] ss:$100 sps:$4 sm:$0xff]  }
  0xfb   :  { %v9664_v50 = vadd.f32 %v6869_v49, %v9656_v44  ;;  %4441 = vmatprep.mubr.bf16.mxu1 %v8449_v42  ;;  %4586 = vmatprep.mubr.bf16.mxu0 %v8451_v43  ;;  %v8479_v42 = vld [vmem:[%s11350_s0 + $0x720] ss:$100 sps:$4 sm:$0xff]  }
  0xfc   :  { %v8480_v43 = vld [vmem:[%s11350_s0 + $0x660] ss:$100 sps:$4 sm:$0xff]  }
  0xfd   :  { %v6822_v53 = vpop.f32.mrb[4].mxu0  ;;  %v6870_v54 = vpop.f32.mrb[4].mxu1 }
  0xfe   :  { %v6823_v55 = vpop.f32.mrb[5].mxu0  ;;  %v6871_v56 = vpop.f32.mrb[5].mxu1 }
  0xff   :  { %v9672_v57 = vadd.f32 %v6823_v55, %v6822_v53  ;;  %v6825_v58 = vpop.f32.mrb[6].mxu0  ;;  %v6872_v59 = vadd.f32 %v6871_v56, %v6870_v54  ;;  %v6873_v60 = vpop.f32.mrb[6].mxu1  ;;  %v8482_v56 = vld [vmem:[%s11350_s0 + $0x7ec] ss:$100 sps:$4 sm:$0xff]  }
 0x100   :  { %v6826_v63 = vpop.f32.mrb[7].mxu0  ;;  %v6874_v0 = vpop.f32.mrb[7].mxu1 }
 0x101   :  { %v9681_v1 = vadd.f32 %v6872_v59, %v9656_v44  ;;  %v9683_v2 = vadd.f32 %v6826_v63, %v6825_v58  ;;  %v6875_v3 = vadd.f32 %v6874_v0, %v6873_v60  ;;  %v8484_v58 = vld [vmem:[%s11350_s0 + $0x72c] ss:$100 sps:$4 sm:$0xff]  }
 0x102   :  { %4442 = vmatmul.mubr.bf16.gmra.mrb[112].mxu1 %v8453_v51  ;;  %4587 = vmatmul.mubr.bf16.gmra.mrb[112].mxu0 %v8454_v52 }
 0x103   :  { %v9686_v4 = vadd.f32 %v6875_v3, %v9656_v44  ;;  %4449 = vmatprep.mubr.bf16.mxu1 %v8459_v61  ;;  %4594 = vmatprep.mubr.bf16.mxu0 %v8461_v62  ;;  %v8487_v3 = vld [vmem:[%s11350_s0 + $0x7e8] ss:$100 sps:$4 sm:$0xff]  }
 0x105   :  { %v6828_v7 = vpop.f32.mrb[8].mxu0  ;;  %v6876_v8 = vpop.f32.mrb[8].mxu1 }
 0x106   :  { %v6829_v9 = vpop.f32.mrb[9].mxu0  ;;  %v6877_v10 = vpop.f32.mrb[9].mxu1 }
 0x107   :  { %v9694_v11 = vadd.f32 %v6829_v9, %v6828_v7  ;;  %v6831_v12 = vpop.f32.mrb[10].mxu0  ;;  %v6878_v13 = vadd.f32 %v6877_v10, %v6876_v8  ;;  %v6879_v14 = vpop.f32.mrb[10].mxu1  ;;  %v8488_v7 = vld [vmem:[%s11350_s0 + $0x728] ss:$100 sps:$4 sm:$0xff]  }
 0x108   :  { %v6832_v17 = vpop.f32.mrb[11].mxu0  ;;  %v6880_v18 = vpop.f32.mrb[11].mxu1 }
 0x109   :  { %v9703_v19 = vadd.f32 %v6878_v13, %v9656_v44  ;;  %v9705_v20 = vadd.f32 %v6832_v17, %v6831_v12  ;;  %v6881_v21 = vadd.f32 %v6880_v18, %v6879_v14 }
 0x10a   :  { %4450 = vmatmul.mubr.bf16.gmra.mrb[116].mxu1 %v8463_v5  ;;  %4595 = vmatmul.mubr.bf16.gmra.mrb[116].mxu0 %v8464_v6 }
 0x10b   :  { %v9708_v22 = vadd.f32 %v6881_v21, %v9656_v44  ;;  %4457 = vmatprep.mubr.bf16.mxu1 %v8465_v15  ;;  %4602 = vmatprep.mubr.bf16.mxu0 %v8467_v16  ;;  %v8491_v15 = vld [vmem:[%s11350_s0 + $0x8b4] ss:$100 sps:$4 sm:$0xff]  }
 0x10c   :  { %v8493_v16 = vld [vmem:[%s11350_s0 + $0x7f4] ss:$100 sps:$4 sm:$0xff]  }
 0x10d   :  { %v6834_v25 = vpop.f32.mrb[12].mxu0  ;;  %v6882_v26 = vpop.f32.mrb[12].mxu1 }
 0x10e   :  { %v6835_v27 = vpop.f32.mrb[13].mxu0  ;;  %v6883_v28 = vpop.f32.mrb[13].mxu1 }
 0x10f   :  { %v9716_v29 = vadd.f32 %v6835_v27, %v6834_v25  ;;  %v6837_v30 = vpop.f32.mrb[14].mxu0  ;;  %v6884_v31 = vadd.f32 %v6883_v28, %v6882_v26  ;;  %v6885_v32 = vpop.f32.mrb[14].mxu1  ;;  %v8495_v26 = vld [vmem:[%s11350_s0 + $0x8b0] ss:$100 sps:$4 sm:$0xff]  }
 0x110   :  { %v6838_v35 = vpop.f32.mrb[15].mxu0  ;;  %v6886_v36 = vpop.f32.mrb[15].mxu1  ;;  %v8496_v27 = vld [vmem:[%s11350_s0 + $0x7f0] ss:$100 sps:$4 sm:$0xff]  }
 0x111   :  { %v9725_v37 = vadd.f32 %v6884_v31, %v9656_v44  ;;  %v9727_v39 = vadd.f32 %v6838_v35, %v6837_v30  ;;  %v6887_v40 = vadd.f32 %v6886_v36, %v6885_v32 }
 0x112   :  { %4458 = vmatmul.mubr.bf16.gmra.mrb[120].mxu1 %v8470_v23  ;;  %4603 = vmatmul.mubr.bf16.gmra.mrb[120].mxu0 %v8471_v24 }
 0x113   :  { %v9730_v41 = vadd.f32 %v6887_v40, %v9656_v44  ;;  %4465 = vmatprep.mubr.bf16.mxu1 %v8475_v33  ;;  %4610 = vmatprep.mubr.bf16.mxu0 %v8477_v34  ;;  %v8499_v40 = vld [vmem:[%s11350_s0 + $0x97c] ss:$100 sps:$4 sm:$0xff]  }
 0x115   :  { %v6840_v45 = vpop.f32.mrb[16].mxu0  ;;  %v6888_v46 = vpop.f32.mrb[16].mxu1 }
 0x116   :  { %v6841_v49 = vpop.f32.mrb[17].mxu0  ;;  %v6889_v51 = vpop.f32.mrb[17].mxu1 }
 0x117   :  { %v9738_v52 = vadd.f32 %v6841_v49, %v6840_v45  ;;  %v6843_v53 = vpop.f32.mrb[18].mxu0  ;;  %v6890_v54 = vadd.f32 %v6889_v51, %v6888_v46  ;;  %v6891_v55 = vpop.f32.mrb[18].mxu1 }
 0x118   :  { %v6844_v59 = vpop.f32.mrb[19].mxu0  ;;  %v6892_v60 = vpop.f32.mrb[19].mxu1 }
 0x119   :  { %v9747_v61 = vadd.f32 %v6890_v54, %v9656_v44  ;;  %v9749_v62 = vadd.f32 %v6844_v59, %v6843_v53  ;;  %v6893_v63 = vadd.f32 %v6892_v60, %v6891_v55  ;;  %v8503_v54 = vld [vmem:[%s11350_s0 + $0x978] ss:$100 sps:$4 sm:$0xff]  }
 0x11a   :  { %4466 = vmatmul.mubr.bf16.gmra.mrb[124].mxu1 %v8479_v42  ;;  %4611 = vmatmul.mubr.bf16.gmra.mrb[124].mxu0 %v8480_v43  ;;  %v8501_v42 = vld [vmem:[%s11350_s0 + $0x8bc] ss:$100 sps:$4 sm:$0xff]  }
 0x11b   :  { %v9752_v0 = vadd.f32 %v6893_v63, %v9656_v44  ;;  %4473 = vmatprep.mubr.bf16.mxu1 %v8482_v56  ;;  %4618 = vmatprep.mubr.bf16.mxu0 %v8484_v58  ;;  %v8504_v55 = vld [vmem:[%s11350_s0 + $0x8b8] ss:$100 sps:$4 sm:$0xff]   ;;  %v3937_v63 = vadd.f32 %v9645_v38, %v9656_v44 }
 0x11d   :  { %v6846_v5 = vpop.f32.mrb[20].mxu0  ;;  %v6894_v6 = vpop.f32.mrb[20].mxu1 }
 0x11e   :  { %v6847_v8 = vpop.f32.mrb[21].mxu0  ;;  %v6895_v9 = vpop.f32.mrb[21].mxu1 }
 0x11f   :  { %v9760_v10 = vadd.f32 %v6847_v8, %v6846_v5  ;;  %v6849_v12 = vpop.f32.mrb[22].mxu0  ;;  %v6896_v13 = vadd.f32 %v6895_v9, %v6894_v6  ;;  %v6897_v14 = vpop.f32.mrb[22].mxu1  ;;  %v8507_v8 = vld [vmem:[%s11350_s0 + $0xa44] ss:$100 sps:$4 sm:$0xff]  }
 0x120   :  { %v6850_v17 = vpop.f32.mrb[23].mxu0  ;;  %v6898_v18 = vpop.f32.mrb[23].mxu1  ;;  %v8509_v9 = vld [vmem:[%s11350_s0 + $0x984] ss:$100 sps:$4 sm:$0xff]  }
 0x121   :  { %v9769_v21 = vadd.f32 %v6896_v13, %v9656_v44  ;;  %v9771_v23 = vadd.f32 %v6850_v17, %v6849_v12  ;;  %v6899_v24 = vadd.f32 %v6898_v18, %v6897_v14  ;;  %v3940_v14 = vadd.f32 %v9661_v48, %v9656_v44  ;;  %v8511_v18 = vld [vmem:[%s11350_s0 + $0xa40] ss:$100 sps:$4 sm:$0xff]  }
 0x122   :  { %4474 = vmatmul.mubr.bf16.gmra.mrb[128].mxu1 %v8487_v3  ;;  %4619 = vmatmul.mubr.bf16.gmra.mrb[128].mxu0 %v8488_v7 }
 0x123   :  { %v9774_v25 = vadd.f32 %v6899_v24, %v9656_v44  ;;  %4481 = vmatprep.mubr.bf16.mxu1 %v8491_v15  ;;  %4626 = vmatprep.mubr.bf16.mxu0 %v8493_v16  ;;  %v8512_v24 = vld [vmem:[%s11350_s0 + $0x980] ss:$100 sps:$4 sm:$0xff]  }
 0x125   :  { %v6852_v28 = vpop.f32.mrb[24].mxu0  ;;  %v6900_v30 = vpop.f32.mrb[24].mxu1 }
 0x126   :  { %v6853_v31 = vpop.f32.mrb[25].mxu0  ;;  %v6901_v32 = vpop.f32.mrb[25].mxu1 }
 0x127   :  { %v9782_v33 = vadd.f32 %v6853_v31, %v6852_v28  ;;  %v6855_v34 = vpop.f32.mrb[26].mxu0  ;;  %v6902_v35 = vadd.f32 %v6901_v32, %v6900_v30  ;;  %v6903_v36 = vpop.f32.mrb[26].mxu1  ;;  %v3945_v30 = vadd.f32 %v9672_v57, %v9656_v44 }
 0x128   :  { %v6856_v43 = vpop.f32.mrb[27].mxu0  ;;  %v6904_v45 = vpop.f32.mrb[27].mxu1 }
 0x129   :  { %v9791_v46 = vadd.f32 %v6902_v35, %v9656_v44  ;;  %v9793_v49 = vadd.f32 %v6856_v43, %v6855_v34  ;;  %v6905_v51 = vadd.f32 %v6904_v45, %v6903_v36  ;;  %v8515_v36 = vld [vmem:[%s11350_s0 + $0xb0c] ss:$100 sps:$4 sm:$0xff]  }
 0x12a   :  { %4482 = vmatmul.mubr.bf16.gmra.mrb[132].mxu1 %v8495_v26  ;;  %4627 = vmatmul.mubr.bf16.gmra.mrb[132].mxu0 %v8496_v27 }
 0x12b   :  { %v9796_v53 = vadd.f32 %v6905_v51, %v9656_v44  ;;  %4489 = vmatprep.mubr.bf16.mxu1 %v8499_v40  ;;  %4634 = vmatprep.mubr.bf16.mxu0 %v8501_v42  ;;  %v8517_v40 = vld [vmem:[%s11350_s0 + $0xa4c] ss:$100 sps:$4 sm:$0xff]   ;;  %v3948_v42 = vadd.f32 %v9683_v2, %v9656_v44 }
 0x12c   :  { %v8520_v2 = vld [vmem:[%s11350_s0 + $0xa48] ss:$100 sps:$4 sm:$0xff]  }
 0x12d   :  { %v6858_v56 = vpop.f32.mrb[28].mxu0  ;;  %v6922_v58 = vpop.f32.mrb[28].mxu1 }
 0x12e   :  { %v6859_v59 = vpop.f32.mrb[29].mxu0  ;;  %v6923_v60 = vpop.f32.mrb[29].mxu1 }
 0x12f   :  { %v9806_v3 = vadd.f32 %v6859_v59, %v6858_v56  ;;  %v6924_v5 = vadd.f32 %v6923_v60, %v6922_v58  ;;  %v6861_v6 = vpop.f32.mrb[30].mxu0  ;;  %v6925_v7 = vpop.f32.mrb[30].mxu1  ;;  %v8519_v59 = vld [vmem:[%s11350_s0 + $0xb08] ss:$100 sps:$4 sm:$0xff]  }
 0x130   :  { %v6862_v12 = vpop.f32.mrb[31].mxu0  ;;  %v6926_v13 = vpop.f32.mrb[31].mxu1 }
 0x131   :  { %v4090_v15 = vadd.f32 %v6924_v5, %v3937_v63  ;;  %v9816_v38 = vadd.f32 %v6862_v12, %v6861_v6  ;;  %v6927_v16 = vadd.f32 %v6926_v13, %v6925_v7  ;;  %v3953_v7 = vadd.f32 %v9694_v11, %v9656_v44 }
 0x132   :  { %4490 = vmatmul.mubr.bf16.gmra.mrb[136].mxu1 %v8503_v54  ;;  %4635 = vmatmul.mubr.bf16.gmra.mrb[136].mxu0 %v8504_v55 }
 0x133   :  { %v4093_v17 = vadd.f32 %v6927_v16, %v3940_v14  ;;  %4497 = vmatprep.mubr.bf16.mxu1 %v8507_v8  ;;  %4642 = vmatprep.mubr.bf16.mxu0 %v8509_v9  ;;  %v8523_v14 = vld [vmem:[%s11350_s0 + $0xb14] ss:$100 sps:$4 sm:$0xff]   ;;  %v3956_v16 = vadd.f32 %v9705_v20, %v9656_v44 }
 0x134   :  { %v8528_v20 = vld [vmem:[%s11350_s0 + $0xb10] ss:$100 sps:$4 sm:$0xff]  }
 0x135   :  { %v6928_v26 = vpop.f32.mrb[32].mxu1  ;;  %v7028_v27 = vpop.f32.mrb[32].mxu0 }
 0x136   :  { %v6929_v48 = vpop.f32.mrb[33].mxu1  ;;  %v7029_v28 = vpop.f32.mrb[33].mxu0 }
 0x137   :  { %v6930_v31 = vadd.f32 %v6929_v48, %v6928_v26  ;;  %v7030_v32 = vadd.f32 %v7029_v28, %v7028_v27  ;;  %v6931_v34 = vpop.f32.mrb[34].mxu1  ;;  %v7031_v35 = vpop.f32.mrb[34].mxu0 }
 0x138   :  { %v6932_v43 = vpop.f32.mrb[35].mxu1  ;;  %v7032_v45 = vpop.f32.mrb[35].mxu0 }
 0x139   :  { %v4098_v51 = vadd.f32 %v6930_v31, %v3945_v30  ;;  %v9834_v54 = vadd.f32 %v7030_v32, %v4090_v15  ;;  %v6933_v57 = vadd.f32 %v6932_v43, %v6931_v34  ;;  %v7033_v55 = vadd.f32 %v7032_v45, %v7031_v35  ;;  %v8527_v15 = vld [vmem:[%s11350_s0 + $0x2c] ss:$100 sps:$4 sm:$0xff]  }
 0x13a   :  { %4498 = vmatmul.mubr.bf16.gmra.mrb[140].mxu1 %v8511_v18  ;;  %4643 = vmatmul.mubr.bf16.gmra.mrb[140].mxu0 %v8512_v24  ;;  %v8525_v30 = vld [vmem:[%s11350_s0 + $0x28] ss:$100 sps:$4 sm:$0xff]  }
 0x13b   :  { %v4101_v56 = vadd.f32 %v6933_v57, %v3948_v42  ;;  %v9836_v58 = vadd.f32 %v7033_v55, %v4093_v17  ;;  %4505 = vmatprep.mubr.bf16.mxu1 %v8515_v36  ;;  %4650 = vmatprep.mubr.bf16.mxu0 %v8517_v40  ;;  %v3961_v36 = vadd.f32 %v9716_v29, %v9656_v44  ;;  %v8531_v57 = vld [vmem:[%s11350_s0 + $0xf4] ss:$100 sps:$4 sm:$0xff]  }
 0x13c   :  { %v3964_v55 = vadd.f32 %v9727_v39, %v9656_v44  ;;  %v8535_v29 = vld [vmem:[%s11350_s0 + $0x34] ss:$100 sps:$4 sm:$0xff]   ;;  %v8546_v39 = vld [vmem:[%s11349_s1 + $0x388] sm:$0xff]  }
 0x13d   :  { %v6934_v60 = vpop.f32.mrb[36].mxu1  ;;  %v7034_v63 = vpop.f32.mrb[36].mxu0 }
 0x13e   :  { %v6935_v5 = vpop.f32.mrb[37].mxu1  ;;  %v7035_v6 = vpop.f32.mrb[37].mxu0 }
 0x13f   :  { %v6936_v8 = vadd.f32 %v6935_v5, %v6934_v60  ;;  %v7036_v9 = vadd.f32 %v7035_v6, %v7034_v63  ;;  %v6937_v12 = vpop.f32.mrb[38].mxu1  ;;  %v7037_v13 = vpop.f32.mrb[38].mxu0 }
 0x140   :  { %v6938_v17 = vpop.f32.mrb[39].mxu1  ;;  %v7038_v18 = vpop.f32.mrb[39].mxu0 }
 0x141   :  { %v4106_v24 = vadd.f32 %v6936_v8, %v3953_v7  ;;  %v9854_v26 = vadd.f32 %v7036_v9, %v4098_v51  ;;  %v6939_v11 = vadd.f32 %v6938_v17, %v6937_v12  ;;  %v7039_v27 = vadd.f32 %v7038_v18, %v7037_v13  ;;  %v8530_v51 = vld [vmem:[%s11349_s1 + $0x380] sm:$0xff]   ;;  %v8561_v9 = vld [vmem:[%s11349_s1 + $0x3d0] sm:$0xff]  }
 0x142   :  { %4506 = vmatmul.mubr.bf16.gmra.mrb[144].mxu1 %v8519_v59  ;;  %4651 = vmatmul.mubr.bf16.gmra.mrb[144].mxu0 %v8520_v2  ;;  %v8545_v2 = vld [vmem:[%s11349_s1 + $0x3c8] sm:$0xff]   ;;  %v8533_v12 = vld [vmem:[%s11350_s0 + $0x30] ss:$100 sps:$4 sm:$0xff]  }
 0x143   :  { %v4109_v48 = vadd.f32 %v6939_v11, %v3956_v16  ;;  %v9856_v28 = vadd.f32 %v7039_v27, %v4101_v56  ;;  %4658 = vmatprep.mubr.bf16.mxu0 %v8523_v14  ;;  %4699 = vmatprep.mubr.bf16.mxu1 %v8527_v15  ;;  %v8536_v13 = vld [vmem:[%s11350_s0 + $0xf0] ss:$100 sps:$4 sm:$0xff]   ;;  %v8538_v16 = vld [vmem:[%s11349_s1 + $0x400] sm:$0xff]  }
 0x145   :  { %v6940_v31 = vpop.f32.mrb[40].mxu1  ;;  %v7040_v32 = vpop.f32.mrb[40].mxu0 }
 0x146   :  { %v6941_v34 = vpop.f32.mrb[41].mxu1  ;;  %v7041_v35 = vpop.f32.mrb[41].mxu0 }
 0x147   :  { %v6942_v40 = vadd.f32 %v6941_v34, %v6940_v31  ;;  %v7042_v42 = vadd.f32 %v7041_v35, %v7040_v32  ;;  %v6943_v43 = vpop.f32.mrb[42].mxu1  ;;  %v7043_v45 = vpop.f32.mrb[42].mxu0  ;;  %v8541_v31 = vld [vmem:[%s11350_s0 + $0xfc] ss:$100 sps:$4 sm:$0xff]   ;;  %v3972_v32 = vadd.f32 %v9749_v62, %v9656_v44 }
 0x148   :  { %v6944_v56 = vpop.f32.mrb[43].mxu1  ;;  %v7044_v59 = vpop.f32.mrb[43].mxu0 }
 0x149   :  { %v4114_v60 = vadd.f32 %v6942_v40, %v3961_v36  ;;  %v9880_v63 = vadd.f32 %v7042_v42, %v4106_v24  ;;  %v6945_v5 = vadd.f32 %v6944_v56, %v6943_v43  ;;  %v7045_v6 = vadd.f32 %v7044_v59, %v7043_v45  ;;  %v8562_v36 = vld [vmem:[%s11349_s1 + $0x390] sm:$0xff]   ;;  %v8577_v40 = vld [vmem:[%s11349_s1 + $0x3d8] sm:$0xff]  }
 0x14a   :  { %4659 = vmatmul.mubr.bf16.gmra.mrb[148].mxu0 %v8528_v20  ;;  %4700 = vmatmul.mubr.bf16.vlgmr.msra.gmra.mrb[148].mxu1 %v8525_v30  ;;  %v3969_v24 = vadd.f32 %v9738_v52, %v9656_v44  ;;  %v8539_v20 = vld [vmem:[%s11350_s0 + $0x1bc] ss:$100 sps:$4 sm:$0xff]   ;;  %v8551_v52 = vld [vmem:[%s11349_s1 + $0x448] sm:$0xff]   ;;  %v8563_v56 = vld [vmem:[%s11349_s1 + $0x450] sm:$0xff]  }
 0x14b   :  { %v4117_v7 = vadd.f32 %v6945_v5, %v3964_v55  ;;  %v9882_v8 = vadd.f32 %v7045_v6, %v4109_v48  ;;  %7543 = vmatpush3.bf16.msra.mxu1 %v8530_v51  ;;  %4707 = vmatprep.mubr.bf16.mxu1 %v8531_v57  ;;  %v8554_v51 = vld [vmem:[%s11349_s1 + $0x408] sm:$0xff]   ;;  %v8543_v59 = vld [vmem:[%s11350_s0 + $0x1b8] ss:$100 sps:$4 sm:$0xff]  }
 0x14c   :  { %4852 = vmatprep.mubr.bf16.mxu0 %v8535_v29  ;;  %7544 = vmatprep.subr.bf16.mxu1 %v8545_v2  ;;  %v8544_v29 = vld [vmem:[%s11350_s0 + $0xf8] ss:$100 sps:$4 sm:$0xff]   ;;  %v8547_v5 = vld [vmem:[%s11350_s0 + $0x284] ss:$100 sps:$4 sm:$0xff]  }
 0x14d   :  { %v6946_v14 = vpop.f32.mrb[44].mxu1  ;;  %v7046_v15 = vpop.f32.mrb[44].mxu0  ;;  %v8578_v6 = vld [vmem:[%s11349_s1 + $0x398] sm:$0xff]  }
 0x14e   :  { %v6947_v17 = vpop.f32.mrb[45].mxu1  ;;  %v7047_v18 = vpop.f32.mrb[45].mxu0 }
 0x14f   :  { %v6948_v11 = vadd.f32 %v6947_v17, %v6946_v14  ;;  %v7048_v27 = vadd.f32 %v7047_v18, %v7046_v15  ;;  %v6949_v48 = vpop.f32.mrb[46].mxu1  ;;  %v7049_v30 = vpop.f32.mrb[46].mxu0  ;;  %7545 = vmatpush3.bf16.msra.mxu1 %v8546_v39  ;;  %v8568_v17 = vld [vmem:[%s11349_s1 + $0x410] sm:$0xff]   ;;  %v8579_v18 = vld [vmem:[%s11349_s1 + $0x458] sm:$0xff]  }
 0x150   :  { %v6950_v34 = vpop.f32.mrb[47].mxu1  ;;  %v7050_v35 = vpop.f32.mrb[47].mxu0  ;;  %7546 = vmatprep.subr.bf16.mxu1 %v8561_v9  ;;  %v3977_v9 = vadd.f32 %v9760_v10, %v9656_v44  ;;  %v3980_v10 = vadd.f32 %v9771_v23, %v9656_v44 }
 0x151   :  { %v4122_v42 = vadd.f32 %v6948_v11, %v3969_v24  ;;  %v9918_v43 = vadd.f32 %v7048_v27, %v4114_v60  ;;  %v6951_v45 = vadd.f32 %v6950_v34, %v6949_v48  ;;  %v7051_v62 = vadd.f32 %v7050_v35, %v7049_v30  ;;  %v8591_v27 = vld [vmem:[%s11349_s1 + $0x3e0] sm:$0xff]   ;;  %v8603_v30 = vld [vmem:[%s11349_s1 + $0x3e8] sm:$0xff]   ;;  %v8580_v35 = vld [vmem:[%s11349_s1 + $0x418] sm:$0xff]  }
 0x152   :  { %4708 = vmatmul.mubr.bf16.gmra.mrb[152].mxu1 %v8536_v13  ;;  %4853 = vmatmul.mubr.bf16.vlgmr.msra.gmra.mrb[152].mxu0 %v8533_v12  ;;  %v8594_v48 = vld [vmem:[%s11349_s1 + $0x3a0] sm:$0xff]  }
 0x153   :  { %v4125_v57 = vadd.f32 %v6951_v45, %v3972_v32  ;;  %v9923_v55 = vadd.f32 %v7051_v62, %v4117_v7  ;;  %7649 = vmatpush3.bf16.msra.mxu0 %v8538_v16  ;;  %4715 = vmatprep.mubr.bf16.mxu1 %v8539_v20  ;;  %v8549_v16 = vld [vmem:[%s11350_s0 + $0x1c4] ss:$100 sps:$4 sm:$0xff]   ;;  %v8555_v62 = vld [vmem:[%s11350_s0 + $0x34c] ss:$100 sps:$4 sm:$0xff]  }
 0x154   :  { %4860 = vmatprep.mubr.bf16.mxu0 %v8541_v31  ;;  %7650 = vmatprep.subr.bf16.mxu0 %v8551_v52  ;;  %v8595_v52 = vld [vmem:[%s11349_s1 + $0x460] sm:$0xff]  }
 0x155   :  { %v6952_v2 = vpop.f32.mrb[48].mxu1  ;;  %v7052_v60 = vpop.f32.mrb[48].mxu0  ;;  %7547 = vmatpush3.bf16.msra.mxu1 %v8562_v36  ;;  %v8552_v36 = vld [vmem:[%s11350_s0 + $0x280] ss:$100 sps:$4 sm:$0xff]  }
 0x156   :  { %v6953_v7 = vpop.f32.mrb[49].mxu1  ;;  %v7053_v39 = vpop.f32.mrb[49].mxu0  ;;  %7548 = vmatprep.subr.bf16.mxu1 %v8577_v40  ;;  %v8553_v40 = vld [vmem:[%s11350_s0 + $0x1c0] ss:$100 sps:$4 sm:$0xff]  }
 0x157   :  { %v6954_v12 = vadd.f32 %v6953_v7, %v6952_v2  ;;  %v7054_v13 = vadd.f32 %v7053_v39, %v7052_v60  ;;  %v6955_v14 = vpop.f32.mrb[50].mxu1  ;;  %v7055_v15 = vpop.f32.mrb[50].mxu0  ;;  %7651 = vmatpush3.bf16.msra.mxu0 %v8554_v51  ;;  %v8596_v7 = vld [vmem:[%s11349_s1 + $0x420] sm:$0xff]  }
 0x158   :  { %v6956_v24 = vpop.f32.mrb[51].mxu1  ;;  %v7056_v11 = vpop.f32.mrb[51].mxu0  ;;  %7652 = vmatprep.subr.bf16.mxu0 %v8563_v56  ;;  %v8944_v56 = vld [vmem:[%s11351_s2] ss:$0 sm:$0xff] }
 0x159   :  { %v4130_v20 = vadd.f32 %v6954_v12, %v3977_v9  ;;  %v9962_v31 = vadd.f32 %v7054_v13, %v4122_v42  ;;  %v6957_v32 = vadd.f32 %v6956_v24, %v6955_v14  ;;  %v7057_v44 = vadd.f32 %v7056_v11, %v7055_v15  ;;  %7549 = vmatpush3.bf16.msra.mxu1 %v8578_v6  ;;  %v8557_v6 = vld [vmem:[%s11350_s0 + $0x28c] ss:$100 sps:$4 sm:$0xff]  }
 0x15a   :  { %4716 = vmatmul.mubr.bf16.gmra.mrb[156].mxu1 %v8543_v59  ;;  %4861 = vmatmul.mubr.bf16.gmra.mrb[156].mxu0 %v8544_v29  ;;  %v3985_v59 = vadd.f32 %v8944_v56, %v9782_v33  ;;  %v3988_v39 = vadd.f32 %v8944_v56, %v9793_v49  ;;  %v8608_v33 = vld [vmem:[%s11349_s1 + $0x3a8] sm:$0xff]   ;;  %v8619_v14 = vld [vmem:[%s11349_s1 + $0x3f0] sm:$0xff]  }
 0x15b   :  { %v4133_v23 = vadd.f32 %v6957_v32, %v3980_v10  ;;  %v9964_v34 = vadd.f32 %v7057_v44, %v4125_v57  ;;  %4723 = vmatprep.mubr.bf16.mxu1 %v8547_v5  ;;  %4868 = vmatprep.mubr.bf16.mxu0 %v8549_v16  ;;  %v8611_v13 = vld [vmem:[%s11349_s1 + $0x468] sm:$0xff]   ;;  %v8620_v11 = vld [vmem:[%s11349_s1 + $0x3b0] sm:$0xff]  }
 0x15c   :  { %7653 = vmatpush3.bf16.msra.mxu0 %v8568_v17  ;;  %7550 = vmatprep.subr.bf16.mxu1 %v8591_v27  ;;  %v8627_v27 = vld [vmem:[%s11349_s1 + $0x470] sm:$0xff]  }
 0x15d   :  { %v6958_v42 = vpop.f32.mrb[52].mxu1  ;;  %v7058_v45 = vpop.f32.mrb[52].mxu0  ;;  %7654 = vmatprep.subr.bf16.mxu0 %v8579_v18  ;;  %7551 = vmatpush3.bf16.msra.mxu1 %v8594_v48  ;;  %v8612_v18 = vld [vmem:[%s11349_s1 + $0x428] sm:$0xff]   ;;  %v8564_v44 = vld [vmem:[%s11350_s0 + $0x414] ss:$100 sps:$4 sm:$0xff]  }
 0x15e   :  { %v6959_v51 = vpop.f32.mrb[53].mxu1  ;;  %v7059_v57 = vpop.f32.mrb[53].mxu0  ;;  %7552 = vmatprep.subr.bf16.mxu1 %v8603_v30  ;;  %v8559_v48 = vld [vmem:[%s11350_s0 + $0x348] ss:$100 sps:$4 sm:$0xff]  }
 0x15f   :  { %v6960_v29 = vadd.f32 %v6959_v51, %v6958_v42  ;;  %v7060_v2 = vadd.f32 %v7059_v57, %v7058_v45  ;;  %v6961_v60 = vpop.f32.mrb[54].mxu1  ;;  %v7061_v5 = vpop.f32.mrb[54].mxu0  ;;  %v8560_v30 = vld [vmem:[%s11350_s0 + $0x288] ss:$100 sps:$4 sm:$0xff]   ;;  %v8628_v51 = vld [vmem:[%s11349_s1 + $0x430] sm:$0xff]   ;;  %v8635_v57 = vld [vmem:[%s11349_s1 + $0x3f8] sm:$0xff]  }
 0x160   :  { %v6962_v9 = vpop.f32.mrb[55].mxu1  ;;  %v7062_v12 = vpop.f32.mrb[55].mxu0  ;;  %7655 = vmatpush3.bf16.msra.mxu0 %v8580_v35 }
 0x161   :  { %v4138_v15 = vadd.f32 %v6960_v29, %v3985_v59  ;;  %v10001_v16 = vadd.f32 %v7060_v2, %v4130_v20  ;;  %v6963_v17 = vadd.f32 %v6962_v9, %v6961_v60  ;;  %v7063_v49 = vadd.f32 %v7062_v12, %v7061_v5  ;;  %7656 = vmatprep.subr.bf16.mxu0 %v8595_v52  ;;  %v8636_v2 = vld [vmem:[%s11349_s1 + $0x3b8] sm:$0xff]   ;;  %v8651_v5 = vld [vmem:[%s11349_s1 + $0x4c0] sm:$0xff]  }
 0x162   :  { %4724 = vmatmul.mubr.bf16.gmra.mrb[160].mxu1 %v8552_v36  ;;  %4869 = vmatmul.mubr.bf16.gmra.mrb[160].mxu0 %v8553_v40  ;;  %v3993_v52 = vadd.f32 %v8944_v56, %v9806_v3  ;;  %v3996_v59 = vadd.f32 %v8944_v56, %v9816_v38  ;;  %v8643_v60 = vld [vmem:[%s11349_s1 + $0x478] sm:$0xff]  }
 0x163   :  { %v4141_v10 = vadd.f32 %v6963_v17, %v3988_v39  ;;  %v10006_v24 = vadd.f32 %v7063_v49, %v4133_v23  ;;  %4731 = vmatprep.mubr.bf16.mxu1 %v8555_v62  ;;  %4876 = vmatprep.mubr.bf16.mxu0 %v8557_v6  ;;  %v8566_v62 = vld [vmem:[%s11350_s0 + $0x354] ss:$100 sps:$4 sm:$0xff]  }
 0x164   :  { %7657 = vmatpush3.bf16.msra.mxu0 %v8596_v7  ;;  %7553 = vmatpush3.bf16.msra.mxu1 %v8608_v33  ;;  %v8644_v12 = vld [vmem:[%s11349_s1 + $0x438] sm:$0xff]   ;;  %v8659_v33 = vld [vmem:[%s11349_s1 + $0x540] sm:$0xff]  }
 0x165   :  { %v6964_v20 = vpop.f32.mrb[56].mxu1  ;;  %v7064_v32 = vpop.f32.mrb[56].mxu0  ;;  %7658 = vmatprep.subr.bf16.mxu0 %v8611_v13  ;;  %7554 = vmatprep.subr.bf16.mxu1 %v8619_v14  ;;  %v8569_v13 = vld [vmem:[%s11350_s0 + $0x410] ss:$100 sps:$4 sm:$0xff]  }
 0x166   :  { %v6965_v23 = vpop.f32.mrb[57].mxu1  ;;  %v7065_v35 = vpop.f32.mrb[57].mxu0  ;;  %v8570_v14 = vld [vmem:[%s11350_s0 + $0x350] ss:$100 sps:$4 sm:$0xff]  }
 0x167   :  { %v6966_v36 = vadd.f32 %v6965_v23, %v6964_v20  ;;  %v7066_v40 = vadd.f32 %v7065_v35, %v7064_v32  ;;  %v6967_v42 = vpop.f32.mrb[58].mxu1  ;;  %v7067_v45 = vpop.f32.mrb[58].mxu0  ;;  %v8573_v20 = vld [vmem:[%s11350_s0 + $0x41c] ss:$100 sps:$4 sm:$0xff]  }
 0x168   :  { %v6968_v29 = vpop.f32.mrb[59].mxu1  ;;  %v7068_v3 = vpop.f32.mrb[59].mxu0  ;;  %7659 = vmatpush3.bf16.msra.mxu0 %v8612_v18  ;;  %7555 = vmatpush3.bf16.msra.mxu1 %v8620_v11 }
 0x169   :  { %v4146_v6 = vadd.f32 %v6966_v36, %v3993_v52  ;;  %v10043_v7 = vadd.f32 %v7066_v40, %v4138_v15  ;;  %v6969_v38 = vadd.f32 %v6968_v29, %v6967_v42  ;;  %v7069_v56 = vadd.f32 %v7068_v3, %v7067_v45  ;;  %7660 = vmatprep.subr.bf16.mxu0 %v8627_v27  ;;  %v8575_v45 = vld [vmem:[%s11350_s0 + $0x4d8] ss:$100 sps:$4 sm:$0xff]  }
 0x16a   :  { %4732 = vmatmul.mubr.bf16.gmra.mrb[164].mxu1 %v8559_v48  ;;  %4877 = vmatmul.mubr.bf16.gmra.mrb[164].mxu0 %v8560_v30  ;;  %v8571_v30 = vld [vmem:[%s11350_s0 + $0x4dc] ss:$100 sps:$4 sm:$0xff]  }
 0x16b   :  { %v4149_v39 = vadd.f32 %v6969_v38, %v3996_v59  ;;  %v10045_v9 = vadd.f32 %v7069_v56, %v4141_v10  ;;  %4739 = vmatprep.mubr.bf16.mxu1 %v8564_v44  ;;  %4884 = vmatprep.mubr.bf16.mxu0 %v8566_v62 }
 0x16c   :  { %7661 = vmatpush3.bf16.msra.mxu0 %v8628_v51  ;;  %7556 = vmatprep.subr.bf16.mxu1 %v8635_v57 }
 0x16d   :  { %v6970_v15 = vpop.f32.mrb[60].mxu1  ;;  %v7070_v17 = vpop.f32.mrb[60].mxu0  ;;  %7557 = vmatpush3.bf16.msra.mxu1 %v8636_v2  ;;  %7662 = vmatprep.subr.bf16.mxu0 %v8643_v60  ;;  %v8581_v60 = vld [vmem:[%s11350_s0 + $0x5a4] ss:$100 sps:$4 sm:$0xff]  }
 0x16e   :  { %v6971_v49 = vpop.f32.mrb[61].mxu1  ;;  %v7071_v18 = vpop.f32.mrb[61].mxu0  ;;  %7754 = vmatprep.subr.bf16.mxu1 %v8651_v5  ;;  %v8583_v5 = vld [vmem:[%s11350_s0 + $0x4e4] ss:$100 sps:$4 sm:$0xff]  }
 0x16f   :  { %v6972_v10 = vadd.f32 %v6971_v49, %v6970_v15  ;;  %v7072_v11 = vadd.f32 %v7071_v18, %v7070_v17  ;;  %v6973_v27 = vpop.f32.mrb[62].mxu1  ;;  %v7073_v48 = vpop.f32.mrb[62].mxu0  ;;  %v8585_v15 = vld [vmem:[%s11350_s0 + $0x5a0] ss:$100 sps:$4 sm:$0xff]  }
 0x170   :  { %v6974_v32 = vpop.f32.mrb[63].mxu1  ;;  %v7074_v44 = vpop.f32.mrb[63].mxu0  ;;  %7663 = vmatpush3.bf16.msra.mxu0 %v8644_v12 }
 0x171   :  { %v4154_v23 = vadd.f32 %v6972_v10, %v9659_v47  ;;  %v10066_v35 = vadd.f32 %v7072_v11, %v4146_v6  ;;  %v6975_v52 = vadd.f32 %v6974_v32, %v6973_v27  ;;  %v7075_v36 = vadd.f32 %v7074_v44, %v7073_v48  ;;  %7860 = vmatprep.subr.bf16.mxu0 %v8659_v33  ;;  %v8576_v47 = vld [vmem:[%s11350_s0 + $0x418] ss:$100 sps:$4 sm:$0xff]  }
 0x172   :  { %4740 = vmatmul.mubr.bf16.gmra.mrb[168].mxu1 %v8569_v13  ;;  %4885 = vmatmul.mubr.bf16.gmra.mrb[168].mxu0 %v8570_v14 }
 0x173   :  { %v4157_v40 = vadd.f32 %v6975_v52, %v9664_v50  ;;  %v10069_v42 = vadd.f32 %v7075_v36, %v4149_v39  ;;  %4747 = vmatprep.mubr.bf16.mxu1 %v8571_v30  ;;  %4892 = vmatprep.mubr.bf16.mxu0 %v8573_v20  ;;  %v8587_v30 = vld [vmem:[%s11350_s0 + $0x66c] ss:$100 sps:$4 sm:$0xff]  }
 0x174   :  { %v8589_v20 = vld [vmem:[%s11350_s0 + $0x5ac] ss:$100 sps:$4 sm:$0xff]  }
 0x175   :  { %v6976_v62 = vpop.f32.mrb[64].mxu1  ;;  %v7076_v51 = vpop.f32.mrb[64].mxu0 }
 0x176   :  { %v6977_v57 = vpop.f32.mrb[65].mxu1  ;;  %v7077_v59 = vpop.f32.mrb[65].mxu0 }
 0x177   :  { %v6978_v29 = vadd.f32 %v6977_v57, %v6976_v62  ;;  %v7078_v3 = vadd.f32 %v7077_v59, %v7076_v51  ;;  %v6979_v2 = vpop.f32.mrb[66].mxu1  ;;  %v7079_v50 = vpop.f32.mrb[66].mxu0  ;;  %v8592_v62 = vld [vmem:[%s11350_s0 + $0x668] ss:$100 sps:$4 sm:$0xff]  }
 0x178   :  { %v6980_v6 = vpop.f32.mrb[67].mxu1  ;;  %v7080_v38 = vpop.f32.mrb[67].mxu0 }
 0x179   :  { %v4162_v56 = vadd.f32 %v6978_v29, %v9681_v1  ;;  %v10084_v39 = vadd.f32 %v7078_v3, %v4154_v23  ;;  %v6981_v12 = vadd.f32 %v6980_v6, %v6979_v2  ;;  %v7081_v33 = vadd.f32 %v7080_v38, %v7079_v50  ;;  %v8586_v1 = vld [vmem:[%s11350_s0 + $0x4e0] ss:$100 sps:$4 sm:$0xff]  }
 0x17a   :  { %4748 = vmatmul.mubr.bf16.gmra.mrb[172].mxu1 %v8575_v45  ;;  %4893 = vmatmul.mubr.bf16.gmra.mrb[172].mxu0 %v8576_v47 }
 0x17b   :  { %v4165_v13 = vadd.f32 %v6981_v12, %v9686_v4  ;;  %v10087_v14 = vadd.f32 %v7081_v33, %v4157_v40  ;;  %4755 = vmatprep.mubr.bf16.mxu1 %v8581_v60  ;;  %4900 = vmatprep.mubr.bf16.mxu0 %v8583_v5  ;;  %v8597_v60 = vld [vmem:[%s11350_s0 + $0x734] ss:$100 sps:$4 sm:$0xff]  }
 0x17c   :  { %v8599_v5 = vld [vmem:[%s11350_s0 + $0x674] ss:$100 sps:$4 sm:$0xff]  }
 0x17d   :  { %v6982_v17 = vpop.f32.mrb[68].mxu1  ;;  %v7082_v49 = vpop.f32.mrb[68].mxu0 }
 0x17e   :  { %v6983_v18 = vpop.f32.mrb[69].mxu1  ;;  %v7083_v10 = vpop.f32.mrb[69].mxu0 }
 0x17f   :  { %v6984_v11 = vadd.f32 %v6983_v18, %v6982_v17  ;;  %v7084_v27 = vadd.f32 %v7083_v10, %v7082_v49  ;;  %v6985_v48 = vpop.f32.mrb[70].mxu1  ;;  %v7085_v4 = vpop.f32.mrb[70].mxu0  ;;  %v8601_v17 = vld [vmem:[%s11350_s0 + $0x730] ss:$100 sps:$4 sm:$0xff]  }
 0x180   :  { %v6986_v32 = vpop.f32.mrb[71].mxu1  ;;  %v7086_v44 = vpop.f32.mrb[71].mxu0 }
 0x181   :  { %v4170_v23 = vadd.f32 %v6984_v11, %v9703_v19  ;;  %v10102_v52 = vadd.f32 %v7084_v27, %v4162_v56  ;;  %v6987_v36 = vadd.f32 %v6986_v32, %v6985_v48  ;;  %v7087_v40 = vadd.f32 %v7086_v44, %v7085_v4  ;;  %v8593_v19 = vld [vmem:[%s11350_s0 + $0x5a8] ss:$100 sps:$4 sm:$0xff]  }
 0x182   :  { %4756 = vmatmul.mubr.bf16.gmra.mrb[176].mxu1 %v8585_v15  ;;  %4901 = vmatmul.mubr.bf16.gmra.mrb[176].mxu0 %v8586_v1 }
 0x183   :  { %v4173_v45 = vadd.f32 %v6987_v36, %v9708_v22  ;;  %v10105_v47 = vadd.f32 %v7087_v40, %v4165_v13  ;;  %4763 = vmatprep.mubr.bf16.mxu1 %v8587_v30  ;;  %4908 = vmatprep.mubr.bf16.mxu0 %v8589_v20  ;;  %v8604_v30 = vld [vmem:[%s11350_s0 + $0x7fc] ss:$100 sps:$4 sm:$0xff]  }
 0x184   :  { %v8606_v20 = vld [vmem:[%s11350_s0 + $0x73c] ss:$100 sps:$4 sm:$0xff]  }
 0x185   :  { %v6988_v51 = vpop.f32.mrb[72].mxu1  ;;  %v7088_v57 = vpop.f32.mrb[72].mxu0 }
 0x186   :  { %v6989_v59 = vpop.f32.mrb[73].mxu1  ;;  %v7089_v29 = vpop.f32.mrb[73].mxu0 }
 0x187   :  { %v6990_v3 = vadd.f32 %v6989_v59, %v6988_v51  ;;  %v7090_v2 = vadd.f32 %v7089_v29, %v7088_v57  ;;  %v6991_v50 = vpop.f32.mrb[74].mxu1  ;;  %v7091_v22 = vpop.f32.mrb[74].mxu0  ;;  %v8609_v51 = vld [vmem:[%s11350_s0 + $0x7f8] ss:$100 sps:$4 sm:$0xff]  }
 0x188   :  { %v6992_v6 = vpop.f32.mrb[75].mxu1  ;;  %v7092_v38 = vpop.f32.mrb[75].mxu0 }
 0x189   :  { %v4178_v56 = vadd.f32 %v6990_v3, %v9725_v37  ;;  %v10120_v12 = vadd.f32 %v7090_v2, %v4170_v23  ;;  %v6993_v33 = vadd.f32 %v6992_v6, %v6991_v50  ;;  %v7093_v13 = vadd.f32 %v7092_v38, %v7091_v22  ;;  %v8602_v37 = vld [vmem:[%s11350_s0 + $0x670] ss:$100 sps:$4 sm:$0xff]  }
 0x18a   :  { %4764 = vmatmul.mubr.bf16.gmra.mrb[180].mxu1 %v8592_v62  ;;  %4909 = vmatmul.mubr.bf16.gmra.mrb[180].mxu0 %v8593_v19 }
 0x18b   :  { %v4181_v15 = vadd.f32 %v6993_v33, %v9730_v41  ;;  %v10123_v1 = vadd.f32 %v7093_v13, %v4173_v45  ;;  %4771 = vmatprep.mubr.bf16.mxu1 %v8597_v60  ;;  %4916 = vmatprep.mubr.bf16.mxu0 %v8599_v5  ;;  %v8613_v60 = vld [vmem:[%s11350_s0 + $0x8c4] ss:$100 sps:$4 sm:$0xff]  }
 0x18c   :  { %v8615_v5 = vld [vmem:[%s11350_s0 + $0x804] ss:$100 sps:$4 sm:$0xff]  }
 0x18d   :  { %v6994_v49 = vpop.f32.mrb[76].mxu1  ;;  %v7094_v18 = vpop.f32.mrb[76].mxu0 }
 0x18e   :  { %v6995_v10 = vpop.f32.mrb[77].mxu1  ;;  %v7095_v11 = vpop.f32.mrb[77].mxu0 }
 0x18f   :  { %v6996_v27 = vadd.f32 %v6995_v10, %v6994_v49  ;;  %v7096_v48 = vadd.f32 %v7095_v11, %v7094_v18  ;;  %v6997_v4 = vpop.f32.mrb[78].mxu1  ;;  %v7097_v41 = vpop.f32.mrb[78].mxu0  ;;  %v8617_v49 = vld [vmem:[%s11350_s0 + $0x8c0] ss:$100 sps:$4 sm:$0xff]  }
 0x190   :  { %v6998_v32 = vpop.f32.mrb[79].mxu1  ;;  %v7098_v44 = vpop.f32.mrb[79].mxu0 }
 0x191   :  { %v4186_v23 = vadd.f32 %v6996_v27, %v9747_v61  ;;  %v6999_v36 = vadd.f32 %v6998_v32, %v6997_v4  ;;  %v7099_v40 = vadd.f32 %v7098_v44, %v7097_v41  ;;  %v10138_v45 = vadd.f32 %v7096_v48, %v4178_v56  ;;  %v8610_v61 = vld [vmem:[%s11350_s0 + $0x738] ss:$100 sps:$4 sm:$0xff]  }
 0x192   :  { %4772 = vmatmul.mubr.bf16.gmra.mrb[184].mxu1 %v8601_v17  ;;  %4917 = vmatmul.mubr.bf16.gmra.mrb[184].mxu0 %v8602_v37 }
 0x193   :  { %v4189_v62 = vadd.f32 %v6999_v36, %v9752_v0  ;;  %4779 = vmatprep.mubr.bf16.mxu1 %v8604_v30  ;;  %4924 = vmatprep.mubr.bf16.mxu0 %v8606_v20  ;;  %v10141_v19 = vadd.f32 %v7099_v40, %v4181_v15  ;;  %v8621_v30 = vld [vmem:[%s11350_s0 + $0x98c] ss:$100 sps:$4 sm:$0xff]  }
 0x194   :  { %v8623_v20 = vld [vmem:[%s11350_s0 + $0x8cc] ss:$100 sps:$4 sm:$0xff]  }
 0x195   :  { %v7000_v57 = vpop.f32.mrb[80].mxu1  ;;  %v7100_v59 = vpop.f32.mrb[80].mxu0 }
 0x196   :  { %v7001_v29 = vpop.f32.mrb[81].mxu1  ;;  %v7101_v3 = vpop.f32.mrb[81].mxu0 }
 0x197   :  { %v7002_v2 = vadd.f32 %v7001_v29, %v7000_v57  ;;  %v7102_v50 = vadd.f32 %v7101_v3, %v7100_v59  ;;  %v7003_v22 = vpop.f32.mrb[82].mxu1  ;;  %v7103_v0 = vpop.f32.mrb[82].mxu0  ;;  %v8625_v59 = vld [vmem:[%s11350_s0 + $0x988] ss:$100 sps:$4 sm:$0xff]  }
 0x198   :  { %v7004_v6 = vpop.f32.mrb[83].mxu1  ;;  %v7104_v38 = vpop.f32.mrb[83].mxu0 }
 0x199   :  { %v4194_v56 = vadd.f32 %v7002_v2, %v9769_v21  ;;  %v7005_v33 = vadd.f32 %v7004_v6, %v7003_v22  ;;  %v7105_v13 = vadd.f32 %v7104_v38, %v7103_v0  ;;  %v10156_v15 = vadd.f32 %v7102_v50, %v4186_v23  ;;  %v8618_v21 = vld [vmem:[%s11350_s0 + $0x800] ss:$100 sps:$4 sm:$0xff]  }
 0x19a   :  { %4780 = vmatmul.mubr.bf16.gmra.mrb[188].mxu1 %v8609_v51  ;;  %4925 = vmatmul.mubr.bf16.gmra.mrb[188].mxu0 %v8610_v61 }
 0x19b   :  { %v4197_v17 = vadd.f32 %v7005_v33, %v9774_v25  ;;  %4787 = vmatprep.mubr.bf16.mxu1 %v8613_v60  ;;  %4932 = vmatprep.mubr.bf16.mxu0 %v8615_v5  ;;  %v10159_v37 = vadd.f32 %v7105_v13, %v4189_v62  ;;  %v8629_v60 = vld [vmem:[%s11350_s0 + $0xa54] ss:$100 sps:$4 sm:$0xff]  }
 0x19c   :  { %v8631_v5 = vld [vmem:[%s11350_s0 + $0x994] ss:$100 sps:$4 sm:$0xff]  }
 0x19d   :  { %v7006_v18 = vpop.f32.mrb[84].mxu1  ;;  %v7106_v10 = vpop.f32.mrb[84].mxu0 }
 0x19e   :  { %v7007_v11 = vpop.f32.mrb[85].mxu1  ;;  %v7107_v27 = vpop.f32.mrb[85].mxu0 }
 0x19f   :  { %v7008_v48 = vadd.f32 %v7007_v11, %v7006_v18  ;;  %v7108_v4 = vadd.f32 %v7107_v27, %v7106_v10  ;;  %v7009_v41 = vpop.f32.mrb[86].mxu1  ;;  %v7109_v25 = vpop.f32.mrb[86].mxu0  ;;  %v8633_v18 = vld [vmem:[%s11350_s0 + $0xa50] ss:$100 sps:$4 sm:$0xff]  }
 0x1a0   :  { %v7010_v32 = vpop.f32.mrb[87].mxu1  ;;  %v7110_v44 = vpop.f32.mrb[87].mxu0 }
 0x1a1   :  { %v4202_v23 = vadd.f32 %v7008_v48, %v9791_v46  ;;  %v7011_v36 = vadd.f32 %v7010_v32, %v7009_v41  ;;  %v7111_v40 = vadd.f32 %v7110_v44, %v7109_v25  ;;  %v10174_v62 = vadd.f32 %v7108_v4, %v4194_v56  ;;  %v8626_v46 = vld [vmem:[%s11350_s0 + $0x8c8] ss:$100 sps:$4 sm:$0xff]  }
 0x1a2   :  { %4788 = vmatmul.mubr.bf16.gmra.mrb[192].mxu1 %v8617_v49  ;;  %4933 = vmatmul.mubr.bf16.gmra.mrb[192].mxu0 %v8618_v21 }
 0x1a3   :  { %v4205_v51 = vadd.f32 %v7011_v36, %v9796_v53  ;;  %4795 = vmatprep.mubr.bf16.mxu1 %v8621_v30  ;;  %4940 = vmatprep.mubr.bf16.mxu0 %v8623_v20  ;;  %v10177_v57 = vadd.f32 %v7111_v40, %v4197_v17  ;;  %v8637_v30 = vld [vmem:[%s11350_s0 + $0xb1c] ss:$100 sps:$4 sm:$0xff]  }
 0x1a4   :  { %v8639_v20 = vld [vmem:[%s11350_s0 + $0xa5c] ss:$100 sps:$4 sm:$0xff]  }
 0x1a5   :  { %v7112_v61 = vpop.f32.mrb[88].mxu0  ;;  %v7134_v29 = vpop.f32.mrb[88].mxu1 }
 0x1a6   :  { %v7113_v3 = vpop.f32.mrb[89].mxu0  ;;  %v7135_v2 = vpop.f32.mrb[89].mxu1 }
 0x1a7   :  { %v7114_v50 = vadd.f32 %v7113_v3, %v7112_v61  ;;  %v7136_v22 = vadd.f32 %v7135_v2, %v7134_v29  ;;  %v7115_v0 = vpop.f32.mrb[90].mxu0  ;;  %v7137_v53 = vpop.f32.mrb[90].mxu1 }
 0x1a8   :  { %v7116_v6 = vpop.f32.mrb[91].mxu0  ;;  %v7138_v38 = vpop.f32.mrb[91].mxu1 }
 0x1a9   :  { %v4396_v56 = vadd.f32 %v7136_v22, %v9834_v54  ;;  %v7117_v33 = vadd.f32 %v7116_v6, %v7115_v0  ;;  %v7139_v13 = vadd.f32 %v7138_v38, %v7137_v53  ;;  %v10192_v17 = vadd.f32 %v7114_v50, %v4202_v23  ;;  %v8634_v54 = vld [vmem:[%s11350_s0 + $0x990] ss:$100 sps:$4 sm:$0xff]   ;;  %v8642_v50 = vld [vmem:[%s11350_s0 + $0xa58] ss:$100 sps:$4 sm:$0xff]  }
 0x1aa   :  { %4796 = vmatmul.mubr.bf16.gmra.mrb[196].mxu1 %v8625_v59  ;;  %4941 = vmatmul.mubr.bf16.gmra.mrb[196].mxu0 %v8626_v46 }
 0x1ab   :  { %v4399_v49 = vadd.f32 %v7139_v13, %v9836_v58  ;;  %4803 = vmatprep.mubr.bf16.mxu1 %v8629_v60  ;;  %4948 = vmatprep.mubr.bf16.mxu0 %v8631_v5  ;;  %v10195_v21 = vadd.f32 %v7117_v33, %v4205_v51  ;;  %v8645_v60 = vld [vmem:[%s11350_s0 + $0xb24] ss:$100 sps:$4 sm:$0xff]   ;;  %v8649_v5 = vld [vmem:[%s11350_s0 + $0x3c] ss:$100 sps:$4 sm:$0xff]  }
 0x1ad   :  { %v7140_v10 = vpop.f32.mrb[92].mxu1  ;;  %v7240_v11 = vpop.f32.mrb[92].mxu0 }
 0x1ae   :  { %v7141_v27 = vpop.f32.mrb[93].mxu1  ;;  %v7241_v48 = vpop.f32.mrb[93].mxu0 }
 0x1af   :  { %v7142_v4 = vadd.f32 %v7141_v27, %v7140_v10  ;;  %v7242_v41 = vadd.f32 %v7241_v48, %v7240_v11  ;;  %v7143_v25 = vpop.f32.mrb[94].mxu1  ;;  %v7243_v58 = vpop.f32.mrb[94].mxu0 }
 0x1b0   :  { %v7144_v32 = vpop.f32.mrb[95].mxu1  ;;  %v7244_v44 = vpop.f32.mrb[95].mxu0 }
 0x1b1   :  { %v4404_v23 = vadd.f32 %v7142_v4, %v9854_v26  ;;  %v7145_v36 = vadd.f32 %v7144_v32, %v7143_v25  ;;  %v7245_v40 = vadd.f32 %v7244_v44, %v7243_v58  ;;  %v10210_v51 = vadd.f32 %v7242_v41, %v4396_v56  ;;  %v8641_v26 = vld [vmem:[%s11350_s0 + $0xb18] ss:$100 sps:$4 sm:$0xff]   ;;  %v8650_v4 = vld [vmem:[%s11350_s0 + $0xb20] ss:$100 sps:$4 sm:$0xff]  }
 0x1b2   :  { %4804 = vmatmul.mubr.bf16.gmra.mrb[200].mxu1 %v8633_v18  ;;  %4949 = vmatmul.mubr.bf16.gmra.mrb[200].mxu0 %v8634_v54 }
 0x1b3   :  { %v4407_v59 = vadd.f32 %v7145_v36, %v9856_v28  ;;  %4811 = vmatprep.mubr.bf16.mxu1 %v8637_v30  ;;  %4956 = vmatprep.mubr.bf16.mxu0 %v8639_v20  ;;  %v10213_v46 = vadd.f32 %v7245_v40, %v4399_v49  ;;  %v8652_v30 = vld [vmem:[%s11349_s1 + $0x480] sm:$0xff]   ;;  %v8667_v36 = vld [vmem:[%s11349_s1 + $0x4c8] sm:$0xff]  }
 0x1b4   :  { %v8653_v20 = vld [vmem:[%s11350_s0 + $0x104] ss:$100 sps:$4 sm:$0xff]  }
 0x1b5   :  { %v7146_v61 = vpop.f32.mrb[96].mxu1  ;;  %v7246_v29 = vpop.f32.mrb[96].mxu0 }
 0x1b6   :  { %v7147_v3 = vpop.f32.mrb[97].mxu1  ;;  %v7247_v2 = vpop.f32.mrb[97].mxu0 }
 0x1b7   :  { %v7148_v22 = vadd.f32 %v7147_v3, %v7146_v61  ;;  %v7248_v0 = vadd.f32 %v7247_v2, %v7246_v29  ;;  %v7149_v53 = vpop.f32.mrb[98].mxu1  ;;  %v7249_v28 = vpop.f32.mrb[98].mxu0  ;;  %v8668_v2 = vld [vmem:[%s11349_s1 + $0x488] sm:$0xff]  }
 0x1b8   :  { %v7150_v6 = vpop.f32.mrb[99].mxu1  ;;  %v7250_v38 = vpop.f32.mrb[99].mxu0 }
 0x1b9   :  { %v4412_v56 = vadd.f32 %v7148_v22, %v9880_v63  ;;  %v7151_v33 = vadd.f32 %v7150_v6, %v7149_v53  ;;  %v7251_v13 = vadd.f32 %v7250_v38, %v7249_v28  ;;  %v10228_v49 = vadd.f32 %v7248_v0, %v4404_v23  ;;  %v8647_v63 = vld [vmem:[%s11350_s0 + $0x38] ss:$100 sps:$4 sm:$0xff]   ;;  %v8657_v23 = vld [vmem:[%s11350_s0 + $0x44] ss:$100 sps:$4 sm:$0xff]  }
 0x1ba   :  { %4812 = vmatmul.mubr.bf16.gmra.mrb[204].mxu1 %v8641_v26  ;;  %4957 = vmatmul.mubr.bf16.gmra.mrb[204].mxu0 %v8642_v50  ;;  %v8658_v28 = vld [vmem:[%s11350_s0 + $0x100] ss:$100 sps:$4 sm:$0xff]  }
 0x1bb   :  { %v4415_v18 = vadd.f32 %v7151_v33, %v9882_v8  ;;  %4964 = vmatprep.mubr.bf16.mxu0 %v8645_v60  ;;  %5005 = vmatprep.mubr.bf16.mxu1 %v8649_v5  ;;  %v10231_v54 = vadd.f32 %v7251_v13, %v4407_v59  ;;  %v8661_v33 = vld [vmem:[%s11350_s0 + $0x1cc] ss:$100 sps:$4 sm:$0xff]  }
 0x1bd   :  { %v7152_v10 = vpop.f32.mrb[100].mxu1  ;;  %v7252_v11 = vpop.f32.mrb[100].mxu0 }
 0x1be   :  { %v7153_v27 = vpop.f32.mrb[101].mxu1  ;;  %v7253_v48 = vpop.f32.mrb[101].mxu0 }
 0x1bf   :  { %v7154_v41 = vadd.f32 %v7153_v27, %v7152_v10  ;;  %v7254_v25 = vadd.f32 %v7253_v48, %v7252_v11  ;;  %v7155_v58 = vpop.f32.mrb[102].mxu1  ;;  %v7255_v8 = vpop.f32.mrb[102].mxu0  ;;  %v8663_v10 = vld [vmem:[%s11350_s0 + $0x10c] ss:$100 sps:$4 sm:$0xff]  }
 0x1c0   :  { %v7156_v32 = vpop.f32.mrb[103].mxu1  ;;  %v7256_v44 = vpop.f32.mrb[103].mxu0  ;;  %v8673_v11 = vld [vmem:[%s11349_s1 + $0x548] sm:$0xff]  }
 0x1c1   :  { %v4420_v40 = vadd.f32 %v7154_v41, %v9918_v43  ;;  %v7157_v59 = vadd.f32 %v7156_v32, %v7155_v58  ;;  %v7257_v61 = vadd.f32 %v7256_v44, %v7255_v8  ;;  %v10252_v29 = vadd.f32 %v7254_v25, %v4412_v56  ;;  %v8683_v43 = vld [vmem:[%s11349_s1 + $0x4d0] sm:$0xff]   ;;  %v8660_v56 = vld [vmem:[%s11349_s1 + $0x500] sm:$0xff]   ;;  %v8699_v25 = vld [vmem:[%s11349_s1 + $0x4d8] sm:$0xff]  }
 0x1c2   :  { %4965 = vmatmul.mubr.bf16.gmra.mrb[208].mxu0 %v8650_v4  ;;  %5006 = vmatmul.mubr.bf16.vlgmr.msra.gmra.mrb[208].mxu1 %v8647_v63  ;;  %v8684_v4 = vld [vmem:[%s11349_s1 + $0x490] sm:$0xff]  }
 0x1c3   :  { %v4423_v3 = vadd.f32 %v7157_v59, %v9923_v55  ;;  %7755 = vmatpush3.bf16.msra.mxu1 %v8652_v30  ;;  %5013 = vmatprep.mubr.bf16.mxu1 %v8653_v20  ;;  %v10258_v26 = vadd.f32 %v7257_v61, %v4415_v18  ;;  %v8655_v55 = vld [vmem:[%s11350_s0 + $0x40] ss:$100 sps:$4 sm:$0xff]   ;;  %v8685_v30 = vld [vmem:[%s11349_s1 + $0x550] sm:$0xff]  }
 0x1c4   :  { %5158 = vmatprep.mubr.bf16.mxu0 %v8657_v23  ;;  %7756 = vmatprep.subr.bf16.mxu1 %v8667_v36  ;;  %v8665_v36 = vld [vmem:[%s11350_s0 + $0x1c8] ss:$100 sps:$4 sm:$0xff]  }
 0x1c5   :  { %v7158_v50 = vpop.f32.mrb[104].mxu1  ;;  %v7258_v22 = vpop.f32.mrb[104].mxu0 }
 0x1c6   :  { %v7159_v0 = vpop.f32.mrb[105].mxu1  ;;  %v7259_v53 = vpop.f32.mrb[105].mxu0 }
 0x1c7   :  { %v7160_v60 = vadd.f32 %v7159_v0, %v7158_v50  ;;  %v7260_v5 = vadd.f32 %v7259_v53, %v7258_v22  ;;  %v7161_v6 = vpop.f32.mrb[106].mxu1  ;;  %v7261_v38 = vpop.f32.mrb[106].mxu0  ;;  %7757 = vmatpush3.bf16.msra.mxu1 %v8668_v2  ;;  %v8671_v50 = vld [vmem:[%s11350_s0 + $0x1d4] ss:$100 sps:$4 sm:$0xff]  }
 0x1c8   :  { %v7162_v13 = vpop.f32.mrb[107].mxu1  ;;  %v7262_v18 = vpop.f32.mrb[107].mxu0  ;;  %7758 = vmatprep.subr.bf16.mxu1 %v8683_v43  ;;  %v8669_v43 = vld [vmem:[%s11350_s0 + $0x294] ss:$100 sps:$4 sm:$0xff]  }
 0x1c9   :  { %v4428_v27 = vadd.f32 %v7160_v60, %v9962_v31  ;;  %v7163_v48 = vadd.f32 %v7162_v13, %v7161_v6  ;;  %v7263_v63 = vadd.f32 %v7262_v18, %v7261_v38  ;;  %v10285_v41 = vadd.f32 %v7260_v5, %v4420_v40  ;;  %v8676_v31 = vld [vmem:[%s11349_s1 + $0x508] sm:$0xff]   ;;  %v8690_v53 = vld [vmem:[%s11349_s1 + $0x510] sm:$0xff]   ;;  %v8701_v6 = vld [vmem:[%s11349_s1 + $0x558] sm:$0xff]  }
 0x1ca   :  { %5014 = vmatmul.mubr.bf16.gmra.mrb[212].mxu1 %v8658_v28  ;;  %5159 = vmatmul.mubr.bf16.vlgmr.msra.gmra.mrb[212].mxu0 %v8655_v55  ;;  %v8666_v40 = vld [vmem:[%s11350_s0 + $0x108] ss:$100 sps:$4 sm:$0xff]   ;;  %v8713_v55 = vld [vmem:[%s11349_s1 + $0x4e0] sm:$0xff]   ;;  %v8702_v18 = vld [vmem:[%s11349_s1 + $0x518] sm:$0xff]  }
 0x1cb   :  { %v4431_v58 = vadd.f32 %v7163_v48, %v9964_v34  ;;  %7861 = vmatpush3.bf16.msra.mxu0 %v8660_v56  ;;  %5021 = vmatprep.mubr.bf16.mxu1 %v8661_v33  ;;  %v10294_v8 = vadd.f32 %v7263_v63, %v4423_v3  ;;  %v8700_v34 = vld [vmem:[%s11349_s1 + $0x498] sm:$0xff]   ;;  %v8716_v38 = vld [vmem:[%s11349_s1 + $0x4a0] sm:$0xff]   ;;  %v8725_v33 = vld [vmem:[%s11349_s1 + $0x4e8] sm:$0xff]  }
 0x1cc   :  { %5166 = vmatprep.mubr.bf16.mxu0 %v8663_v10  ;;  %7862 = vmatprep.subr.bf16.mxu0 %v8673_v11 }
 0x1cd   :  { %v7164_v20 = vpop.f32.mrb[108].mxu1  ;;  %v7264_v32 = vpop.f32.mrb[108].mxu0  ;;  %7759 = vmatpush3.bf16.msra.mxu1 %v8684_v4  ;;  %v8674_v4 = vld [vmem:[%s11350_s0 + $0x290] ss:$100 sps:$4 sm:$0xff]  }
 0x1ce   :  { %v7165_v44 = vpop.f32.mrb[109].mxu1  ;;  %v7265_v23 = vpop.f32.mrb[109].mxu0  ;;  %7760 = vmatprep.subr.bf16.mxu1 %v8699_v25  ;;  %v8675_v25 = vld [vmem:[%s11350_s0 + $0x1d0] ss:$100 sps:$4 sm:$0xff]  }
 0x1cf   :  { %v7166_v59 = vadd.f32 %v7165_v44, %v7164_v20  ;;  %v7266_v61 = vadd.f32 %v7265_v23, %v7264_v32  ;;  %v7167_v3 = vpop.f32.mrb[110].mxu1  ;;  %v7267_v2 = vpop.f32.mrb[110].mxu0  ;;  %7863 = vmatpush3.bf16.msra.mxu0 %v8676_v31  ;;  %v8677_v32 = vld [vmem:[%s11350_s0 + $0x35c] ss:$100 sps:$4 sm:$0xff]  }
 0x1d0   :  { %v7168_v22 = vpop.f32.mrb[111].mxu1  ;;  %v7268_v0 = vpop.f32.mrb[111].mxu0  ;;  %7864 = vmatprep.subr.bf16.mxu0 %v8685_v30 }
 0x1d1   :  { %v4436_v28 = vadd.f32 %v7166_v59, %v10001_v16  ;;  %v7169_v60 = vadd.f32 %v7168_v22, %v7167_v3  ;;  %v7269_v5 = vadd.f32 %v7268_v0, %v7267_v2  ;;  %7761 = vmatpush3.bf16.msra.mxu1 %v8700_v34  ;;  %v10327_v56 = vadd.f32 %v7266_v61, %v4428_v27  ;;  %v8717_v27 = vld [vmem:[%s11349_s1 + $0x560] sm:$0xff]   ;;  %v8733_v2 = vld [vmem:[%s11349_s1 + $0x568] sm:$0xff]  }
 0x1d2   :  { %5022 = vmatmul.mubr.bf16.gmra.mrb[216].mxu1 %v8665_v36  ;;  %5167 = vmatmul.mubr.bf16.gmra.mrb[216].mxu0 %v8666_v40  ;;  %v8679_v34 = vld [vmem:[%s11350_s0 + $0x29c] ss:$100 sps:$4 sm:$0xff]   ;;  %v8741_v40 = vld [vmem:[%s11349_s1 + $0x4f0] sm:$0xff]  }
 0x1d3   :  { %v4439_v16 = vadd.f32 %v7169_v60, %v10006_v24  ;;  %5029 = vmatprep.mubr.bf16.mxu1 %v8669_v43  ;;  %5174 = vmatprep.mubr.bf16.mxu0 %v8671_v50  ;;  %v10333_v13 = vadd.f32 %v7269_v5, %v4431_v58  ;;  %v8730_v24 = vld [vmem:[%s11349_s1 + $0x4a8] sm:$0xff]   ;;  %v8718_v36 = vld [vmem:[%s11349_s1 + $0x520] sm:$0xff]   ;;  %v8742_v43 = vld [vmem:[%s11349_s1 + $0x4b0] sm:$0xff]  }
 0x1d4   :  { %7865 = vmatpush3.bf16.msra.mxu0 %v8690_v53  ;;  %7762 = vmatprep.subr.bf16.mxu1 %v8713_v55  ;;  %v8757_v50 = vld [vmem:[%s11349_s1 + $0x4f8] sm:$0xff]   ;;  %v8734_v53 = vld [vmem:[%s11349_s1 + $0x528] sm:$0xff]  }
 0x1d5   :  { %v7170_v10 = vpop.f32.mrb[112].mxu1  ;;  %v7270_v11 = vpop.f32.mrb[112].mxu0  ;;  %7866 = vmatprep.subr.bf16.mxu0 %v8701_v6  ;;  %7763 = vmatpush3.bf16.msra.mxu1 %v8716_v38  ;;  %v8681_v38 = vld [vmem:[%s11350_s0 + $0x358] ss:$100 sps:$4 sm:$0xff]  }
 0x1d6   :  { %v7171_v48 = vpop.f32.mrb[113].mxu1  ;;  %v7271_v63 = vpop.f32.mrb[113].mxu0  ;;  %7764 = vmatprep.subr.bf16.mxu1 %v8725_v33  ;;  %v8682_v33 = vld [vmem:[%s11350_s0 + $0x298] ss:$100 sps:$4 sm:$0xff]  }
 0x1d7   :  { %v7172_v58 = vadd.f32 %v7171_v48, %v7170_v10  ;;  %v7272_v31 = vadd.f32 %v7271_v63, %v7270_v11  ;;  %v7173_v30 = vpop.f32.mrb[114].mxu1  ;;  %v7273_v20 = vpop.f32.mrb[114].mxu0 }
 0x1d8   :  { %v7174_v44 = vpop.f32.mrb[115].mxu1  ;;  %v7274_v23 = vpop.f32.mrb[115].mxu0  ;;  %7867 = vmatpush3.bf16.msra.mxu0 %v8702_v18 }
 0x1d9   :  { %v4444_v59 = vadd.f32 %v7172_v58, %v10043_v7  ;;  %v7175_v61 = vadd.f32 %v7174_v44, %v7173_v30  ;;  %v7275_v3 = vadd.f32 %v7274_v23, %v7273_v20  ;;  %7868 = vmatprep.subr.bf16.mxu0 %v8717_v27  ;;  %7765 = vmatpush3.bf16.msra.mxu1 %v8730_v24  ;;  %v8686_v27 = vld [vmem:[%s11350_s0 + $0x424] ss:$100 sps:$4 sm:$0xff]   ;;  %v8765_v20 = vld [vmem:[%s11349_s1 + $0x578] sm:$0xff]  }
 0x1da   :  { %5030 = vmatmul.mubr.bf16.gmra.mrb[220].mxu1 %v8674_v4  ;;  %5175 = vmatmul.mubr.bf16.gmra.mrb[220].mxu0 %v8675_v25  ;;  %v10372_v22 = vadd.f32 %v7272_v31, %v4436_v28  ;;  %v8749_v28 = vld [vmem:[%s11349_s1 + $0x570] sm:$0xff]   ;;  %v8688_v24 = vld [vmem:[%s11350_s0 + $0x364] ss:$100 sps:$4 sm:$0xff]  }
 0x1db   :  { %v4447_v7 = vadd.f32 %v7175_v61, %v10045_v9  ;;  %5037 = vmatprep.mubr.bf16.mxu1 %v8677_v32  ;;  %5182 = vmatprep.mubr.bf16.mxu0 %v8679_v34  ;;  %v10375_v0 = vadd.f32 %v7275_v3, %v4439_v16  ;;  %v8758_v9 = vld [vmem:[%s11349_s1 + $0x4b8] sm:$0xff]   ;;  %v8750_v4 = vld [vmem:[%s11349_s1 + $0x530] sm:$0xff]   ;;  %v8773_v25 = vld [vmem:[%s11349_s1 + $0x5c0] sm:$0xff]  }
 0x1dc   :  { %7869 = vmatpush3.bf16.msra.mxu0 %v8718_v36  ;;  %7766 = vmatprep.subr.bf16.mxu1 %v8741_v40  ;;  %v8691_v40 = vld [vmem:[%s11350_s0 + $0x420] ss:$100 sps:$4 sm:$0xff]  }
 0x1dd   :  { %v7176_v55 = vpop.f32.mrb[116].mxu1  ;;  %v7276_v60 = vpop.f32.mrb[116].mxu0  ;;  %7870 = vmatprep.subr.bf16.mxu0 %v8733_v2  ;;  %7767 = vmatpush3.bf16.msra.mxu1 %v8742_v43 }
 0x1de   :  { %v7177_v5 = vpop.f32.mrb[117].mxu1  ;;  %v7277_v6 = vpop.f32.mrb[117].mxu0  ;;  %7768 = vmatprep.subr.bf16.mxu1 %v8757_v50 }
 0x1df   :  { %v7178_v16 = vadd.f32 %v7177_v5, %v7176_v55  ;;  %v7278_v18 = vadd.f32 %v7277_v6, %v7276_v60  ;;  %v7179_v10 = vpop.f32.mrb[118].mxu1  ;;  %v7279_v11 = vpop.f32.mrb[118].mxu0  ;;  %v8945_v6 = vmov 0.0  }
 0x1e0   :  { %v7180_v48 = vpop.f32.mrb[119].mxu1  ;;  %v7280_v63 = vpop.f32.mrb[119].mxu0  ;;  %7871 = vmatpush3.bf16.msra.mxu0 %v8734_v53  ;;  %v8695_v53 = vld [vmem:[%s11350_s0 + $0x42c] ss:$100 sps:$4 sm:$0xff]  }
 0x1e1   :  { %v4452_v58 = vadd.f32 %v7178_v16, %v10066_v35  ;;  %v7181_v31 = vadd.f32 %v7180_v48, %v7179_v10  ;;  %v7281_v30 = vadd.f32 %v7280_v63, %v7279_v11  ;;  %7872 = vmatprep.subr.bf16.mxu0 %v8749_v28  ;;  %7769 = vmatpush3.bf16.msra.mxu1 %v8758_v9  ;;  %v8766_v35 = vld [vmem:[%s11349_s1 + $0x538] sm:$0xff]  }
 0x1e2   :  { %5038 = vmatmul.mubr.bf16.gmra.mrb[224].mxu1 %v8681_v38  ;;  %5183 = vmatmul.mubr.bf16.gmra.mrb[224].mxu0 %v8682_v33  ;;  %v10408_v32 = vadd.f32 %v7278_v18, %v4444_v59 }
 0x1e3   :  { %v4455_v34 = vadd.f32 %v7181_v31, %v10069_v42  ;;  %5045 = vmatprep.mubr.bf16.mxu1 %v8686_v27  ;;  %5190 = vmatprep.mubr.bf16.mxu0 %v8688_v24  ;;  %v10411_v44 = vadd.f32 %v7281_v30, %v4447_v7  ;;  %v8692_v42 = vld [vmem:[%s11350_s0 + $0x360] ss:$100 sps:$4 sm:$0xff]   ;;  %v8693_v7 = vld [vmem:[%s11350_s0 + $0x4ec] ss:$100 sps:$4 sm:$0xff]  }
 0x1e4   :  { %7873 = vmatpush3.bf16.msra.mxu0 %v8750_v4  ;;  %7966 = vmatprep.subr.bf16.mxu1 %v8773_v25  ;;  %v8698_v24 = vld [vmem:[%s11350_s0 + $0x428] ss:$100 sps:$4 sm:$0xff]   ;;  %v8703_v25 = vld [vmem:[%s11350_s0 + $0x5b4] ss:$100 sps:$4 sm:$0xff]  }
 0x1e5   :  { %v7182_v23 = vpop.f32.mrb[120].mxu1  ;;  %v7282_v36 = vpop.f32.mrb[120].mxu0  ;;  %7874 = vmatprep.subr.bf16.mxu0 %v8765_v20 }
 0x1e6   :  { %v7183_v59 = vpop.f32.mrb[121].mxu1  ;;  %v7283_v61 = vpop.f32.mrb[121].mxu0 }
 0x1e7   :  { %v7184_v3 = vadd.f32 %v7183_v59, %v7182_v23  ;;  %v7284_v2 = vadd.f32 %v7283_v61, %v7282_v36  ;;  %v7185_v43 = vpop.f32.mrb[122].mxu1  ;;  %v7285_v50 = vpop.f32.mrb[122].mxu0 }
 0x1e8   :  { %v7186_v55 = vpop.f32.mrb[123].mxu1  ;;  %v7286_v60 = vpop.f32.mrb[123].mxu0  ;;  %7875 = vmatpush3.bf16.msra.mxu0 %v8766_v35 }
 0x1e9   :  { %v4460_v28 = vadd.f32 %v7184_v3, %v10084_v39  ;;  %v7187_v9 = vadd.f32 %v7186_v55, %v7185_v43  ;;  %v7287_v5 = vadd.f32 %v7286_v60, %v7285_v50  ;;  %8095 = vmatprep.subr.bf16.mxu0 %v8945_v6  ;;  %v10430_v38 = vadd.f32 %v7284_v2, %v4452_v58  ;;  %v8697_v39 = vld [vmem:[%s11350_s0 + $0x4e8] ss:$100 sps:$4 sm:$0xff]   ;;  %v8705_v58 = vld [vmem:[%s11350_s0 + $0x4f4] ss:$100 sps:$4 sm:$0xff]   ;;  %v8711_v55 = vld [vmem:[%s11350_s0 + $0x5bc] ss:$100 sps:$4 sm:$0xff]  }
 0x1ea   :  { %5046 = vmatmul.mubr.bf16.gmra.mrb[228].mxu1 %v8691_v40  ;;  %5191 = vmatmul.mubr.bf16.gmra.mrb[228].mxu0 %v8692_v42  ;;  %v8708_v2 = vld [vmem:[%s11350_s0 + $0x4f0] ss:$100 sps:$4 sm:$0xff]  }
 0x1eb   :  { %v4463_v33 = vadd.f32 %v7187_v9, %v10087_v14  ;;  %5053 = vmatprep.mubr.bf16.mxu1 %v8693_v7  ;;  %5198 = vmatprep.mubr.bf16.mxu0 %v8695_v53  ;;  %v10433_v16 = vadd.f32 %v7287_v5, %v4455_v34  ;;  %v8709_v53 = vld [vmem:[%s11350_s0 + $0x67c] ss:$100 sps:$4 sm:$0xff]  }
 0x1ed   :  { %v7188_v18 = vpop.f32.mrb[124].mxu1  ;;  %v7288_v10 = vpop.f32.mrb[124].mxu0 }
 0x1ee   :  { %v7189_v11 = vpop.f32.mrb[125].mxu1  ;;  %v7289_v27 = vpop.f32.mrb[125].mxu0 }
 0x1ef   :  { %v7190_v48 = vadd.f32 %v7189_v11, %v7188_v18  ;;  %v7290_v63 = vadd.f32 %v7289_v27, %v7288_v10  ;;  %v7191_v4 = vpop.f32.mrb[126].mxu1  ;;  %v7291_v14 = vpop.f32.mrb[126].mxu0 }
 0x1f0   :  { %v7192_v31 = vpop.f32.mrb[127].mxu1  ;;  %v7292_v30 = vpop.f32.mrb[127].mxu0 }
 0x1f1   :  { %v4468_v20 = vadd.f32 %v7190_v48, %v10102_v52  ;;  %v7193_v34 = vadd.f32 %v7192_v31, %v7191_v4  ;;  %v7293_v35 = vadd.f32 %v7292_v30, %v7291_v14  ;;  %v10448_v23 = vadd.f32 %v7290_v63, %v4460_v28  ;;  %v8707_v52 = vld [vmem:[%s11350_s0 + $0x5b0] ss:$100 sps:$4 sm:$0xff]   ;;  %v8715_v63 = vld [vmem:[%s11350_s0 + $0x5b8] ss:$100 sps:$4 sm:$0xff]   ;;  %v8721_v31 = vld [vmem:[%s11350_s0 + $0x684] ss:$100 sps:$4 sm:$0xff]  }
 0x1f2   :  { %5054 = vmatmul.mubr.bf16.gmra.mrb[232].mxu1 %v8697_v39  ;;  %5199 = vmatmul.mubr.bf16.gmra.mrb[232].mxu0 %v8698_v24 }
 0x1f3   :  { %v4471_v36 = vadd.f32 %v7193_v34, %v10105_v47  ;;  %5061 = vmatprep.mubr.bf16.mxu1 %v8703_v25  ;;  %5206 = vmatprep.mubr.bf16.mxu0 %v8705_v58  ;;  %v10451_v40 = vadd.f32 %v7293_v35, %v4463_v33  ;;  %v8719_v58 = vld [vmem:[%s11350_s0 + $0x744] ss:$100 sps:$4 sm:$0xff]  }
 0x1f5   :  { %v7194_v59 = vpop.f32.mrb[128].mxu1  ;;  %v7294_v61 = vpop.f32.mrb[128].mxu0 }
 0x1f6   :  { %v7195_v42 = vpop.f32.mrb[129].mxu1  ;;  %v7295_v3 = vpop.f32.mrb[129].mxu0 }
 0x1f7   :  { %v7196_v43 = vadd.f32 %v7195_v42, %v7194_v59  ;;  %v7296_v50 = vadd.f32 %v7295_v3, %v7294_v61  ;;  %v7197_v7 = vpop.f32.mrb[130].mxu1  ;;  %v7297_v47 = vpop.f32.mrb[130].mxu0 }
 0x1f8   :  { %v7198_v60 = vpop.f32.mrb[131].mxu1  ;;  %v7298_v28 = vpop.f32.mrb[131].mxu0 }
 0x1f9   :  { %v4476_v9 = vadd.f32 %v7196_v43, %v10120_v12  ;;  %v7199_v5 = vadd.f32 %v7198_v60, %v7197_v7  ;;  %v7299_v33 = vadd.f32 %v7298_v28, %v7297_v47  ;;  %v10466_v18 = vadd.f32 %v7296_v50, %v4468_v20  ;;  %v8714_v12 = vld [vmem:[%s11350_s0 + $0x678] ss:$100 sps:$4 sm:$0xff]   ;;  %v8724_v50 = vld [vmem:[%s11350_s0 + $0x680] ss:$100 sps:$4 sm:$0xff]   ;;  %v8728_v60 = vld [vmem:[%s11350_s0 + $0x74c] ss:$100 sps:$4 sm:$0xff]  }
 0x1fa   :  { %5062 = vmatmul.mubr.bf16.gmra.mrb[236].mxu1 %v8707_v52  ;;  %5207 = vmatmul.mubr.bf16.gmra.mrb[236].mxu0 %v8708_v2 }
 0x1fb   :  { %v4479_v10 = vadd.f32 %v7199_v5, %v10123_v1  ;;  %5069 = vmatprep.mubr.bf16.mxu1 %v8709_v53  ;;  %5214 = vmatprep.mubr.bf16.mxu0 %v8711_v55  ;;  %v10469_v11 = vadd.f32 %v7299_v33, %v4471_v36  ;;  %v8726_v55 = vld [vmem:[%s11350_s0 + $0x80c] ss:$100 sps:$4 sm:$0xff]  }
 0x1fd   :  { %v7200_v27 = vpop.f32.mrb[132].mxu1  ;;  %v7300_v39 = vpop.f32.mrb[132].mxu0 }
 0x1fe   :  { %v7201_v24 = vpop.f32.mrb[133].mxu1  ;;  %v7301_v48 = vpop.f32.mrb[133].mxu0 }
 0x1ff   :  { %v7202_v4 = vadd.f32 %v7201_v24, %v7200_v27  ;;  %v7302_v14 = vadd.f32 %v7301_v48, %v7300_v39  ;;  %v7203_v25 = vpop.f32.mrb[134].mxu1  ;;  %v7303_v1 = vpop.f32.mrb[134].mxu0 }
 0x200   :  { %v7204_v30 = vpop.f32.mrb[135].mxu1  ;;  %v7304_v20 = vpop.f32.mrb[135].mxu0 }
 0x201   :  { %v4484_v34 = vadd.f32 %v7202_v4, %v10138_v45  ;;  %v7205_v35 = vadd.f32 %v7204_v30, %v7203_v25  ;;  %v7305_v36 = vadd.f32 %v7304_v20, %v7303_v1  ;;  %v10484_v59 = vadd.f32 %v7302_v14, %v4476_v9  ;;  %v8723_v45 = vld [vmem:[%s11350_s0 + $0x740] ss:$100 sps:$4 sm:$0xff]   ;;  %v8732_v14 = vld [vmem:[%s11350_s0 + $0x748] ss:$100 sps:$4 sm:$0xff]   ;;  %v8737_v30 = vld [vmem:[%s11350_s0 + $0x814] ss:$100 sps:$4 sm:$0xff]  }
 0x202   :  { %5070 = vmatmul.mubr.bf16.gmra.mrb[240].mxu1 %v8714_v12  ;;  %5215 = vmatmul.mubr.bf16.gmra.mrb[240].mxu0 %v8715_v63 }
 0x203   :  { %v4487_v61 = vadd.f32 %v7205_v35, %v10141_v19  ;;  %5077 = vmatprep.mubr.bf16.mxu1 %v8719_v58  ;;  %5222 = vmatprep.mubr.bf16.mxu0 %v8721_v31  ;;  %v10487_v42 = vadd.f32 %v7305_v36, %v4479_v10  ;;  %v8735_v31 = vld [vmem:[%s11350_s0 + $0x8d4] ss:$100 sps:$4 sm:$0xff]  }
 0x205   :  { %v7206_v3 = vpop.f32.mrb[136].mxu1  ;;  %v7306_v52 = vpop.f32.mrb[136].mxu0 }
 0x206   :  { %v7207_v2 = vpop.f32.mrb[137].mxu1  ;;  %v7307_v43 = vpop.f32.mrb[137].mxu0 }
 0x207   :  { %v7208_v7 = vadd.f32 %v7207_v2, %v7206_v3  ;;  %v7308_v47 = vadd.f32 %v7307_v43, %v7306_v52  ;;  %v7209_v53 = vpop.f32.mrb[138].mxu1  ;;  %v7309_v19 = vpop.f32.mrb[138].mxu0 }
 0x208   :  { %v7210_v28 = vpop.f32.mrb[139].mxu1  ;;  %v7310_v9 = vpop.f32.mrb[139].mxu0 }
 0x209   :  { %v4492_v5 = vadd.f32 %v7208_v7, %v10156_v15  ;;  %v10502_v33 = vadd.f32 %v7308_v47, %v4484_v34  ;;  %v7211_v10 = vadd.f32 %v7210_v28, %v7209_v53  ;;  %v7311_v27 = vadd.f32 %v7310_v9, %v7309_v19  ;;  %v8731_v15 = vld [vmem:[%s11350_s0 + $0x808] ss:$100 sps:$4 sm:$0xff]   ;;  %v8740_v47 = vld [vmem:[%s11350_s0 + $0x810] ss:$100 sps:$4 sm:$0xff]   ;;  %v8748_v28 = vld [vmem:[%s11350_s0 + $0x8dc] ss:$100 sps:$4 sm:$0xff]  }
 0x20a   :  { %5078 = vmatmul.mubr.bf16.gmra.mrb[244].mxu1 %v8723_v45  ;;  %5223 = vmatmul.mubr.bf16.gmra.mrb[244].mxu0 %v8724_v50 }
 0x20b   :  { %v4495_v39 = vadd.f32 %v7211_v10, %v10159_v37  ;;  %v10505_v24 = vadd.f32 %v7311_v27, %v4487_v61  ;;  %5085 = vmatprep.mubr.bf16.mxu1 %v8726_v55  ;;  %5230 = vmatprep.mubr.bf16.mxu0 %v8728_v60  ;;  %v8745_v60 = vld [vmem:[%s11350_s0 + $0x99c] ss:$100 sps:$4 sm:$0xff]  }
 0x20d   :  { %v7212_v48 = vpop.f32.mrb[140].mxu1  ;;  %v7312_v12 = vpop.f32.mrb[140].mxu0 }
 0x20e   :  { %v7213_v63 = vpop.f32.mrb[141].mxu1  ;;  %v7313_v4 = vpop.f32.mrb[141].mxu0 }
 0x20f   :  { %v7214_v25 = vadd.f32 %v7213_v63, %v7212_v48  ;;  %v7314_v1 = vadd.f32 %v7313_v4, %v7312_v12  ;;  %v7215_v58 = vpop.f32.mrb[142].mxu1  ;;  %v7315_v37 = vpop.f32.mrb[142].mxu0 }
 0x210   :  { %v7216_v20 = vpop.f32.mrb[143].mxu1  ;;  %v7316_v34 = vpop.f32.mrb[143].mxu0 }
 0x211   :  { %v4500_v35 = vadd.f32 %v7214_v25, %v10174_v62  ;;  %v10520_v36 = vadd.f32 %v7314_v1, %v4492_v5  ;;  %v7217_v61 = vadd.f32 %v7216_v20, %v7215_v58  ;;  %v7317_v3 = vadd.f32 %v7316_v34, %v7315_v37  ;;  %v8739_v62 = vld [vmem:[%s11350_s0 + $0x8d0] ss:$100 sps:$4 sm:$0xff]   ;;  %v8746_v1 = vld [vmem:[%s11350_s0 + $0x8d8] ss:$100 sps:$4 sm:$0xff]   ;;  %v8756_v20 = vld [vmem:[%s11350_s0 + $0x9a4] ss:$100 sps:$4 sm:$0xff]  }
 0x212   :  { %5086 = vmatmul.mubr.bf16.gmra.mrb[248].mxu1 %v8731_v15  ;;  %5231 = vmatmul.mubr.bf16.gmra.mrb[248].mxu0 %v8732_v14 }
 0x213   :  { %v4503_v52 = vadd.f32 %v7217_v61, %v10177_v57  ;;  %v10523_v2 = vadd.f32 %v7317_v3, %v4495_v39  ;;  %5093 = vmatprep.mubr.bf16.mxu1 %v8735_v31  ;;  %5238 = vmatprep.mubr.bf16.mxu0 %v8737_v30  ;;  %v8753_v30 = vld [vmem:[%s11350_s0 + $0xa64] ss:$100 sps:$4 sm:$0xff]  }
 0x215   :  { %v7218_v43 = vpop.f32.mrb[144].mxu1  ;;  %v7318_v45 = vpop.f32.mrb[144].mxu0 }
 0x216   :  { %v7219_v50 = vpop.f32.mrb[145].mxu1  ;;  %v7319_v7 = vpop.f32.mrb[145].mxu0 }
 0x217   :  { %v7220_v53 = vadd.f32 %v7219_v50, %v7218_v43  ;;  %v7320_v19 = vadd.f32 %v7319_v7, %v7318_v45  ;;  %v7221_v55 = vpop.f32.mrb[146].mxu1  ;;  %v7321_v57 = vpop.f32.mrb[146].mxu0 }
 0x218   :  { %v7222_v9 = vpop.f32.mrb[147].mxu1  ;;  %v7322_v5 = vpop.f32.mrb[147].mxu0 }
 0x219   :  { %v4508_v10 = vadd.f32 %v7220_v53, %v10192_v17  ;;  %v10538_v27 = vadd.f32 %v7320_v19, %v4500_v35  ;;  %v7223_v39 = vadd.f32 %v7222_v9, %v7221_v55  ;;  %v7323_v48 = vadd.f32 %v7322_v5, %v7321_v57  ;;  %v8743_v17 = vld [vmem:[%s11350_s0 + $0x998] ss:$100 sps:$4 sm:$0xff]   ;;  %v8751_v19 = vld [vmem:[%s11350_s0 + $0xa60] ss:$100 sps:$4 sm:$0xff]   ;;  %v8764_v9 = vld [vmem:[%s11350_s0 + $0xa6c] ss:$100 sps:$4 sm:$0xff]  }
 0x21a   :  { %5094 = vmatmul.mubr.bf16.gmra.mrb[252].mxu1 %v8739_v62  ;;  %5239 = vmatmul.mubr.bf16.gmra.mrb[252].mxu0 %v8740_v47 }
 0x21b   :  { %v4511_v12 = vadd.f32 %v7223_v39, %v10195_v21  ;;  %v10541_v63 = vadd.f32 %v7323_v48, %v4503_v52  ;;  %5101 = vmatprep.mubr.bf16.mxu1 %v8745_v60  ;;  %5246 = vmatprep.mubr.bf16.mxu0 %v8748_v28 }
 0x21d   :  { %v7324_v4 = vpop.f32.mrb[148].mxu0  ;;  %v7346_v15 = vpop.f32.mrb[148].mxu1 }
 0x21e   :  { %v7325_v14 = vpop.f32.mrb[149].mxu0  ;;  %v7347_v25 = vpop.f32.mrb[149].mxu1 }
 0x21f   :  { %v7326_v58 = vadd.f32 %v7325_v14, %v7324_v4  ;;  %v7348_v37 = vadd.f32 %v7347_v25, %v7346_v15  ;;  %v7327_v31 = vpop.f32.mrb[150].mxu0  ;;  %v7349_v21 = vpop.f32.mrb[150].mxu1 }
 0x220   :  { %v7328_v34 = vpop.f32.mrb[151].mxu0  ;;  %v7350_v35 = vpop.f32.mrb[151].mxu1 }
 0x221   :  { %v10555_v61 = vadd.f32 %v7326_v58, %v4508_v10  ;;  %v4702_v3 = vadd.f32 %v7348_v37, %v10210_v51  ;;  %v7329_v52 = vadd.f32 %v7328_v34, %v7327_v31  ;;  %v7351_v43 = vadd.f32 %v7350_v35, %v7349_v21  ;;  %v8754_v51 = vld [vmem:[%s11350_s0 + $0x9a0] ss:$100 sps:$4 sm:$0xff]   ;;  %v8762_v37 = vld [vmem:[%s11350_s0 + $0xa68] ss:$100 sps:$4 sm:$0xff]  }
 0x222   :  { %5102 = vmatmul.mubr.bf16.gmra.mrb[0].mxu1 %v8743_v17  ;;  %5247 = vmatmul.mubr.bf16.gmra.mrb[0].mxu0 %v8746_v1  ;;  %v8772_v34 = vld [vmem:[%s11350_s0 + $0x4c] ss:$100 sps:$4 sm:$0xff]  }
 0x223   :  { %v10558_v45 = vadd.f32 %v7329_v52, %v4511_v12  ;;  %v4705_v50 = vadd.f32 %v7351_v43, %v10213_v46  ;;  %5109 = vmatprep.mubr.bf16.mxu1 %v8753_v30  ;;  %5254 = vmatprep.mubr.bf16.mxu0 %v8756_v20  ;;  %v8761_v46 = vld [vmem:[%s11350_s0 + $0xb2c] ss:$100 sps:$4 sm:$0xff]   ;;  %v8769_v20 = vld [vmem:[%s11350_s0 + $0xb34] ss:$100 sps:$4 sm:$0xff]  }
 0x225   :  { %v7352_v7 = vpop.f32.mrb[152].mxu1  ;;  %v7452_v62 = vpop.f32.mrb[152].mxu0 }
 0x226   :  { %v7353_v47 = vpop.f32.mrb[153].mxu1  ;;  %v7453_v53 = vpop.f32.mrb[153].mxu0 }
 0x227   :  { %v7354_v55 = vadd.f32 %v7353_v47, %v7352_v7  ;;  %v7454_v57 = vadd.f32 %v7453_v53, %v7452_v62  ;;  %v7355_v60 = vpop.f32.mrb[154].mxu1  ;;  %v7455_v28 = vpop.f32.mrb[154].mxu0 }
 0x228   :  { %v7356_v5 = vpop.f32.mrb[155].mxu1  ;;  %v7456_v10 = vpop.f32.mrb[155].mxu0 }
 0x229   :  { %v4710_v39 = vadd.f32 %v7354_v55, %v10228_v49  ;;  %v10574_v48 = vadd.f32 %v7454_v57, %v4702_v3  ;;  %v7357_v12 = vadd.f32 %v7356_v5, %v7355_v60  ;;  %v7457_v4 = vadd.f32 %v7456_v10, %v7455_v28  ;;  %v8759_v49 = vld [vmem:[%s11350_s0 + $0xb28] ss:$100 sps:$4 sm:$0xff]   ;;  %v8777_v5 = vld [vmem:[%s11350_s0 + $0x114] ss:$100 sps:$4 sm:$0xff]  }
 0x22a   :  { %5110 = vmatmul.mubr.bf16.gmra.mrb[4].mxu1 %v8751_v19  ;;  %5255 = vmatmul.mubr.bf16.gmra.mrb[4].mxu0 %v8754_v51  ;;  %v8770_v57 = vld [vmem:[%s11350_s0 + $0x48] ss:$100 sps:$4 sm:$0xff]  }
 0x22b   :  { %v4713_v15 = vadd.f32 %v7357_v12, %v10231_v54  ;;  %v10577_v14 = vadd.f32 %v7457_v4, %v4705_v50  ;;  %5117 = vmatprep.mubr.bf16.mxu1 %v8761_v46  ;;  %5262 = vmatprep.mubr.bf16.mxu0 %v8764_v9  ;;  %v8774_v9 = vld [vmem:[%s11349_s1 + $0x580] sm:$0xff]   ;;  %v8780_v12 = vld [vmem:[%s11350_s0 + $0x54] ss:$100 sps:$4 sm:$0xff]   ;;  %v8788_v4 = vld [vmem:[%s11349_s1 + $0x5c8] sm:$0xff]  }
 0x22d   :  { %v7358_v25 = vpop.f32.mrb[156].mxu1  ;;  %v7458_v17 = vpop.f32.mrb[156].mxu0 }
 0x22e   :  { %v7359_v1 = vpop.f32.mrb[157].mxu1  ;;  %v7459_v58 = vpop.f32.mrb[157].mxu0 }
 0x22f   :  { %v7360_v31 = vadd.f32 %v7359_v1, %v7358_v25  ;;  %v7460_v21 = vadd.f32 %v7459_v58, %v7458_v17  ;;  %v7361_v30 = vpop.f32.mrb[158].mxu1  ;;  %v7461_v54 = vpop.f32.mrb[158].mxu0 }
 0x230   :  { %v7362_v35 = vpop.f32.mrb[159].mxu1  ;;  %v7462_v3 = vpop.f32.mrb[159].mxu0 }
 0x231   :  { %v4718_v52 = vadd.f32 %v7360_v31, %v10252_v29  ;;  %v10592_v43 = vadd.f32 %v7460_v21, %v4710_v39  ;;  %v7363_v50 = vadd.f32 %v7362_v35, %v7361_v30  ;;  %v7463_v7 = vadd.f32 %v7462_v3, %v7461_v54  ;;  %v8767_v29 = vld [vmem:[%s11350_s0 + $0xb30] ss:$100 sps:$4 sm:$0xff]  }
 0x232   :  { %5118 = vmatmul.mubr.bf16.gmra.mrb[8].mxu1 %v8759_v49  ;;  %5263 = vmatmul.mubr.bf16.gmra.mrb[8].mxu0 %v8762_v37  ;;  %v8789_v37 = vld [vmem:[%s11349_s1 + $0x588] sm:$0xff]  }
 0x233   :  { %v4721_v62 = vadd.f32 %v7363_v50, %v10258_v26  ;;  %v10595_v47 = vadd.f32 %v7463_v7, %v4713_v15  ;;  %5270 = vmatprep.mubr.bf16.mxu0 %v8769_v20  ;;  %5311 = vmatprep.mubr.bf16.mxu1 %v8772_v34  ;;  %v8778_v20 = vld [vmem:[%s11350_s0 + $0x50] ss:$100 sps:$4 sm:$0xff]   ;;  %v8781_v50 = vld [vmem:[%s11349_s1 + $0x600] sm:$0xff]  }
 0x234   :  { %v8784_v7 = vld [vmem:[%s11350_s0 + $0x1dc] ss:$100 sps:$4 sm:$0xff]  }
 0x235   :  { %v7364_v53 = vpop.f32.mrb[160].mxu1  ;;  %v7464_v19 = vpop.f32.mrb[160].mxu0 }
 0x236   :  { %v7365_v51 = vpop.f32.mrb[161].mxu1  ;;  %v7465_v55 = vpop.f32.mrb[161].mxu0 }
 0x237   :  { %v7366_v60 = vadd.f32 %v7365_v51, %v7364_v53  ;;  %v7466_v28 = vadd.f32 %v7465_v55, %v7464_v19  ;;  %v7367_v46 = vpop.f32.mrb[162].mxu1  ;;  %v7467_v26 = vpop.f32.mrb[162].mxu0  ;;  %v8787_v19 = vld [vmem:[%s11350_s0 + $0x11c] ss:$100 sps:$4 sm:$0xff]  }
 0x238   :  { %v7368_v10 = vpop.f32.mrb[163].mxu1  ;;  %v7468_v39 = vpop.f32.mrb[163].mxu0 }
 0x239   :  { %v4726_v15 = vadd.f32 %v7366_v60, %v10285_v41  ;;  %v10616_v25 = vadd.f32 %v7466_v28, %v4718_v52  ;;  %v7369_v17 = vadd.f32 %v7368_v10, %v7367_v46  ;;  %v7469_v1 = vadd.f32 %v7468_v39, %v7467_v26  ;;  %v8803_v41 = vld [vmem:[%s11349_s1 + $0x5d0] sm:$0xff]   ;;  %v8818_v28 = vld [vmem:[%s11349_s1 + $0x5d8] sm:$0xff]  }
 0x23a   :  { %5271 = vmatmul.mubr.bf16.gmra.mrb[12].mxu0 %v8767_v29  ;;  %5312 = vmatmul.mubr.bf16.vlgmr.msra.gmra.mrb[12].mxu1 %v8770_v57  ;;  %v8804_v60 = vld [vmem:[%s11349_s1 + $0x590] sm:$0xff]   ;;  %v8819_v10 = vld [vmem:[%s11349_s1 + $0x598] sm:$0xff]  }
 0x23b   :  { %v4729_v58 = vadd.f32 %v7369_v17, %v10294_v8  ;;  %v10619_v49 = vadd.f32 %v7469_v1, %v4721_v62  ;;  %7967 = vmatpush3.bf16.msra.mxu1 %v8774_v9  ;;  %5319 = vmatprep.mubr.bf16.mxu1 %v8777_v5  ;;  %v8775_v8 = vld [vmem:[%s11350_s0 + $0x110] ss:$100 sps:$4 sm:$0xff]  }
 0x23c   :  { %5464 = vmatprep.mubr.bf16.mxu0 %v8780_v12  ;;  %7968 = vmatprep.subr.bf16.mxu1 %v8788_v4  ;;  %v8782_v12 = vld [vmem:[%s11350_s0 + $0x1d8] ss:$100 sps:$4 sm:$0xff]  }
 0x23d   :  { %v7370_v31 = vpop.f32.mrb[164].mxu1  ;;  %v7470_v21 = vpop.f32.mrb[164].mxu0  ;;  %v8785_v4 = vld [vmem:[%s11350_s0 + $0x118] ss:$100 sps:$4 sm:$0xff]  }
 0x23e   :  { %v7371_v30 = vpop.f32.mrb[165].mxu1  ;;  %v7471_v54 = vpop.f32.mrb[165].mxu0 }
 0x23f   :  { %v7372_v34 = vadd.f32 %v7371_v30, %v7370_v31  ;;  %v7472_v35 = vadd.f32 %v7471_v54, %v7470_v21  ;;  %v7373_v3 = vpop.f32.mrb[166].mxu1  ;;  %v7473_v52 = vpop.f32.mrb[166].mxu0  ;;  %7969 = vmatpush3.bf16.msra.mxu1 %v8789_v37  ;;  %v8792_v37 = vld [vmem:[%s11350_s0 + $0x2a4] ss:$100 sps:$4 sm:$0xff]   ;;  %v8811_v30 = vld [vmem:[%s11349_s1 + $0x610] sm:$0xff]  }
 0x240   :  { %v7374_v62 = vpop.f32.mrb[167].mxu1  ;;  %v7474_v53 = vpop.f32.mrb[167].mxu0  ;;  %7970 = vmatprep.subr.bf16.mxu1 %v8803_v41  ;;  %v8795_v41 = vld [vmem:[%s11350_s0 + $0x1e4] ss:$100 sps:$4 sm:$0xff]  }
 0x241   :  { %v4734_v51 = vadd.f32 %v7372_v34, %v10327_v56  ;;  %v10643_v55 = vadd.f32 %v7472_v35, %v4726_v15  ;;  %v7375_v29 = vadd.f32 %v7374_v62, %v7373_v3  ;;  %v7475_v57 = vadd.f32 %v7474_v53, %v7473_v52  ;;  %v8796_v56 = vld [vmem:[%s11349_s1 + $0x608] sm:$0xff]   ;;  %v8833_v54 = vld [vmem:[%s11349_s1 + $0x5e0] sm:$0xff]  }
 0x242   :  { %5320 = vmatmul.mubr.bf16.gmra.mrb[16].mxu1 %v8775_v8  ;;  %5465 = vmatmul.mubr.bf16.vlgmr.msra.gmra.mrb[16].mxu0 %v8778_v20  ;;  %v8834_v3 = vld [vmem:[%s11349_s1 + $0x5a0] sm:$0xff]   ;;  %v8842_v52 = vld [vmem:[%s11349_s1 + $0x5e8] sm:$0xff]  }
 0x243   :  { %v4737_v46 = vadd.f32 %v7375_v29, %v10333_v13  ;;  %v10652_v26 = vadd.f32 %v7475_v57, %v4729_v58  ;;  %8096 = vmatpush3.bf16.msra.mxu0 %v8781_v50  ;;  %5327 = vmatprep.mubr.bf16.mxu1 %v8784_v7  ;;  %v8793_v29 = vld [vmem:[%s11350_s0 + $0x1e0] ss:$100 sps:$4 sm:$0xff]  }
 0x244   :  { %5472 = vmatprep.mubr.bf16.mxu0 %v8787_v19  ;;  %8097 = vmatprep.subr.bf16.mxu0 %v8945_v6 }
 0x245   :  { %v7376_v9 = vpop.f32.mrb[168].mxu1  ;;  %v7476_v5 = vpop.f32.mrb[168].mxu0  ;;  %7971 = vmatpush3.bf16.msra.mxu1 %v8804_v60 }
 0x246   :  { %v7377_v39 = vpop.f32.mrb[169].mxu1  ;;  %v7477_v13 = vpop.f32.mrb[169].mxu0  ;;  %7972 = vmatprep.subr.bf16.mxu1 %v8818_v28 }
 0x247   :  { %v7378_v15 = vadd.f32 %v7377_v39, %v7376_v9  ;;  %v7478_v17 = vadd.f32 %v7477_v13, %v7476_v5  ;;  %v7379_v1 = vpop.f32.mrb[170].mxu1  ;;  %v7479_v58 = vpop.f32.mrb[170].mxu0  ;;  %8098 = vmatpush3.bf16.msra.mxu0 %v8796_v56  ;;  %v8799_v56 = vld [vmem:[%s11350_s0 + $0x36c] ss:$100 sps:$4 sm:$0xff]   ;;  %v8835_v39 = vld [vmem:[%s11349_s1 + $0x620] sm:$0xff]  }
 0x248   :  { %v7380_v31 = vpop.f32.mrb[171].mxu1  ;;  %v7480_v21 = vpop.f32.mrb[171].mxu0  ;;  %8099 = vmatprep.subr.bf16.mxu0 %v8945_v6  ;;  %v8802_v9 = vld [vmem:[%s11350_s0 + $0x2ac] ss:$100 sps:$4 sm:$0xff]  }
 0x249   :  { %v4742_v8 = vadd.f32 %v7378_v15, %v10372_v22  ;;  %v10681_v20 = vadd.f32 %v7478_v17, %v4734_v51  ;;  %v7381_v34 = vadd.f32 %v7380_v31, %v7379_v1  ;;  %v7481_v35 = vadd.f32 %v7480_v21, %v7479_v58  ;;  %7973 = vmatpush3.bf16.msra.mxu1 %v8819_v10  ;;  %v8820_v22 = vld [vmem:[%s11349_s1 + $0x618] sm:$0xff]   ;;  %v8849_v13 = vld [vmem:[%s11349_s1 + $0x5a8] sm:$0xff]   ;;  %v8857_v1 = vld [vmem:[%s11349_s1 + $0x5f0] sm:$0xff]  }
 0x24a   :  { %5328 = vmatmul.mubr.bf16.gmra.mrb[20].mxu1 %v8782_v12  ;;  %5473 = vmatmul.mubr.bf16.gmra.mrb[20].mxu0 %v8785_v4 }
 0x24b   :  { %v4745_v50 = vadd.f32 %v7381_v34, %v10375_v0  ;;  %v10690_v7 = vadd.f32 %v7481_v35, %v4737_v46  ;;  %5335 = vmatprep.mubr.bf16.mxu1 %v8792_v37  ;;  %5480 = vmatprep.mubr.bf16.mxu0 %v8795_v41  ;;  %v8790_v0 = vld [vmem:[%s11350_s0 + $0x2a0] ss:$100 sps:$4 sm:$0xff]   ;;  %v8858_v41 = vld [vmem:[%s11349_s1 + $0x5b0] sm:$0xff]  }
 0x24c   :  { %8100 = vmatpush3.bf16.msra.mxu0 %v8811_v30  ;;  %7974 = vmatprep.subr.bf16.mxu1 %v8833_v54  ;;  %v8797_v54 = vld [vmem:[%s11350_s0 + $0x368] ss:$100 sps:$4 sm:$0xff]  }
 0x24d   :  { %v7382_v62 = vpop.f32.mrb[172].mxu1  ;;  %v7482_v53 = vpop.f32.mrb[172].mxu0  ;;  %8101 = vmatprep.subr.bf16.mxu0 %v8945_v6  ;;  %7975 = vmatpush3.bf16.msra.mxu1 %v8834_v3 }
 0x24e   :  { %v7383_v19 = vpop.f32.mrb[173].mxu1  ;;  %v7483_v51 = vpop.f32.mrb[173].mxu0  ;;  %7976 = vmatprep.subr.bf16.mxu1 %v8842_v52 }
 0x24f   :  { %v7384_v57 = vadd.f32 %v7383_v19, %v7382_v62  ;;  %v7484_v60 = vadd.f32 %v7483_v51, %v7482_v53  ;;  %v7385_v28 = vpop.f32.mrb[174].mxu1  ;;  %v7485_v46 = vpop.f32.mrb[174].mxu0  ;;  %v8865_v19 = vld [vmem:[%s11349_s1 + $0x630] sm:$0xff]   ;;  %v8872_v51 = vld [vmem:[%s11349_s1 + $0x5f8] sm:$0xff]  }
 0x250   :  { %v7386_v5 = vpop.f32.mrb[175].mxu1  ;;  %v7486_v10 = vpop.f32.mrb[175].mxu0  ;;  %8102 = vmatpush3.bf16.msra.mxu0 %v8820_v22  ;;  %v8810_v22 = vld [vmem:[%s11350_s0 + $0x374] ss:$100 sps:$4 sm:$0xff]  }
 0x251   :  { %v4750_v12 = vadd.f32 %v7384_v57, %v10408_v32  ;;  %v10715_v4 = vadd.f32 %v7484_v60, %v4742_v8  ;;  %v7387_v15 = vadd.f32 %v7386_v5, %v7385_v28  ;;  %v7487_v17 = vadd.f32 %v7486_v10, %v7485_v46  ;;  %8103 = vmatprep.subr.bf16.mxu0 %v8945_v6  ;;  %v8850_v32 = vld [vmem:[%s11349_s1 + $0x628] sm:$0xff]   ;;  %v8873_v28 = vld [vmem:[%s11349_s1 + $0x5b8] sm:$0xff]  }
 0x252   :  { %5336 = vmatmul.mubr.bf16.gmra.mrb[24].mxu1 %v8790_v0  ;;  %5481 = vmatmul.mubr.bf16.gmra.mrb[24].mxu0 %v8793_v29  ;;  %v8800_v8 = vld [vmem:[%s11350_s0 + $0x2a8] ss:$100 sps:$4 sm:$0xff]  }
 0x253   :  { %v4753_v58 = vadd.f32 %v7387_v15, %v10411_v44  ;;  %v10722_v37 = vadd.f32 %v7487_v17, %v4745_v50  ;;  %5343 = vmatprep.mubr.bf16.mxu1 %v8799_v56  ;;  %5488 = vmatprep.mubr.bf16.mxu0 %v8802_v9  ;;  %v8807_v50 = vld [vmem:[%s11350_s0 + $0x434] ss:$100 sps:$4 sm:$0xff]  }
 0x254   :  { %8104 = vmatpush3.bf16.msra.mxu0 %v8835_v39  ;;  %7977 = vmatpush3.bf16.msra.mxu1 %v8849_v13  ;;  %v8808_v13 = vld [vmem:[%s11350_s0 + $0x370] ss:$100 sps:$4 sm:$0xff]  }
 0x255   :  { %v7388_v31 = vpop.f32.mrb[176].mxu1  ;;  %v7488_v21 = vpop.f32.mrb[176].mxu0  ;;  %8105 = vmatprep.subr.bf16.mxu0 %v8945_v6  ;;  %7978 = vmatprep.subr.bf16.mxu1 %v8857_v1 }
 0x256   :  { %v7389_v44 = vpop.f32.mrb[177].mxu1  ;;  %v7489_v30 = vpop.f32.mrb[177].mxu0 }
 0x257   :  { %v7390_v34 = vadd.f32 %v7389_v44, %v7388_v31  ;;  %v7490_v35 = vadd.f32 %v7489_v30, %v7488_v21  ;;  %v7391_v3 = vpop.f32.mrb[178].mxu1  ;;  %v7491_v52 = vpop.f32.mrb[178].mxu0 }
 0x258   :  { %v7392_v62 = vpop.f32.mrb[179].mxu1  ;;  %v7492_v53 = vpop.f32.mrb[179].mxu0  ;;  %8106 = vmatpush3.bf16.msra.mxu0 %v8850_v32  ;;  %7979 = vmatpush3.bf16.msra.mxu1 %v8858_v41  ;;  %v8817_v32 = vld [vmem:[%s11350_s0 + $0x43c] ss:$100 sps:$4 sm:$0xff]  }
 0x259   :  { %v4758_v0 = vadd.f32 %v7390_v34, %v10430_v38  ;;  %v10750_v29 = vadd.f32 %v7490_v35, %v4750_v12  ;;  %v7393_v57 = vadd.f32 %v7392_v62, %v7391_v3  ;;  %v7493_v60 = vadd.f32 %v7492_v53, %v7491_v52  ;;  %8107 = vmatprep.subr.bf16.mxu0 %v8945_v6  ;;  %v8880_v38 = vld [vmem:[%s11349_s1 + $0x638] sm:$0xff]  }
 0x25a   :  { %5344 = vmatmul.mubr.bf16.gmra.mrb[28].mxu1 %v8797_v54  ;;  %5489 = vmatmul.mubr.bf16.gmra.mrb[28].mxu0 %v8800_v8 }
 0x25b   :  { %v4761_v46 = vadd.f32 %v7393_v57, %v10433_v16  ;;  %v10757_v56 = vadd.f32 %v7493_v60, %v4753_v58  ;;  %5351 = vmatprep.mubr.bf16.mxu1 %v8807_v50  ;;  %5496 = vmatprep.mubr.bf16.mxu0 %v8810_v22  ;;  %v8805_v16 = vld [vmem:[%s11350_s0 + $0x430] ss:$100 sps:$4 sm:$0xff]   ;;  %v8814_v58 = vld [vmem:[%s11350_s0 + $0x4fc] ss:$100 sps:$4 sm:$0xff]  }
 0x25c   :  { %8108 = vmatpush3.bf16.msra.mxu0 %v8865_v19  ;;  %7980 = vmatprep.subr.bf16.mxu1 %v8872_v51  ;;  %v8815_v22 = vld [vmem:[%s11350_s0 + $0x438] ss:$100 sps:$4 sm:$0xff]   ;;  %v8823_v51 = vld [vmem:[%s11350_s0 + $0x5c4] ss:$100 sps:$4 sm:$0xff]  }
 0x25d   :  { %v7394_v9 = vpop.f32.mrb[180].mxu1  ;;  %v7494_v5 = vpop.f32.mrb[180].mxu0  ;;  %7981 = vmatpush3.bf16.msra.mxu1 %v8873_v28  ;;  %8109 = vmatprep.subr.bf16.mxu0 %v8945_v6 }
 0x25e   :  { %v7395_v10 = vpop.f32.mrb[181].mxu1  ;;  %v7495_v39 = vpop.f32.mrb[181].mxu0 }
 0x25f   :  { %v7396_v12 = vadd.f32 %v7395_v10, %v7394_v9  ;;  %v7496_v15 = vadd.f32 %v7495_v39, %v7494_v5  ;;  %v7397_v17 = vpop.f32.mrb[182].mxu1  ;;  %v7497_v1 = vpop.f32.mrb[182].mxu0 }
 0x260   :  { %v7398_v41 = vpop.f32.mrb[183].mxu1  ;;  %v7498_v31 = vpop.f32.mrb[183].mxu0  ;;  %8110 = vmatpush3.bf16.msra.mxu0 %v8880_v38 }
 0x261   :  { %v4766_v21 = vadd.f32 %v7396_v12, %v10448_v23  ;;  %v10776_v44 = vadd.f32 %v7496_v15, %v4758_v0  ;;  %v7399_v30 = vadd.f32 %v7398_v41, %v7397_v17  ;;  %v7499_v54 = vadd.f32 %v7498_v31, %v7497_v1  ;;  %v8812_v23 = vld [vmem:[%s11350_s0 + $0x4f8] ss:$100 sps:$4 sm:$0xff]   ;;  %v8826_v0 = vld [vmem:[%s11350_s0 + $0x504] ss:$100 sps:$4 sm:$0xff]   ;;  %v8832_v41 = vld [vmem:[%s11350_s0 + $0x5cc] ss:$100 sps:$4 sm:$0xff]  }
 0x262   :  { %5352 = vmatmul.mubr.bf16.gmra.mrb[32].mxu1 %v8805_v16  ;;  %5497 = vmatmul.mubr.bf16.gmra.mrb[32].mxu0 %v8808_v13  ;;  %v8824_v15 = vld [vmem:[%s11350_s0 + $0x500] ss:$100 sps:$4 sm:$0xff]  }
 0x263   :  { %v4769_v8 = vadd.f32 %v7399_v30, %v10451_v40  ;;  %v10779_v34 = vadd.f32 %v7499_v54, %v4761_v46  ;;  %5359 = vmatprep.mubr.bf16.mxu1 %v8814_v58  ;;  %5504 = vmatprep.mubr.bf16.mxu0 %v8817_v32  ;;  %v8829_v32 = vld [vmem:[%s11350_s0 + $0x68c] ss:$100 sps:$4 sm:$0xff]  }
 0x265   :  { %v7400_v35 = vpop.f32.mrb[184].mxu1  ;;  %v7500_v3 = vpop.f32.mrb[184].mxu0 }
 0x266   :  { %v7401_v52 = vpop.f32.mrb[185].mxu1  ;;  %v7501_v50 = vpop.f32.mrb[185].mxu0 }
 0x267   :  { %v7402_v62 = vadd.f32 %v7401_v52, %v7400_v35  ;;  %v7502_v53 = vadd.f32 %v7501_v50, %v7500_v3  ;;  %v7403_v19 = vpop.f32.mrb[186].mxu1  ;;  %v7503_v40 = vpop.f32.mrb[186].mxu0 }
 0x268   :  { %v7404_v57 = vpop.f32.mrb[187].mxu1  ;;  %v7504_v60 = vpop.f32.mrb[187].mxu0 }
 0x269   :  { %v4774_v28 = vadd.f32 %v7402_v62, %v10466_v18  ;;  %v10794_v46 = vadd.f32 %v7502_v53, %v4766_v21  ;;  %v7405_v38 = vadd.f32 %v7404_v57, %v7403_v19  ;;  %v7505_v9 = vadd.f32 %v7504_v60, %v7503_v40  ;;  %v8821_v18 = vld [vmem:[%s11350_s0 + $0x5c0] ss:$100 sps:$4 sm:$0xff]   ;;  %v8830_v53 = vld [vmem:[%s11350_s0 + $0x5c8] ss:$100 sps:$4 sm:$0xff]   ;;  %v8841_v57 = vld [vmem:[%s11350_s0 + $0x694] ss:$100 sps:$4 sm:$0xff]  }
 0x26a   :  { %5360 = vmatmul.mubr.bf16.gmra.mrb[36].mxu1 %v8812_v23  ;;  %5505 = vmatmul.mubr.bf16.gmra.mrb[36].mxu0 %v8815_v22 }
 0x26b   :  { %v4777_v5 = vadd.f32 %v7405_v38, %v10469_v11  ;;  %v10797_v10 = vadd.f32 %v7505_v9, %v4769_v8  ;;  %5367 = vmatprep.mubr.bf16.mxu1 %v8823_v51  ;;  %5512 = vmatprep.mubr.bf16.mxu0 %v8826_v0  ;;  %v8838_v0 = vld [vmem:[%s11350_s0 + $0x754] ss:$100 sps:$4 sm:$0xff]  }
 0x26d   :  { %v7406_v39 = vpop.f32.mrb[188].mxu1  ;;  %v7506_v16 = vpop.f32.mrb[188].mxu0 }
 0x26e   :  { %v7407_v13 = vpop.f32.mrb[189].mxu1  ;;  %v7507_v12 = vpop.f32.mrb[189].mxu0 }
 0x26f   :  { %v7408_v17 = vadd.f32 %v7407_v13, %v7406_v39  ;;  %v7508_v1 = vadd.f32 %v7507_v12, %v7506_v16  ;;  %v7409_v58 = vpop.f32.mrb[190].mxu1  ;;  %v7509_v11 = vpop.f32.mrb[190].mxu0 }
 0x270   :  { %v7410_v31 = vpop.f32.mrb[191].mxu1  ;;  %v7510_v21 = vpop.f32.mrb[191].mxu0 }
 0x271   :  { %v4782_v30 = vadd.f32 %v7408_v17, %v10484_v59  ;;  %v10812_v54 = vadd.f32 %v7508_v1, %v4774_v28  ;;  %v7411_v8 = vadd.f32 %v7410_v31, %v7409_v58  ;;  %v7511_v35 = vadd.f32 %v7510_v21, %v7509_v11  ;;  %v8827_v59 = vld [vmem:[%s11350_s0 + $0x688] ss:$100 sps:$4 sm:$0xff]   ;;  %v8839_v1 = vld [vmem:[%s11350_s0 + $0x690] ss:$100 sps:$4 sm:$0xff]   ;;  %v8848_v31 = vld [vmem:[%s11350_s0 + $0x75c] ss:$100 sps:$4 sm:$0xff]  }
 0x272   :  { %5368 = vmatmul.mubr.bf16.gmra.mrb[40].mxu1 %v8821_v18  ;;  %5513 = vmatmul.mubr.bf16.gmra.mrb[40].mxu0 %v8824_v15 }
 0x273   :  { %v4785_v3 = vadd.f32 %v7411_v8, %v10487_v42  ;;  %v10815_v52 = vadd.f32 %v7511_v35, %v4777_v5  ;;  %5375 = vmatprep.mubr.bf16.mxu1 %v8829_v32  ;;  %5520 = vmatprep.mubr.bf16.mxu0 %v8832_v41  ;;  %v8845_v41 = vld [vmem:[%s11350_s0 + $0x81c] ss:$100 sps:$4 sm:$0xff]  }
 0x275   :  { %v7412_v50 = vpop.f32.mrb[192].mxu1  ;;  %v7512_v23 = vpop.f32.mrb[192].mxu0 }
 0x276   :  { %v7413_v22 = vpop.f32.mrb[193].mxu1  ;;  %v7513_v62 = vpop.f32.mrb[193].mxu0 }
 0x277   :  { %v7414_v19 = vadd.f32 %v7413_v22, %v7412_v50  ;;  %v7514_v40 = vadd.f32 %v7513_v62, %v7512_v23  ;;  %v7415_v51 = vpop.f32.mrb[194].mxu1  ;;  %v7515_v42 = vpop.f32.mrb[194].mxu0 }
 0x278   :  { %v7416_v60 = vpop.f32.mrb[195].mxu1  ;;  %v7516_v28 = vpop.f32.mrb[195].mxu0 }
 0x279   :  { %v4790_v38 = vadd.f32 %v7414_v19, %v10502_v33  ;;  %v10830_v9 = vadd.f32 %v7514_v40, %v4782_v30  ;;  %v7417_v5 = vadd.f32 %v7416_v60, %v7415_v51  ;;  %v7517_v39 = vadd.f32 %v7516_v28, %v7515_v42  ;;  %v8836_v33 = vld [vmem:[%s11350_s0 + $0x750] ss:$100 sps:$4 sm:$0xff]   ;;  %v8846_v40 = vld [vmem:[%s11350_s0 + $0x758] ss:$100 sps:$4 sm:$0xff]   ;;  %v8856_v60 = vld [vmem:[%s11350_s0 + $0x824] ss:$100 sps:$4 sm:$0xff]  }
 0x27a   :  { %5376 = vmatmul.mubr.bf16.gmra.mrb[44].mxu1 %v8827_v59  ;;  %5521 = vmatmul.mubr.bf16.gmra.mrb[44].mxu0 %v8830_v53 }
 0x27b   :  { %v4793_v16 = vadd.f32 %v7417_v5, %v10505_v24  ;;  %v10833_v13 = vadd.f32 %v7517_v39, %v4785_v3  ;;  %5383 = vmatprep.mubr.bf16.mxu1 %v8838_v0  ;;  %5528 = vmatprep.mubr.bf16.mxu0 %v8841_v57  ;;  %v8853_v57 = vld [vmem:[%s11350_s0 + $0x8e4] ss:$100 sps:$4 sm:$0xff]  }
 0x27d   :  { %v7418_v12 = vpop.f32.mrb[196].mxu1  ;;  %v7518_v18 = vpop.f32.mrb[196].mxu0 }
 0x27e   :  { %v7419_v15 = vpop.f32.mrb[197].mxu1  ;;  %v7519_v17 = vpop.f32.mrb[197].mxu0 }
 0x27f   :  { %v7420_v58 = vadd.f32 %v7419_v15, %v7418_v12  ;;  %v7520_v11 = vadd.f32 %v7519_v17, %v7518_v18  ;;  %v7421_v32 = vpop.f32.mrb[198].mxu1  ;;  %v7521_v24 = vpop.f32.mrb[198].mxu0 }
 0x280   :  { %v7422_v21 = vpop.f32.mrb[199].mxu1  ;;  %v7522_v30 = vpop.f32.mrb[199].mxu0 }
 0x281   :  { %v4798_v8 = vadd.f32 %v7420_v58, %v10520_v36  ;;  %v10848_v35 = vadd.f32 %v7520_v11, %v4790_v38  ;;  %v7423_v3 = vadd.f32 %v7422_v21, %v7421_v32  ;;  %v7523_v50 = vadd.f32 %v7522_v30, %v7521_v24  ;;  %v8843_v36 = vld [vmem:[%s11350_s0 + $0x818] ss:$100 sps:$4 sm:$0xff]   ;;  %v8854_v11 = vld [vmem:[%s11350_s0 + $0x820] ss:$100 sps:$4 sm:$0xff]   ;;  %v8864_v21 = vld [vmem:[%s11350_s0 + $0x8ec] ss:$100 sps:$4 sm:$0xff]  }
 0x282   :  { %5384 = vmatmul.mubr.bf16.gmra.mrb[48].mxu1 %v8836_v33  ;;  %5529 = vmatmul.mubr.bf16.gmra.mrb[48].mxu0 %v8839_v1 }
 0x283   :  { %v4801_v23 = vadd.f32 %v7423_v3, %v10523_v2  ;;  %v10851_v22 = vadd.f32 %v7523_v50, %v4793_v16  ;;  %5391 = vmatprep.mubr.bf16.mxu1 %v8845_v41  ;;  %5536 = vmatprep.mubr.bf16.mxu0 %v8848_v31  ;;  %v8861_v31 = vld [vmem:[%s11350_s0 + $0x9ac] ss:$100 sps:$4 sm:$0xff]  }
 0x285   :  { %v7424_v62 = vpop.f32.mrb[200].mxu1  ;;  %v7524_v59 = vpop.f32.mrb[200].mxu0 }
 0x286   :  { %v7425_v53 = vpop.f32.mrb[201].mxu1  ;;  %v7525_v19 = vpop.f32.mrb[201].mxu0 }
 0x287   :  { %v7426_v51 = vadd.f32 %v7425_v53, %v7424_v62  ;;  %v7526_v42 = vadd.f32 %v7525_v19, %v7524_v59  ;;  %v7427_v0 = vpop.f32.mrb[202].mxu1  ;;  %v7527_v2 = vpop.f32.mrb[202].mxu0 }
 0x288   :  { %v7428_v28 = vpop.f32.mrb[203].mxu1  ;;  %v7528_v38 = vpop.f32.mrb[203].mxu0 }
 0x289   :  { %v4806_v5 = vadd.f32 %v7426_v51, %v10538_v27  ;;  %v10866_v39 = vadd.f32 %v7526_v42, %v4798_v8  ;;  %v7429_v16 = vadd.f32 %v7428_v28, %v7427_v0  ;;  %v7529_v12 = vadd.f32 %v7528_v38, %v7527_v2  ;;  %v8851_v27 = vld [vmem:[%s11350_s0 + $0x8e0] ss:$100 sps:$4 sm:$0xff]   ;;  %v8862_v42 = vld [vmem:[%s11350_s0 + $0x8e8] ss:$100 sps:$4 sm:$0xff]   ;;  %v8871_v28 = vld [vmem:[%s11350_s0 + $0x9b4] ss:$100 sps:$4 sm:$0xff]  }
 0x28a   :  { %5392 = vmatmul.mubr.bf16.gmra.mrb[52].mxu1 %v8843_v36  ;;  %5537 = vmatmul.mubr.bf16.gmra.mrb[52].mxu0 %v8846_v40 }
 0x28b   :  { %v4809_v18 = vadd.f32 %v7429_v16, %v10541_v63  ;;  %v10869_v15 = vadd.f32 %v7529_v12, %v4801_v23  ;;  %5399 = vmatprep.mubr.bf16.mxu1 %v8853_v57  ;;  %5544 = vmatprep.mubr.bf16.mxu0 %v8856_v60  ;;  %v8868_v60 = vld [vmem:[%s11350_s0 + $0xa74] ss:$100 sps:$4 sm:$0xff]  }
 0x28d   :  { %v7430_v17 = vpop.f32.mrb[204].mxu1  ;;  %v7530_v33 = vpop.f32.mrb[204].mxu0 }
 0x28e   :  { %v7431_v1 = vpop.f32.mrb[205].mxu1  ;;  %v7531_v58 = vpop.f32.mrb[205].mxu0 }
 0x28f   :  { %v7432_v32 = vadd.f32 %v7431_v1, %v7430_v17  ;;  %v7532_v24 = vadd.f32 %v7531_v58, %v7530_v33  ;;  %v7433_v41 = vpop.f32.mrb[206].mxu1  ;;  %v7533_v63 = vpop.f32.mrb[206].mxu0 }
 0x290   :  { %v7434_v30 = vpop.f32.mrb[207].mxu1  ;;  %v7534_v8 = vpop.f32.mrb[207].mxu0 }
 0x291   :  { %v4814_v3 = vadd.f32 %v7432_v32, %v10555_v61  ;;  %v10884_v50 = vadd.f32 %v7532_v24, %v4806_v5  ;;  %v7435_v23 = vadd.f32 %v7434_v30, %v7433_v41  ;;  %v7535_v62 = vadd.f32 %v7534_v8, %v7533_v63  ;;  %v8859_v61 = vld [vmem:[%s11350_s0 + $0x9a8] ss:$100 sps:$4 sm:$0xff]   ;;  %v8866_v24 = vld [vmem:[%s11350_s0 + $0xa70] ss:$100 sps:$4 sm:$0xff]   ;;  %v8879_v30 = vld [vmem:[%s11350_s0 + $0xa7c] ss:$100 sps:$4 sm:$0xff]  }
 0x292   :  { %5400 = vmatmul.mubr.bf16.gmra.mrb[56].mxu1 %v8851_v27  ;;  %5545 = vmatmul.mubr.bf16.gmra.mrb[56].mxu0 %v8854_v11 }
 0x293   :  { %v4817_v59 = vadd.f32 %v7435_v23, %v10558_v45  ;;  %v10887_v53 = vadd.f32 %v7535_v62, %v4809_v18  ;;  %5407 = vmatprep.mubr.bf16.mxu1 %v8861_v31  ;;  %5552 = vmatprep.mubr.bf16.mxu0 %v8864_v21 }
 0x295   :  { %v7536_v19 = vpop.f32.mrb[208].mxu0  ;;  %v7558_v36 = vpop.f32.mrb[208].mxu1 }
 0x296   :  { %v7537_v40 = vpop.f32.mrb[209].mxu0  ;;  %v7559_v51 = vpop.f32.mrb[209].mxu1 }
 0x297   :  { %v7538_v0 = vadd.f32 %v7537_v40, %v7536_v19  ;;  %v7560_v2 = vadd.f32 %v7559_v51, %v7558_v36  ;;  %v7539_v57 = vpop.f32.mrb[210].mxu0  ;;  %v7561_v45 = vpop.f32.mrb[210].mxu1 }
 0x298   :  { %v7540_v38 = vpop.f32.mrb[211].mxu0  ;;  %v7562_v5 = vpop.f32.mrb[211].mxu1 }
 0x299   :  { %v10901_v16 = vadd.f32 %v7538_v0, %v4814_v3  ;;  %v5008_v12 = vadd.f32 %v7560_v2, %v10574_v48  ;;  %v7541_v18 = vadd.f32 %v7540_v38, %v7539_v57  ;;  %v7563_v17 = vadd.f32 %v7562_v5, %v7561_v45  ;;  %v8869_v48 = vld [vmem:[%s11350_s0 + $0x9b0] ss:$100 sps:$4 sm:$0xff]   ;;  %v8877_v2 = vld [vmem:[%s11350_s0 + $0xa78] ss:$100 sps:$4 sm:$0xff]  }
 0x29a   :  { %5408 = vmatmul.mubr.bf16.gmra.mrb[60].mxu1 %v8859_v61  ;;  %5553 = vmatmul.mubr.bf16.gmra.mrb[60].mxu0 %v8862_v42  ;;  %v8886_v38 = vld [vmem:[%s11350_s0 + $0x5c] ss:$100 sps:$4 sm:$0xff]  }
 0x29b   :  { %v10904_v33 = vadd.f32 %v7541_v18, %v4817_v59  ;;  %v5011_v1 = vadd.f32 %v7563_v17, %v10577_v14  ;;  %5415 = vmatprep.mubr.bf16.mxu1 %v8868_v60  ;;  %5560 = vmatprep.mubr.bf16.mxu0 %v8871_v28  ;;  %v8876_v14 = vld [vmem:[%s11350_s0 + $0xb3c] ss:$100 sps:$4 sm:$0xff]   ;;  %v8883_v28 = vld [vmem:[%s11350_s0 + $0xb44] ss:$100 sps:$4 sm:$0xff]  }
 0x29d   :  { %v7564_v58 = vpop.f32.mrb[212].mxu1  ;;  %v7664_v27 = vpop.f32.mrb[212].mxu0 }
 0x29e   :  { %v7565_v11 = vpop.f32.mrb[213].mxu1  ;;  %v7665_v32 = vpop.f32.mrb[213].mxu0 }
 0x29f   :  { %v7566_v41 = vadd.f32 %v7565_v11, %v7564_v58  ;;  %v7666_v63 = vadd.f32 %v7665_v32, %v7664_v27  ;;  %v7567_v31 = vpop.f32.mrb[214].mxu1  ;;  %v7667_v21 = vpop.f32.mrb[214].mxu0 }
 0x2a0   :  { %v7568_v8 = vpop.f32.mrb[215].mxu1  ;;  %v7668_v3 = vpop.f32.mrb[215].mxu0 }
 0x2a1   :  { %v5016_v23 = vadd.f32 %v7566_v41, %v10592_v43  ;;  %v10920_v62 = vadd.f32 %v7666_v63, %v5008_v12  ;;  %v7569_v59 = vadd.f32 %v7568_v8, %v7567_v31  ;;  %v7669_v19 = vadd.f32 %v7668_v3, %v7667_v21  ;;  %v8874_v43 = vld [vmem:[%s11350_s0 + $0xb38] ss:$100 sps:$4 sm:$0xff]  }
 0x2a2   :  { %5416 = vmatmul.mubr.bf16.gmra.mrb[64].mxu1 %v8866_v24  ;;  %5561 = vmatmul.mubr.bf16.gmra.mrb[64].mxu0 %v8869_v48  ;;  %v8884_v63 = vld [vmem:[%s11350_s0 + $0x58] ss:$100 sps:$4 sm:$0xff]  }
 0x2a3   :  { %v5019_v36 = vadd.f32 %v7569_v59, %v10595_v47  ;;  %v10923_v40 = vadd.f32 %v7669_v19, %v5011_v1  ;;  %5423 = vmatprep.mubr.bf16.mxu1 %v8876_v14  ;;  %5568 = vmatprep.mubr.bf16.mxu0 %v8879_v30  ;;  %v8889_v30 = vld [vmem:[%s11350_s0 + $0x124] ss:$100 sps:$4 sm:$0xff]  }
 0x2a5   :  { %v7570_v51 = vpop.f32.mrb[216].mxu1  ;;  %v7670_v61 = vpop.f32.mrb[216].mxu0 }
 0x2a6   :  { %v7571_v42 = vpop.f32.mrb[217].mxu1  ;;  %v7671_v0 = vpop.f32.mrb[217].mxu0 }
 0x2a7   :  { %v7572_v57 = vadd.f32 %v7571_v42, %v7570_v51  ;;  %v7672_v45 = vadd.f32 %v7671_v0, %v7670_v61  ;;  %v7573_v60 = vpop.f32.mrb[218].mxu1  ;;  %v7673_v47 = vpop.f32.mrb[218].mxu0 }
 0x2a8   :  { %v7574_v5 = vpop.f32.mrb[219].mxu1  ;;  %v7674_v12 = vpop.f32.mrb[219].mxu0 }
 0x2a9   :  { %v5024_v18 = vadd.f32 %v7572_v57, %v10616_v25  ;;  %v10938_v17 = vadd.f32 %v7672_v45, %v5016_v23  ;;  %v7575_v1 = vadd.f32 %v7574_v5, %v7573_v60  ;;  %v7675_v58 = vadd.f32 %v7674_v12, %v7673_v47  ;;  %v8881_v25 = vld [vmem:[%s11350_s0 + $0xb40] ss:$100 sps:$4 sm:$0xff]  }
 0x2aa   :  { %5424 = vmatmul.mubr.bf16.gmra.mrb[68].mxu1 %v8874_v43  ;;  %5569 = vmatmul.mubr.bf16.gmra.mrb[68].mxu0 %v8877_v2  ;;  %v8890_v57 = vld [vmem:[%s11350_s0 + $0x60] ss:$100 sps:$4 sm:$0xff]  }
 0x2ab   :  { %v5027_v27 = vadd.f32 %v7575_v1, %v10619_v49  ;;  %v10941_v11 = vadd.f32 %v7675_v58, %v5019_v36  ;;  %5576 = vmatprep.mubr.bf16.mxu0 %v8883_v28  ;;  %5617 = vmatprep.mubr.bf16.mxu1 %v8886_v38  ;;  %v8893_v28 = vld [vmem:[%s11350_s0 + $0x1ec] ss:$100 sps:$4 sm:$0xff]  }
 0x2ad   :  { %v7576_v32 = vpop.f32.mrb[220].mxu1  ;;  %v7676_v24 = vpop.f32.mrb[220].mxu0 }
 0x2ae   :  { %v7577_v48 = vpop.f32.mrb[221].mxu1  ;;  %v7677_v41 = vpop.f32.mrb[221].mxu0 }
 0x2af   :  { %v7578_v31 = vadd.f32 %v7577_v48, %v7576_v32  ;;  %v7678_v21 = vadd.f32 %v7677_v41, %v7676_v24  ;;  %v7579_v14 = vpop.f32.mrb[222].mxu1  ;;  %v7679_v49 = vpop.f32.mrb[222].mxu0 }
 0x2b0   :  { %v7580_v8 = vpop.f32.mrb[223].mxu1  ;;  %v7680_v3 = vpop.f32.mrb[223].mxu0 }
 0x2b1   :  { %v5032_v23 = vadd.f32 %v7578_v31, %v10643_v55  ;;  %v10953_v59 = vadd.f32 %v7678_v21, %v5024_v18  ;;  %v7581_v19 = vadd.f32 %v7580_v8, %v7579_v14  ;;  %v7681_v36 = vadd.f32 %v7680_v3, %v7679_v49  ;;  %v8887_v55 = vld [vmem:[%s11350_s0 + $0x120] ss:$100 sps:$4 sm:$0xff]   ;;  %v8897_v49 = vld [vmem:[%s11350_s0 + $0x2b4] ss:$100 sps:$4 sm:$0xff]  }
 0x2b2   :  { %5577 = vmatmul.mubr.bf16.gmra.mrb[72].mxu0 %v8881_v25  ;;  %5618 = vmatmul.mubr.bf16.vlgmr.msra.gmra.mrb[72].mxu1 %v8884_v63  ;;  %v8894_v63 = vld [vmem:[%s11350_s0 + $0x128] ss:$100 sps:$4 sm:$0xff]  }
 0x2b3   :  { %v5035_v51 = vadd.f32 %v7581_v19, %v10652_v26  ;;  %v10956_v61 = vadd.f32 %v7681_v36, %v5027_v27  ;;  %5625 = vmatprep.mubr.bf16.mxu1 %v8889_v30  ;;  %8111 = vmatprep.mubr.msk.bf16.mxu0 %vm8946_vm0, %v8945_v6 }
 0x2b5   :  { %v7582_v42 = vpop.f32.mrb[224].mxu1  ;;  %v7682_v0 = vpop.f32.mrb[224].mxu0 }
 0x2b6   :  { %v7583_v43 = vpop.f32.mrb[225].mxu1  ;;  %v7683_v2 = vpop.f32.mrb[225].mxu0 }
 0x2b7   :  { %v7584_v26 = vadd.f32 %v7583_v43, %v7582_v42  ;;  %v7684_v45 = vadd.f32 %v7683_v2, %v7682_v0  ;;  %v7585_v60 = vpop.f32.mrb[226].mxu1  ;;  %v7685_v47 = vpop.f32.mrb[226].mxu0 }
 0x2b8   :  { %v7586_v38 = vpop.f32.mrb[227].mxu1  ;;  %v7686_v5 = vpop.f32.mrb[227].mxu0 }
 0x2b9   :  { %v5040_v12 = vadd.f32 %v7584_v26, %v10681_v20  ;;  %v10970_v18 = vadd.f32 %v7684_v45, %v5032_v23  ;;  %v7587_v1 = vadd.f32 %v7586_v38, %v7585_v60  ;;  %v7687_v58 = vadd.f32 %v7686_v5, %v7685_v47  ;;  %v8891_v20 = vld [vmem:[%s11350_s0 + $0x1e8] ss:$100 sps:$4 sm:$0xff]   ;;  %v8901_v47 = vld [vmem:[%s11350_s0 + $0x37c] ss:$100 sps:$4 sm:$0xff]  }
 0x2ba   :  { %5626 = vmatmul.mubr.bf16.gmra.mrb[76].mxu1 %v8887_v55  ;;  %8112 = vmatmul.mubr.bf16.vlgmr.msra.gmra.mrb[76].mxu0 %v8890_v57  ;;  %v8898_v57 = vld [vmem:[%s11350_s0 + $0x1f0] ss:$100 sps:$4 sm:$0xff]  }
 0x2bb   :  { %v5043_v27 = vadd.f32 %v7587_v1, %v10690_v7  ;;  %v10973_v32 = vadd.f32 %v7687_v58, %v5035_v51  ;;  %5633 = vmatprep.mubr.bf16.mxu1 %v8893_v28  ;;  %8115 = vmatprep.mubr.msk.bf16.mxu0 %vm8946_vm0, %v8945_v6 }
 0x2bd   :  { %v7588_v24 = vpop.f32.mrb[228].mxu1  ;;  %v7688_v48 = vpop.f32.mrb[228].mxu0 }
 0x2be   :  { %v7589_v41 = vpop.f32.mrb[229].mxu1  ;;  %v7689_v25 = vpop.f32.mrb[229].mxu0 }
 0x2bf   :  { %v7590_v31 = vadd.f32 %v7589_v41, %v7588_v24  ;;  %v7690_v7 = vadd.f32 %v7689_v25, %v7688_v48  ;;  %v7591_v21 = vpop.f32.mrb[230].mxu1  ;;  %v7691_v14 = vpop.f32.mrb[230].mxu0 }
 0x2c0   :  { %v7592_v30 = vpop.f32.mrb[231].mxu1  ;;  %v7692_v8 = vpop.f32.mrb[231].mxu0 }
 0x2c1   :  { %v5048_v3 = vadd.f32 %v7590_v31, %v10715_v4  ;;  %v10987_v23 = vadd.f32 %v7690_v7, %v5040_v12  ;;  %v7593_v19 = vadd.f32 %v7592_v30, %v7591_v21  ;;  %v7693_v36 = vadd.f32 %v7692_v8, %v7691_v14  ;;  %v8895_v4 = vld [vmem:[%s11350_s0 + $0x2b0] ss:$100 sps:$4 sm:$0xff]   ;;  %v8905_v14 = vld [vmem:[%s11350_s0 + $0x444] ss:$100 sps:$4 sm:$0xff]  }
 0x2c2   :  { %5634 = vmatmul.mubr.bf16.gmra.mrb[80].mxu1 %v8891_v20  ;;  %8116 = vmatmul.mubr.bf16.gmra.mrb[80].mxu0 %v8894_v63  ;;  %v8902_v63 = vld [vmem:[%s11350_s0 + $0x2b8] ss:$100 sps:$4 sm:$0xff]  }
 0x2c3   :  { %v5051_v51 = vadd.f32 %v7593_v19, %v10722_v37  ;;  %v10990_v42 = vadd.f32 %v7693_v36, %v5043_v27  ;;  %5641 = vmatprep.mubr.bf16.mxu1 %v8897_v49  ;;  %8119 = vmatprep.mubr.msk.bf16.mxu0 %vm8946_vm0, %v8945_v6 }
 0x2c5   :  { %v7594_v0 = vpop.f32.mrb[232].mxu1  ;;  %v7694_v43 = vpop.f32.mrb[232].mxu0 }
 0x2c6   :  { %v7595_v2 = vpop.f32.mrb[233].mxu1  ;;  %v7695_v55 = vpop.f32.mrb[233].mxu0 }
 0x2c7   :  { %v7596_v26 = vadd.f32 %v7595_v2, %v7594_v0  ;;  %v7696_v37 = vadd.f32 %v7695_v55, %v7694_v43  ;;  %v7597_v45 = vpop.f32.mrb[234].mxu1  ;;  %v7697_v60 = vpop.f32.mrb[234].mxu0 }
 0x2c8   :  { %v7598_v28 = vpop.f32.mrb[235].mxu1  ;;  %v7698_v38 = vpop.f32.mrb[235].mxu0 }
 0x2c9   :  { %v5056_v5 = vadd.f32 %v7596_v26, %v10750_v29  ;;  %v11004_v12 = vadd.f32 %v7696_v37, %v5048_v3  ;;  %v7599_v1 = vadd.f32 %v7598_v28, %v7597_v45  ;;  %v7699_v58 = vadd.f32 %v7698_v38, %v7697_v60  ;;  %v8899_v29 = vld [vmem:[%s11350_s0 + $0x378] ss:$100 sps:$4 sm:$0xff]   ;;  %v8909_v60 = vld [vmem:[%s11350_s0 + $0x50c] ss:$100 sps:$4 sm:$0xff]  }
 0x2ca   :  { %5642 = vmatmul.mubr.bf16.gmra.mrb[84].mxu1 %v8895_v4  ;;  %8120 = vmatmul.mubr.bf16.gmra.mrb[84].mxu0 %v8898_v57  ;;  %v8906_v57 = vld [vmem:[%s11350_s0 + $0x380] ss:$100 sps:$4 sm:$0xff]  }
 0x2cb   :  { %v5059_v27 = vadd.f32 %v7599_v1, %v10757_v56  ;;  %v11007_v24 = vadd.f32 %v7699_v58, %v5051_v51  ;;  %5649 = vmatprep.mubr.bf16.mxu1 %v8901_v47  ;;  %8123 = vmatprep.mubr.msk.bf16.mxu0 %vm8946_vm0, %v8945_v6 }
 0x2cd   :  { %v7600_v48 = vpop.f32.mrb[236].mxu1  ;;  %v7700_v41 = vpop.f32.mrb[236].mxu0 }
 0x2ce   :  { %v7601_v25 = vpop.f32.mrb[237].mxu1  ;;  %v7701_v20 = vpop.f32.mrb[237].mxu0 }
 0x2cf   :  { %v7602_v31 = vadd.f32 %v7601_v25, %v7600_v48  ;;  %v7702_v56 = vadd.f32 %v7701_v20, %v7700_v41  ;;  %v7603_v7 = vpop.f32.mrb[238].mxu1  ;;  %v7703_v21 = vpop.f32.mrb[238].mxu0 }
 0x2d0   :  { %v7604_v49 = vpop.f32.mrb[239].mxu1  ;;  %v7704_v30 = vpop.f32.mrb[239].mxu0 }
 0x2d1   :  { %v5064_v8 = vadd.f32 %v7602_v31, %v10776_v44  ;;  %v11021_v3 = vadd.f32 %v7702_v56, %v5056_v5  ;;  %v7605_v19 = vadd.f32 %v7604_v49, %v7603_v7  ;;  %v7705_v36 = vadd.f32 %v7704_v30, %v7703_v21  ;;  %v8903_v44 = vld [vmem:[%s11350_s0 + $0x440] ss:$100 sps:$4 sm:$0xff]   ;;  %v8913_v21 = vld [vmem:[%s11350_s0 + $0x5d4] ss:$100 sps:$4 sm:$0xff]  }
 0x2d2   :  { %5650 = vmatmul.mubr.bf16.gmra.mrb[88].mxu1 %v8899_v29  ;;  %8124 = vmatmul.mubr.bf16.gmra.mrb[88].mxu0 %v8902_v63  ;;  %v8910_v63 = vld [vmem:[%s11350_s0 + $0x448] ss:$100 sps:$4 sm:$0xff]  }
 0x2d3   :  { %v5067_v51 = vadd.f32 %v7605_v19, %v10779_v34  ;;  %v11024_v0 = vadd.f32 %v7705_v36, %v5059_v27  ;;  %5657 = vmatprep.mubr.bf16.mxu1 %v8905_v14  ;;  %8127 = vmatprep.mubr.msk.bf16.mxu0 %vm8946_vm0, %v8945_v6 }
 0x2d5   :  { %v7606_v43 = vpop.f32.mrb[240].mxu1  ;;  %v7706_v2 = vpop.f32.mrb[240].mxu0 }
 0x2d6   :  { %v7607_v55 = vpop.f32.mrb[241].mxu1  ;;  %v7707_v4 = vpop.f32.mrb[241].mxu0 }
 0x2d7   :  { %v7608_v26 = vadd.f32 %v7607_v55, %v7606_v43  ;;  %v7708_v34 = vadd.f32 %v7707_v4, %v7706_v2  ;;  %v7609_v37 = vpop.f32.mrb[242].mxu1  ;;  %v7709_v45 = vpop.f32.mrb[242].mxu0 }
 0x2d8   :  { %v7610_v47 = vpop.f32.mrb[243].mxu1  ;;  %v7710_v28 = vpop.f32.mrb[243].mxu0 }
 0x2d9   :  { %v5072_v38 = vadd.f32 %v7608_v26, %v10794_v46  ;;  %v11038_v5 = vadd.f32 %v7708_v34, %v5064_v8  ;;  %v7611_v1 = vadd.f32 %v7610_v47, %v7609_v37  ;;  %v7711_v58 = vadd.f32 %v7710_v28, %v7709_v45  ;;  %v8907_v46 = vld [vmem:[%s11350_s0 + $0x508] ss:$100 sps:$4 sm:$0xff]   ;;  %v8917_v45 = vld [vmem:[%s11350_s0 + $0x69c] ss:$100 sps:$4 sm:$0xff]  }
 0x2da   :  { %5658 = vmatmul.mubr.bf16.gmra.mrb[92].mxu1 %v8903_v44  ;;  %8128 = vmatmul.mubr.bf16.gmra.mrb[92].mxu0 %v8906_v57  ;;  %v8914_v57 = vld [vmem:[%s11350_s0 + $0x510] ss:$100 sps:$4 sm:$0xff]  }
 0x2db   :  { %v5075_v27 = vadd.f32 %v7611_v1, %v10797_v10  ;;  %v11041_v48 = vadd.f32 %v7711_v58, %v5067_v51  ;;  %5665 = vmatprep.mubr.bf16.mxu1 %v8909_v60  ;;  %8131 = vmatprep.mubr.msk.bf16.mxu0 %vm8946_vm0, %v8945_v6 }
 0x2dd   :  { %v7612_v41 = vpop.f32.mrb[244].mxu1  ;;  %v7712_v25 = vpop.f32.mrb[244].mxu0 }
 0x2de   :  { %v7613_v20 = vpop.f32.mrb[245].mxu1  ;;  %v7713_v29 = vpop.f32.mrb[245].mxu0 }
 0x2df   :  { %v7614_v31 = vadd.f32 %v7613_v20, %v7612_v41  ;;  %v7714_v10 = vadd.f32 %v7713_v29, %v7712_v25  ;;  %v7615_v56 = vpop.f32.mrb[246].mxu1  ;;  %v7715_v7 = vpop.f32.mrb[246].mxu0 }
 0x2e0   :  { %v7616_v14 = vpop.f32.mrb[247].mxu1  ;;  %v7716_v49 = vpop.f32.mrb[247].mxu0 }
 0x2e1   :  { %v5080_v30 = vadd.f32 %v7614_v31, %v10812_v54  ;;  %v11055_v8 = vadd.f32 %v7714_v10, %v5072_v38  ;;  %v7617_v19 = vadd.f32 %v7616_v14, %v7615_v56  ;;  %v7717_v36 = vadd.f32 %v7716_v49, %v7715_v7  ;;  %v8911_v54 = vld [vmem:[%s11350_s0 + $0x5d0] ss:$100 sps:$4 sm:$0xff]   ;;  %v8921_v7 = vld [vmem:[%s11350_s0 + $0x764] ss:$100 sps:$4 sm:$0xff]  }
 0x2e2   :  { %5666 = vmatmul.mubr.bf16.gmra.mrb[96].mxu1 %v8907_v46  ;;  %8132 = vmatmul.mubr.bf16.gmra.mrb[96].mxu0 %v8910_v63  ;;  %v8918_v63 = vld [vmem:[%s11350_s0 + $0x5d8] ss:$100 sps:$4 sm:$0xff]  }
 0x2e3   :  { %v5083_v51 = vadd.f32 %v7617_v19, %v10815_v52  ;;  %v11058_v43 = vadd.f32 %v7717_v36, %v5075_v27  ;;  %5673 = vmatprep.mubr.bf16.mxu1 %v8913_v21  ;;  %8135 = vmatprep.mubr.msk.bf16.mxu0 %vm8946_vm0, %v8945_v6 }
 0x2e5   :  { %v7618_v2 = vpop.f32.mrb[248].mxu1  ;;  %v7718_v55 = vpop.f32.mrb[248].mxu0 }
 0x2e6   :  { %v7619_v4 = vpop.f32.mrb[249].mxu1  ;;  %v7719_v44 = vpop.f32.mrb[249].mxu0 }
 0x2e7   :  { %v7620_v26 = vadd.f32 %v7619_v4, %v7618_v2  ;;  %v7720_v52 = vadd.f32 %v7719_v44, %v7718_v55  ;;  %v7621_v34 = vpop.f32.mrb[250].mxu1  ;;  %v7721_v37 = vpop.f32.mrb[250].mxu0 }
 0x2e8   :  { %v7622_v60 = vpop.f32.mrb[251].mxu1  ;;  %v7722_v47 = vpop.f32.mrb[251].mxu0 }
 0x2e9   :  { %v5088_v28 = vadd.f32 %v7620_v26, %v10830_v9  ;;  %v11072_v38 = vadd.f32 %v7720_v52, %v5080_v30  ;;  %v7623_v1 = vadd.f32 %v7622_v60, %v7621_v34  ;;  %v7723_v58 = vadd.f32 %v7722_v47, %v7721_v37  ;;  %v8915_v9 = vld [vmem:[%s11350_s0 + $0x698] ss:$100 sps:$4 sm:$0xff]   ;;  %v8925_v37 = vld [vmem:[%s11350_s0 + $0x82c] ss:$100 sps:$4 sm:$0xff]  }
 0x2ea   :  { %5674 = vmatmul.mubr.bf16.gmra.mrb[100].mxu1 %v8911_v54  ;;  %8136 = vmatmul.mubr.bf16.gmra.mrb[100].mxu0 %v8914_v57  ;;  %v8922_v57 = vld [vmem:[%s11350_s0 + $0x6a0] ss:$100 sps:$4 sm:$0xff]  }
 0x2eb   :  { %v5091_v27 = vadd.f32 %v7623_v1, %v10833_v13  ;;  %v11075_v41 = vadd.f32 %v7723_v58, %v5083_v51  ;;  %5681 = vmatprep.mubr.bf16.mxu1 %v8917_v45  ;;  %8139 = vmatprep.mubr.msk.bf16.mxu0 %vm8946_vm0, %v8945_v6 }
 0x2ed   :  { %v7624_v25 = vpop.f32.mrb[252].mxu1  ;;  %v7724_v20 = vpop.f32.mrb[252].mxu0 }
 0x2ee   :  { %v7625_v29 = vpop.f32.mrb[253].mxu1  ;;  %v7725_v46 = vpop.f32.mrb[253].mxu0 }
 0x2ef   :  { %v7626_v31 = vadd.f32 %v7625_v29, %v7624_v25  ;;  %v7726_v13 = vadd.f32 %v7725_v46, %v7724_v20  ;;  %v7627_v10 = vpop.f32.mrb[254].mxu1  ;;  %v7727_v56 = vpop.f32.mrb[254].mxu0 }
 0x2f0   :  { %v7628_v21 = vpop.f32.mrb[255].mxu1  ;;  %v7728_v14 = vpop.f32.mrb[255].mxu0 }
 0x2f1   :  { %v5096_v49 = vadd.f32 %v7626_v31, %v10848_v35  ;;  %v11089_v30 = vadd.f32 %v7726_v13, %v5088_v28  ;;  %v7629_v19 = vadd.f32 %v7628_v21, %v7627_v10  ;;  %v7729_v36 = vadd.f32 %v7728_v14, %v7727_v56  ;;  %v8919_v35 = vld [vmem:[%s11350_s0 + $0x760] ss:$100 sps:$4 sm:$0xff]   ;;  %v8929_v56 = vld [vmem:[%s11350_s0 + $0x8f4] ss:$100 sps:$4 sm:$0xff]  }
 0x2f2   :  { %5682 = vmatmul.mubr.bf16.gmra.mrb[104].mxu1 %v8915_v9  ;;  %8140 = vmatmul.mubr.bf16.gmra.mrb[104].mxu0 %v8918_v63  ;;  %v8926_v63 = vld [vmem:[%s11350_s0 + $0x768] ss:$100 sps:$4 sm:$0xff]  }
 0x2f3   :  { %v5099_v51 = vadd.f32 %v7629_v19, %v10851_v22  ;;  %v11092_v2 = vadd.f32 %v7729_v36, %v5091_v27  ;;  %5689 = vmatprep.mubr.bf16.mxu1 %v8921_v7  ;;  %8143 = vmatprep.mubr.msk.bf16.mxu0 %vm8946_vm0, %v8945_v6 }
 0x2f5   :  { %v7630_v55 = vpop.f32.mrb[0].mxu1  ;;  %v7730_v4 = vpop.f32.mrb[0].mxu0 }
 0x2f6   :  { %v7631_v44 = vpop.f32.mrb[1].mxu1  ;;  %v7731_v54 = vpop.f32.mrb[1].mxu0 }
 0x2f7   :  { %v7632_v26 = vadd.f32 %v7631_v44, %v7630_v55  ;;  %v7732_v22 = vadd.f32 %v7731_v54, %v7730_v4  ;;  %v7633_v52 = vpop.f32.mrb[2].mxu1  ;;  %v7733_v34 = vpop.f32.mrb[2].mxu0 }
 0x2f8   :  { %v7634_v45 = vpop.f32.mrb[3].mxu1  ;;  %v7734_v60 = vpop.f32.mrb[3].mxu0 }
 0x2f9   :  { %v5104_v47 = vadd.f32 %v7632_v26, %v10866_v39  ;;  %v11106_v28 = vadd.f32 %v7732_v22, %v5096_v49  ;;  %v7635_v1 = vadd.f32 %v7634_v45, %v7633_v52  ;;  %v7735_v58 = vadd.f32 %v7734_v60, %v7733_v34  ;;  %v8923_v39 = vld [vmem:[%s11350_s0 + $0x828] ss:$100 sps:$4 sm:$0xff]   ;;  %v8933_v34 = vld [vmem:[%s11350_s0 + $0x9bc] ss:$100 sps:$4 sm:$0xff]  }
 0x2fa   :  { %5690 = vmatmul.mubr.bf16.gmra.mrb[108].mxu1 %v8919_v35  ;;  %8144 = vmatmul.mubr.bf16.gmra.mrb[108].mxu0 %v8922_v57  ;;  %v8930_v57 = vld [vmem:[%s11350_s0 + $0x830] ss:$100 sps:$4 sm:$0xff]  }
 0x2fb   :  { %v5107_v27 = vadd.f32 %v7635_v1, %v10869_v15  ;;  %v11109_v25 = vadd.f32 %v7735_v58, %v5099_v51  ;;  %5697 = vmatprep.mubr.bf16.mxu1 %v8925_v37  ;;  %8147 = vmatprep.mubr.msk.bf16.mxu0 %vm8946_vm0, %v8945_v6 }
 0x2fd   :  { %v7636_v20 = vpop.f32.mrb[4].mxu1  ;;  %v7736_v29 = vpop.f32.mrb[4].mxu0 }
 0x2fe   :  { %v7637_v46 = vpop.f32.mrb[5].mxu1  ;;  %v7737_v9 = vpop.f32.mrb[5].mxu0 }
 0x2ff   :  { %v7638_v31 = vadd.f32 %v7637_v46, %v7636_v20  ;;  %v7738_v15 = vadd.f32 %v7737_v9, %v7736_v29  ;;  %v7639_v13 = vpop.f32.mrb[6].mxu1  ;;  %v7739_v10 = vpop.f32.mrb[6].mxu0 }
 0x300   :  { %v7640_v7 = vpop.f32.mrb[7].mxu1  ;;  %v7740_v21 = vpop.f32.mrb[7].mxu0 }
 0x301   :  { %v5112_v14 = vadd.f32 %v7638_v31, %v10884_v50  ;;  %v11123_v49 = vadd.f32 %v7738_v15, %v5104_v47  ;;  %v7641_v19 = vadd.f32 %v7640_v7, %v7639_v13  ;;  %v7741_v36 = vadd.f32 %v7740_v21, %v7739_v10  ;;  %v8927_v50 = vld [vmem:[%s11350_s0 + $0x8f0] ss:$100 sps:$4 sm:$0xff]   ;;  %v8937_v10 = vld [vmem:[%s11350_s0 + $0xa84] ss:$100 sps:$4 sm:$0xff]  }
 0x302   :  { %5698 = vmatmul.mubr.bf16.gmra.mrb[112].mxu1 %v8923_v39  ;;  %8148 = vmatmul.mubr.bf16.gmra.mrb[112].mxu0 %v8926_v63  ;;  %v8934_v63 = vld [vmem:[%s11350_s0 + $0x8f8] ss:$100 sps:$4 sm:$0xff]  }
 0x303   :  { %v5115_v51 = vadd.f32 %v7641_v19, %v10887_v53  ;;  %v11126_v55 = vadd.f32 %v7741_v36, %v5107_v27  ;;  %5705 = vmatprep.mubr.bf16.mxu1 %v8929_v56  ;;  %8151 = vmatprep.mubr.msk.bf16.mxu0 %vm8946_vm0, %v8945_v6 }
 0x305   :  { %v7642_v4 = vpop.f32.mrb[8].mxu1  ;;  %v7742_v44 = vpop.f32.mrb[8].mxu0 }
 0x306   :  { %v7643_v54 = vpop.f32.mrb[9].mxu1  ;;  %v7743_v35 = vpop.f32.mrb[9].mxu0 }
 0x307   :  { %v7644_v26 = vadd.f32 %v7643_v54, %v7642_v4  ;;  %v7744_v53 = vadd.f32 %v7743_v35, %v7742_v44  ;;  %v7645_v22 = vpop.f32.mrb[10].mxu1  ;;  %v7745_v52 = vpop.f32.mrb[10].mxu0 }
 0x308   :  { %v7646_v37 = vpop.f32.mrb[11].mxu1  ;;  %v7746_v45 = vpop.f32.mrb[11].mxu0 }
 0x309   :  { %v5120_v60 = vadd.f32 %v7644_v26, %v10901_v16  ;;  %v11140_v47 = vadd.f32 %v7744_v53, %v5112_v14  ;;  %v7647_v1 = vadd.f32 %v7646_v37, %v7645_v22  ;;  %v7747_v58 = vadd.f32 %v7746_v45, %v7745_v52  ;;  %v8931_v16 = vld [vmem:[%s11350_s0 + $0x9b8] ss:$100 sps:$4 sm:$0xff]   ;;  %v8941_v52 = vld [vmem:[%s11350_s0 + $0xb4c] ss:$100 sps:$4 sm:$0xff]  }
 0x30a   :  { %5706 = vmatmul.mubr.bf16.gmra.mrb[116].mxu1 %v8927_v50  ;;  %8152 = vmatmul.mubr.bf16.gmra.mrb[116].mxu0 %v8930_v57  ;;  %v8938_v57 = vld [vmem:[%s11350_s0 + $0x9c0] ss:$100 sps:$4 sm:$0xff]  }
 0x30b   :  { %v5123_v27 = vadd.f32 %v7647_v1, %v10904_v33  ;;  %v11143_v20 = vadd.f32 %v7747_v58, %v5115_v51  ;;  %5713 = vmatprep.mubr.bf16.mxu1 %v8933_v34  ;;  %8155 = vmatprep.mubr.msk.bf16.mxu0 %vm8946_vm0, %v8945_v6 }
 0x30d   :  { %v7748_v29 = vpop.f32.mrb[12].mxu0  ;;  %v7770_v46 = vpop.f32.mrb[12].mxu1 }
 0x30e   :  { %v7749_v9 = vpop.f32.mrb[13].mxu0  ;;  %v7771_v39 = vpop.f32.mrb[13].mxu1 }
 0x30f   :  { %v7750_v31 = vadd.f32 %v7749_v9, %v7748_v29  ;;  %v7772_v33 = vadd.f32 %v7771_v39, %v7770_v46  ;;  %v7751_v15 = vpop.f32.mrb[14].mxu0  ;;  %v7773_v13 = vpop.f32.mrb[14].mxu1 }
 0x310   :  { %v7752_v56 = vpop.f32.mrb[15].mxu0  ;;  %v7774_v7 = vpop.f32.mrb[15].mxu1 }
 0x311   :  { %v11156_v21 = vadd.f32 %v7750_v31, %v5120_v60  ;;  %v5314_v14 = vadd.f32 %v7772_v33, %v10920_v62  ;;  %v7753_v19 = vadd.f32 %v7752_v56, %v7751_v15  ;;  %v7775_v36 = vadd.f32 %v7774_v7, %v7773_v13  ;;  %v8935_v62 = vld [vmem:[%s11350_s0 + $0xa80] ss:$100 sps:$4 sm:$0xff]  }
 0x312   :  { %5714 = vmatmul.mubr.bf16.gmra.mrb[120].mxu1 %v8931_v16  ;;  %8156 = vmatmul.mubr.bf16.gmra.mrb[120].mxu0 %v8934_v63  ;;  %v8942_v63 = vld [vmem:[%s11350_s0 + $0xa88] ss:$100 sps:$4 sm:$0xff]  }
 0x313   :  { %v11159_v51 = vadd.f32 %v7753_v19, %v5123_v27  ;;  %v5317_v4 = vadd.f32 %v7775_v36, %v10923_v40  ;;  %5721 = vmatprep.mubr.bf16.mxu1 %v8937_v10  ;;  %8159 = vmatprep.mubr.msk.bf16.mxu0 %vm8946_vm0, %v8945_v6 }
 0x315   :  { %v7776_v44 = vpop.f32.mrb[16].mxu1  ;;  %v7876_v54 = vpop.f32.mrb[16].mxu0 }
 0x316   :  { %v7777_v35 = vpop.f32.mrb[17].mxu1  ;;  %v7877_v50 = vpop.f32.mrb[17].mxu0 }
 0x317   :  { %v7778_v26 = vadd.f32 %v7777_v35, %v7776_v44  ;;  %v7878_v53 = vadd.f32 %v7877_v50, %v7876_v54  ;;  %v7779_v22 = vpop.f32.mrb[18].mxu1  ;;  %v7879_v40 = vpop.f32.mrb[18].mxu0 }
 0x318   :  { %v7780_v34 = vpop.f32.mrb[19].mxu1  ;;  %v7880_v37 = vpop.f32.mrb[19].mxu0 }
 0x319   :  { %v5322_v45 = vadd.f32 %v7778_v26, %v10938_v17  ;;  %v11174_v60 = vadd.f32 %v7878_v53, %v5314_v14  ;;  %v7781_v1 = vadd.f32 %v7780_v34, %v7779_v22  ;;  %v7881_v58 = vadd.f32 %v7880_v37, %v7879_v40  ;;  %v8939_v17 = vld [vmem:[%s11350_s0 + $0xb48] ss:$100 sps:$4 sm:$0xff]  }
 0x31a   :  { %5722 = vmatmul.mubr.bf16.gmra.mrb[124].mxu1 %v8935_v62  ;;  %8160 = vmatmul.mubr.bf16.gmra.mrb[124].mxu0 %v8938_v57 }
 0x31b   :  { %v5325_v27 = vadd.f32 %v7781_v1, %v10941_v11  ;;  %v11177_v29 = vadd.f32 %v7881_v58, %v5317_v4  ;;  %5729 = vmatprep.mubr.bf16.mxu1 %v8941_v52  ;;  %8163 = vmatprep.mubr.msk.bf16.mxu0 %vm8946_vm0, %v8945_v6 }
 0x31d   :  { %v7782_v46 = vpop.f32.mrb[20].mxu1  ;;  %v7882_v9 = vpop.f32.mrb[20].mxu0 }
 0x31e   :  { %v7783_v39 = vpop.f32.mrb[21].mxu1  ;;  %v7883_v16 = vpop.f32.mrb[21].mxu0 }
 0x31f   :  { %v7784_v31 = vadd.f32 %v7783_v39, %v7782_v46  ;;  %v7884_v11 = vadd.f32 %v7883_v16, %v7882_v9  ;;  %v7785_v33 = vpop.f32.mrb[22].mxu1  ;;  %v7885_v15 = vpop.f32.mrb[22].mxu0 }
 0x320   :  { %v7786_v13 = vpop.f32.mrb[23].mxu1  ;;  %v7886_v10 = vpop.f32.mrb[23].mxu0 }
 0x321   :  { %v5330_v56 = vadd.f32 %v7784_v31, %v10953_v59  ;;  %v11188_v7 = vadd.f32 %v7884_v11, %v5322_v45  ;;  %v7787_v14 = vadd.f32 %v7786_v13, %v7785_v33  ;;  %v7887_v19 = vadd.f32 %v7886_v10, %v7885_v15  ;;  %v8943_v59 = vld [vmem:[%s11350_s0 + $0xb50] ss:$100 sps:$4 sm:$0xff]  }
 0x322   :  { %5730 = vmatmul.mubr.bf16.gmra.mrb[128].mxu1 %v8939_v17  ;;  %8164 = vmatmul.mubr.bf16.gmra.mrb[128].mxu0 %v8942_v63 }
 0x323   :  { %v5333_v36 = vadd.f32 %v7787_v14, %v10956_v61  ;;  %v11191_v4 = vadd.f32 %v7887_v19, %v5325_v27  ;;  %8167 = vmatprep.mubr.msk.bf16.mxu0 %vm8946_vm0, %v8945_v6 }
 0x325   :  { %v7788_v44 = vpop.f32.mrb[24].mxu1  ;;  %v7888_v54 = vpop.f32.mrb[24].mxu0 }
 0x326   :  { %v7789_v35 = vpop.f32.mrb[25].mxu1  ;;  %v7889_v50 = vpop.f32.mrb[25].mxu0 }
 0x327   :  { %v7790_v62 = vadd.f32 %v7789_v35, %v7788_v44  ;;  %v7890_v57 = vadd.f32 %v7889_v50, %v7888_v54  ;;  %v7791_v26 = vpop.f32.mrb[26].mxu1  ;;  %v7891_v53 = vpop.f32.mrb[26].mxu0 }
 0x328   :  { %v7792_v22 = vpop.f32.mrb[27].mxu1  ;;  %v7892_v40 = vpop.f32.mrb[27].mxu0 }
 0x329   :  { %v5338_v61 = vadd.f32 %v7790_v62, %v10970_v18  ;;  %v11199_v52 = vadd.f32 %v7890_v57, %v5330_v56  ;;  %v7793_v34 = vadd.f32 %v7792_v22, %v7791_v26  ;;  %v7893_v6 = vadd.f32 %v7892_v40, %v7891_v53 }
 0x32a   :  { %8168 = vmatmul.mubr.bf16.gmra.mrb[132].mxu0 %v8943_v59 }
 0x32b   :  { %v5341_v37 = vadd.f32 %v7793_v34, %v10973_v32  ;;  %v11202_v45 = vadd.f32 %v7893_v6, %v5333_v36 }
 0x32d   :  { %v7794_v1 = vpop.f32.mrb[28].mxu1  ;;  %v7894_v58 = vpop.f32.mrb[28].mxu0 }
 0x32e   :  { %v7795_v27 = vpop.f32.mrb[29].mxu1  ;;  %v7895_v46 = vpop.f32.mrb[29].mxu0 }
 0x32f   :  { %v7796_v9 = vadd.f32 %v7795_v27, %v7794_v1  ;;  %v7896_v39 = vadd.f32 %v7895_v46, %v7894_v58  ;;  %v7797_v16 = vpop.f32.mrb[30].mxu1  ;;  %v7897_v17 = vpop.f32.mrb[30].mxu0 }
 0x330   :  { %v7798_v63 = vpop.f32.mrb[31].mxu1  ;;  %v7898_v31 = vpop.f32.mrb[31].mxu0 }
 0x331   :  { %v5346_v18 = vadd.f32 %v7796_v9, %v10987_v23  ;;  %v11205_v11 = vadd.f32 %v7896_v39, %v5338_v61  ;;  %v7799_v33 = vadd.f32 %v7798_v63, %v7797_v16  ;;  %v7899_v15 = vadd.f32 %v7898_v31, %v7897_v17 }
 0x333   :  { %v5349_v32 = vadd.f32 %v7799_v33, %v10990_v42  ;;  %v11208_v13 = vadd.f32 %v7899_v15, %v5341_v37 }
 0x335   :  { %v7800_v10 = vpop.f32.mrb[32].mxu1  ;;  %v7900_v56 = vpop.f32.mrb[32].mxu0 }
 0x336   :  { %v7801_v14 = vpop.f32.mrb[33].mxu1  ;;  %v7901_v19 = vpop.f32.mrb[33].mxu0 }
 0x337   :  { %v7802_v36 = vadd.f32 %v7801_v14, %v7800_v10  ;;  %v7902_v44 = vadd.f32 %v7901_v19, %v7900_v56  ;;  %v7803_v54 = vpop.f32.mrb[34].mxu1  ;;  %v7903_v35 = vpop.f32.mrb[34].mxu0 }
 0x338   :  { %v7804_v50 = vpop.f32.mrb[35].mxu1  ;;  %v7904_v59 = vpop.f32.mrb[35].mxu0 }
 0x339   :  { %v5354_v23 = vadd.f32 %v7802_v36, %v11004_v12  ;;  %v11211_v62 = vadd.f32 %v7902_v44, %v5346_v18  ;;  %v7805_v57 = vadd.f32 %v7804_v50, %v7803_v54  ;;  %v7905_v26 = vadd.f32 %v7904_v59, %v7903_v35 }
 0x33b   :  { %v5357_v42 = vadd.f32 %v7805_v57, %v11007_v24  ;;  %v11214_v53 = vadd.f32 %v7905_v26, %v5349_v32 }
 0x33d   :  { %v7806_v22 = vpop.f32.mrb[36].mxu1  ;;  %v7906_v40 = vpop.f32.mrb[36].mxu0 }
 0x33e   :  { %v7807_v61 = vpop.f32.mrb[37].mxu1  ;;  %v7907_v34 = vpop.f32.mrb[37].mxu0 }
 0x33f   :  { %v7808_v6 = vadd.f32 %v7807_v61, %v7806_v22  ;;  %v7908_v37 = vadd.f32 %v7907_v34, %v7906_v40  ;;  %v7809_v1 = vpop.f32.mrb[38].mxu1  ;;  %v7909_v58 = vpop.f32.mrb[38].mxu0 }
 0x340   :  { %v7810_v27 = vpop.f32.mrb[39].mxu1  ;;  %v7910_v46 = vpop.f32.mrb[39].mxu0 }
 0x341   :  { %v5362_v12 = vadd.f32 %v7808_v6, %v11021_v3  ;;  %v11217_v9 = vadd.f32 %v7908_v37, %v5354_v23  ;;  %v7811_v39 = vadd.f32 %v7810_v27, %v7809_v1  ;;  %v7911_v16 = vadd.f32 %v7910_v46, %v7909_v58 }
 0x343   :  { %v5365_v24 = vadd.f32 %v7811_v39, %v11024_v0  ;;  %v11220_v17 = vadd.f32 %v7911_v16, %v5357_v42 }
 0x345   :  { %v7812_v63 = vpop.f32.mrb[40].mxu1  ;;  %v7912_v31 = vpop.f32.mrb[40].mxu0 }
 0x346   :  { %v7813_v18 = vpop.f32.mrb[41].mxu1  ;;  %v7913_v33 = vpop.f32.mrb[41].mxu0 }
 0x347   :  { %v7814_v15 = vadd.f32 %v7813_v18, %v7812_v63  ;;  %v7914_v32 = vadd.f32 %v7913_v33, %v7912_v31  ;;  %v7815_v10 = vpop.f32.mrb[42].mxu1  ;;  %v7915_v56 = vpop.f32.mrb[42].mxu0 }
 0x348   :  { %v7816_v14 = vpop.f32.mrb[43].mxu1  ;;  %v7916_v19 = vpop.f32.mrb[43].mxu0 }
 0x349   :  { %v5370_v3 = vadd.f32 %v7814_v15, %v11038_v5  ;;  %v11223_v36 = vadd.f32 %v7914_v32, %v5362_v12  ;;  %v7817_v44 = vadd.f32 %v7816_v14, %v7815_v10  ;;  %v7917_v54 = vadd.f32 %v7916_v19, %v7915_v56 }
 0x34b   :  { %v5373_v0 = vadd.f32 %v7817_v44, %v11041_v48  ;;  %v11226_v35 = vadd.f32 %v7917_v54, %v5365_v24 }
 0x34d   :  { %v7818_v50 = vpop.f32.mrb[44].mxu1  ;;  %v7918_v59 = vpop.f32.mrb[44].mxu0 }
 0x34e   :  { %v7819_v23 = vpop.f32.mrb[45].mxu1  ;;  %v7919_v57 = vpop.f32.mrb[45].mxu0 }
 0x34f   :  { %v7820_v26 = vadd.f32 %v7819_v23, %v7818_v50  ;;  %v7920_v42 = vadd.f32 %v7919_v57, %v7918_v59  ;;  %v7821_v22 = vpop.f32.mrb[46].mxu1  ;;  %v7921_v40 = vpop.f32.mrb[46].mxu0 }
 0x350   :  { %v7822_v61 = vpop.f32.mrb[47].mxu1  ;;  %v7922_v34 = vpop.f32.mrb[47].mxu0 }
 0x351   :  { %v5378_v5 = vadd.f32 %v7820_v26, %v11055_v8  ;;  %v11229_v6 = vadd.f32 %v7920_v42, %v5370_v3  ;;  %v7823_v37 = vadd.f32 %v7822_v61, %v7821_v22  ;;  %v7923_v1 = vadd.f32 %v7922_v34, %v7921_v40 }
 0x353   :  { %v5381_v48 = vadd.f32 %v7823_v37, %v11058_v43  ;;  %v11232_v58 = vadd.f32 %v7923_v1, %v5373_v0 }
 0x355   :  { %v7824_v27 = vpop.f32.mrb[48].mxu1  ;;  %v7924_v46 = vpop.f32.mrb[48].mxu0 }
 0x356   :  { %v7825_v12 = vpop.f32.mrb[49].mxu1  ;;  %v7925_v39 = vpop.f32.mrb[49].mxu0 }
 0x357   :  { %v7826_v16 = vadd.f32 %v7825_v12, %v7824_v27  ;;  %v7926_v24 = vadd.f32 %v7925_v39, %v7924_v46  ;;  %v7827_v63 = vpop.f32.mrb[50].mxu1  ;;  %v7927_v31 = vpop.f32.mrb[50].mxu0 }
 0x358   :  { %v7828_v18 = vpop.f32.mrb[51].mxu1  ;;  %v7928_v33 = vpop.f32.mrb[51].mxu0 }
 0x359   :  { %v5386_v8 = vadd.f32 %v7826_v16, %v11072_v38  ;;  %v11235_v15 = vadd.f32 %v7926_v24, %v5378_v5  ;;  %v7829_v32 = vadd.f32 %v7828_v18, %v7827_v63  ;;  %v7929_v10 = vadd.f32 %v7928_v33, %v7927_v31 }
 0x35b   :  { %v5389_v43 = vadd.f32 %v7829_v32, %v11075_v41  ;;  %v11238_v56 = vadd.f32 %v7929_v10, %v5381_v48 }
 0x35d   :  { %v7830_v14 = vpop.f32.mrb[52].mxu1  ;;  %v7930_v19 = vpop.f32.mrb[52].mxu0 }
 0x35e   :  { %v7831_v3 = vpop.f32.mrb[53].mxu1  ;;  %v7931_v44 = vpop.f32.mrb[53].mxu0 }
 0x35f   :  { %v7832_v54 = vadd.f32 %v7831_v3, %v7830_v14  ;;  %v7932_v0 = vadd.f32 %v7931_v44, %v7930_v19  ;;  %v7833_v50 = vpop.f32.mrb[54].mxu1  ;;  %v7933_v59 = vpop.f32.mrb[54].mxu0 }
 0x360   :  { %v7834_v23 = vpop.f32.mrb[55].mxu1  ;;  %v7934_v57 = vpop.f32.mrb[55].mxu0 }
 0x361   :  { %v5394_v38 = vadd.f32 %v7832_v54, %v11089_v30  ;;  %v11241_v26 = vadd.f32 %v7932_v0, %v5386_v8  ;;  %v7835_v42 = vadd.f32 %v7834_v23, %v7833_v50  ;;  %v7935_v22 = vadd.f32 %v7934_v57, %v7933_v59 }
 0x363   :  { %v5397_v41 = vadd.f32 %v7835_v42, %v11092_v2  ;;  %v11244_v40 = vadd.f32 %v7935_v22, %v5389_v43 }
 0x365   :  { %v7836_v61 = vpop.f32.mrb[56].mxu1  ;;  %v7936_v34 = vpop.f32.mrb[56].mxu0 }
 0x366   :  { %v7837_v5 = vpop.f32.mrb[57].mxu1  ;;  %v7937_v37 = vpop.f32.mrb[57].mxu0 }
 0x367   :  { %v7838_v1 = vadd.f32 %v7837_v5, %v7836_v61  ;;  %v7938_v48 = vadd.f32 %v7937_v37, %v7936_v34  ;;  %v7839_v27 = vpop.f32.mrb[58].mxu1  ;;  %v7939_v46 = vpop.f32.mrb[58].mxu0 }
 0x368   :  { %v7840_v12 = vpop.f32.mrb[59].mxu1  ;;  %v7940_v39 = vpop.f32.mrb[59].mxu0 }
 0x369   :  { %v5402_v30 = vadd.f32 %v7838_v1, %v11106_v28  ;;  %v11247_v16 = vadd.f32 %v7938_v48, %v5394_v38  ;;  %v7841_v24 = vadd.f32 %v7840_v12, %v7839_v27  ;;  %v7941_v63 = vadd.f32 %v7940_v39, %v7939_v46 }
 0x36b   :  { %v5405_v2 = vadd.f32 %v7841_v24, %v11109_v25  ;;  %v11250_v31 = vadd.f32 %v7941_v63, %v5397_v41 }
 0x36d   :  { %v7842_v18 = vpop.f32.mrb[60].mxu1  ;;  %v7942_v33 = vpop.f32.mrb[60].mxu0 }
 0x36e   :  { %v7843_v8 = vpop.f32.mrb[61].mxu1  ;;  %v7943_v32 = vpop.f32.mrb[61].mxu0 }
 0x36f   :  { %v7844_v10 = vadd.f32 %v7843_v8, %v7842_v18  ;;  %v7944_v43 = vadd.f32 %v7943_v32, %v7942_v33  ;;  %v7845_v14 = vpop.f32.mrb[62].mxu1  ;;  %v7945_v19 = vpop.f32.mrb[62].mxu0 }
 0x370   :  { %v7846_v3 = vpop.f32.mrb[63].mxu1  ;;  %v7946_v44 = vpop.f32.mrb[63].mxu0 }
 0x371   :  { %v5410_v28 = vadd.f32 %v7844_v10, %v11123_v49  ;;  %v11253_v54 = vadd.f32 %v7944_v43, %v5402_v30  ;;  %v7847_v0 = vadd.f32 %v7846_v3, %v7845_v14  ;;  %v7947_v50 = vadd.f32 %v7946_v44, %v7945_v19 }
 0x373   :  { %v5413_v25 = vadd.f32 %v7847_v0, %v11126_v55  ;;  %v11256_v59 = vadd.f32 %v7947_v50, %v5405_v2 }
 0x375   :  { %v7848_v23 = vpop.f32.mrb[64].mxu1  ;;  %v7948_v57 = vpop.f32.mrb[64].mxu0 }
 0x376   :  { %v7849_v38 = vpop.f32.mrb[65].mxu1  ;;  %v7949_v42 = vpop.f32.mrb[65].mxu0 }
 0x377   :  { %v7850_v22 = vadd.f32 %v7849_v38, %v7848_v23  ;;  %v7950_v41 = vadd.f32 %v7949_v42, %v7948_v57  ;;  %v7851_v61 = vpop.f32.mrb[66].mxu1  ;;  %v7951_v34 = vpop.f32.mrb[66].mxu0 }
 0x378   :  { %v7852_v5 = vpop.f32.mrb[67].mxu1  ;;  %v7952_v37 = vpop.f32.mrb[67].mxu0 }
 0x379   :  { %v5418_v49 = vadd.f32 %v7850_v22, %v11140_v47  ;;  %v11259_v1 = vadd.f32 %v7950_v41, %v5410_v28  ;;  %v7853_v48 = vadd.f32 %v7852_v5, %v7851_v61  ;;  %v7953_v27 = vadd.f32 %v7952_v37, %v7951_v34 }
 0x37b   :  { %v5421_v55 = vadd.f32 %v7853_v48, %v11143_v20  ;;  %v11262_v46 = vadd.f32 %v7953_v27, %v5413_v25 }
 0x37d   :  { %v7854_v12 = vpop.f32.mrb[68].mxu1  ;;  %v7954_v39 = vpop.f32.mrb[68].mxu0 }
 0x37e   :  { %v7855_v30 = vpop.f32.mrb[69].mxu1  ;;  %v7955_v24 = vpop.f32.mrb[69].mxu0 }
 0x37f   :  { %v7856_v63 = vadd.f32 %v7855_v30, %v7854_v12  ;;  %v7956_v2 = vadd.f32 %v7955_v24, %v7954_v39  ;;  %v7857_v18 = vpop.f32.mrb[70].mxu1  ;;  %v7957_v33 = vpop.f32.mrb[70].mxu0 }
 0x380   :  { %v7858_v8 = vpop.f32.mrb[71].mxu1  ;;  %v7958_v32 = vpop.f32.mrb[71].mxu0 }
 0x381   :  { %v5426_v47 = vadd.f32 %v7856_v63, %v11156_v21  ;;  %v11265_v10 = vadd.f32 %v7956_v2, %v5418_v49  ;;  %v7859_v43 = vadd.f32 %v7858_v8, %v7857_v18  ;;  %v7959_v14 = vadd.f32 %v7958_v32, %v7957_v33 }
 0x383   :  { %v5429_v20 = vadd.f32 %v7859_v43, %v11159_v51  ;;  %v11268_v19 = vadd.f32 %v7959_v14, %v5421_v55 }
 0x385   :  { %v7960_v3 = vpop.f32.mrb[72].mxu0  ;;  %v7982_v44 = vpop.f32.mrb[72].mxu1 }
 0x386   :  { %v7961_v28 = vpop.f32.mrb[73].mxu0  ;;  %v7983_v0 = vpop.f32.mrb[73].mxu1 }
 0x387   :  { %v7962_v50 = vadd.f32 %v7961_v28, %v7960_v3  ;;  %v7984_v25 = vadd.f32 %v7983_v0, %v7982_v44  ;;  %v7963_v23 = vpop.f32.mrb[74].mxu0  ;;  %v7985_v57 = vpop.f32.mrb[74].mxu1 }
 0x388   :  { %v7964_v38 = vpop.f32.mrb[75].mxu0  ;;  %v7986_v42 = vpop.f32.mrb[75].mxu1 }
 0x389   :  { %v11270_v22 = vadd.f32 %v7962_v50, %v5426_v47  ;;  %v7965_v21 = vadd.f32 %v7964_v38, %v7963_v23  ;;  %v7987_v41 = vadd.f32 %v7986_v42, %v7985_v57  ;;  %v5620_v61 = vadd.f32 %v7984_v25, %v11174_v60 }
 0x38b   :  { %v11273_v34 = vadd.f32 %v7965_v21, %v5429_v20  ;;  %v5623_v51 = vadd.f32 %v7987_v41, %v11177_v29 }
 0x38d   :  { %v7988_v5 = vpop.f32.mrb[76].mxu1  ;;  %v5772_v37 = vpop.f32.mrb[76].mxu0 }
 0x38e   :  { %v5773_v49 = vadd.f32 %v5772_v37, %v5620_v61  ;;  %v7989_v48 = vpop.f32.mrb[77].mxu1  ;;  %v8113_v27 = vpop.f32.mrb[77].mxu0 }
 0x38f   :  { %v7990_v55 = vadd.f32 %v7989_v48, %v7988_v5  ;;  %v7991_v12 = vpop.f32.mrb[78].mxu1  ;;  %v5775_v39 = vpop.f32.mrb[78].mxu0 }
 0x390   :  { %v5776_v30 = vadd.f32 %v5775_v39, %v5623_v51  ;;  %v7992_v24 = vpop.f32.mrb[79].mxu1  ;;  %v8114_v63 = vpop.f32.mrb[79].mxu0  ;;  %v5891_v33 = vmax.f32 %v5773_v49, 0.0 }
 0x391   :  { %v7993_v2 = vadd.f32 %v7992_v24, %v7991_v12  ;;  %v5628_v18 = vadd.f32 %v7990_v55, %v11188_v7 }
 0x392   :  { %v5892_v60 = vmax.f32 %v5776_v30, 0.0 }
 0x393   :  { %v5631_v8 = vadd.f32 %v7993_v2, %v11191_v4 }
 0x394   :  { %v6714_v32 = vpack.c.bf16 %v5892_v60, %v5891_v33 }
 0x395   :  { %v7994_v29 = vpop.f32.mrb[80].mxu1  ;;  %v5780_v47 = vpop.f32.mrb[80].mxu0 }
 0x396   :  { %6715 = vst [vmem:[%s11352_s3] sm:$0xff] %v6714_v32   ;;  %v5781_v43 = vadd.f32 %v5780_v47, %v5628_v18  ;;  %v7995_v14 = vpop.f32.mrb[81].mxu1  ;;  %v8117_v20 = vpop.f32.mrb[81].mxu0 }
 0x397   :  { %v7996_v3 = vadd.f32 %v7995_v14, %v7994_v29  ;;  %v7997_v44 = vpop.f32.mrb[82].mxu1  ;;  %v5783_v28 = vpop.f32.mrb[82].mxu0 }
 0x398   :  { %v5784_v0 = vadd.f32 %v5783_v28, %v5631_v8  ;;  %v7998_v50 = vpop.f32.mrb[83].mxu1  ;;  %v8118_v7 = vpop.f32.mrb[83].mxu0  ;;  %v5893_v4 = vmax.f32 %v5781_v43, 0.0 }
 0x399   :  { %v7999_v25 = vadd.f32 %v7998_v50, %v7997_v44  ;;  %v5636_v23 = vadd.f32 %v7996_v3, %v11199_v52 }
 0x39a   :  { %v5894_v57 = vmax.f32 %v5784_v0, 0.0 }
 0x39b   :  { %v5639_v38 = vadd.f32 %v7999_v25, %v11202_v45 }
 0x39c   :  { %v6719_v42 = vpack.c.bf16 %v5894_v57, %v5893_v4 }
 0x39d   :  { %v8000_v21 = vpop.f32.mrb[84].mxu1  ;;  %v5788_v41 = vpop.f32.mrb[84].mxu0 }
 0x39e   :  { %6786 = vst [vmem:[%s11352_s3 + $0x8] sm:$0xff] %v6719_v42   ;;  %v5789_v61 = vadd.f32 %v5788_v41, %v5636_v23  ;;  %v8001_v51 = vpop.f32.mrb[85].mxu1  ;;  %v8121_v5 = vpop.f32.mrb[85].mxu0 }
 0x39f   :  { %v8002_v37 = vadd.f32 %v8001_v51, %v8000_v21  ;;  %v8003_v49 = vpop.f32.mrb[86].mxu1  ;;  %v5791_v48 = vpop.f32.mrb[86].mxu0 }
 0x3a0   :  { %v5792_v27 = vadd.f32 %v5791_v48, %v5639_v38  ;;  %v8004_v55 = vpop.f32.mrb[87].mxu1  ;;  %v8122_v52 = vpop.f32.mrb[87].mxu0  ;;  %v5895_v45 = vmax.f32 %v5789_v61, 0.0 }
 0x3a1   :  { %v8005_v12 = vadd.f32 %v8004_v55, %v8003_v49  ;;  %v5644_v39 = vadd.f32 %v8002_v37, %v11205_v11 }
 0x3a2   :  { %v5896_v30 = vmax.f32 %v5792_v27, 0.0 }
 0x3a3   :  { %v5647_v24 = vadd.f32 %v8005_v12, %v11208_v13 }
 0x3a4   :  { %v6724_v63 = vpack.c.bf16 %v5896_v30, %v5895_v45 }
 0x3a5   :  { %v8006_v2 = vpop.f32.mrb[88].mxu1  ;;  %v5796_v18 = vpop.f32.mrb[88].mxu0 }
 0x3a6   :  { %6787 = vst [vmem:[%s11352_s3 + $0x10] sm:$0xff] %v6724_v63   ;;  %v5797_v33 = vadd.f32 %v5796_v18, %v5644_v39  ;;  %v8007_v60 = vpop.f32.mrb[89].mxu1  ;;  %v8125_v8 = vpop.f32.mrb[89].mxu0 }
 0x3a7   :  { %v8008_v32 = vadd.f32 %v8007_v60, %v8006_v2  ;;  %v8009_v29 = vpop.f32.mrb[90].mxu1  ;;  %v5799_v47 = vpop.f32.mrb[90].mxu0 }
 0x3a8   :  { %v5800_v43 = vadd.f32 %v5799_v47, %v5647_v24  ;;  %v8010_v14 = vpop.f32.mrb[91].mxu1  ;;  %v8126_v11 = vpop.f32.mrb[91].mxu0  ;;  %v5897_v13 = vmax.f32 %v5797_v33, 0.0 }
 0x3a9   :  { %v8011_v20 = vadd.f32 %v8010_v14, %v8009_v29  ;;  %v5652_v3 = vadd.f32 %v8008_v32, %v11211_v62 }
 0x3aa   :  { %v5898_v44 = vmax.f32 %v5800_v43, 0.0 }
 0x3ab   :  { %v5655_v28 = vadd.f32 %v8011_v20, %v11214_v53 }
 0x3ac   :  { %v6729_v0 = vpack.c.bf16 %v5898_v44, %v5897_v13 }
 0x3ad   :  { %v8012_v50 = vpop.f32.mrb[92].mxu1  ;;  %v5804_v7 = vpop.f32.mrb[92].mxu0 }
 0x3ae   :  { %6788 = vst [vmem:[%s11352_s3 + $0x18] sm:$0xff] %v6729_v0   ;;  %v5805_v25 = vadd.f32 %v5804_v7, %v5652_v3  ;;  %v8013_v23 = vpop.f32.mrb[93].mxu1  ;;  %v8129_v4 = vpop.f32.mrb[93].mxu0 }
 0x3af   :  { %v8014_v57 = vadd.f32 %v8013_v23, %v8012_v50  ;;  %v8015_v38 = vpop.f32.mrb[94].mxu1  ;;  %v5807_v42 = vpop.f32.mrb[94].mxu0 }
 0x3b0   :  { %v5808_v21 = vadd.f32 %v5807_v42, %v5655_v28  ;;  %v8016_v41 = vpop.f32.mrb[95].mxu1  ;;  %v8130_v62 = vpop.f32.mrb[95].mxu0  ;;  %v5899_v53 = vmax.f32 %v5805_v25, 0.0 }
 0x3b1   :  { %v8017_v61 = vadd.f32 %v8016_v41, %v8015_v38  ;;  %v5660_v51 = vadd.f32 %v8014_v57, %v11217_v9 }
 0x3b2   :  { %v5900_v5 = vmax.f32 %v5808_v21, 0.0 }
 0x3b3   :  { %v5663_v37 = vadd.f32 %v8017_v61, %v11220_v17 }
 0x3b4   :  { %v6734_v49 = vpack.c.bf16 %v5900_v5, %v5899_v53 }
 0x3b5   :  { %v8018_v48 = vpop.f32.mrb[96].mxu1  ;;  %v5812_v27 = vpop.f32.mrb[96].mxu0 }
 0x3b6   :  { %6789 = vst [vmem:[%s11352_s3 + $0x20] sm:$0xff] %v6734_v49   ;;  %v5813_v55 = vadd.f32 %v5812_v27, %v5660_v51  ;;  %v8019_v52 = vpop.f32.mrb[97].mxu1  ;;  %v8133_v12 = vpop.f32.mrb[97].mxu0 }
 0x3b7   :  { %v8020_v39 = vadd.f32 %v8019_v52, %v8018_v48  ;;  %v8021_v45 = vpop.f32.mrb[98].mxu1  ;;  %v5815_v30 = vpop.f32.mrb[98].mxu0 }
 0x3b8   :  { %v5816_v24 = vadd.f32 %v5815_v30, %v5663_v37  ;;  %v8022_v63 = vpop.f32.mrb[99].mxu1  ;;  %v8134_v9 = vpop.f32.mrb[99].mxu0  ;;  %v5901_v17 = vmax.f32 %v5813_v55, 0.0 }
 0x3b9   :  { %v8023_v2 = vadd.f32 %v8022_v63, %v8021_v45  ;;  %v5668_v18 = vadd.f32 %v8020_v39, %v11223_v36 }
 0x3ba   :  { %v5902_v33 = vmax.f32 %v5816_v24, 0.0 }
 0x3bb   :  { %v5671_v60 = vadd.f32 %v8023_v2, %v11226_v35 }
 0x3bc   :  { %v6739_v8 = vpack.c.bf16 %v5902_v33, %v5901_v17 }
 0x3bd   :  { %v8024_v32 = vpop.f32.mrb[100].mxu1  ;;  %v5820_v29 = vpop.f32.mrb[100].mxu0 }
 0x3be   :  { %6790 = vst [vmem:[%s11352_s3 + $0x28] sm:$0xff] %v6739_v8   ;;  %v5821_v47 = vadd.f32 %v5820_v29, %v5668_v18  ;;  %v8025_v43 = vpop.f32.mrb[101].mxu1  ;;  %v8137_v14 = vpop.f32.mrb[101].mxu0 }
 0x3bf   :  { %v8026_v11 = vadd.f32 %v8025_v43, %v8024_v32  ;;  %v8027_v20 = vpop.f32.mrb[102].mxu1  ;;  %v5823_v3 = vpop.f32.mrb[102].mxu0 }
 0x3c0   :  { %v5824_v13 = vadd.f32 %v5823_v3, %v5671_v60  ;;  %v8028_v44 = vpop.f32.mrb[103].mxu1  ;;  %v8138_v36 = vpop.f32.mrb[103].mxu0  ;;  %v5903_v35 = vmax.f32 %v5821_v47, 0.0 }
 0x3c1   :  { %v8029_v28 = vadd.f32 %v8028_v44, %v8027_v20  ;;  %v5676_v0 = vadd.f32 %v8026_v11, %v11229_v6 }
 0x3c2   :  { %v5904_v50 = vmax.f32 %v5824_v13, 0.0 }
 0x3c3   :  { %v5679_v7 = vadd.f32 %v8029_v28, %v11232_v58 }
 0x3c4   :  { %v6744_v25 = vpack.c.bf16 %v5904_v50, %v5903_v35 }
 0x3c5   :  { %v8030_v23 = vpop.f32.mrb[104].mxu1  ;;  %v5828_v4 = vpop.f32.mrb[104].mxu0 }
 0x3c6   :  { %6791 = vst [vmem:[%s11352_s3 + $0x30] sm:$0xff] %v6744_v25   ;;  %v5829_v57 = vadd.f32 %v5828_v4, %v5676_v0  ;;  %v8031_v38 = vpop.f32.mrb[105].mxu1  ;;  %v8141_v42 = vpop.f32.mrb[105].mxu0 }
 0x3c7   :  { %v8032_v21 = vadd.f32 %v8031_v38, %v8030_v23  ;;  %v8033_v41 = vpop.f32.mrb[106].mxu1  ;;  %v5831_v62 = vpop.f32.mrb[106].mxu0 }
 0x3c8   :  { %v5832_v61 = vadd.f32 %v5831_v62, %v5679_v7  ;;  %v8034_v51 = vpop.f32.mrb[107].mxu1  ;;  %v8142_v6 = vpop.f32.mrb[107].mxu0  ;;  %v5905_v58 = vmax.f32 %v5829_v57, 0.0 }
 0x3c9   :  { %v8035_v53 = vadd.f32 %v8034_v51, %v8033_v41  ;;  %v5684_v5 = vadd.f32 %v8032_v21, %v11235_v15 }
 0x3ca   :  { %v5906_v37 = vmax.f32 %v5832_v61, 0.0 }
 0x3cb   :  { %v5687_v49 = vadd.f32 %v8035_v53, %v11238_v56 }
 0x3cc   :  { %v6749_v48 = vpack.c.bf16 %v5906_v37, %v5905_v58 }
 0x3cd   :  { %v8036_v27 = vpop.f32.mrb[108].mxu1  ;;  %v5836_v55 = vpop.f32.mrb[108].mxu0 }
 0x3ce   :  { %6792 = vst [vmem:[%s11352_s3 + $0x38] sm:$0xff] %v6749_v48   ;;  %v5837_v52 = vadd.f32 %v5836_v55, %v5684_v5  ;;  %v8037_v12 = vpop.f32.mrb[109].mxu1  ;;  %v8145_v39 = vpop.f32.mrb[109].mxu0 }
 0x3cf   :  { %v8038_v45 = vadd.f32 %v8037_v12, %v8036_v27  ;;  %v8039_v30 = vpop.f32.mrb[110].mxu1  ;;  %v5839_v24 = vpop.f32.mrb[110].mxu0 }
 0x3d0   :  { %v5840_v63 = vadd.f32 %v5839_v24, %v5687_v49  ;;  %v8040_v9 = vpop.f32.mrb[111].mxu1  ;;  %v8146_v15 = vpop.f32.mrb[111].mxu0  ;;  %v5907_v56 = vmax.f32 %v5837_v52, 0.0 }
 0x3d1   :  { %v8041_v2 = vadd.f32 %v8040_v9, %v8039_v30  ;;  %v5692_v18 = vadd.f32 %v8038_v45, %v11241_v26 }
 0x3d2   :  { %v5908_v17 = vmax.f32 %v5840_v63, 0.0 }
 0x3d3   :  { %v5695_v33 = vadd.f32 %v8041_v2, %v11244_v40 }
 0x3d4   :  { %v6754_v60 = vpack.c.bf16 %v5908_v17, %v5907_v56 }
 0x3d5   :  { %v8042_v8 = vpop.f32.mrb[112].mxu1  ;;  %v5844_v32 = vpop.f32.mrb[112].mxu0 }
 0x3d6   :  { %6793 = vst [vmem:[%s11352_s3 + $0x40] sm:$0xff] %v6754_v60   ;;  %v5845_v29 = vadd.f32 %v5844_v32, %v5692_v18  ;;  %v8043_v47 = vpop.f32.mrb[113].mxu1  ;;  %v8149_v43 = vpop.f32.mrb[113].mxu0 }
 0x3d7   :  { %v8044_v14 = vadd.f32 %v8043_v47, %v8042_v8  ;;  %v8045_v11 = vpop.f32.mrb[114].mxu1  ;;  %v5847_v20 = vpop.f32.mrb[114].mxu0 }
 0x3d8   :  { %v5848_v3 = vadd.f32 %v5847_v20, %v5695_v33  ;;  %v8046_v13 = vpop.f32.mrb[115].mxu1  ;;  %v8150_v26 = vpop.f32.mrb[115].mxu0  ;;  %v5909_v40 = vmax.f32 %v5845_v29, 0.0 }
 0x3d9   :  { %v8047_v44 = vadd.f32 %v8046_v13, %v8045_v11  ;;  %v5700_v36 = vadd.f32 %v8044_v14, %v11247_v16 }
 0x3da   :  { %v5910_v28 = vmax.f32 %v5848_v3, 0.0 }
 0x3db   :  { %v5703_v0 = vadd.f32 %v8047_v44, %v11250_v31 }
 0x3dc   :  { %v6759_v35 = vpack.c.bf16 %v5910_v28, %v5909_v40 }
 0x3dd   :  { %v8048_v50 = vpop.f32.mrb[116].mxu1  ;;  %v5852_v7 = vpop.f32.mrb[116].mxu0 }
 0x3de   :  { %6794 = vst [vmem:[%s11352_s3 + $0x48] sm:$0xff] %v6759_v35   ;;  %v5853_v25 = vadd.f32 %v5852_v7, %v5700_v36  ;;  %v8049_v23 = vpop.f32.mrb[117].mxu1  ;;  %v8153_v4 = vpop.f32.mrb[117].mxu0 }
 0x3df   :  { %v8050_v57 = vadd.f32 %v8049_v23, %v8048_v50  ;;  %v8051_v38 = vpop.f32.mrb[118].mxu1  ;;  %v5855_v42 = vpop.f32.mrb[118].mxu0 }
 0x3e0   :  { %v5856_v21 = vadd.f32 %v5855_v42, %v5703_v0  ;;  %v8052_v41 = vpop.f32.mrb[119].mxu1  ;;  %v8154_v16 = vpop.f32.mrb[119].mxu0  ;;  %v5911_v31 = vmax.f32 %v5853_v25, 0.0 }
 0x3e1   :  { %v8053_v62 = vadd.f32 %v8052_v41, %v8051_v38  ;;  %v5708_v61 = vadd.f32 %v8050_v57, %v11253_v54 }
 0x3e2   :  { %v5912_v51 = vmax.f32 %v5856_v21, 0.0 }
 0x3e3   :  { %v5711_v6 = vadd.f32 %v8053_v62, %v11256_v59 }
 0x3e4   :  { %v6764_v53 = vpack.c.bf16 %v5912_v51, %v5911_v31 }
 0x3e5   :  { %v8054_v5 = vpop.f32.mrb[120].mxu1  ;;  %v5860_v58 = vpop.f32.mrb[120].mxu0 }
 0x3e6   :  { %6795 = vst [vmem:[%s11352_s3 + $0x50] sm:$0xff] %v6764_v53   ;;  %v5861_v37 = vadd.f32 %v5860_v58, %v5708_v61  ;;  %v8055_v49 = vpop.f32.mrb[121].mxu1  ;;  %v8157_v48 = vpop.f32.mrb[121].mxu0 }
 0x3e7   :  { %v8056_v27 = vadd.f32 %v8055_v49, %v8054_v5  ;;  %v8057_v55 = vpop.f32.mrb[122].mxu1  ;;  %v5863_v52 = vpop.f32.mrb[122].mxu0 }
 0x3e8   :  { %v5864_v12 = vadd.f32 %v5863_v52, %v5711_v6  ;;  %v8058_v39 = vpop.f32.mrb[123].mxu1  ;;  %v8158_v54 = vpop.f32.mrb[123].mxu0  ;;  %v5913_v59 = vmax.f32 %v5861_v37, 0.0 }
 0x3e9   :  { %v8059_v45 = vadd.f32 %v8058_v39, %v8057_v55  ;;  %v5716_v30 = vadd.f32 %v8056_v27, %v11259_v1 }
 0x3ea   :  { %v5914_v24 = vmax.f32 %v5864_v12, 0.0 }
 0x3eb   :  { %v5719_v63 = vadd.f32 %v8059_v45, %v11262_v46 }
 0x3ec   :  { %v6769_v9 = vpack.c.bf16 %v5914_v24, %v5913_v59 }
 0x3ed   :  { %v8060_v15 = vpop.f32.mrb[124].mxu1  ;;  %v5868_v2 = vpop.f32.mrb[124].mxu0 }
 0x3ee   :  { %6796 = vst [vmem:[%s11352_s3 + $0x58] sm:$0xff] %v6769_v9   ;;  %v5869_v18 = vadd.f32 %v5868_v2, %v5716_v30  ;;  %v8061_v56 = vpop.f32.mrb[125].mxu1  ;;  %v8161_v17 = vpop.f32.mrb[125].mxu0 }
 0x3ef   :  { %v8062_v33 = vadd.f32 %v8061_v56, %v8060_v15  ;;  %v8063_v60 = vpop.f32.mrb[126].mxu1  ;;  %v5871_v8 = vpop.f32.mrb[126].mxu0 }
 0x3f0   :  { %v5872_v32 = vadd.f32 %v5871_v8, %v5719_v63  ;;  %v8064_v29 = vpop.f32.mrb[127].mxu1  ;;  %v8162_v1 = vpop.f32.mrb[127].mxu0  ;;  %v5915_v46 = vmax.f32 %v5869_v18, 0.0 }
 0x3f1   :  { %v8065_v47 = vadd.f32 %v8064_v29, %v8063_v60  ;;  %v5724_v43 = vadd.f32 %v8062_v33, %v11265_v10 }
 0x3f2   :  { %v5916_v14 = vmax.f32 %v5872_v32, 0.0 }
 0x3f3   :  { %v5727_v11 = vadd.f32 %v8065_v47, %v11268_v19 }
 0x3f4   :  { %v6774_v20 = vpack.c.bf16 %v5916_v14, %v5915_v46 }
 0x3f5   :  { %v8066_v3 = vpop.f32.mrb[128].mxu1  ;;  %v5876_v13 = vpop.f32.mrb[128].mxu0 }
 0x3f6   :  { %6797 = vst [vmem:[%s11352_s3 + $0x60] sm:$0xff] %v6774_v20   ;;  %v5877_v26 = vadd.f32 %v5876_v13, %v5724_v43  ;;  %v8067_v44 = vpop.f32.mrb[129].mxu1  ;;  %v8165_v36 = vpop.f32.mrb[129].mxu0 }
 0x3f7   :  { %v8068_v40 = vadd.f32 %v8067_v44, %v8066_v3  ;;  %v8069_v28 = vpop.f32.mrb[130].mxu1  ;;  %v5879_v0 = vpop.f32.mrb[130].mxu0 }
 0x3f8   :  { %v5880_v35 = vadd.f32 %v5879_v0, %v5727_v11  ;;  %v8070_v50 = vpop.f32.mrb[131].mxu1  ;;  %v8166_v10 = vpop.f32.mrb[131].mxu0  ;;  %v5917_v19 = vmax.f32 %v5877_v26, 0.0 }
 0x3f9   :  { %v8071_v7 = vadd.f32 %v8070_v50, %v8069_v28  ;;  %v5732_v25 = vadd.f32 %v8068_v40, %v11270_v22 }
 0x3fa   :  { %v5918_v23 = vmax.f32 %v5880_v35, 0.0 }
 0x3fb   :  { %v5735_v4 = vadd.f32 %v8071_v7, %v11273_v34 }
 0x3fc   :  { %v6779_v57 = vpack.c.bf16 %v5918_v23, %v5917_v19 }
 0x3fd   :  { %v5884_v38 = vpop.f32.mrb[132].mxu0 }
 0x3fe   :  { %6798 = vst [vmem:[%s11352_s3 + $0x68] sm:$0xff] %v6779_v57   ;;  %v5885_v42 = vadd.f32 %v5884_v38, %v5732_v25  ;;  %v8169_v21 = vpop.f32.mrb[133].mxu0 }
 0x3ff   :  { %v5887_v41 = vpop.f32.mrb[134].mxu0 }
 0x400   :  { %v5888_v16 = vadd.f32 %v5887_v41, %v5735_v4  ;;  %v8170_v62 = vpop.f32.mrb[135].mxu0  ;;  %v5919_v61 = vmax.f32 %v5885_v42, 0.0 }
 0x402   :  { %v5920_v31 = vmax.f32 %v5888_v16, 0.0 }
 0x404   :  { %v6784_v51 = vpack.c.bf16 %v5920_v31, %v5919_v61 }
 0x406   :  { %6799 = vst [vmem:[%s11352_s3 + $0x70] sm:$0xff] %v6784_v51  }

// kernel: dqn_forward.5
= control target key start
LH: loop header
LB: loop body
LE: loop exit
PB: predicated region body
PF: predicated region fallthrough
CT: control target
= control target key end

     0   :  { %10 = vsyncpa [#allocation3], 0  ;;  %s4283_s0 = inlined_call_operand.vmem [shape: bf16[2,14,3200], index: 0, kind: input, shape index: {}]   ;;  %s4284_s1 = inlined_call_operand.vmem [shape: bf16[3200,128], index: 1, kind: input, shape index: {}]   ;;  %s4285_s2 = inlined_call_operand.vmem [shape: f32[1,128], index: 2, kind: input, shape index: {}]   ;;  %s4286_s3 = inlined_call_operand.vmem [shape: f32[2,14,128], index: 3, kind: input, shape index: {}]   ;;  %s4287_s4 = inlined_call_operand.vmem [shape: f32[1,128], index: 4, kind: input, shape index: {}]   ;;  %s4288_s5 = inlined_call_operand.hbm [shape: f32[2,1,128], index: 5, kind: output, shape index: {}]  }
   0x1   :  { %12 = vsyncpa [#allocation3 + $0x1], 0  ;;  %s3538_s18 = smov 0   ;;  %s3540_s19 = smov 0  }
   0x2   :  { %s3542_s20 = smov 0   ;;  %s3544_s21 = smov 0  }
   0x3 LB: > { %s3559_s22 = sadd.s32 4294967295, %s3503_s21   ;;  %s2629_s23 = sadd.s32 4294967294, %s3503_s21   ;;  %s3503_s21 = sphi %s3544_s21, %s4294_s21   ;;  %s3499_s20 = sphi %s3542_s20, %s4293_s20   ;;  %s3495_s19 = sphi %s3540_s19, %s4292_s19   ;;  %s3491_s18 = sphi %s3538_s18, %s4291_s18  }
   0x4   : > { %s3563_s24 = sadd.s32 1, %s3503_s21   ;;  %s135_s25 = sadd.s32 1, %s3499_s20 }
   0x5   : > { %s132_s26 = ssub.s32 %s3503_s21, %s3563_s24  ;;  %p145_p0 = scmp.ne.s32.totalorder %s3499_s20, %s3495_s19 }
   0x6   : > { %p133_p1 = scmp.eq.s32.totalorder %s132_s26, 0  ;;  %p146_p2 = scmp.eq.s32.totalorder %s3559_s22, 1 }
   0x7   : > { %p151_p3 = scmp.ne.s32.totalorder %s3495_s19, %s3491_s18  ;;  %p152_p4 = scmp.eq.s32.totalorder %s2629_s23, 1 }
   0x8   : > { %s3574_s27 = scalar_select %p133_p1, %s3499_s20, %s135_s25  }
   0x9   : > { %p3576_p5 = por %p146_p2, %p145_p0  ;;  %p3580_p6 = por %p152_p4, %p151_p3 }
   0xa   : > { %p2632_p7 = scmp.ge.s32.totalorder %s3503_s21, 1  ;;  %p190_p8 = scmp.lt.s32.totalorder %s3503_s21, 3 }
   0xc   : > { %p191_p9 = pnand %p2632_p7, %p190_p8 }
   0xd   : > { %v3204_v0 = vld [vmem:[%s4284_s1 + $0x40] sm:$0xff] (!%p191_p9)   ;;  %v3208_v4 = vld [vmem:[%s4284_s1 + $0x48] sm:$0xff] (!%p191_p9)   ;;  %v3212_v8 = vld [vmem:[%s4284_s1 + $0x50] sm:$0xff] (!%p191_p9)   ;;  %p217_p10 = scmp.lt.s32.totalorder (!%p191_p9), %s3559_s22, 1  ;;  %vm3506_vm0 = vmmov (!%p191_p9), 0   ;;  %vm2524_vm1 = vcmask (!%p191_p9), 1045504  }
   0xe   : > { %194 = sbr.rel (%p191_p9) target bundleno = 687 (0x2af), region = 40  ;;  %v3205_v1 = vld [vmem:[%s4284_s1] sm:$0xff] (!%p191_p9)   ;;  %2865 = vmatprep.subr.bf16.mxu0 (!%p191_p9), %v3204_v0  ;;  %v3209_v5 = vld [vmem:[%s4284_s1 + $0x8] sm:$0xff] (!%p191_p9)   ;;  %v3213_v9 = vld [vmem:[%s4284_s1 + $0x10] sm:$0xff] (!%p191_p9)   ;;  %s215_s10 = sand.u32 (!%p191_p9), 1, %s3495_s19  }
   0xf   : > { %v3206_v2 = vld [vmem:[%s4284_s1 + $0xc0] sm:$0xff] (!%p191_p9)   ;;  %2866 = vmatpush3.bf16.msra.mxu0 (!%p191_p9), %v3205_v1  ;;  %v3210_v6 = vld [vmem:[%s4284_s1 + $0xc8] sm:$0xff] (!%p191_p9)   ;;  %v3214_v10 = vld [vmem:[%s4284_s1 + $0xd0] sm:$0xff] (!%p191_p9)   ;;  %s2862_s14 = sshll.u32 (!%p191_p9), %s3559_s22, 4  ;;  %s216_s17 = scalar_lea.vmem (!%p191_p9), [#allocation2], %s215_s10 }
  0x10   : > { %v3207_v3 = vld [vmem:[%s4284_s1 + $0x80] sm:$0xff] (!%p191_p9)   ;;  %2887 = vmatprep.subr.bf16.mxu1 (!%p191_p9), %v3206_v2  ;;  %2867 = vmatprep.subr.bf16.mxu0 (!%p191_p9), %v3208_v4  ;;  %v3211_v7 = vld [vmem:[%s4284_s1 + $0x88] sm:$0xff] (!%p191_p9)   ;;  %v3215_v11 = vld [vmem:[%s4284_s1 + $0x90] sm:$0xff] (!%p191_p9)   ;;  %s4241_s26 = scalar_lea.hbm (!%p191_p9), %s4288_s5, %s2862_s14  ;;  %s2562_s30 = scalar_lea.sflag (!%p191_p9), [#allocation3], %s215_s10 }
  0x11   : > { %2888 = vmatpush3.bf16.msra.mxu1 (!%p191_p9), %v3207_v3  ;;  %v3216_v12 = vld [vmem:[%s4284_s1 + $0x58] sm:$0xff] (!%p191_p9)   ;;  %v3220_v16 = vld [vmem:[%s4284_s1 + $0x60] sm:$0xff] (!%p191_p9)   ;;  %v3224_v20 = vld [vmem:[%s4284_s1 + $0x68] sm:$0xff] (!%p191_p9)   ;;  %s3507_s6 = smov (!%p191_p9), [#allocation2]  }
  0x12   : > { %2889 = vmatprep.subr.bf16.mxu1 (!%p191_p9), %v3210_v6  ;;  %v3217_v13 = vld [vmem:[%s4284_s1 + $0x18] sm:$0xff] (!%p191_p9)   ;;  %v3221_v17 = vld [vmem:[%s4284_s1 + $0x20] sm:$0xff] (!%p191_p9)   ;;  %v3225_v21 = vld [vmem:[%s4284_s1 + $0x28] sm:$0xff] (!%p191_p9)   ;;  %s3445_s7 = sshll.u32 (!%p191_p9), %s3507_s6, 4  ;;  %s3446_s7 = int_to_ptr.vmem [resolvable:$false] %s3445_s7 }
  0x13   : > { %2868 = vmatpush3.bf16.msra.mxu0 (!%p191_p9), %v3209_v5  ;;  %v3218_v14 = vld [vmem:[%s4284_s1 + $0xd8] sm:$0xff] (!%p191_p9)   ;;  %v3222_v18 = vld [vmem:[%s4284_s1 + $0xe0] sm:$0xff] (!%p191_p9)   ;;  %v3226_v22 = vld [vmem:[%s4284_s1 + $0xe8] sm:$0xff] (!%p191_p9)  }
  0x14   : > { %2869 = vmatprep.subr.bf16.mxu0 (!%p191_p9), %v3212_v8  ;;  %v3219_v15 = vld [vmem:[%s4284_s1 + $0x98] sm:$0xff] (!%p191_p9)   ;;  %v3223_v19 = vld [vmem:[%s4284_s1 + $0xa0] sm:$0xff] (!%p191_p9)   ;;  %v3227_v23 = vld [vmem:[%s4284_s1 + $0xa8] sm:$0xff] (!%p191_p9)  }
  0x15   : > { %2890 = vmatpush3.bf16.msra.mxu1 %v3211_v7  ;;  %s218_s15 = scalar_select %p217_p10, %s3559_s22, 1  ;;  %v3228_v24 = vld [vmem:[%s4284_s1 + $0x70] sm:$0xff]   ;;  %v3232_v28 = vld [vmem:[%s4284_s1 + $0x78] sm:$0xff]   ;;  %v3239_v34 = vld [vmem:[%s4284_s1 + $0x140] sm:$0xff]  }
  0x16   : > { %2891 = vmatprep.subr.bf16.mxu1 %v3214_v10  ;;  %v3229_v25 = vld [vmem:[%s4284_s1 + $0x30] sm:$0xff]   ;;  %v3233_v29 = vld [vmem:[%s4284_s1 + $0x38] sm:$0xff]   ;;  %v3243_v37 = vld [vmem:[%s4284_s1 + $0x100] sm:$0xff]  }
  0x17   : > { %2870 = vmatpush3.bf16.msra.mxu0 %v3213_v9  ;;  %s3158_s8 = smul.u32 200, %s218_s15  ;;  %v3230_v26 = vld [vmem:[%s4284_s1 + $0xf0] sm:$0xff]   ;;  %v3234_v30 = vld [vmem:[%s4284_s1 + $0xf8] sm:$0xff]   ;;  %v3244_v38 = vld [vmem:[%s4284_s1 + $0x1c0] sm:$0xff]   ;;  %s2574_s15 = sshll.u32 %s216_s17, 4  ;;  %s4243_s15 = int_to_ptr.vmem [resolvable:$true] %s2574_s15 }
  0x18   : > { %2871 = vmatprep.subr.bf16.mxu0 %v3216_v12  ;;  %v3231_v27 = vld [vmem:[%s4284_s1 + $0xb0] sm:$0xff]   ;;  %v3238_v33 = vld [vmem:[%s4284_s1 + $0xb8] sm:$0xff]   ;;  %v3245_v39 = vld [vmem:[%s4284_s1 + $0x180] sm:$0xff]   ;;  %s3441_s22 = scalar_lea.vmem %s4243_s15, 16  ;;  %p3448_p0 = scmp.lt.s32.totalorder %s4243_s15, %s3446_s7 }
  0x19   : > { %2892 = vmatpush3.bf16.msra.mxu1 %v3215_v11  ;;  %s3678_s25 = scalar_lea.vmem %s4283_s0, %s3158_s8  ;;  %v3246_v40 = vld [vmem:[%s4284_s1 + $0x148] sm:$0xff]   ;;  %v3250_v44 = vld [vmem:[%s4284_s1 + $0x150] sm:$0xff]   ;;  %v3254_v48 = vld [vmem:[%s4284_s1 + $0x158] sm:$0xff]   ;;  %p3442_p11 = scmp.ne.s32.totalorder %s4243_s15, %s3441_s22 }
  0x1a   : > { %2893 = vmatprep.subr.bf16.mxu1 %v3218_v14  ;;  %v3235_v31 = vld [vmem:[%s3678_s25] ss:$100 sps:$4 sm:$0x7f]   ;;  %v3240_v35 = vld [vmem:[%s3678_s25 + $0x8] ss:$100 sps:$4 sm:$0x7f]  }
  0x1b   : > { %2872 = vmatpush3.bf16.msra.mxu0 %v3217_v13  ;;  %v3237_v32 = vld [vmem:[%s3678_s25 + $0x4] ss:$100 sps:$4 sm:$0x7f]   ;;  %v3242_v36 = vld [vmem:[%s3678_s25 + $0xc] ss:$100 sps:$4 sm:$0x7f]   ;;  %p3443_p12 = pnand %p3442_p11, %p3576_p5 }
  0x1c   : > { %2873 = vmatprep.subr.bf16.mxu0 %v3220_v16  ;;  %2014 = vmatprep.mubr.bf16.mxu0 %v3237_v32  ;;  %v3247_v41 = vld [vmem:[%s4284_s1 + $0x108] sm:$0xff]   ;;  %v3251_v45 = vld [vmem:[%s4284_s1 + $0x110] sm:$0xff]   ;;  %v3255_v49 = vld [vmem:[%s4284_s1 + $0x118] sm:$0xff]   ;;  %s3447_s8 = scalar_lea.vmem %s3446_s7, 32 }
  0x1d   : > { %2894 = vmatpush3.bf16.msra.mxu1 %v3219_v15  ;;  %2055 = vmatprep.mubr.bf16.mxu1 %v3242_v36  ;;  %v3248_v42 = vld [vmem:[%s4284_s1 + $0x1c8] sm:$0xff]   ;;  %v3252_v46 = vld [vmem:[%s4284_s1 + $0x1d0] sm:$0xff]   ;;  %v3256_v50 = vld [vmem:[%s4284_s1 + $0x1d8] sm:$0xff]   ;;  %p3444_p13 = pneg %p3443_p12  ;;  %p3449_p1 = scmp.lt.s32.totalorder %s3447_s8, %s3441_s22 }
  0x1e   : > { %2895 = vmatprep.subr.bf16.mxu1 %v3222_v18  ;;  %v3249_v43 = vld [vmem:[%s4284_s1 + $0x188] sm:$0xff]   ;;  %v3253_v47 = vld [vmem:[%s4284_s1 + $0x190] sm:$0xff]   ;;  %v3257_v51 = vld [vmem:[%s4284_s1 + $0x198] sm:$0xff]  }
  0x1f   : > { %2874 = vmatpush3.bf16.msra.mxu0 %v3221_v17  ;;  %v3258_v52 = vld [vmem:[%s4284_s1 + $0x160] sm:$0xff]   ;;  %v3262_v56 = vld [vmem:[%s4284_s1 + $0x168] sm:$0xff]   ;;  %v3266_v60 = vld [vmem:[%s4284_s1 + $0x170] sm:$0xff]   ;;  %p3450_p2 = por %p3449_p1, %p3448_p0 }
  0x20   : > { %2875 = vmatprep.subr.bf16.mxu0 %v3224_v20  ;;  %v3259_v53 = vld [vmem:[%s4284_s1 + $0x120] sm:$0xff]   ;;  %v3263_v57 = vld [vmem:[%s4284_s1 + $0x128] sm:$0xff]   ;;  %v3267_v61 = vld [vmem:[%s4284_s1 + $0x130] sm:$0xff]  }
  0x21   : > { %2896 = vmatpush3.bf16.msra.mxu1 %v3223_v19  ;;  %v3260_v54 = vld [vmem:[%s4284_s1 + $0x1e0] sm:$0xff]   ;;  %v3264_v58 = vld [vmem:[%s4284_s1 + $0x1e8] sm:$0xff]   ;;  %v3268_v62 = vld [vmem:[%s4284_s1 + $0x1f0] sm:$0xff]   ;;  %p3451_p3 = pnand %p3450_p2, %p3444_p13 }
  0x22   : > { %2897 = vmatprep.subr.bf16.mxu1 %v3226_v22  ;;  %v3261_v55 = vld [vmem:[%s4284_s1 + $0x1a0] sm:$0xff]   ;;  %v3265_v59 = vld [vmem:[%s4284_s1 + $0x1a8] sm:$0xff]   ;;  %v3269_v63 = vld [vmem:[%s4284_s1 + $0x1b0] sm:$0xff]  }
  0x23   : > { %2876 = vmatpush3.bf16.msra.mxu0 %v3225_v21  ;;  %v3270_v0 = vld [vmem:[%s4284_s1 + $0x178] sm:$0xff]   ;;  %v3273_v3 = vld [vmem:[%s3678_s25 + $0x10] ss:$100 sps:$4 sm:$0x7f]   ;;  %v3277_v6 = vld [vmem:[%s4284_s1 + $0x240] sm:$0xff]  }
  0x24   : > { %2877 = vmatprep.subr.bf16.mxu0 %v3228_v24  ;;  %v3271_v1 = vld [vmem:[%s4284_s1 + $0x138] sm:$0xff]   ;;  %v3281_v9 = vld [vmem:[%s4284_s1 + $0x200] sm:$0xff]   ;;  %v3284_v12 = vld [vmem:[%s4284_s1 + $0x248] sm:$0xff]  }
  0x25   : > { %2898 = vmatpush3.bf16.msra.mxu1 %v3227_v23  ;;  %v3272_v2 = vld [vmem:[%s4284_s1 + $0x1f8] sm:$0xff]   ;;  %v3282_v10 = vld [vmem:[%s4284_s1 + $0x2c0] sm:$0xff]   ;;  %v3285_v13 = vld [vmem:[%s4284_s1 + $0x208] sm:$0xff]  }
  0x26   : > { %2899 = vmatprep.subr.bf16.mxu1 %v3230_v26  ;;  %v3275_v4 = vld [vmem:[%s3678_s25 + $0x14] ss:$100 sps:$4 sm:$0x7f]   ;;  %v3280_v8 = vld [vmem:[%s3678_s25 + $0x1c] ss:$100 sps:$4 sm:$0x7f]  }
  0x27   : > { %2878 = vmatpush3.bf16.msra.mxu0 %v3229_v25  ;;  %v3276_v5 = vld [vmem:[%s4284_s1 + $0x1b8] sm:$0xff]   ;;  %v3283_v11 = vld [vmem:[%s4284_s1 + $0x280] sm:$0xff]   ;;  %v3286_v14 = vld [vmem:[%s4284_s1 + $0x2c8] sm:$0xff]  }
  0x28   : > { %2879 = vmatprep.subr.bf16.mxu0 %v3232_v28  ;;  %v3278_v7 = vld [vmem:[%s3678_s25 + $0x18] ss:$100 sps:$4 sm:$0x7f]   ;;  %v3287_v15 = vld [vmem:[%s4284_s1 + $0x288] sm:$0xff]   ;;  %v3288_v16 = vld [vmem:[%s4284_s1 + $0x250] sm:$0xff]  }
  0x29   : > { %2900 = vmatpush3.bf16.msra.mxu1 %v3231_v27  ;;  %v3289_v17 = vld [vmem:[%s4284_s1 + $0x210] sm:$0xff]   ;;  %v3292_v20 = vld [vmem:[%s4284_s1 + $0x258] sm:$0xff]   ;;  %v3296_v24 = vld [vmem:[%s4284_s1 + $0x260] sm:$0xff]  }
  0x2a   : > { %2901 = vmatprep.subr.bf16.mxu1 %v3234_v30  ;;  %v3290_v18 = vld [vmem:[%s4284_s1 + $0x2d0] sm:$0xff]   ;;  %v3293_v21 = vld [vmem:[%s4284_s1 + $0x218] sm:$0xff]   ;;  %v3297_v25 = vld [vmem:[%s4284_s1 + $0x220] sm:$0xff]  }
  0x2b   : > { %2880 = vmatpush3.bf16.msra.mxu0 %v3233_v29  ;;  %v3291_v19 = vld [vmem:[%s4284_s1 + $0x290] sm:$0xff]   ;;  %v3294_v22 = vld [vmem:[%s4284_s1 + $0x2d8] sm:$0xff]   ;;  %v3298_v26 = vld [vmem:[%s4284_s1 + $0x2e0] sm:$0xff]  }
  0x2c   : > { %2909 = vmatprep.subr.bf16.mxu0 %v3239_v34  ;;  %v3295_v23 = vld [vmem:[%s4284_s1 + $0x298] sm:$0xff]   ;;  %v3299_v27 = vld [vmem:[%s4284_s1 + $0x2a0] sm:$0xff]   ;;  %v3300_v28 = vld [vmem:[%s4284_s1 + $0x268] sm:$0xff]  }
  0x2d   : > { %2902 = vmatpush3.bf16.msra.mxu1 %v3238_v33  ;;  %v3301_v29 = vld [vmem:[%s4284_s1 + $0x228] sm:$0xff]   ;;  %v3304_v32 = vld [vmem:[%s4284_s1 + $0x270] sm:$0xff]   ;;  %v3308_v36 = vld [vmem:[%s4284_s1 + $0x278] sm:$0xff]  }
  0x2e   : > { %2015 = vmatmul.mubr.bf16.vlgmr.msra.gmra.mrb[0].mxu0 %v3235_v31  ;;  %2931 = vmatprep.subr.bf16.mxu1 %v3244_v38  ;;  %v3302_v30 = vld [vmem:[%s4284_s1 + $0x2e8] sm:$0xff]   ;;  %v3305_v33 = vld [vmem:[%s4284_s1 + $0x230] sm:$0xff]   ;;  %v3310_v38 = vld [vmem:[%s4284_s1 + $0x2f8] sm:$0xff]  }
  0x2f   : > { %2910 = vmatpush3.bf16.msra.mxu0 %v3243_v37  ;;  %2096 = vmatprep.mubr.bf16.mxu0 %v3275_v4  ;;  %v3303_v31 = vld [vmem:[%s4284_s1 + $0x2a8] sm:$0xff]   ;;  %v3306_v34 = vld [vmem:[%s4284_s1 + $0x2f0] sm:$0xff]   ;;  %v3309_v37 = vld [vmem:[%s4284_s1 + $0x238] sm:$0xff]  }
  0x30   : > { %2056 = vmatmul.mubr.bf16.vlgmr.msra.gmra.mrb[0].mxu1 %v3240_v35  ;;  %2911 = vmatprep.subr.bf16.mxu0 %v3246_v40  ;;  %v3307_v35 = vld [vmem:[%s4284_s1 + $0x2b0] sm:$0xff]   ;;  %v3313_v40 = vld [vmem:[%s3678_s25 + $0x24] ss:$100 sps:$4 sm:$0x7f]  }
  0x31   : > { %2932 = vmatpush3.bf16.msra.mxu1 %v3245_v39  ;;  %2137 = vmatprep.mubr.bf16.mxu1 %v3280_v8  ;;  %v3311_v39 = vld [vmem:[%s3678_s25 + $0x20] ss:$100 sps:$4 sm:$0x7f]   ;;  %v3342_v4 = vld [vmem:[%s4284_s1 + $0x370] sm:$0xff]   ;;  %v3346_v8 = vld [vmem:[%s4284_s1 + $0x378] sm:$0xff]  }
  0x32   : > { %2933 = vmatprep.subr.bf16.mxu1 %v3248_v42  ;;  %v3315_v42 = vld [vmem:[%s4284_s1 + $0x340] sm:$0xff]  }
  0x33   : > { %2912 = vmatpush3.bf16.msra.mxu0 %v3247_v41  ;;  %v3314_v41 = vld [vmem:[%s4284_s1 + $0x2b8] sm:$0xff]  }
  0x34   : > { %2913 = vmatprep.subr.bf16.mxu0 %v3250_v44  ;;  %v3318_v44 = vld [vmem:[%s3678_s25 + $0x2c] ss:$100 sps:$4 sm:$0x7f]  }
  0x35   : > { %2934 = vmatpush3.bf16.msra.mxu1 %v3249_v43  ;;  %v3316_v43 = vld [vmem:[%s3678_s25 + $0x28] ss:$100 sps:$4 sm:$0x7f]  }
  0x36   : > { %2935 = vmatprep.subr.bf16.mxu1 %v3252_v46  ;;  %v3320_v46 = vld [vmem:[%s4284_s1 + $0x3c0] sm:$0xff]  }
  0x37   : > { %2914 = vmatpush3.bf16.msra.mxu0 %v3251_v45  ;;  %v3319_v45 = vld [vmem:[%s4284_s1 + $0x300] sm:$0xff]  }
  0x38   : > { %2915 = vmatprep.subr.bf16.mxu0 %v3254_v48  ;;  %v3322_v48 = vld [vmem:[%s4284_s1 + $0x348] sm:$0xff]  }
  0x39   : > { %2936 = vmatpush3.bf16.msra.mxu1 %v3253_v47  ;;  %v3321_v47 = vld [vmem:[%s4284_s1 + $0x380] sm:$0xff]  }
  0x3a   : > { %2937 = vmatprep.subr.bf16.mxu1 %v3256_v50  ;;  %v3324_v50 = vld [vmem:[%s4284_s1 + $0x3c8] sm:$0xff]  }
  0x3b   : > { %2916 = vmatpush3.bf16.msra.mxu0 %v3255_v49  ;;  %v3323_v49 = vld [vmem:[%s4284_s1 + $0x308] sm:$0xff]  }
  0x3c   : > { %2917 = vmatprep.subr.bf16.mxu0 %v3258_v52  ;;  %v3326_v52 = vld [vmem:[%s4284_s1 + $0x350] sm:$0xff]  }
  0x3d   : > { %2938 = vmatpush3.bf16.msra.mxu1 %v3257_v51  ;;  %v3325_v51 = vld [vmem:[%s4284_s1 + $0x388] sm:$0xff]  }
  0x3e   : > { %2939 = vmatprep.subr.bf16.mxu1 %v3260_v54  ;;  %v3328_v54 = vld [vmem:[%s4284_s1 + $0x3d0] sm:$0xff]  }
  0x3f   : > { %2918 = vmatpush3.bf16.msra.mxu0 %v3259_v53  ;;  %v3327_v53 = vld [vmem:[%s4284_s1 + $0x310] sm:$0xff]  }
  0x40   : > { %2919 = vmatprep.subr.bf16.mxu0 %v3262_v56  ;;  %v3330_v56 = vld [vmem:[%s4284_s1 + $0x358] sm:$0xff]  }
  0x41   : > { %2940 = vmatpush3.bf16.msra.mxu1 %v3261_v55  ;;  %v3329_v55 = vld [vmem:[%s4284_s1 + $0x390] sm:$0xff]  }
  0x42   : > { %2941 = vmatprep.subr.bf16.mxu1 %v3264_v58  ;;  %v3332_v58 = vld [vmem:[%s4284_s1 + $0x3d8] sm:$0xff]  }
  0x43   : > { %2920 = vmatpush3.bf16.msra.mxu0 %v3263_v57  ;;  %v3331_v57 = vld [vmem:[%s4284_s1 + $0x318] sm:$0xff]  }
  0x44   : > { %2921 = vmatprep.subr.bf16.mxu0 %v3266_v60  ;;  %v3334_v60 = vld [vmem:[%s4284_s1 + $0x360] sm:$0xff]  }
  0x45   : > { %2942 = vmatpush3.bf16.msra.mxu1 %v3265_v59  ;;  %v3333_v59 = vld [vmem:[%s4284_s1 + $0x398] sm:$0xff]  }
  0x46   : > { %2943 = vmatprep.subr.bf16.mxu1 %v3268_v62  ;;  %v3336_v62 = vld [vmem:[%s4284_s1 + $0x3e0] sm:$0xff]  }
  0x47   : > { %2922 = vmatpush3.bf16.msra.mxu0 %v3267_v61  ;;  %v3335_v61 = vld [vmem:[%s4284_s1 + $0x320] sm:$0xff]  }
  0x48   : > { %2923 = vmatprep.subr.bf16.mxu0 %v3270_v0  ;;  %v3338_v0 = vld [vmem:[%s4284_s1 + $0x368] sm:$0xff]  }
  0x49   : > { %2944 = vmatpush3.bf16.msra.mxu1 %v3269_v63  ;;  %v3337_v63 = vld [vmem:[%s4284_s1 + $0x3a0] sm:$0xff]  }
  0x4a   : > { %2945 = vmatprep.subr.bf16.mxu1 %v3272_v2  ;;  %v3340_v2 = vld [vmem:[%s4284_s1 + $0x3e8] sm:$0xff]  }
  0x4b   : > { %2924 = vmatpush3.bf16.msra.mxu0 %v3271_v1  ;;  %v3339_v1 = vld [vmem:[%s4284_s1 + $0x328] sm:$0xff]  }
  0x4c   : > { %2953 = vmatprep.subr.bf16.mxu0 %v3277_v6  ;;  %v3344_v6 = vld [vmem:[%s4284_s1 + $0x3f0] sm:$0xff]  }
  0x4d   : > { %2946 = vmatpush3.bf16.msra.mxu1 %v3276_v5  ;;  %v3343_v5 = vld [vmem:[%s4284_s1 + $0x330] sm:$0xff]  }
  0x4e   : > { %2097 = vmatmul.mubr.bf16.vlgmr.msra.gmra.mrb[4].mxu0 %v3273_v3  ;;  %2975 = vmatprep.subr.bf16.mxu1 %v3282_v10  ;;  %v3341_v3 = vld [vmem:[%s4284_s1 + $0x3a8] sm:$0xff]   ;;  %v3348_v10 = vld [vmem:[%s4284_s1 + $0x3f8] sm:$0xff]  }
  0x4f   : > { %2954 = vmatpush3.bf16.msra.mxu0 %v3281_v9  ;;  %2178 = vmatprep.mubr.bf16.mxu0 %v3313_v40  ;;  %v3347_v9 = vld [vmem:[%s4284_s1 + $0x338] sm:$0xff]   ;;  %v3380_v40 = vld [vmem:[%s4284_s1 + $0x470] sm:$0xff]  }
  0x50   : > { %2138 = vmatmul.mubr.bf16.vlgmr.msra.gmra.mrb[4].mxu1 %v3278_v7  ;;  %2955 = vmatprep.subr.bf16.mxu0 %v3284_v12  ;;  %v3345_v7 = vld [vmem:[%s4284_s1 + $0x3b0] sm:$0xff]  }
  0x51   : > { %2976 = vmatpush3.bf16.msra.mxu1 %v3283_v11  ;;  %2219 = vmatprep.mubr.bf16.mxu1 %v3318_v44  ;;  %v3349_v11 = vld [vmem:[%s3678_s25 + $0x30] ss:$100 sps:$4 sm:$0x7f]   ;;  %v3384_v44 = vld [vmem:[%s4284_s1 + $0x478] sm:$0xff]  }
  0x52   : > { %2977 = vmatprep.subr.bf16.mxu1 %v3286_v14  ;;  %v3351_v12 = vld [vmem:[%s3678_s25 + $0x34] ss:$100 sps:$4 sm:$0x7f]   ;;  %v3353_v14 = vld [vmem:[%s4284_s1 + $0x440] sm:$0xff]  }
  0x53   : > { %2956 = vmatpush3.bf16.msra.mxu0 %v3285_v13  ;;  %v3352_v13 = vld [vmem:[%s4284_s1 + $0x3b8] sm:$0xff]  }
  0x54   : > { %2957 = vmatprep.subr.bf16.mxu0 %v3288_v16  ;;  %v3356_v16 = vld [vmem:[%s3678_s25 + $0x3c] ss:$100 sps:$4 sm:$0x7f]  }
  0x55   : > { %2978 = vmatpush3.bf16.msra.mxu1 %v3287_v15  ;;  %v3354_v15 = vld [vmem:[%s3678_s25 + $0x38] ss:$100 sps:$4 sm:$0x7f]  }
  0x56   : > { %2979 = vmatprep.subr.bf16.mxu1 %v3290_v18  ;;  %v3358_v18 = vld [vmem:[%s4284_s1 + $0x4c0] sm:$0xff]  }
  0x57   : > { %2958 = vmatpush3.bf16.msra.mxu0 %v3289_v17  ;;  %v3357_v17 = vld [vmem:[%s4284_s1 + $0x400] sm:$0xff]  }
  0x58   : > { %2959 = vmatprep.subr.bf16.mxu0 %v3292_v20  ;;  %v3360_v20 = vld [vmem:[%s4284_s1 + $0x448] sm:$0xff]  }
  0x59   : > { %2980 = vmatpush3.bf16.msra.mxu1 %v3291_v19  ;;  %v3359_v19 = vld [vmem:[%s4284_s1 + $0x480] sm:$0xff]  }
  0x5a   : > { %2981 = vmatprep.subr.bf16.mxu1 %v3294_v22  ;;  %v3362_v22 = vld [vmem:[%s4284_s1 + $0x4c8] sm:$0xff]  }
  0x5b   : > { %2960 = vmatpush3.bf16.msra.mxu0 %v3293_v21  ;;  %v3361_v21 = vld [vmem:[%s4284_s1 + $0x408] sm:$0xff]  }
  0x5c   : > { %2961 = vmatprep.subr.bf16.mxu0 %v3296_v24  ;;  %v3364_v24 = vld [vmem:[%s4284_s1 + $0x450] sm:$0xff]  }
  0x5d   : > { %2982 = vmatpush3.bf16.msra.mxu1 %v3295_v23  ;;  %v3363_v23 = vld [vmem:[%s4284_s1 + $0x488] sm:$0xff]  }
  0x5e   : > { %2983 = vmatprep.subr.bf16.mxu1 %v3298_v26  ;;  %v3366_v26 = vld [vmem:[%s4284_s1 + $0x4d0] sm:$0xff]  }
  0x5f   : > { %2962 = vmatpush3.bf16.msra.mxu0 %v3297_v25  ;;  %v3365_v25 = vld [vmem:[%s4284_s1 + $0x410] sm:$0xff]  }
  0x60   : > { %2963 = vmatprep.subr.bf16.mxu0 %v3300_v28  ;;  %v3368_v28 = vld [vmem:[%s4284_s1 + $0x458] sm:$0xff]  }
  0x61   : > { %2984 = vmatpush3.bf16.msra.mxu1 %v3299_v27  ;;  %v3367_v27 = vld [vmem:[%s4284_s1 + $0x490] sm:$0xff]  }
  0x62   : > { %2985 = vmatprep.subr.bf16.mxu1 %v3302_v30  ;;  %v3370_v30 = vld [vmem:[%s4284_s1 + $0x4d8] sm:$0xff]  }
  0x63   : > { %2964 = vmatpush3.bf16.msra.mxu0 %v3301_v29  ;;  %v3369_v29 = vld [vmem:[%s4284_s1 + $0x418] sm:$0xff]  }
  0x64   : > { %2965 = vmatprep.subr.bf16.mxu0 %v3304_v32  ;;  %v3372_v32 = vld [vmem:[%s4284_s1 + $0x460] sm:$0xff]  }
  0x65   : > { %2986 = vmatpush3.bf16.msra.mxu1 %v3303_v31  ;;  %v3371_v31 = vld [vmem:[%s4284_s1 + $0x498] sm:$0xff]  }
  0x66   : > { %2987 = vmatprep.subr.bf16.mxu1 %v3306_v34  ;;  %v3374_v34 = vld [vmem:[%s4284_s1 + $0x4e0] sm:$0xff]  }
  0x67   : > { %2966 = vmatpush3.bf16.msra.mxu0 %v3305_v33  ;;  %v3373_v33 = vld [vmem:[%s4284_s1 + $0x420] sm:$0xff]  }
  0x68   : > { %2967 = vmatprep.subr.bf16.mxu0 %v3308_v36  ;;  %v3376_v36 = vld [vmem:[%s4284_s1 + $0x468] sm:$0xff]  }
  0x69   : > { %2988 = vmatpush3.bf16.msra.mxu1 %v3307_v35  ;;  %v3375_v35 = vld [vmem:[%s4284_s1 + $0x4a0] sm:$0xff]  }
  0x6a   : > { %2989 = vmatprep.subr.bf16.mxu1 %v3310_v38  ;;  %v3378_v38 = vld [vmem:[%s4284_s1 + $0x4e8] sm:$0xff]  }
  0x6b   : > { %2968 = vmatpush3.bf16.msra.mxu0 %v3309_v37  ;;  %v3377_v37 = vld [vmem:[%s4284_s1 + $0x428] sm:$0xff]  }
  0x6c   : > { %2997 = vmatprep.subr.bf16.mxu0 %v3315_v42  ;;  %v3382_v42 = vld [vmem:[%s4284_s1 + $0x4f0] sm:$0xff]  }
  0x6d   : > { %2990 = vmatpush3.bf16.msra.mxu1 %v3314_v41  ;;  %v3381_v41 = vld [vmem:[%s4284_s1 + $0x430] sm:$0xff]  }
  0x6e   : > { %2179 = vmatmul.mubr.bf16.vlgmr.msra.gmra.mrb[8].mxu0 %v3311_v39  ;;  %3019 = vmatprep.subr.bf16.mxu1 %v3320_v46  ;;  %v3379_v39 = vld [vmem:[%s4284_s1 + $0x4a8] sm:$0xff]   ;;  %v3386_v46 = vld [vmem:[%s4284_s1 + $0x4f8] sm:$0xff]  }
  0x6f   : > { %2998 = vmatpush3.bf16.msra.mxu0 %v3319_v45  ;;  %2260 = vmatprep.mubr.bf16.mxu0 %v3351_v12  ;;  %v3385_v45 = vld [vmem:[%s4284_s1 + $0x438] sm:$0xff]   ;;  %v3418_v12 = vld [vmem:[%s4284_s1 + $0x570] sm:$0xff]  }
  0x70   : > { %2220 = vmatmul.mubr.bf16.vlgmr.msra.gmra.mrb[8].mxu1 %v3316_v43  ;;  %2999 = vmatprep.subr.bf16.mxu0 %v3322_v48  ;;  %v3383_v43 = vld [vmem:[%s4284_s1 + $0x4b0] sm:$0xff]   ;;  %v3389_v48 = vld [vmem:[%s3678_s25 + $0x44] ss:$100 sps:$4 sm:$0x7f]  }
  0x71   : > { %3020 = vmatpush3.bf16.msra.mxu1 %v3321_v47  ;;  %2301 = vmatprep.mubr.bf16.mxu1 %v3356_v16  ;;  %v3387_v47 = vld [vmem:[%s3678_s25 + $0x40] ss:$100 sps:$4 sm:$0x7f]   ;;  %v3422_v16 = vld [vmem:[%s4284_s1 + $0x578] sm:$0xff]  }
  0x72   : > { %3021 = vmatprep.subr.bf16.mxu1 %v3324_v50  ;;  %v3391_v50 = vld [vmem:[%s4284_s1 + $0x540] sm:$0xff]  }
  0x73   : > { %3000 = vmatpush3.bf16.msra.mxu0 %v3323_v49  ;;  %v3390_v49 = vld [vmem:[%s4284_s1 + $0x4b8] sm:$0xff]  }
  0x74   : > { %3001 = vmatprep.subr.bf16.mxu0 %v3326_v52  ;;  %v3394_v52 = vld [vmem:[%s3678_s25 + $0x4c] ss:$100 sps:$4 sm:$0x7f]  }
  0x75   : > { %3022 = vmatpush3.bf16.msra.mxu1 %v3325_v51  ;;  %v3392_v51 = vld [vmem:[%s3678_s25 + $0x48] ss:$100 sps:$4 sm:$0x7f]  }
  0x76   : > { %3023 = vmatprep.subr.bf16.mxu1 %v3328_v54  ;;  %v3396_v54 = vld [vmem:[%s4284_s1 + $0x5c0] sm:$0xff]  }
  0x77   : > { %3002 = vmatpush3.bf16.msra.mxu0 %v3327_v53  ;;  %v3395_v53 = vld [vmem:[%s4284_s1 + $0x500] sm:$0xff]  }
  0x78   : > { %3003 = vmatprep.subr.bf16.mxu0 %v3330_v56  ;;  %v3398_v56 = vld [vmem:[%s4284_s1 + $0x548] sm:$0xff]  }
  0x79   : > { %3024 = vmatpush3.bf16.msra.mxu1 %v3329_v55  ;;  %v3397_v55 = vld [vmem:[%s4284_s1 + $0x580] sm:$0xff]  }
  0x7a   : > { %3025 = vmatprep.subr.bf16.mxu1 %v3332_v58  ;;  %v3400_v58 = vld [vmem:[%s4284_s1 + $0x5c8] sm:$0xff]  }
  0x7b   : > { %3004 = vmatpush3.bf16.msra.mxu0 %v3331_v57  ;;  %v3399_v57 = vld [vmem:[%s4284_s1 + $0x508] sm:$0xff]  }
  0x7c   : > { %3005 = vmatprep.subr.bf16.mxu0 %v3334_v60  ;;  %v3402_v60 = vld [vmem:[%s4284_s1 + $0x550] sm:$0xff]  }
  0x7d   : > { %3026 = vmatpush3.bf16.msra.mxu1 %v3333_v59  ;;  %v3401_v59 = vld [vmem:[%s4284_s1 + $0x588] sm:$0xff]  }
  0x7e   : > { %3027 = vmatprep.subr.bf16.mxu1 %v3336_v62  ;;  %v3404_v62 = vld [vmem:[%s4284_s1 + $0x5d0] sm:$0xff]  }
  0x7f   : > { %3006 = vmatpush3.bf16.msra.mxu0 %v3335_v61  ;;  %v3403_v61 = vld [vmem:[%s4284_s1 + $0x510] sm:$0xff]  }
  0x80   : > { %3007 = vmatprep.subr.bf16.mxu0 %v3338_v0  ;;  %v3406_v0 = vld [vmem:[%s4284_s1 + $0x558] sm:$0xff]  }
  0x81   : > { %3028 = vmatpush3.bf16.msra.mxu1 %v3337_v63  ;;  %v3405_v63 = vld [vmem:[%s4284_s1 + $0x590] sm:$0xff]  }
  0x82   : > { %3029 = vmatprep.subr.bf16.mxu1 %v3340_v2  ;;  %v3408_v2 = vld [vmem:[%s4284_s1 + $0x5d8] sm:$0xff]  }
  0x83   : > { %3008 = vmatpush3.bf16.msra.mxu0 %v3339_v1  ;;  %v3407_v1 = vld [vmem:[%s4284_s1 + $0x518] sm:$0xff]  }
  0x84   : > { %3009 = vmatprep.subr.bf16.mxu0 %v3342_v4  ;;  %v3410_v4 = vld [vmem:[%s4284_s1 + $0x560] sm:$0xff]  }
  0x85   : > { %3030 = vmatpush3.bf16.msra.mxu1 %v3341_v3  ;;  %v3409_v3 = vld [vmem:[%s4284_s1 + $0x598] sm:$0xff]  }
  0x86   : > { %3031 = vmatprep.subr.bf16.mxu1 %v3344_v6  ;;  %v3412_v6 = vld [vmem:[%s4284_s1 + $0x5e0] sm:$0xff]  }
  0x87   : > { %3010 = vmatpush3.bf16.msra.mxu0 %v3343_v5  ;;  %v3411_v5 = vld [vmem:[%s4284_s1 + $0x520] sm:$0xff]  }
  0x88   : > { %3011 = vmatprep.subr.bf16.mxu0 %v3346_v8  ;;  %v3414_v8 = vld [vmem:[%s4284_s1 + $0x568] sm:$0xff]  }
  0x89   : > { %3032 = vmatpush3.bf16.msra.mxu1 %v3345_v7  ;;  %v3413_v7 = vld [vmem:[%s4284_s1 + $0x5a0] sm:$0xff]  }
  0x8a   : > { %3033 = vmatprep.subr.bf16.mxu1 %v3348_v10  ;;  %v3416_v10 = vld [vmem:[%s4284_s1 + $0x5e8] sm:$0xff]  }
  0x8b   : > { %3012 = vmatpush3.bf16.msra.mxu0 %v3347_v9  ;;  %v3415_v9 = vld [vmem:[%s4284_s1 + $0x528] sm:$0xff]  }
  0x8c   : > { %3041 = vmatprep.subr.bf16.mxu0 %v3353_v14  ;;  %v3420_v14 = vld [vmem:[%s4284_s1 + $0x5f0] sm:$0xff]  }
  0x8d   : > { %3034 = vmatpush3.bf16.msra.mxu1 %v3352_v13  ;;  %v3419_v13 = vld [vmem:[%s4284_s1 + $0x530] sm:$0xff]  }
  0x8e   : > { %2261 = vmatmul.mubr.bf16.vlgmr.msra.gmra.mrb[12].mxu0 %v3349_v11  ;;  %3063 = vmatprep.subr.bf16.mxu1 %v3358_v18  ;;  %v3417_v11 = vld [vmem:[%s4284_s1 + $0x5a8] sm:$0xff]   ;;  %v3424_v18 = vld [vmem:[%s4284_s1 + $0x5f8] sm:$0xff]  }
  0x8f   : > { %3042 = vmatpush3.bf16.msra.mxu0 %v3357_v17  ;;  %2342 = vmatprep.mubr.bf16.mxu0 %v3389_v48  ;;  %v3423_v17 = vld [vmem:[%s4284_s1 + $0x538] sm:$0xff]  }
  0x90   : > { %2302 = vmatmul.mubr.bf16.vlgmr.msra.gmra.mrb[12].mxu1 %v3354_v15  ;;  %3043 = vmatprep.subr.bf16.mxu0 %v3360_v20  ;;  %v3421_v15 = vld [vmem:[%s4284_s1 + $0x5b0] sm:$0xff]  }
  0x91   : > { %3064 = vmatpush3.bf16.msra.mxu1 %v3359_v19  ;;  %2383 = vmatprep.mubr.bf16.mxu1 %v3394_v52  ;;  %v3425_v19 = vld [vmem:[%s3678_s25 + $0x50] ss:$100 sps:$4 sm:$0x7f]  }
  0x92   : > { %3065 = vmatprep.subr.bf16.mxu1 %v3362_v22  ;;  %v3427_v20 = vld [vmem:[%s3678_s25 + $0x54] ss:$100 sps:$4 sm:$0x7f]   ;;  %v3505_v22 = vmov 0.0  }
  0x93   : > { %3044 = vmatpush3.bf16.msra.mxu0 %v3361_v21  ;;  %v3428_v21 = vld [vmem:[%s4284_s1 + $0x5b8] sm:$0xff]  }
  0x94   : > { %3045 = vmatprep.subr.bf16.mxu0 %v3364_v24  ;;  %v3431_v24 = vld [vmem:[%s3678_s25 + $0x5c] ss:$100 sps:$4 sm:$0x7f]  }
  0x95   : > { %3066 = vmatpush3.bf16.msra.mxu1 %v3363_v23  ;;  %v3429_v23 = vld [vmem:[%s3678_s25 + $0x58] ss:$100 sps:$4 sm:$0x7f]  }
  0x96   : > { %3067 = vmatprep.subr.bf16.mxu1 %v3366_v26  ;;  %v3433_v26 = vld [vmem:[%s4284_s1 + $0x608] sm:$0xff]  }
  0x97   : > { %3046 = vmatpush3.bf16.msra.mxu0 %v3365_v25  ;;  %v3432_v25 = vld [vmem:[%s4284_s1 + $0x600] sm:$0xff]  }
  0x98   : > { %3047 = vmatprep.subr.bf16.mxu0 %v3368_v28  ;;  %v3435_v28 = vld [vmem:[%s4284_s1 + $0x618] sm:$0xff]  }
  0x99   : > { %3068 = vmatpush3.bf16.msra.mxu1 %v3367_v27  ;;  %v3434_v27 = vld [vmem:[%s4284_s1 + $0x610] sm:$0xff]  }
  0x9a   : > { %3069 = vmatprep.subr.bf16.mxu1 %v3370_v30  ;;  %v3437_v30 = vld [vmem:[%s4284_s1 + $0x628] sm:$0xff]  }
  0x9b   : > { %3048 = vmatpush3.bf16.msra.mxu0 %v3369_v29  ;;  %v3436_v29 = vld [vmem:[%s4284_s1 + $0x620] sm:$0xff]  }
  0x9c   : > { %3049 = vmatprep.subr.bf16.mxu0 %v3372_v32  ;;  %v3439_v32 = vld [vmem:[%s4284_s1 + $0x638] sm:$0xff]  }
  0x9d   : > { %3070 = vmatpush3.bf16.msra.mxu1 %v3371_v31  ;;  %v3438_v31 = vld [vmem:[%s4284_s1 + $0x630] sm:$0xff]  }
  0x9e   : > { %3071 = vmatprep.subr.bf16.mxu1 %v3374_v34 }
  0x9f   : > { %3050 = vmatpush3.bf16.msra.mxu0 %v3373_v33  ;;  %v3440_v33 = vld [vmem:[%s3678_s25 + $0x60] ss:$100 sps:$4 sm:$0x7f]  }
  0xa0   : > { %3051 = vmatprep.subr.bf16.mxu0 %v3376_v36 }
  0xa1   : > { %3072 = vmatpush3.bf16.msra.mxu1 %v3375_v35  ;;  %v2634_v35 = vld [vmem:[%s4285_s2] ss:$0 sm:$0xff] }
  0xa2   : > { %3073 = vmatprep.subr.bf16.mxu1 %v3378_v38 }
  0xa3   : > { %3052 = vmatpush3.bf16.msra.mxu0 %v3377_v37 }
  0xa4   : > { %3053 = vmatprep.subr.bf16.mxu0 %v3380_v40 }
  0xa5   : > { %3074 = vmatpush3.bf16.msra.mxu1 %v3379_v39 }
  0xa6   : > { %3075 = vmatprep.subr.bf16.mxu1 %v3382_v42 }
  0xa7   : > { %3054 = vmatpush3.bf16.msra.mxu0 %v3381_v41 }
  0xa8   : > { %3055 = vmatprep.subr.bf16.mxu0 %v3384_v44 }
  0xa9   : > { %3076 = vmatpush3.bf16.msra.mxu1 %v3383_v43 }
  0xaa   : > { %3077 = vmatprep.subr.bf16.mxu1 %v3386_v46 }
  0xab   : > { %3056 = vmatpush3.bf16.msra.mxu0 %v3385_v45 }
  0xac   : > { %3085 = vmatprep.subr.bf16.mxu0 %v3391_v50 }
  0xad   : > { %3078 = vmatpush3.bf16.msra.mxu1 %v3390_v49 }
  0xae   : > { %2343 = vmatmul.mubr.bf16.vlgmr.msra.gmra.mrb[16].mxu0 %v3387_v47  ;;  %3107 = vmatprep.subr.bf16.mxu1 %v3396_v54 }
  0xaf   : > { %3086 = vmatpush3.bf16.msra.mxu0 %v3395_v53  ;;  %2424 = vmatprep.mubr.bf16.mxu0 %v3427_v20 }
  0xb0   : > { %2384 = vmatmul.mubr.bf16.vlgmr.msra.gmra.mrb[16].mxu1 %v3392_v51  ;;  %3087 = vmatprep.subr.bf16.mxu0 %v3398_v56 }
  0xb1   : > { %3108 = vmatpush3.bf16.msra.mxu1 %v3397_v55  ;;  %2465 = vmatprep.mubr.bf16.mxu1 %v3431_v24 }
  0xb2   : > { %3109 = vmatprep.subr.bf16.mxu1 %v3400_v58 }
  0xb3   : > { %3088 = vmatpush3.bf16.msra.mxu0 %v3399_v57 }
  0xb4   : > { %3089 = vmatprep.subr.bf16.mxu0 %v3402_v60 }
  0xb5   : > { %3110 = vmatpush3.bf16.msra.mxu1 %v3401_v59 }
  0xb6   : > { %3111 = vmatprep.subr.bf16.mxu1 %v3404_v62 }
  0xb7   : > { %3090 = vmatpush3.bf16.msra.mxu0 %v3403_v61 }
  0xb8   : > { %3091 = vmatprep.subr.bf16.mxu0 %v3406_v0 }
  0xb9   : > { %3112 = vmatpush3.bf16.msra.mxu1 %v3405_v63 }
  0xba   : > { %3113 = vmatprep.subr.bf16.mxu1 %v3408_v2 }
  0xbb   : > { %3092 = vmatpush3.bf16.msra.mxu0 %v3407_v1 }
  0xbc   : > { %3093 = vmatprep.subr.bf16.mxu0 %v3410_v4 }
  0xbd   : > { %3114 = vmatpush3.bf16.msra.mxu1 %v3409_v3 }
  0xbe   : > { %3115 = vmatprep.subr.bf16.mxu1 %v3412_v6 }
  0xbf   : > { %3094 = vmatpush3.bf16.msra.mxu0 %v3411_v5 }
  0xc0   : > { %3095 = vmatprep.subr.bf16.mxu0 %v3414_v8 }
  0xc1   : > { %3116 = vmatpush3.bf16.msra.mxu1 %v3413_v7 }
  0xc2   : > { %3117 = vmatprep.subr.bf16.mxu1 %v3416_v10 }
  0xc3   : > { %3096 = vmatpush3.bf16.msra.mxu0 %v3415_v9 }
  0xc4   : > { %3097 = vmatprep.subr.bf16.mxu0 %v3418_v12 }
  0xc5   : > { %3118 = vmatpush3.bf16.msra.mxu1 %v3417_v11 }
  0xc6   : > { %3119 = vmatprep.subr.bf16.mxu1 %v3420_v14 }
  0xc7   : > { %3098 = vmatpush3.bf16.msra.mxu0 %v3419_v13 }
  0xc8   : > { %3099 = vmatprep.subr.bf16.mxu0 %v3422_v16 }
  0xc9   : > { %3120 = vmatpush3.bf16.msra.mxu1 %v3421_v15 }
  0xca   : > { %3121 = vmatprep.subr.bf16.mxu1 %v3424_v18 }
  0xcb   : > { %3100 = vmatpush3.bf16.msra.mxu0 %v3423_v17 }
  0xcc   : > { %3138 = vmatprep.subr.bf16.mxu0 %v3505_v22 }
  0xcd   : > { %3122 = vmatpush3.bf16.msra.mxu1 %v3428_v21 }
  0xce   : > { %2425 = vmatmul.mubr.bf16.vlgmr.msra.gmra.mrb[20].mxu0 %v3425_v19 }
  0xcf   : > { %3154 = vmatprep.mubr.msk.bf16.mxu0 %vm3506_vm0, %v3505_v22  ;;  %3139 = vmatpush3.bf16.msra.mxu0 %v3432_v25 }
  0xd0   : > { %2466 = vmatmul.mubr.bf16.vlgmr.msra.gmra.mrb[20].mxu1 %v3429_v23  ;;  %3140 = vmatprep.subr.bf16.mxu0 %v3505_v22 }
  0xd3   : > { %3141 = vmatpush3.bf16.msra.mxu0 %v3433_v26 }
  0xd4   : > { %3142 = vmatprep.subr.bf16.mxu0 %v3505_v22 }
  0xd7   : > { %3143 = vmatpush3.bf16.msra.mxu0 %v3434_v27 }
  0xd8   : > { %3144 = vmatprep.subr.bf16.mxu0 %v3505_v22 }
  0xdb   : > { %3145 = vmatpush3.bf16.msra.mxu0 %v3435_v28 }
  0xdc   : > { %3146 = vmatprep.subr.bf16.mxu0 %v3505_v22 }
  0xdf   : > { %3147 = vmatpush3.bf16.msra.mxu0 %v3436_v29 }
  0xe0   : > { %3148 = vmatprep.subr.bf16.mxu0 %v3505_v22 }
  0xe3   : > { %3149 = vmatpush3.bf16.msra.mxu0 %v3437_v30 }
  0xe4   : > { %3150 = vmatprep.subr.bf16.mxu0 %v3505_v22 }
  0xe7   : > { %3151 = vmatpush3.bf16.msra.mxu0 %v3438_v31 }
  0xe8   : > { %3152 = vmatprep.subr.bf16.mxu0 %v3505_v22 }
  0xeb   : > { %3153 = vmatpush3.bf16.msra.mxu0 %v3439_v32 }
  0xee   : > { %3155 = vmatmul.mubr.bf16.vlgmr.msra.gmra.mrb[24].mxu0 %v3440_v33 }
 0x101   : > { %v2881_v34 = vpop.f32.mrb[0].mxu0 }
 0x102   : > { %v2882_v36 = vpop.f32.mrb[1].mxu0 }
 0x103   : > { %v2883_v37 = vadd.f32 %v2882_v36, %v2881_v34  ;;  %v2884_v38 = vpop.f32.mrb[2].mxu0  ;;  %v2903_v39 = vpop.f32.mrb[0].mxu1 }
 0x104   : > { %v2885_v40 = vpop.f32.mrb[3].mxu0  ;;  %v2904_v43 = vpop.f32.mrb[1].mxu1 }
 0x105   : > { %v2017_v41 = vadd.f32 %v2883_v37, %v2634_v35  ;;  %v2886_v42 = vadd.f32 %v2885_v40, %v2884_v38  ;;  %v2905_v44 = vadd.f32 %v2904_v43, %v2903_v39  ;;  %v2906_v45 = vpop.f32.mrb[2].mxu1 }
 0x106   : > { %v2907_v47 = vpop.f32.mrb[3].mxu1 }
 0x107   : > { %v2020_v46 = vadd.f32 %v2886_v42, %v2634_v35  ;;  %v2058_v48 = vadd.f32 %v2905_v44, %v2017_v41  ;;  %v2908_v49 = vadd.f32 %v2907_v47, %v2906_v45 }
 0x109   : > { %v2061_v50 = vadd.f32 %v2908_v49, %v2020_v46 }
 0x121   : > { %v2925_v51 = vpop.f32.mrb[4].mxu0 }
 0x122   : > { %v2926_v52 = vpop.f32.mrb[5].mxu0 }
 0x123   : > { %v2927_v53 = vadd.f32 %v2926_v52, %v2925_v51  ;;  %v2928_v54 = vpop.f32.mrb[6].mxu0  ;;  %v2947_v55 = vpop.f32.mrb[4].mxu1 }
 0x124   : > { %v2929_v56 = vpop.f32.mrb[7].mxu0  ;;  %v2948_v59 = vpop.f32.mrb[5].mxu1 }
 0x125   : > { %v2099_v57 = vadd.f32 %v2927_v53, %v2058_v48  ;;  %v2930_v58 = vadd.f32 %v2929_v56, %v2928_v54  ;;  %v2949_v60 = vadd.f32 %v2948_v59, %v2947_v55  ;;  %v2950_v61 = vpop.f32.mrb[6].mxu1 }
 0x126   : > { %v2951_v63 = vpop.f32.mrb[7].mxu1 }
 0x127   : > { %v2102_v62 = vadd.f32 %v2930_v58, %v2061_v50  ;;  %v2140_v0 = vadd.f32 %v2949_v60, %v2099_v57  ;;  %v2952_v1 = vadd.f32 %v2951_v63, %v2950_v61 }
 0x129   : > { %v2143_v2 = vadd.f32 %v2952_v1, %v2102_v62 }
 0x141   : > { %v2969_v3 = vpop.f32.mrb[8].mxu0 }
 0x142   : > { %v2970_v4 = vpop.f32.mrb[9].mxu0 }
 0x143   : > { %v2971_v5 = vadd.f32 %v2970_v4, %v2969_v3  ;;  %v2972_v6 = vpop.f32.mrb[10].mxu0  ;;  %v2991_v7 = vpop.f32.mrb[8].mxu1 }
 0x144   : > { %v2973_v8 = vpop.f32.mrb[11].mxu0  ;;  %v2992_v11 = vpop.f32.mrb[9].mxu1 }
 0x145   : > { %v2181_v9 = vadd.f32 %v2971_v5, %v2140_v0  ;;  %v2974_v10 = vadd.f32 %v2973_v8, %v2972_v6  ;;  %v2993_v12 = vadd.f32 %v2992_v11, %v2991_v7  ;;  %v2994_v13 = vpop.f32.mrb[10].mxu1  ;;  %v2521_v11 = vld [vmem:[%s4286_s3 + $0x8] sm:$0x3f] }
 0x146   : > { %v2995_v15 = vpop.f32.mrb[11].mxu1 }
 0x147   : > { %v2184_v14 = vadd.f32 %v2974_v10, %v2143_v2  ;;  %v2222_v16 = vadd.f32 %v2993_v12, %v2181_v9  ;;  %v2996_v17 = vadd.f32 %v2995_v15, %v2994_v13  ;;  %v2861_v10 = vld [vmem:[%s4286_s3 + $0x18] sm:$0x3f]  ;;  %v2860_v12 = vld [vmem:[%s4286_s3 + $0x10] sm:$0xff] }
 0x149   : > { %v2225_v18 = vadd.f32 %v2996_v17, %v2184_v14  ;;  %v2520_v14 = vld [vmem:[%s4286_s3] sm:$0xff] }
 0x161   : > { %v3013_v19 = vpop.f32.mrb[12].mxu0 }
 0x162   : > { %v3014_v20 = vpop.f32.mrb[13].mxu0 }
 0x163   : > { %v3015_v21 = vadd.f32 %v3014_v20, %v3013_v19  ;;  %v3016_v22 = vpop.f32.mrb[14].mxu0  ;;  %v3035_v23 = vpop.f32.mrb[12].mxu1 }
 0x164   : > { %v3017_v24 = vpop.f32.mrb[15].mxu0  ;;  %v3036_v27 = vpop.f32.mrb[13].mxu1 }
 0x165   : > { %v2263_v25 = vadd.f32 %v3015_v21, %v2222_v16  ;;  %v3018_v26 = vadd.f32 %v3017_v24, %v3016_v22  ;;  %v3037_v28 = vadd.f32 %v3036_v27, %v3035_v23  ;;  %v3038_v29 = vpop.f32.mrb[14].mxu1 }
 0x166   : > { %v3039_v31 = vpop.f32.mrb[15].mxu1 }
 0x167   : > { %v2266_v30 = vadd.f32 %v3018_v26, %v2225_v18  ;;  %v2304_v32 = vadd.f32 %v3037_v28, %v2263_v25  ;;  %v3040_v33 = vadd.f32 %v3039_v31, %v3038_v29 }
 0x169   : > { %v2307_v34 = vadd.f32 %v3040_v33, %v2266_v30 }
 0x181   : > { %v3057_v35 = vpop.f32.mrb[16].mxu0 }
 0x182   : > { %v3058_v36 = vpop.f32.mrb[17].mxu0 }
 0x183   : > { %v3059_v37 = vadd.f32 %v3058_v36, %v3057_v35  ;;  %v3060_v38 = vpop.f32.mrb[18].mxu0  ;;  %v3079_v39 = vpop.f32.mrb[16].mxu1 }
 0x184   : > { %v3061_v40 = vpop.f32.mrb[19].mxu0  ;;  %v3080_v43 = vpop.f32.mrb[17].mxu1 }
 0x185   : > { %v2345_v41 = vadd.f32 %v3059_v37, %v2304_v32  ;;  %v3062_v42 = vadd.f32 %v3061_v40, %v3060_v38  ;;  %v3081_v44 = vadd.f32 %v3080_v43, %v3079_v39  ;;  %v3082_v45 = vpop.f32.mrb[18].mxu1  ;;  %v2517_v37 = vlaneseq  ;;  %v2519_v40 = vld [vmem:[%s4287_s4] sm:$0x1] }
 0x186   : > { %v3083_v47 = vpop.f32.mrb[19].mxu1 }
 0x187   : > { %v2348_v46 = vadd.f32 %v3062_v42, %v2307_v34  ;;  %v2386_v48 = vadd.f32 %v3081_v44, %v2345_v41  ;;  %v3084_v49 = vadd.f32 %v3083_v47, %v3082_v45  ;;  %v2518_v38 = vand.u32 127, %v2517_v37 }
 0x189   : > { %v2389_v50 = vadd.f32 %v3084_v49, %v2348_v46  ;;  %vm2536_vm2 = vcmp.eq.s32.totalorder %v2518_v38, 0  ;;  %vm2556_vm3 = vcmp.eq.s32.totalorder %v2518_v38, 1 }
 0x1a1   : > { %v3101_v51 = vpop.f32.mrb[20].mxu0 }
 0x1a2   : > { %v3102_v52 = vpop.f32.mrb[21].mxu0 }
 0x1a3   : > { %v3103_v53 = vadd.f32 %v3102_v52, %v3101_v51  ;;  %v3104_v54 = vpop.f32.mrb[22].mxu0  ;;  %v3123_v55 = vpop.f32.mrb[20].mxu1 }
 0x1a4   : > { %v3105_v56 = vpop.f32.mrb[23].mxu0  ;;  %v3124_v57 = vpop.f32.mrb[21].mxu1 }
 0x1a5   : > { %v2427_v58 = vadd.f32 %v3103_v53, %v2386_v48  ;;  %v3106_v59 = vadd.f32 %v3105_v56, %v3104_v54  ;;  %v3125_v60 = vadd.f32 %v3124_v57, %v3123_v55  ;;  %v3126_v61 = vpop.f32.mrb[22].mxu1 }
 0x1a6   : > { %v3127_v62 = vpop.f32.mrb[23].mxu1 }
 0x1a7   : > { %v2430_v63 = vadd.f32 %v3106_v59, %v2389_v50  ;;  %v3128_v0 = vadd.f32 %v3127_v62, %v3126_v61  ;;  %v2468_v1 = vadd.f32 %v3125_v60, %v2427_v58 }
 0x1a9   : > { %v2471_v2 = vadd.f32 %v3128_v0, %v2430_v63 }
 0x1c1   : > { %v2508_v3 = vpop.f32.mrb[24].mxu0 }
 0x1c2   : > { %v2509_v4 = vadd.f32 %v2508_v3, %v2468_v1  ;;  %v3156_v5 = vpop.f32.mrb[25].mxu0 }
 0x1c3   : > { %v2511_v6 = vpop.f32.mrb[26].mxu0 }
 0x1c4   : > { %v2512_v7 = vadd.f32 %v2511_v6, %v2471_v2  ;;  %v3157_v8 = vpop.f32.mrb[27].mxu0  ;;  %v2515_v9 = vmax.f32 %v2509_v4, 0.0 }
 0x1c6   : > { %v2516_v13 = vmax.f32 %v2512_v7, 0.0  ;;  %v2543_v17 = vmul.f32 %v2860_v12, %v2515_v9  ;;  %v2522_v18 = vmul.f32 %v2520_v14, %v2515_v9 }
 0x1c8   : > { %v2544_v15 = vmul.f32 %v2861_v10, %v2516_v13  ;;  %v2523_v16 = vmul.f32 %v2521_v11, %v2516_v13 }
 0x1ca   : > { %v2525_v19 = vsel %vm2524_vm1, %v2523_v16, 0.0  ;;  %v2545_v20 = vsel %vm2524_vm1, %v2544_v15, 0.0 }
 0x1cb   : > { %v2526_v21 = vadd.f32 %v2525_v19, %v2522_v18  ;;  %v2546_v22 = vadd.f32 %v2545_v20, %v2543_v17 }
 0x1cd   : > { %2527 = vadd.xlane.f32.xlu0 %v2526_v21 }
 0x1d1   : > { %2547 = vadd.xlane.f32.xlu0 %v2546_v22 }
 0x25a   : > { %v2528_v23 = vpop.xlane.xlu0 %2527 }
 0x25b   : > { %v2529_v24 = vrot.slane %v2528_v23, 4 }
 0x25d   : > { %v2530_v25 = vadd.f32 %v2529_v24, %v2528_v23 }
 0x25e   : > { %v2548_v26 = vpop.xlane.xlu0 %2547 }
 0x25f   : > { %v2531_v27 = vrot.slane %v2530_v25, 2  ;;  %v2549_v28 = vrot.slane %v2548_v26, 4 }
 0x261   : > { %v2550_v29 = vadd.f32 %v2549_v28, %v2548_v26  ;;  %v2532_v30 = vadd.f32 %v2531_v27, %v2530_v25 }
 0x263   : > { %v2551_v31 = vrot.slane %v2550_v29, 2  ;;  %v2533_v32 = vrot.slane %v2532_v30, 1 }
 0x265   : > { %v2552_v33 = vadd.f32 %v2551_v31, %v2550_v29  ;;  %v2534_v34 = vadd.f32 %v2533_v32, %v2532_v30 }
 0x267   : > { %3159 = vpush %v2534_v34  ;;  %v2553_v35 = vrot.slane %v2552_v33, 1 }
 0x269   : > { %v2554_v36 = vadd.f32 %v2553_v35, %v2552_v33 }
 0x26b   : > { %3161 = vpush %v2554_v36 }
 0x298   : > { %s3160_s11 = spop %3159 }
 0x299   : > { %v2537_v39 = vstv %s3160_s11 }
 0x29a   : > { %v2538_v41 = vsel %vm2536_vm2, %v2537_v39, 0.0 }
 0x29b   : > { %v2539_v42 = vadd.f32 %v2538_v41, %v2519_v40 }
 0x29c   : > { %s3162_s16 = spop %3161 }
 0x29d   : > { %v2557_v43 = vstv %s3162_s16 }
 0x29e   : > { %v2558_v44 = vsel %vm2556_vm3, %v2557_v43, 0.0 }
 0x29f   : > { %v2559_v45 = vadd.f32 %v2558_v44, %v2539_v42 }
 0x2a1   : > { %2560 = vst [vmem:[%s216_s17] sm:$0x1] %v2559_v45 }
 0x2a2   : > { %3454 = shalt.err (!%p3451_p3)
}
 0x2a3   : > { %s3455_s9 = scalar_lea.hbm %s4241_s26, 16  ;;  %s3459_s12 = scalar_lea.hbm %s4288_s5, 32 }
 0x2a4   : > { %p3456_p4 = scmp.ne.s32.totalorder %s4241_s26, %s3455_s9  ;;  %p3460_p9 = scmp.lt.u32.totalorder %s4241_s26, %s4288_s5 }
 0x2a5   : > { %p3461_p10 = scmp.lt.u32.totalorder %s3459_s12, %s3455_s9  ;;  %p3463_p12 = scmp.lt.u32.totalorder %s3455_s9, %s4241_s26 }
 0x2a6   : > { %p3457_p7 = pnand %p3456_p4, %p3576_p5 }
 0x2a7   : > { %p3462_p11 = por %p3461_p10, %p3460_p9 }
 0x2a8   : > { %p3458_p8 = pneg %p3457_p7 }
 0x2a9   : > { %p3464_p13 = por %p3463_p12, %p3462_p11 }
 0x2ab   : > { %p3465_p0 = pnand %p3464_p13, %p3458_p8 }
 0x2ad   : > { %3468 = shalt.err (!%p3465_p0)
}
 0x2ae   : > { %3163 = dma.vmem_to_hbm [thread:$0]  (%p3576_p5), %s4243_s15, 16, %s4241_s26, %s2562_s30  }
 0x2af PF: > { %p3169_p1 = scmp.ge.s32.totalorder %s3503_s21, 2  ;;  %s2586_s16 = sand.u32 1, %s3491_s18  }
 0x2b0   : > { %s2587_s17 = scalar_lea.sflag [#allocation3], %s2586_s16 }
 0x2b1   : > { %p3166_p2 = pnand %p3169_p1, %p3580_p6 }
 0x2b3   : > { %3486 = dma.done.wait (!%p3166_p2), %s2587_s17, 16  }
 0x2b4   : > { %3488 = vsyncadd (!%p3166_p2), %s2587_s17, 4294967280  ;;  %p15_p3 = scmp.ge.s32.totalorder %s3563_s24, 4   ;;  %s4291_s18 = smov %s3495_s19 }
 0x2b5   : > { %s4292_s19 = smov %s3499_s20  ;;  %s4293_s20 = smov %s3574_s27 }
 0x2b6   : > { %s4294_s21 = smov %s3563_s24  ;;  %17 = sbr.rel (!%p15_p3) target bundleno = 3 (0x3), region = 76 }
 0x2bd   :  { %2591 = vsyncpa [#allocation3], 1 }
 0x2be   :  { %2593 = vsyncpa [#allocation3 + $0x1], 1 }

</bundles_post_ra>
